<compile_context>
chip_gen: v6e
topology: v6e:2x2x1
jax: 0.10.0
libtpu: 0.0.40
codegen_flags: <defaults>
</compile_context>

<pallas_src>
import jax
import jax.numpy as jnp
from jax.experimental import pallas as pl
from jax.experimental.pallas import tpu as pltpu

_LANE = 128


def _pad_up(n, mult):
    return ((n + mult - 1) // mult) * mult


def _make_mlp_kernel(n_layers, k_in, kp0, tm):
    """Build the fused-MLP kernel for one (tm, :) batch tile.

    Kernel args:
      inputs : x_ref (tm, k_in) f32, bias_ref (8, 1024) f32,
               w_hbm_0..w_hbm_{L-1} (HBM refs, bf16, padded shapes)
      outputs: o_ref (tm, 128) f32
      scratch: xpad (tm, kp0) f32,
               w_vmem_0..w_vmem_{L-1} (VMEM, same shapes as weights),
               sems  DMA semaphores (L,)
    """

    def kernel(*refs):
        x_ref = refs[0]
        bias_ref = refs[1]
        w_hbm = refs[2:2 + n_layers]
        o_ref = refs[2 + n_layers]
        xpad = refs[3 + n_layers]
        w_vmem = refs[4 + n_layers:4 + 2 * n_layers]
        sems = refs[4 + 2 * n_layers]

        first_step = pl.program_id(0) == 0

        # Issue ALL weight DMAs up front (HBM -> per-layer VMEM scratch).
        # Each layer's matmul only waits on its own semaphore, so streaming
        # of later layers' weights overlaps earlier layers' compute.
        # Weights persist in scratch across grid steps (only fetched once).
        @pl.when(first_step)
        def _():
            for l in range(n_layers):
                pltpu.make_async_copy(w_hbm[l], w_vmem[l], sems.at[l]).start()

        # Zero-pad the (tm, k_in) input tile to the lane-aligned (tm, kp0)
        # contraction width in-kernel (masked lane store, no host-side pad).
        xpad[...] = jnp.zeros((tm, kp0), jnp.float32)
        xpad[:, 0:k_in] = x_ref[...]
        h = xpad[...]                                     # (tm, kp0) f32

        for l in range(n_layers):
            @pl.when(first_step)
            def _():
                pltpu.make_async_copy(w_hbm[l], w_vmem[l], sems.at[l]).wait()

            w = w_vmem[l][...]                            # (Kp, Np) bf16 (native MXU operand)
            np_l = w.shape[1]
            b = bias_ref[l:l + 1, 0:np_l]                 # (1, Np) f32
            acc = jnp.dot(h.astype(jnp.bfloat16), w,
                          preferred_element_type=jnp.float32)
            # f32 epilogue; ReLU on every layer (incl. the last) matches the
            # torch forward(), which applies relu(layer(x)) for all layers.
            h = jnp.maximum(acc + b, 0.0)

        o_ref[...] = h.astype(o_ref.dtype)                # lane-dense (tm, 128) store

    return kernel


def init_params(key, neurons):
    """Deterministic parameter init matching Regressor.__init__:
    init.eye_ on each (out, in) weight (stored here transposed as (in, out);
    the rectangular identity is its own transpose) and PyTorch's default
    uniform(-1/sqrt(fan_in), 1/sqrt(fan_in)) bias init."""
    params = []
    for i in range(len(neurons) - 1):
        fan_in, fan_out = neurons[i], neurons[i + 1]
        w = jnp.eye(fan_in, fan_out, dtype=jnp.float32)
        key, sub = jax.random.split(key)
        bound = 1.0 / float(fan_in) ** 0.5
        b = jax.random.uniform(sub, (fan_out,), jnp.float32, -bound, bound)
        params.append((w, b))
    return params


def pack_params(params, weight_dtype=jnp.bfloat16):
    """One-time static packing of parameters.

    Weights -> (Kp, Np) padded to 128-multiples in `weight_dtype` (bf16 halves
    the weight HBM stream, which dominates this kernel).  Biases -> a single
    coalesced (8, max_Np) f32 buffer (one DMA instead of 7 tiny ones).
    Padded rows/cols are zero, so padded activation lanes stay exactly zero
    through every layer.
    """
    weights = []
    max_np = 0
    for (w, _b) in params:
        K, N = w.shape
        Kp, Np = _pad_up(K, _LANE), _pad_up(N, _LANE)
        w_pad = jnp.zeros((Kp, Np), weight_dtype).at[:K, :N].set(
            w.astype(weight_dtype))
        weights.append(w_pad)
        max_np = max(max_np, Np)

    n_rows = _pad_up(len(params), 8)
    bias_pack = jnp.zeros((n_rows, max_np), jnp.float32)
    for l, (_w, b) in enumerate(params):
        bias_pack = bias_pack.at[l, :b.shape[0]].set(b)
    return weights, bias_pack


def regressor_forward(x, weights, bias_pack, *, out_dim=1, tm=128):
    """Fused forward pass: relu(linear(x)) for every layer, one pallas_call.

    x: (M, input_size) f32 -> (M, out_dim) f32.
    For large-M inference raise tm (256-512) to amortize per-grid-step
    overhead; keep 128 for tiny batches.
    """
    M, K = x.shape
    n_layers = len(weights)
    Kp0 = weights[0].shape[0]
    Np_last = weights[-1].shape[1]
    assert K <= Kp0

    # Row-pad only (no column pad); padded rows are sliced off at the end and
    # their compute is free on this weight-DMA-bound kernel.
    Mp = _pad_up(max(M, 1), tm)
    x_rows = x if Mp == M else jnp.zeros((Mp, K), jnp.float32).at[:M].set(x)
    num_tiles = Mp // tm

    in_specs = [
        pl.BlockSpec((tm, K), lambda i: (i, 0)),          # x batch tile
        pl.BlockSpec(bias_pack.shape, lambda i: (0, 0)),  # all biases, one DMA
    ]
    # Weights stay in HBM; the kernel streams them with manual async copies.
    in_specs += [pl.BlockSpec(memory_space=pl.ANY)] * n_layers

    scratch_shapes = (
        [pltpu.VMEM((tm, Kp0), jnp.float32)]                       # padded x tile
        + [pltpu.VMEM(w.shape, w.dtype) for w in weights]          # weight buffers
        + [pltpu.SemaphoreType.DMA((n_layers,))]                   # one sem per layer
    )

    out = pl.pallas_call(
        _make_mlp_kernel(n_layers, K, Kp0, tm),
        out_shape=jax.ShapeDtypeStruct((Mp, Np_last), jnp.float32),
        grid=(num_tiles,),
        in_specs=in_specs,
        out_specs=pl.BlockSpec((tm, Np_last), lambda i: (i, 0)),
        scratch_shapes=scratch_shapes,
        compiler_params=pltpu.CompilerParams(
            # Sequential batch tiles: the one-shot weight prefetch is keyed on
            # program_id==0 and the weight scratch persists across steps; this
            # also avoids doubled weight HBM traffic on v7x megacore for small
            # tile counts.
            dimension_semantics=("arbitrary",),
            # ~2.8 MB bf16 weight scratch + tiles fits easily; leave headroom
            # for larger tm.
            vmem_limit_bytes=32 * 1024 * 1024,
        ),
    )(x_rows, bias_pack, *weights)
    return out[:M, :out_dim]


def _ref_forward_mixed(x, weights, bias_pack, out_dim=1):
    """Pure-JAX reference using the exact same mixed-precision recipe
    (bf16 operands into the dot, f32 accumulation/epilogue, padded params)."""
    Kp0 = weights[0].shape[0]
    h = jnp.zeros((x.shape[0], Kp0), jnp.float32).at[:, :x.shape[1]].set(x)
    for l, w in enumerate(weights):
        b = bias_pack[l, :w.shape[1]]
        h = jnp.maximum(
            jnp.dot(h.astype(jnp.bfloat16), w,
                    preferred_element_type=jnp.float32) + b, 0.0)
    return h[:, :out_dim]


def _ref_forward_f32(x, params, out_dim=1):
    """Full-f32 reference with the original (unpadded, unquantized) params,
    to bound bf16 quantization drift vs. the f32 torch model."""
    h = x
    for (w, b) in params:
        h = jnp.maximum(h @ w + b, 0.0)
    return h[:, :out_dim]


if __name__ == "__main__":
    # Preprocessed housing features: 8 numeric + 5 one-hot ocean_proximity = 13 cols.
    batch, input_size = 8, 13
    neurons = [input_size, 256, 512, 1024, 512, 256, 128, 1]

    key = jax.random.PRNGKey(0)
    key, xkey = jax.random.split(key)
    # MinMax-scaled inputs live in [0, 1].
    x = jax.random.uniform(xkey, (batch, input_size), jnp.float32)

    params = init_params(key, neurons)
    weights, bias_pack = pack_params(params)   # static, done once

    out = regressor_forward(x, weights, bias_pack, out_dim=neurons[-1])
    out = jax.block_until_ready(out)
    assert out.shape == (batch, 1), out.shape

    # Apples-to-apples check (same mixed-precision recipe as the kernel).
    ref = _ref_forward_mixed(x, weights, bias_pack, out_dim=neurons[-1])
    assert jnp.allclose(out, ref, atol=2e-3, rtol=2e-3), float(
        jnp.max(jnp.abs(out - ref)))

    # Drift check vs. the f32 model (bf16 weight/activation quantization).
    ref32 = _ref_forward_f32(x, params, out_dim=neurons[-1])
    assert jnp.allclose(out, ref32, atol=5e-2, rtol=5e-2), float(
        jnp.max(jnp.abs(out - ref32)))

    print("KERNEL_OK")
</pallas_src>

<mosaic_0001>
module attributes {stable_mosaic.version = 11 : i64} {
  func.func @kernel(%arg0: i32, %arg1: memref<128x13xf32, #tpu.memory_space<vmem>>, %arg2: memref<8x1024xf32, #tpu.memory_space<vmem>>, %arg3: memref<128x256xbf16, #tpu.memory_space<any>>, %arg4: memref<256x512xbf16, #tpu.memory_space<any>>, %arg5: memref<512x1024xbf16, #tpu.memory_space<any>>, %arg6: memref<1024x512xbf16, #tpu.memory_space<any>>, %arg7: memref<512x256xbf16, #tpu.memory_space<any>>, %arg8: memref<256x128xbf16, #tpu.memory_space<any>>, %arg9: memref<128x128xbf16, #tpu.memory_space<any>>, %arg10: memref<128x128xf32, #tpu.memory_space<vmem>>, %arg11: memref<128x128xf32, #tpu.memory_space<vmem>>, %arg12: memref<128x256xbf16, #tpu.memory_space<vmem>>, %arg13: memref<256x512xbf16, #tpu.memory_space<vmem>>, %arg14: memref<512x1024xbf16, #tpu.memory_space<vmem>>, %arg15: memref<1024x512xbf16, #tpu.memory_space<vmem>>, %arg16: memref<512x256xbf16, #tpu.memory_space<vmem>>, %arg17: memref<256x128xbf16, #tpu.memory_space<vmem>>, %arg18: memref<128x128xbf16, #tpu.memory_space<vmem>>, %arg19: memref<7x!tpu.dma_semaphore, #tpu.memory_space<semaphore_mem>>) attributes {dimension_semantics = [#tpu.dimension_semantics<arbitrary>], iteration_bounds = array<i64: 1>, scalar_prefetch = 0 : i64, scratch_operands = 9 : i64, tpu.core_type = #tpu.core_type<tc>, window_params = [{transform_indices = @transform_0, window_bounds = array<i64: 128, 13>}, {pipeline_mode = #tpu.pipeline_mode<synchronous>, transform_indices = @transform_1, window_bounds = array<i64: 8, 1024>}, {}, {}, {}, {}, {}, {}, {}, {transform_indices = @transform_9, window_bounds = array<i64: 128, 128>}]} {
    %c0_i32 = arith.constant 0 : i32
    %0 = arith.cmpi eq, %arg0, %c0_i32 : i32
    %1 = arith.extui %0 : i1 to i32
    %c0_i32_0 = arith.constant 0 : i32
    %2 = arith.cmpi ne, %1, %c0_i32_0 : i32
    scf.if %2 {
      %c0_i32_53 = arith.constant 0 : i32
      %79 = tpu.memref_slice %arg19[%c0_i32_53] : memref<7x!tpu.dma_semaphore, #tpu.memory_space<semaphore_mem>> -> memref<1x!tpu.dma_semaphore, #tpu.memory_space<semaphore_mem>>
      %80 = tpu.memref_squeeze %79 : memref<1x!tpu.dma_semaphore, #tpu.memory_space<semaphore_mem>> -> memref<!tpu.dma_semaphore, #tpu.memory_space<semaphore_mem>>
      tpu.enqueue_dma source(%arg3 : memref<128x256xbf16, #tpu.memory_space<any>>) target(%arg12 : memref<128x256xbf16, #tpu.memory_space<vmem>>) target_semaphore(%80 : memref<!tpu.dma_semaphore, #tpu.memory_space<semaphore_mem>>)
      %c1_i32 = arith.constant 1 : i32
      %81 = tpu.memref_slice %arg19[%c1_i32] : memref<7x!tpu.dma_semaphore, #tpu.memory_space<semaphore_mem>> -> memref<1x!tpu.dma_semaphore, #tpu.memory_space<semaphore_mem>>
      %82 = tpu.memref_squeeze %81 : memref<1x!tpu.dma_semaphore, #tpu.memory_space<semaphore_mem>> -> memref<!tpu.dma_semaphore, #tpu.memory_space<semaphore_mem>>
      tpu.enqueue_dma source(%arg4 : memref<256x512xbf16, #tpu.memory_space<any>>) target(%arg13 : memref<256x512xbf16, #tpu.memory_space<vmem>>) target_semaphore(%82 : memref<!tpu.dma_semaphore, #tpu.memory_space<semaphore_mem>>)
      %c2_i32 = arith.constant 2 : i32
      %83 = tpu.memref_slice %arg19[%c2_i32] : memref<7x!tpu.dma_semaphore, #tpu.memory_space<semaphore_mem>> -> memref<1x!tpu.dma_semaphore, #tpu.memory_space<semaphore_mem>>
      %84 = tpu.memref_squeeze %83 : memref<1x!tpu.dma_semaphore, #tpu.memory_space<semaphore_mem>> -> memref<!tpu.dma_semaphore, #tpu.memory_space<semaphore_mem>>
      tpu.enqueue_dma source(%arg5 : memref<512x1024xbf16, #tpu.memory_space<any>>) target(%arg14 : memref<512x1024xbf16, #tpu.memory_space<vmem>>) target_semaphore(%84 : memref<!tpu.dma_semaphore, #tpu.memory_space<semaphore_mem>>)
      %c3_i32 = arith.constant 3 : i32
      %85 = tpu.memref_slice %arg19[%c3_i32] : memref<7x!tpu.dma_semaphore, #tpu.memory_space<semaphore_mem>> -> memref<1x!tpu.dma_semaphore, #tpu.memory_space<semaphore_mem>>
      %86 = tpu.memref_squeeze %85 : memref<1x!tpu.dma_semaphore, #tpu.memory_space<semaphore_mem>> -> memref<!tpu.dma_semaphore, #tpu.memory_space<semaphore_mem>>
      tpu.enqueue_dma source(%arg6 : memref<1024x512xbf16, #tpu.memory_space<any>>) target(%arg15 : memref<1024x512xbf16, #tpu.memory_space<vmem>>) target_semaphore(%86 : memref<!tpu.dma_semaphore, #tpu.memory_space<semaphore_mem>>)
      %c4_i32 = arith.constant 4 : i32
      %87 = tpu.memref_slice %arg19[%c4_i32] : memref<7x!tpu.dma_semaphore, #tpu.memory_space<semaphore_mem>> -> memref<1x!tpu.dma_semaphore, #tpu.memory_space<semaphore_mem>>
      %88 = tpu.memref_squeeze %87 : memref<1x!tpu.dma_semaphore, #tpu.memory_space<semaphore_mem>> -> memref<!tpu.dma_semaphore, #tpu.memory_space<semaphore_mem>>
      tpu.enqueue_dma source(%arg7 : memref<512x256xbf16, #tpu.memory_space<any>>) target(%arg16 : memref<512x256xbf16, #tpu.memory_space<vmem>>) target_semaphore(%88 : memref<!tpu.dma_semaphore, #tpu.memory_space<semaphore_mem>>)
      %c5_i32 = arith.constant 5 : i32
      %89 = tpu.memref_slice %arg19[%c5_i32] : memref<7x!tpu.dma_semaphore, #tpu.memory_space<semaphore_mem>> -> memref<1x!tpu.dma_semaphore, #tpu.memory_space<semaphore_mem>>
      %90 = tpu.memref_squeeze %89 : memref<1x!tpu.dma_semaphore, #tpu.memory_space<semaphore_mem>> -> memref<!tpu.dma_semaphore, #tpu.memory_space<semaphore_mem>>
      tpu.enqueue_dma source(%arg8 : memref<256x128xbf16, #tpu.memory_space<any>>) target(%arg17 : memref<256x128xbf16, #tpu.memory_space<vmem>>) target_semaphore(%90 : memref<!tpu.dma_semaphore, #tpu.memory_space<semaphore_mem>>)
      %c6_i32 = arith.constant 6 : i32
      %91 = tpu.memref_slice %arg19[%c6_i32] : memref<7x!tpu.dma_semaphore, #tpu.memory_space<semaphore_mem>> -> memref<1x!tpu.dma_semaphore, #tpu.memory_space<semaphore_mem>>
      %92 = tpu.memref_squeeze %91 : memref<1x!tpu.dma_semaphore, #tpu.memory_space<semaphore_mem>> -> memref<!tpu.dma_semaphore, #tpu.memory_space<semaphore_mem>>
      tpu.enqueue_dma source(%arg9 : memref<128x128xbf16, #tpu.memory_space<any>>) target(%arg18 : memref<128x128xbf16, #tpu.memory_space<vmem>>) target_semaphore(%92 : memref<!tpu.dma_semaphore, #tpu.memory_space<semaphore_mem>>)
    } else {
    }
    %cst = arith.constant 0.000000e+00 : f32
    %3 = vector.broadcast %cst : f32 to vector<128x128xf32>
    %c0 = arith.constant 0 : index
    %c0_1 = arith.constant 0 : index
    %4 = vector.load %arg11[%c0, %c0_1] : memref<128x128xf32, #tpu.memory_space<vmem>>, vector<128x128xf32>
    tpu.vector_store %arg11[%c0, %c0_1], %3 {strides = array<i32>} : memref<128x128xf32, #tpu.memory_space<vmem>>, vector<128x128xf32>,
    %c0_2 = arith.constant 0 : index
    %c0_3 = arith.constant 0 : index
    %5 = vector.load %arg1[%c0_2, %c0_3] : memref<128x13xf32, #tpu.memory_space<vmem>>, vector<128x13xf32>
    %c0_4 = arith.constant 0 : index
    %c0_5 = arith.constant 0 : index
    %6 = vector.load %arg11[%c0_4, %c0_5] : memref<128x128xf32, #tpu.memory_space<vmem>>, vector<128x13xf32>
    tpu.vector_store %arg11[%c0_4, %c0_5], %5 {strides = array<i32>} : memref<128x128xf32, #tpu.memory_space<vmem>>, vector<128x13xf32>,
    %c0_6 = arith.constant 0 : index
    %c0_7 = arith.constant 0 : index
    %7 = vector.load %arg11[%c0_6, %c0_7] : memref<128x128xf32, #tpu.memory_space<vmem>>, vector<128x128xf32>
    %8 = arith.extui %0 : i1 to i32
    %c0_i32_8 = arith.constant 0 : i32
    %9 = arith.cmpi ne, %8, %c0_i32_8 : i32
    scf.if %9 {
      %c0_i32_53 = arith.constant 0 : i32
      %79 = tpu.memref_slice %arg19[%c0_i32_53] : memref<7x!tpu.dma_semaphore, #tpu.memory_space<semaphore_mem>> -> memref<1x!tpu.dma_semaphore, #tpu.memory_space<semaphore_mem>>
      %80 = tpu.memref_squeeze %79 : memref<1x!tpu.dma_semaphore, #tpu.memory_space<semaphore_mem>> -> memref<!tpu.dma_semaphore, #tpu.memory_space<semaphore_mem>>
      tpu.wait_dma2 semaphore(%80 : memref<!tpu.dma_semaphore, #tpu.memory_space<semaphore_mem>>) src(%arg3 : memref<128x256xbf16, #tpu.memory_space<any>>) dst(%arg12 : memref<128x256xbf16, #tpu.memory_space<vmem>>)
    } else {
    }
    %c0_9 = arith.constant 0 : index
    %c0_10 = arith.constant 0 : index
    %10 = vector.load %arg12[%c0_9, %c0_10] : memref<128x256xbf16, #tpu.memory_space<vmem>>, vector<128x256xbf16>
    %c0_11 = arith.constant 0 : index
    %c0_12 = arith.constant 0 : index
    %11 = vector.load %arg2[%c0_11, %c0_12] : memref<8x1024xf32, #tpu.memory_space<vmem>>, vector<1x256xf32>
    %12 = arith.truncf %7 : vector<128x128xf32> to vector<128x128xbf16>
    %cst_13 = arith.constant dense<0.000000e+00> : vector<128x256xf32>
    %13 = tpu.matmul %12, %10, %cst_13 {dimension_numbers = #tpu.dot_dimension_numbers<[1], [0], [0], [1], [0, 0, 1, 1], [], []>} : vector<128x128xbf16>, vector<128x256xbf16>, vector<128x256xf32> -> vector<128x256xf32>
    %14 = vector.broadcast %11 : vector<1x256xf32> to vector<128x256xf32>
    %15 = arith.addf %13, %14 : vector<128x256xf32>
    %cst_14 = arith.constant 0.000000e+00 : f32
    %16 = vector.broadcast %cst_14 : f32 to vector<128x256xf32>
    %17 = arith.maximumf %15, %16 : vector<128x256xf32>
    %18 = arith.extui %0 : i1 to i32
    %c0_i32_15 = arith.constant 0 : i32
    %19 = arith.cmpi ne, %18, %c0_i32_15 : i32
    scf.if %19 {
      %c1_i32 = arith.constant 1 : i32
      %79 = tpu.memref_slice %arg19[%c1_i32] : memref<7x!tpu.dma_semaphore, #tpu.memory_space<semaphore_mem>> -> memref<1x!tpu.dma_semaphore, #tpu.memory_space<semaphore_mem>>
      %80 = tpu.memref_squeeze %79 : memref<1x!tpu.dma_semaphore, #tpu.memory_space<semaphore_mem>> -> memref<!tpu.dma_semaphore, #tpu.memory_space<semaphore_mem>>
      tpu.wait_dma2 semaphore(%80 : memref<!tpu.dma_semaphore, #tpu.memory_space<semaphore_mem>>) src(%arg4 : memref<256x512xbf16, #tpu.memory_space<any>>) dst(%arg13 : memref<256x512xbf16, #tpu.memory_space<vmem>>)
    } else {
    }
    %c0_16 = arith.constant 0 : index
    %c0_17 = arith.constant 0 : index
    %20 = vector.load %arg13[%c0_16, %c0_17] : memref<256x512xbf16, #tpu.memory_space<vmem>>, vector<256x512xbf16>
    %c1 = arith.constant 1 : index
    %c0_18 = arith.constant 0 : index
    %21 = vector.load %arg2[%c1, %c0_18] : memref<8x1024xf32, #tpu.memory_space<vmem>>, vector<1x512xf32>
    %22 = arith.truncf %17 : vector<128x256xf32> to vector<128x256xbf16>
    %cst_19 = arith.constant dense<0.000000e+00> : vector<128x512xf32>
    %23 = tpu.matmul %22, %20, %cst_19 {dimension_numbers = #tpu.dot_dimension_numbers<[1], [0], [0], [1], [0, 0, 1, 1], [], []>} : vector<128x256xbf16>, vector<256x512xbf16>, vector<128x512xf32> -> vector<128x512xf32>
    %24 = vector.broadcast %21 : vector<1x512xf32> to vector<128x512xf32>
    %25 = arith.addf %23, %24 : vector<128x512xf32>
    %cst_20 = arith.constant 0.000000e+00 : f32
    %26 = vector.broadcast %cst_20 : f32 to vector<128x512xf32>
    %27 = arith.maximumf %25, %26 : vector<128x512xf32>
    %28 = arith.extui %0 : i1 to i32
    %c0_i32_21 = arith.constant 0 : i32
    %29 = arith.cmpi ne, %28, %c0_i32_21 : i32
    scf.if %29 {
      %c2_i32 = arith.constant 2 : i32
      %79 = tpu.memref_slice %arg19[%c2_i32] : memref<7x!tpu.dma_semaphore, #tpu.memory_space<semaphore_mem>> -> memref<1x!tpu.dma_semaphore, #tpu.memory_space<semaphore_mem>>
      %80 = tpu.memref_squeeze %79 : memref<1x!tpu.dma_semaphore, #tpu.memory_space<semaphore_mem>> -> memref<!tpu.dma_semaphore, #tpu.memory_space<semaphore_mem>>
      tpu.wait_dma2 semaphore(%80 : memref<!tpu.dma_semaphore, #tpu.memory_space<semaphore_mem>>) src(%arg5 : memref<512x1024xbf16, #tpu.memory_space<any>>) dst(%arg14 : memref<512x1024xbf16, #tpu.memory_space<vmem>>)
    } else {
    }
    %c0_22 = arith.constant 0 : index
    %c0_23 = arith.constant 0 : index
    %30 = vector.load %arg14[%c0_22, %c0_23] : memref<512x1024xbf16, #tpu.memory_space<vmem>>, vector<512x1024xbf16>
    %c2 = arith.constant 2 : index
    %c0_24 = arith.constant 0 : index
    %31 = vector.load %arg2[%c2, %c0_24] : memref<8x1024xf32, #tpu.memory_space<vmem>>, vector<1x1024xf32>
    %32 = arith.truncf %27 : vector<128x512xf32> to vector<128x512xbf16>
    %cst_25 = arith.constant dense<0.000000e+00> : vector<128x1024xf32>
    %33 = tpu.matmul %32, %30, %cst_25 {dimension_numbers = #tpu.dot_dimension_numbers<[1], [0], [0], [1], [0, 0, 1, 1], [], []>} : vector<128x512xbf16>, vector<512x1024xbf16>, vector<128x1024xf32> -> vector<128x1024xf32>
    %34 = vector.broadcast %31 : vector<1x1024xf32> to vector<128x1024xf32>
    %35 = arith.addf %33, %34 : vector<128x1024xf32>
    %cst_26 = arith.constant 0.000000e+00 : f32
    %36 = vector.broadcast %cst_26 : f32 to vector<128x1024xf32>
    %37 = arith.maximumf %35, %36 : vector<128x1024xf32>
    %38 = arith.extui %0 : i1 to i32
    %c0_i32_27 = arith.constant 0 : i32
    %39 = arith.cmpi ne, %38, %c0_i32_27 : i32
    scf.if %39 {
      %c3_i32 = arith.constant 3 : i32
      %79 = tpu.memref_slice %arg19[%c3_i32] : memref<7x!tpu.dma_semaphore, #tpu.memory_space<semaphore_mem>> -> memref<1x!tpu.dma_semaphore, #tpu.memory_space<semaphore_mem>>
      %80 = tpu.memref_squeeze %79 : memref<1x!tpu.dma_semaphore, #tpu.memory_space<semaphore_mem>> -> memref<!tpu.dma_semaphore, #tpu.memory_space<semaphore_mem>>
      tpu.wait_dma2 semaphore(%80 : memref<!tpu.dma_semaphore, #tpu.memory_space<semaphore_mem>>) src(%arg6 : memref<1024x512xbf16, #tpu.memory_space<any>>) dst(%arg15 : memref<1024x512xbf16, #tpu.memory_space<vmem>>)
    } else {
    }
    %c0_28 = arith.constant 0 : index
    %c0_29 = arith.constant 0 : index
    %40 = vector.load %arg15[%c0_28, %c0_29] : memref<1024x512xbf16, #tpu.memory_space<vmem>>, vector<1024x512xbf16>
    %c3 = arith.constant 3 : index
    %c0_30 = arith.constant 0 : index
    %41 = vector.load %arg2[%c3, %c0_30] : memref<8x1024xf32, #tpu.memory_space<vmem>>, vector<1x512xf32>
    %42 = arith.truncf %37 : vector<128x1024xf32> to vector<128x1024xbf16>
    %cst_31 = arith.constant dense<0.000000e+00> : vector<128x512xf32>
    %43 = tpu.matmul %42, %40, %cst_31 {dimension_numbers = #tpu.dot_dimension_numbers<[1], [0], [0], [1], [0, 0, 1, 1], [], []>} : vector<128x1024xbf16>, vector<1024x512xbf16>, vector<128x512xf32> -> vector<128x512xf32>
    %44 = vector.broadcast %41 : vector<1x512xf32> to vector<128x512xf32>
    %45 = arith.addf %43, %44 : vector<128x512xf32>
    %cst_32 = arith.constant 0.000000e+00 : f32
    %46 = vector.broadcast %cst_32 : f32 to vector<128x512xf32>
    %47 = arith.maximumf %45, %46 : vector<128x512xf32>
    %48 = arith.extui %0 : i1 to i32
    %c0_i32_33 = arith.constant 0 : i32
    %49 = arith.cmpi ne, %48, %c0_i32_33 : i32
    scf.if %49 {
      %c4_i32 = arith.constant 4 : i32
      %79 = tpu.memref_slice %arg19[%c4_i32] : memref<7x!tpu.dma_semaphore, #tpu.memory_space<semaphore_mem>> -> memref<1x!tpu.dma_semaphore, #tpu.memory_space<semaphore_mem>>
      %80 = tpu.memref_squeeze %79 : memref<1x!tpu.dma_semaphore, #tpu.memory_space<semaphore_mem>> -> memref<!tpu.dma_semaphore, #tpu.memory_space<semaphore_mem>>
      tpu.wait_dma2 semaphore(%80 : memref<!tpu.dma_semaphore, #tpu.memory_space<semaphore_mem>>) src(%arg7 : memref<512x256xbf16, #tpu.memory_space<any>>) dst(%arg16 : memref<512x256xbf16, #tpu.memory_space<vmem>>)
    } else {
    }
    %c0_34 = arith.constant 0 : index
    %c0_35 = arith.constant 0 : index
    %50 = vector.load %arg16[%c0_34, %c0_35] : memref<512x256xbf16, #tpu.memory_space<vmem>>, vector<512x256xbf16>
    %c4 = arith.constant 4 : index
    %c0_36 = arith.constant 0 : index
    %51 = vector.load %arg2[%c4, %c0_36] : memref<8x1024xf32, #tpu.memory_space<vmem>>, vector<1x256xf32>
    %52 = arith.truncf %47 : vector<128x512xf32> to vector<128x512xbf16>
    %cst_37 = arith.constant dense<0.000000e+00> : vector<128x256xf32>
    %53 = tpu.matmul %52, %50, %cst_37 {dimension_numbers = #tpu.dot_dimension_numbers<[1], [0], [0], [1], [0, 0, 1, 1], [], []>} : vector<128x512xbf16>, vector<512x256xbf16>, vector<128x256xf32> -> vector<128x256xf32>
    %54 = vector.broadcast %51 : vector<1x256xf32> to vector<128x256xf32>
    %55 = arith.addf %53, %54 : vector<128x256xf32>
    %cst_38 = arith.constant 0.000000e+00 : f32
    %56 = vector.broadcast %cst_38 : f32 to vector<128x256xf32>
    %57 = arith.maximumf %55, %56 : vector<128x256xf32>
    %58 = arith.extui %0 : i1 to i32
    %c0_i32_39 = arith.constant 0 : i32
    %59 = arith.cmpi ne, %58, %c0_i32_39 : i32
    scf.if %59 {
      %c5_i32 = arith.constant 5 : i32
      %79 = tpu.memref_slice %arg19[%c5_i32] : memref<7x!tpu.dma_semaphore, #tpu.memory_space<semaphore_mem>> -> memref<1x!tpu.dma_semaphore, #tpu.memory_space<semaphore_mem>>
      %80 = tpu.memref_squeeze %79 : memref<1x!tpu.dma_semaphore, #tpu.memory_space<semaphore_mem>> -> memref<!tpu.dma_semaphore, #tpu.memory_space<semaphore_mem>>
      tpu.wait_dma2 semaphore(%80 : memref<!tpu.dma_semaphore, #tpu.memory_space<semaphore_mem>>) src(%arg8 : memref<256x128xbf16, #tpu.memory_space<any>>) dst(%arg17 : memref<256x128xbf16, #tpu.memory_space<vmem>>)
    } else {
    }
    %c0_40 = arith.constant 0 : index
    %c0_41 = arith.constant 0 : index
    %60 = vector.load %arg17[%c0_40, %c0_41] : memref<256x128xbf16, #tpu.memory_space<vmem>>, vector<256x128xbf16>
    %c5 = arith.constant 5 : index
    %c0_42 = arith.constant 0 : index
    %61 = vector.load %arg2[%c5, %c0_42] : memref<8x1024xf32, #tpu.memory_space<vmem>>, vector<1x128xf32>
    %62 = arith.truncf %57 : vector<128x256xf32> to vector<128x256xbf16>
    %cst_43 = arith.constant dense<0.000000e+00> : vector<128x128xf32>
    %63 = tpu.matmul %62, %60, %cst_43 {dimension_numbers = #tpu.dot_dimension_numbers<[1], [0], [0], [1], [0, 0, 1, 1], [], []>} : vector<128x256xbf16>, vector<256x128xbf16>, vector<128x128xf32> -> vector<128x128xf32>
    %64 = vector.broadcast %61 : vector<1x128xf32> to vector<128x128xf32>
    %65 = arith.addf %63, %64 : vector<128x128xf32>
    %cst_44 = arith.constant 0.000000e+00 : f32
    %66 = vector.broadcast %cst_44 : f32 to vector<128x128xf32>
    %67 = arith.maximumf %65, %66 : vector<128x128xf32>
    %68 = arith.extui %0 : i1 to i32
    %c0_i32_45 = arith.constant 0 : i32
    %69 = arith.cmpi ne, %68, %c0_i32_45 : i32
    scf.if %69 {
      %c6_i32 = arith.constant 6 : i32
      %79 = tpu.memref_slice %arg19[%c6_i32] : memref<7x!tpu.dma_semaphore, #tpu.memory_space<semaphore_mem>> -> memref<1x!tpu.dma_semaphore, #tpu.memory_space<semaphore_mem>>
      %80 = tpu.memref_squeeze %79 : memref<1x!tpu.dma_semaphore, #tpu.memory_space<semaphore_mem>> -> memref<!tpu.dma_semaphore, #tpu.memory_space<semaphore_mem>>
      tpu.wait_dma2 semaphore(%80 : memref<!tpu.dma_semaphore, #tpu.memory_space<semaphore_mem>>) src(%arg9 : memref<128x128xbf16, #tpu.memory_space<any>>) dst(%arg18 : memref<128x128xbf16, #tpu.memory_space<vmem>>)
    } else {
    }
    %c0_46 = arith.constant 0 : index
    %c0_47 = arith.constant 0 : index
    %70 = vector.load %arg18[%c0_46, %c0_47] : memref<128x128xbf16, #tpu.memory_space<vmem>>, vector<128x128xbf16>
    %c6 = arith.constant 6 : index
    %c0_48 = arith.constant 0 : index
    %71 = vector.load %arg2[%c6, %c0_48] : memref<8x1024xf32, #tpu.memory_space<vmem>>, vector<1x128xf32>
    %72 = arith.truncf %67 : vector<128x128xf32> to vector<128x128xbf16>
    %cst_49 = arith.constant dense<0.000000e+00> : vector<128x128xf32>
    %73 = tpu.matmul %72, %70, %cst_49 {dimension_numbers = #tpu.dot_dimension_numbers<[1], [0], [0], [1], [0, 0, 1, 1], [], []>} : vector<128x128xbf16>, vector<128x128xbf16>, vector<128x128xf32> -> vector<128x128xf32>
    %74 = vector.broadcast %71 : vector<1x128xf32> to vector<128x128xf32>
    %75 = arith.addf %73, %74 : vector<128x128xf32>
    %cst_50 = arith.constant 0.000000e+00 : f32
    %76 = vector.broadcast %cst_50 : f32 to vector<128x128xf32>
    %77 = arith.maximumf %75, %76 : vector<128x128xf32>
    %c0_51 = arith.constant 0 : index
    %c0_52 = arith.constant 0 : index
    %78 = vector.load %arg10[%c0_51, %c0_52] : memref<128x128xf32, #tpu.memory_space<vmem>>, vector<128x128xf32>
    tpu.vector_store %arg10[%c0_51, %c0_52], %77 {strides = array<i32>} : memref<128x128xf32, #tpu.memory_space<vmem>>, vector<128x128xf32>,
    return
  }
  func.func @transform_0(%arg0: i32) -> (i32, i32) {
    %c0_i32 = arith.constant 0 : i32
    %c0_i32_0 = arith.constant 0 : i32
    return %arg0, %c0_i32 : i32, i32
  }
  func.func @transform_1(%arg0: i32) -> (i32, i32) {
    %c0_i32 = arith.constant 0 : i32
    %c0_i32_0 = arith.constant 0 : i32
    %c0_i32_1 = arith.constant 0 : i32
    return %c0_i32, %c0_i32_0 : i32, i32
  }
  func.func @transform_9(%arg0: i32) -> (i32, i32) {
    %c0_i32 = arith.constant 0 : i32
    %c0_i32_0 = arith.constant 0 : i32
    return %arg0, %c0_i32 : i32, i32
  }
}

</mosaic_0001>

<bundles_post_ra>
// kernel: tpu_custom_call.1
= control target key start
LH: loop header
LB: loop body
LE: loop exit
PB: predicated region body
PF: predicated region fallthrough
CT: control target
= control target key end

     0   :  { %14 = vsyncpa [#allocation12], 0  ;;  %s12385_s0 = inlined_call_operand.vmem [shape: f32[128,13], index: 0, kind: input, shape index: {}]   ;;  %s12386_s1 = inlined_call_operand.hbm [shape: f32[8,1024], index: 1, kind: input, shape index: {}]   ;;  %s12387_s2 = inlined_call_operand.vmem [shape: bf16[128,256], index: 2, kind: input, shape index: {}]   ;;  %s12388_s3 = inlined_call_operand.hbm [shape: bf16[256,512], index: 3, kind: input, shape index: {}]   ;;  %s12389_s4 = inlined_call_operand.hbm [shape: bf16[512,1024], index: 4, kind: input, shape index: {}]   ;;  %s12390_s5 = inlined_call_operand.hbm [shape: bf16[1024,512], index: 5, kind: input, shape index: {}]   ;;  %s12391_s6 = inlined_call_operand.hbm [shape: bf16[512,256], index: 6, kind: input, shape index: {}]   ;;  %s12392_s7 = inlined_call_operand.hbm [shape: bf16[256,128], index: 7, kind: input, shape index: {}]   ;;  %s12393_s8 = inlined_call_operand.hbm [shape: bf16[128,128], index: 8, kind: input, shape index: {}]   ;;  %s12394_s9 = inlined_call_operand.hbm [shape: f32[128,128], index: 9, kind: output, shape index: {}]  }
   0x1   :  { %15 = vsyncpa [#allocation13], 0  ;;  %s9320_s30 = smov [#allocation11]  }
   0x2   :  { %s24_s10 = sshll.u32 %s9320_s30, 4  ;;  %s25_s10 = int_to_ptr.vmem [resolvable:$true] %s24_s10 }
   0x3   :  { %s9150_s11 = scalar_lea.vmem %s25_s10, 1024  ;;  %p9155_p1 = scmp.lt.s32.totalorder %s25_s10, %s25_s10 }
   0x4   :  { %p9151_p0 = scmp.ne.s32.totalorder %s25_s10, %s9150_s11  ;;  %p9156_p2 = scmp.lt.s32.totalorder %s9150_s11, %s9150_s11 }
   0x6   :  { %p9157_p3 = por %p9156_p2, %p9155_p1 }
   0x8   :  { %p9158_p4 = pnand %p9157_p3, %p9151_p0 }
   0xa   :  { %9161 = shalt.err (!%p9158_p4)
}
   0xb   :  { %27 = dma.hbm_to_vmem [thread:$0]  %s12386_s1, 1024, %s25_s10, [#allocation12]  }
   0xc   :  { %9302 = dma.done.wait [#allocation12], 1024  }
   0xd   :  { %9303 = vsyncadd [#allocation12], 4294966272  ;;  %v9388_v0 = vld [vmem:[%s12387_s2] sm:$0xff]  ;;  %v9393_v1 = vld [vmem:[%s12387_s2 + $0x8] sm:$0xff]  ;;  %vm213_vm0 = vcmask 105472   ;;  %v9321_v19 = vmov 0.0  }
   0xe   :  { %v9398_v2 = vld [vmem:[%s12387_s2 + $0x10] sm:$0xff]  ;;  %v9403_v3 = vld [vmem:[%s12387_s2 + $0x18] sm:$0xff]  ;;  %v9408_v4 = vld [vmem:[%s12387_s2 + $0x20] sm:$0xff]  ;;  %181 = vst [vmem:[#allocation2] sm:$0xff] %v9321_v19  ;;  %s9322_s13 = smov [#allocation4]   ;;  %s9323_s21 = smov [#allocation5]  }
   0xf   :  { %v9413_v5 = vld [vmem:[%s12387_s2 + $0x28] sm:$0xff]  ;;  %v9418_v6 = vld [vmem:[%s12387_s2 + $0x30] sm:$0xff]  ;;  %v9423_v7 = vld [vmem:[%s12387_s2 + $0x38] sm:$0xff]  ;;  %182 = vst [vmem:[#allocation2 + $0x8] sm:$0xff] %v9321_v19  ;;  %s117_s14 = sshll.u32 %s9322_s13, 4  ;;  %s129_s1 = sshll.u32 %s9323_s21, 4  ;;  %s9498_s14 = int_to_ptr.vmem [resolvable:$true] %s117_s14  ;;  %s9512_s1 = int_to_ptr.vmem [resolvable:$true] %s129_s1 }
  0x10   :  { %v9428_v8 = vld [vmem:[%s12387_s2 + $0x40] sm:$0xff]  ;;  %v9433_v9 = vld [vmem:[%s12387_s2 + $0x48] sm:$0xff]  ;;  %v9438_v10 = vld [vmem:[%s12387_s2 + $0x50] sm:$0xff]  ;;  %183 = vst [vmem:[#allocation2 + $0x10] sm:$0xff] %v9321_v19  ;;  %s9324_s12 = smov [#allocation6]  }
  0x11   :  { %v9443_v11 = vld [vmem:[%s12387_s2 + $0x58] sm:$0xff]  ;;  %v9448_v12 = vld [vmem:[%s12387_s2 + $0x60] sm:$0xff]  ;;  %v9453_v13 = vld [vmem:[%s12387_s2 + $0x68] sm:$0xff]  ;;  %184 = vst [vmem:[#allocation2 + $0x18] sm:$0xff] %v9321_v19  ;;  %s141_s13 = sshll.u32 %s9324_s12, 4  ;;  %s142_s13 = int_to_ptr.vmem [resolvable:$true] %s141_s13 }
  0x12   :  { %v9458_v14 = vld [vmem:[%s12387_s2 + $0x70] sm:$0xff]  ;;  %v9463_v15 = vld [vmem:[%s12387_s2 + $0x78] sm:$0xff]  ;;  %v197_v16 = vld [vmem:[%s12385_s0] sm:$0xff]  ;;  %185 = vst [vmem:[#allocation2 + $0x20] sm:$0xff] %v9321_v19 }
  0x13   :  { %v198_v17 = vld [vmem:[%s12385_s0 + $0x8] sm:$0xff]  ;;  %v199_v18 = vld [vmem:[%s12385_s0 + $0x10] sm:$0xff]  ;;  %186 = vst [vmem:[#allocation2 + $0x28] sm:$0xff] %v9321_v19  ;;  %187 = vst [vmem:[#allocation2 + $0x30] sm:$0xff] %v9321_v19 }
  0x14   :  { %188 = vst [vmem:[#allocation2 + $0x38] sm:$0xff] %v9321_v19  ;;  %189 = vst [vmem:[#allocation2 + $0x40] sm:$0xff] %v9321_v19  ;;  %v200_v20 = vld [vmem:[%s12385_s0 + $0x18] sm:$0xff]  ;;  %v201_v21 = vld [vmem:[%s12385_s0 + $0x20] sm:$0xff] }
  0x15   :  { %190 = vst [vmem:[#allocation2 + $0x48] sm:$0xff] %v9321_v19  ;;  %191 = vst [vmem:[#allocation2 + $0x50] sm:$0xff] %v9321_v19  ;;  %v202_v22 = vld [vmem:[%s12385_s0 + $0x28] sm:$0xff]  ;;  %v203_v23 = vld [vmem:[%s12385_s0 + $0x30] sm:$0xff] }
  0x16   :  { %192 = vst [vmem:[#allocation2 + $0x58] sm:$0xff] %v9321_v19  ;;  %193 = vst [vmem:[#allocation2 + $0x60] sm:$0xff] %v9321_v19  ;;  %v204_v24 = vld [vmem:[%s12385_s0 + $0x38] sm:$0xff]  ;;  %v205_v25 = vld [vmem:[%s12385_s0 + $0x40] sm:$0xff] }
  0x17   :  { %194 = vst [vmem:[#allocation2 + $0x68] sm:$0xff] %v9321_v19  ;;  %195 = vst [vmem:[#allocation2 + $0x70] sm:$0xff] %v9321_v19  ;;  %v206_v26 = vld [vmem:[%s12385_s0 + $0x48] sm:$0xff]  ;;  %v207_v27 = vld [vmem:[%s12385_s0 + $0x50] sm:$0xff] }
  0x18   :  { %196 = vst [vmem:[#allocation2 + $0x78] sm:$0xff] %v9321_v19  ;;  %214 = vst.msk [vmem:[#allocation2] sm:$0xff] %vm213_vm0, %v197_v16  ;;  %v208_v28 = vld [vmem:[%s12385_s0 + $0x58] sm:$0xff]  ;;  %v209_v29 = vld [vmem:[%s12385_s0 + $0x60] sm:$0xff] }
  0x19   :  { %215 = vst.msk [vmem:[#allocation2 + $0x8] sm:$0xff] %vm213_vm0, %v198_v17  ;;  %216 = vst.msk [vmem:[#allocation2 + $0x10] sm:$0xff] %vm213_vm0, %v199_v18  ;;  %v210_v30 = vld [vmem:[%s12385_s0 + $0x68] sm:$0xff]  ;;  %v211_v31 = vld [vmem:[%s12385_s0 + $0x70] sm:$0xff] }
  0x1a   :  { %217 = vst.msk [vmem:[#allocation2 + $0x18] sm:$0xff] %vm213_vm0, %v200_v20  ;;  %218 = vst.msk [vmem:[#allocation2 + $0x20] sm:$0xff] %vm213_vm0, %v201_v21  ;;  %v212_v32 = vld [vmem:[%s12385_s0 + $0x78] sm:$0xff] }
  0x1b   :  { %219 = vst.msk [vmem:[#allocation2 + $0x28] sm:$0xff] %vm213_vm0, %v202_v22  ;;  %220 = vst.msk [vmem:[#allocation2 + $0x30] sm:$0xff] %vm213_vm0, %v203_v23 }
  0x1c   :  { %221 = vst.msk [vmem:[#allocation2 + $0x38] sm:$0xff] %vm213_vm0, %v204_v24  ;;  %222 = vst.msk [vmem:[#allocation2 + $0x40] sm:$0xff] %vm213_vm0, %v205_v25 }
  0x1d   :  { %223 = vst.msk [vmem:[#allocation2 + $0x48] sm:$0xff] %vm213_vm0, %v206_v26  ;;  %224 = vst.msk [vmem:[#allocation2 + $0x50] sm:$0xff] %vm213_vm0, %v207_v27 }
  0x1e   :  { %225 = vst.msk [vmem:[#allocation2 + $0x58] sm:$0xff] %vm213_vm0, %v208_v28  ;;  %226 = vst.msk [vmem:[#allocation2 + $0x60] sm:$0xff] %vm213_vm0, %v209_v29 }
  0x1f   :  { %227 = vst.msk [vmem:[#allocation2 + $0x68] sm:$0xff] %vm213_vm0, %v210_v30  ;;  %228 = vst.msk [vmem:[#allocation2 + $0x70] sm:$0xff] %vm213_vm0, %v211_v31 }
  0x20   :  { %108 = vsyncadd [#allocation10], 2048  ;;  %s9325_s17 = smov [#allocation7]   ;;  %229 = vst.msk [vmem:[#allocation2 + $0x78] sm:$0xff] %vm213_vm0, %v212_v32  ;;  %s9170_s19 = scalar_lea.vmem %s9498_s14, 8192 }
  0x21   :  { %s153_s18 = sshll.u32 %s9325_s17, 4  ;;  %p9171_p5 = scmp.ne.s32.totalorder %s9498_s14, %s9170_s19  ;;  %s154_s18 = int_to_ptr.vmem [resolvable:$true] %s153_s18 }
  0x22   :  { %p9175_p6 = scmp.lt.s32.totalorder %s9498_s14, %s9498_s14  ;;  %p9176_p7 = scmp.lt.s32.totalorder %s9170_s19, %s9170_s19 }
  0x24   :  { %p9177_p8 = por %p9176_p7, %p9175_p6 }
  0x26   :  { %p9178_p9 = pnand %p9177_p8, %p9171_p5 }
  0x28   :  { %9181 = shalt.err (!%p9178_p9)  }
  0x29   :  { %120 = dma.hbm_to_vmem [thread:$0]  %s12388_s3, 8192, %s9498_s14, [#allocation10 + $0x1] }
  0x2a   :  { %s9190_s21 = scalar_lea.vmem %s9512_s1, 32768  ;;  %p9195_p11 = scmp.lt.s32.totalorder %s9512_s1, %s9512_s1 }
  0x2b   :  { %p9191_p10 = scmp.ne.s32.totalorder %s9512_s1, %s9190_s21  ;;  %p9196_p12 = scmp.lt.s32.totalorder %s9190_s21, %s9190_s21 }
  0x2d   :  { %p9197_p13 = por %p9196_p12, %p9195_p11 }
  0x2f   :  { %p9198_p0 = pnand %p9197_p13, %p9191_p10 }
  0x31   :  { %9201 = shalt.err (!%p9198_p0)  }
  0x32   :  { %132 = dma.hbm_to_vmem [thread:$0]  %s12389_s4, 32768, %s9512_s1, [#allocation10 + $0x2] }
  0x33   :  { %s9210_s24 = scalar_lea.vmem %s142_s13, 32768  ;;  %p9215_p2 = scmp.lt.s32.totalorder %s142_s13, %s142_s13 }
  0x34   :  { %p9211_p1 = scmp.ne.s32.totalorder %s142_s13, %s9210_s24  ;;  %p9216_p3 = scmp.lt.s32.totalorder %s9210_s24, %s9210_s24 }
  0x36   :  { %p9217_p4 = por %p9216_p3, %p9215_p2 }
  0x38   :  { %p9218_p5 = pnand %p9217_p4, %p9211_p1 }
  0x3a   :  { %9221 = shalt.err (!%p9218_p5)  }
  0x3b   :  { %144 = dma.hbm_to_vmem [thread:$0]  %s12390_s5, 32768, %s142_s13, [#allocation10 + $0x3]  ;;  %v9552_v33 = vld [vmem:[#allocation2] sm:$0xff]  ;;  %v9554_v34 = vld [vmem:[#allocation2 + $0x8] sm:$0xff]  ;;  %v9556_v35 = vld [vmem:[#allocation2 + $0x10] sm:$0xff] }
  0x3c   :  { %v9558_v36 = vld [vmem:[#allocation2 + $0x18] sm:$0xff]  ;;  %v9560_v37 = vld [vmem:[#allocation2 + $0x20] sm:$0xff]  ;;  %v9562_v38 = vld [vmem:[#allocation2 + $0x28] sm:$0xff]  ;;  %s9230_s4 = scalar_lea.vmem %s154_s18, 8192  ;;  %p9235_p7 = scmp.lt.s32.totalorder %s154_s18, %s154_s18 }
  0x3d   :  { %p9231_p6 = scmp.ne.s32.totalorder %s154_s18, %s9230_s4  ;;  %p9236_p8 = scmp.lt.s32.totalorder %s9230_s4, %s9230_s4 }
  0x3f   :  { %p9237_p9 = por %p9236_p8, %p9235_p7 }
  0x41   :  { %p9238_p10 = pnand %p9237_p9, %p9231_p6 }
  0x43   :  { %9241 = shalt.err (!%p9238_p10)  }
  0x44   :  { %156 = dma.hbm_to_vmem [thread:$0]  %s12391_s6, 8192, %s154_s18, [#allocation10 + $0x4]  ;;  %v9567_v39 = vld [vmem:[#allocation2 + $0x30] sm:$0xff]  ;;  %v9569_v40 = vld [vmem:[#allocation2 + $0x38] sm:$0xff]  ;;  %v9571_v41 = vld [vmem:[#allocation2 + $0x40] sm:$0xff] }
  0x45   :  { %s9326_s25 = smov [#allocation8]   ;;  %v9573_v42 = vld [vmem:[#allocation2 + $0x48] sm:$0xff]  ;;  %v9575_v43 = vld [vmem:[#allocation2 + $0x50] sm:$0xff]  ;;  %v9577_v44 = vld [vmem:[#allocation2 + $0x58] sm:$0xff]  ;;  %s9327_s27 = smov [#allocation9]  }
  0x46   :  { %s165_s26 = sshll.u32 %s9326_s25, 4  ;;  %s177_s28 = sshll.u32 %s9327_s27, 4  ;;  %v9579_v45 = vld [vmem:[#allocation2 + $0x60] sm:$0xff]  ;;  %v9581_v46 = vld [vmem:[#allocation2 + $0x68] sm:$0xff]  ;;  %v9583_v47 = vld [vmem:[#allocation2 + $0x70] sm:$0xff]  ;;  %s166_s26 = int_to_ptr.vmem [resolvable:$true] %s165_s26  ;;  %s178_s28 = int_to_ptr.vmem [resolvable:$true] %s177_s28 }
  0x47   :  { %s9250_s6 = scalar_lea.vmem %s166_s26, 2048  ;;  %p9255_p12 = scmp.lt.s32.totalorder %s166_s26, %s166_s26 }
  0x48   :  { %p9251_p11 = scmp.ne.s32.totalorder %s166_s26, %s9250_s6  ;;  %p9256_p13 = scmp.lt.s32.totalorder %s9250_s6, %s9250_s6 }
  0x4a   :  { %p9257_p0 = por %p9256_p13, %p9255_p12 }
  0x4c   :  { %p9258_p1 = pnand %p9257_p0, %p9251_p11 }
  0x4e   :  { %9261 = shalt.err (!%p9258_p1)  }
  0x4f   :  { %168 = dma.hbm_to_vmem [thread:$0]  %s12392_s7, 2048, %s166_s26, [#allocation10 + $0x5]  ;;  %v9588_v48 = vld [vmem:[#allocation2 + $0x78] sm:$0xff] }
  0x50   :  { %s9270_s30 = scalar_lea.vmem %s178_s28, 1024  ;;  %p9275_p3 = scmp.lt.s32.totalorder %s178_s28, %s178_s28 }
  0x51   :  { %p9271_p2 = scmp.ne.s32.totalorder %s178_s28, %s9270_s30  ;;  %p9276_p4 = scmp.lt.s32.totalorder %s9270_s30, %s9270_s30 }
  0x53   :  { %p9277_p5 = por %p9276_p4, %p9275_p3 }
  0x55   :  { %p9278_p6 = pnand %p9277_p5, %p9271_p2 }
  0x57   :  { %9281 = shalt.err (!%p9278_p6)  }
  0x58   :  { %180 = dma.hbm_to_vmem [thread:$0]  %s12393_s8, 1024, %s178_s28, [#allocation10 + $0x6]  ;;  %v7746_v49 = vcombine.high %v9458_v14, %v9463_v15  ;;  %v7745_v50 = vcombine.low %v9458_v14, %v9463_v15  ;;  %v7744_v51 = vcombine.high %v9448_v12, %v9453_v13 }
  0x59   :  { %9304 = dma.done.wait [#allocation10], 2048 }
  0x5a   :  { %9305 = vsyncadd [#allocation10], 4294965248  ;;  %369 = vmatprep.subr.bf16.mxu0 %v7746_v49  ;;  %v7743_v52 = vcombine.low %v9448_v12, %v9453_v13  ;;  %v7742_v53 = vcombine.high %v9438_v10, %v9443_v11  ;;  %v9328_v54 = vmov 0   ;;  %v7741_v55 = vcombine.low %v9438_v10, %v9443_v11  ;;  %v269_v13 = vld [vmem:[#allocation11] ss:$8 sm:$0x3] }
  0x5b   :  { %370 = vmatpush1.bf16.msra.mxu0 %v7745_v50  ;;  %401 = vmatprep.mubr.bf16.mxu0 %v9328_v54  ;;  %v7740_v56 = vcombine.high %v9428_v8, %v9433_v9  ;;  %v7739_v57 = vcombine.low %v9428_v8, %v9433_v9  ;;  %v7738_v58 = vcombine.high %v9418_v6, %v9423_v7  ;;  %v279_v10 = vlaneseq }
  0x5c   :  { %371 = vmatprep.subr.bf16.mxu0 %v7744_v51  ;;  %v7737_v59 = vcombine.low %v9418_v6, %v9423_v7  ;;  %v7736_v60 = vcombine.high %v9408_v4, %v9413_v5  ;;  %v7735_v61 = vcombine.low %v9408_v4, %v9413_v5  ;;  %v7734_v62 = vcombine.high %v9398_v2, %v9403_v3 }
  0x5d   :  { %v7733_v63 = vcombine.low %v9398_v2, %v9403_v3  ;;  %v7732_v6 = vcombine.high %v9388_v0, %v9393_v1  ;;  %v7731_v7 = vcombine.low %v9388_v0, %v9393_v1  ;;  %v270_v4 = vpack.c.bf16 %v9554_v34, %v9552_v33 }
  0x5e   :  { %v271_v5 = vpack.c.bf16 %v9558_v36, %v9556_v35  ;;  %v272_v2 = vpack.c.bf16 %v9562_v38, %v9560_v37  ;;  %v273_v0 = vpack.c.bf16 %v9569_v40, %v9567_v39  ;;  %v274_v1 = vpack.c.bf16 %v9573_v42, %v9571_v41 }
  0x5f   :  { %372 = vmatpush1.bf16.msra.mxu0 %v7743_v52  ;;  %v275_v3 = vpack.c.bf16 %v9577_v44, %v9575_v43  ;;  %v276_v8 = vpack.c.bf16 %v9581_v46, %v9579_v45  ;;  %v277_v9 = vpack.c.bf16 %v9588_v48, %v9583_v47  ;;  %v9641_v11 = vshrl.u32 %v279_v10, 7 }
  0x60   :  { %373 = vmatprep.subr.bf16.mxu0 %v7742_v53 }
  0x61   :  { %12545 = vst [vmem:[#allocation39_spill] sm:$0xff] %v9641_v11  ;;  %v9644_v12 = vsub.s32 0, %v9641_v11  ;;  %v9647_v14 = vsub.s32 1, %v9641_v11 }
  0x63   :  { %374 = vmatpush1.bf16.msra.mxu0 %v7741_v55  ;;  %12546 = vst [vmem:[#allocation40_spill] sm:$0xff] %v9644_v12  ;;  %12547 = vst [vmem:[#allocation41_spill] sm:$0xff] %v9647_v14  ;;  %v9650_v15 = vrot.slane %v269_v13, %v9644_v12  ;;  %v9653_v16 = vrot.slane %v269_v13, %v9647_v14 }
  0x64   :  { %375 = vmatprep.subr.bf16.mxu0 %v7740_v56 }
  0x67   :  { %376 = vmatpush1.bf16.msra.mxu0 %v7739_v57 }
  0x68   :  { %377 = vmatprep.subr.bf16.mxu0 %v7738_v58 }
  0x6b   :  { %378 = vmatpush1.bf16.msra.mxu0 %v7737_v59 }
  0x6c   :  { %379 = vmatprep.subr.bf16.mxu0 %v7736_v60 }
  0x6f   :  { %380 = vmatpush1.bf16.msra.mxu0 %v7735_v61 }
  0x70   :  { %381 = vmatprep.subr.bf16.mxu0 %v7734_v62 }
  0x73   :  { %382 = vmatpush1.bf16.msra.mxu0 %v7733_v63 }
  0x74   :  { %383 = vmatprep.subr.bf16.mxu0 %v7732_v6 }
  0x77   :  { %384 = vmatpush1.bf16.msra.mxu0 %v7731_v7 }
  0x7a   :  { %402 = vmatmul.mubr.bf16.vlgmr.msra.gmra.mxu0 %v270_v4 }
  0x7b   :  { %411 = vmatprep.mubr.bf16.mxu0 %v9328_v54 }
  0x82   :  { %412 = vmatmul.mubr.bf16.gmra.mxu0 %v271_v5 }
  0x83   :  { %421 = vmatprep.mubr.bf16.mxu0 %v9328_v54 }
  0x8a   :  { %422 = vmatmul.mubr.bf16.gmra.mxu0 %v272_v2 }
  0x8b   :  { %431 = vmatprep.mubr.bf16.mxu0 %v9328_v54 }
  0x92   :  { %432 = vmatmul.mubr.bf16.gmra.mxu0 %v273_v0 }
  0x93   :  { %441 = vmatprep.mubr.bf16.mxu0 %v9328_v54 }
  0x9a   :  { %442 = vmatmul.mubr.bf16.gmra.mxu0 %v274_v1 }
  0x9b   :  { %451 = vmatprep.mubr.bf16.mxu0 %v9328_v54 }
  0xa2   :  { %452 = vmatmul.mubr.bf16.gmra.mxu0 %v275_v3 }
  0xa3   :  { %461 = vmatprep.mubr.bf16.mxu0 %v9328_v54 }
  0xaa   :  { %462 = vmatmul.mubr.bf16.gmra.mxu0 %v276_v8 }
  0xab   :  { %471 = vmatprep.mubr.bf16.mxu0 %v9328_v54 }
  0xb2   :  { %472 = vmatmul.mubr.bf16.gmra.mxu0 %v277_v9 }
 0x13a   :  { %v403_v17 = vpop.f32.mrf.mxu0 }
 0x13b   :  { %v9656_v18 = vadd.f32 %v403_v17, %v9650_v15 }
 0x13c   :  { %v405_v19 = vpop.f32.mrf.mxu0 }
 0x13d   :  { %v482_v20 = vmax.f32 %v9656_v18, 0.0  ;;  %v9660_v21 = vadd.f32 %v405_v19, %v9653_v16 }
 0x13e   :  { %v407_v22 = vpop.f32.mrf.mxu0 }
 0x13f   :  { %v483_v23 = vmax.f32 %v9660_v21, 0.0  ;;  %v9664_v24 = vadd.f32 %v407_v22, %v9650_v15 }
 0x140   :  { %v409_v25 = vpop.f32.mrf.mxu0 }
 0x141   :  { %v484_v26 = vmax.f32 %v9664_v24, 0.0  ;;  %v9668_v27 = vadd.f32 %v409_v25, %v9653_v16 }
 0x142   :  { %v413_v28 = vpop.f32.mrf.mxu0 }
 0x143   :  { %v485_v29 = vmax.f32 %v9668_v27, 0.0  ;;  %v9672_v30 = vadd.f32 %v413_v28, %v9650_v15 }
 0x144   :  { %v415_v31 = vpop.f32.mrf.mxu0 }
 0x145   :  { %v486_v32 = vmax.f32 %v9672_v30, 0.0  ;;  %v9676_v33 = vadd.f32 %v415_v31, %v9653_v16 }
 0x146   :  { %v417_v34 = vpop.f32.mrf.mxu0 }
 0x147   :  { %v487_v35 = vmax.f32 %v9676_v33, 0.0  ;;  %v9680_v36 = vadd.f32 %v417_v34, %v9650_v15 }
 0x148   :  { %v419_v37 = vpop.f32.mrf.mxu0 }
 0x149   :  { %v488_v38 = vmax.f32 %v9680_v36, 0.0  ;;  %v9684_v39 = vadd.f32 %v419_v37, %v9653_v16 }
 0x14a   :  { %v423_v40 = vpop.f32.mrf.mxu0 }
 0x14b   :  { %v489_v41 = vmax.f32 %v9684_v39, 0.0  ;;  %v9688_v42 = vadd.f32 %v423_v40, %v9650_v15 }
 0x14c   :  { %v425_v43 = vpop.f32.mrf.mxu0 }
 0x14d   :  { %v490_v44 = vmax.f32 %v9688_v42, 0.0  ;;  %v9692_v45 = vadd.f32 %v425_v43, %v9653_v16 }
 0x14e   :  { %v427_v46 = vpop.f32.mrf.mxu0 }
 0x14f   :  { %v491_v47 = vmax.f32 %v9692_v45, 0.0  ;;  %v9696_v48 = vadd.f32 %v427_v46, %v9650_v15 }
 0x150   :  { %v429_v49 = vpop.f32.mrf.mxu0 }
 0x151   :  { %v492_v50 = vmax.f32 %v9696_v48, 0.0  ;;  %v9700_v51 = vadd.f32 %v429_v49, %v9653_v16 }
 0x152   :  { %v433_v52 = vpop.f32.mrf.mxu0 }
 0x153   :  { %v493_v53 = vmax.f32 %v9700_v51, 0.0  ;;  %v9704_v54 = vadd.f32 %v433_v52, %v9650_v15 }
 0x154   :  { %v435_v55 = vpop.f32.mrf.mxu0 }
 0x155   :  { %v494_v56 = vmax.f32 %v9704_v54, 0.0  ;;  %v9708_v57 = vadd.f32 %v435_v55, %v9653_v16 }
 0x156   :  { %v437_v58 = vpop.f32.mrf.mxu0 }
 0x157   :  { %v495_v59 = vmax.f32 %v9708_v57, 0.0  ;;  %v9712_v60 = vadd.f32 %v437_v58, %v9650_v15 }
 0x158   :  { %v439_v61 = vpop.f32.mrf.mxu0 }
 0x159   :  { %v496_v62 = vmax.f32 %v9712_v60, 0.0  ;;  %v9716_v63 = vadd.f32 %v439_v61, %v9653_v16 }
 0x15a   :  { %v443_v6 = vpop.f32.mrf.mxu0 }
 0x15b   :  { %v497_v7 = vmax.f32 %v9716_v63, 0.0  ;;  %v9720_v4 = vadd.f32 %v443_v6, %v9650_v15 }
 0x15c   :  { %v445_v5 = vpop.f32.mrf.mxu0 }
 0x15d   :  { %v9724_v0 = vadd.f32 %v445_v5, %v9653_v16 }
 0x15e   :  { %v447_v1 = vpop.f32.mrf.mxu0 }
 0x15f   :  { %v499_v3 = vmax.f32 %v9724_v0, 0.0  ;;  %v9728_v8 = vadd.f32 %v447_v1, %v9650_v15 }
 0x160   :  { %v449_v9 = vpop.f32.mrf.mxu0 }
 0x161   :  { %v9732_v13 = vadd.f32 %v449_v9, %v9653_v16 }
 0x162   :  { %v453_v17 = vpop.f32.mrf.mxu0 }
 0x163   :  { %v501_v19 = vmax.f32 %v9732_v13, 0.0  ;;  %v9736_v22 = vadd.f32 %v453_v17, %v9650_v15 }
 0x164   :  { %v455_v25 = vpop.f32.mrf.mxu0 }
 0x165   :  { %v9740_v31 = vadd.f32 %v455_v25, %v9653_v16 }
 0x166   :  { %v457_v34 = vpop.f32.mrf.mxu0 }
 0x167   :  { %v9744_v40 = vadd.f32 %v457_v34, %v9650_v15 }
 0x168   :  { %v459_v43 = vpop.f32.mrf.mxu0 }
 0x169   :  { %v9748_v49 = vadd.f32 %v459_v43, %v9653_v16 }
 0x16a   :  { %v463_v52 = vpop.f32.mrf.mxu0 }
 0x16b   :  { %v9752_v58 = vadd.f32 %v463_v52, %v9650_v15 }
 0x16c   :  { %v465_v61 = vpop.f32.mrf.mxu0 }
 0x16d   :  { %v9756_v5 = vadd.f32 %v465_v61, %v9653_v16 }
 0x16e   :  { %v467_v1 = vpop.f32.mrf.mxu0 }
 0x16f   :  { %v9760_v17 = vadd.f32 %v467_v1, %v9650_v15 }
 0x170   :  { %v469_v25 = vpop.f32.mrf.mxu0 }
 0x171   :  { %v9764_v43 = vadd.f32 %v469_v25, %v9653_v16 }
 0x172   :  { %v473_v52 = vpop.f32.mrf.mxu0 }
 0x173   :  { %v9768_v6 = vadd.f32 %v473_v52, %v9650_v15 }
 0x174   :  { %v475_v61 = vpop.f32.mrf.mxu0 }
 0x175   :  { %v9772_v9 = vadd.f32 %v475_v61, %v9653_v16 }
 0x176   :  { %v477_v1 = vpop.f32.mrf.mxu0 }
 0x177   :  { %v9776_v34 = vadd.f32 %v477_v1, %v9650_v15 }
 0x178   :  { %v479_v25 = vpop.f32.mrf.mxu0 }
 0x179   :  { %v9780_v46 = vadd.f32 %v479_v25, %v9653_v16 }
 0x17a   :  { %9306 = dma.done.wait [#allocation10 + $0x1], 8192 }
 0x17b   :  { %9307 = vsyncadd [#allocation10 + $0x1], 4294959104  ;;  %v589_v61 = vpack.c.bf16 %v485_v29, %v483_v23  ;;  %v8542_v28 = vld [vmem:[#allocation4 + $0xe4] ss:$16 sps:$4 sm:$0xff]   ;;  %v8544_v15 = vld [vmem:[#allocation4 + $0xec] ss:$16 sps:$4 sm:$0xff]   ;;  %v593_v18 = vpack.c.bf16 %v493_v53, %v491_v47  ;;  %v595_v24 = vpack.c.bf16 %v497_v7, %v495_v59  ;;  %v597_v30 = vpack.c.bf16 %v501_v19, %v499_v3 }
 0x17c   :  { %945 = vmatprep.subr.bf16.mxu1 %v8542_v28  ;;  %v8546_v1 = vld [vmem:[#allocation4 + $0xe0] ss:$16 sps:$4 sm:$0xff]   ;;  %v8547_v55 = vld [vmem:[#allocation4 + $0xe8] ss:$16 sps:$4 sm:$0xff]   ;;  %1058 = vmatprep.subr.bf16.mxu0 %v8544_v15  ;;  %v8548_v37 = vld [vmem:[#allocation4 + $0xc4] ss:$16 sps:$4 sm:$0xff]  }
 0x17d   :  { %977 = vmatprep.mubr.bf16.mxu1 %v589_v61  ;;  %1090 = vmatprep.mubr.bf16.mxu0 %v589_v61  ;;  %v8550_v16 = vld [vmem:[#allocation4 + $0xcc] ss:$16 sps:$4 sm:$0xff]   ;;  %v8552_v25 = vld [vmem:[#allocation4 + $0xc0] ss:$16 sps:$4 sm:$0xff]   ;;  %v8553_v52 = vld [vmem:[#allocation4 + $0xc8] ss:$16 sps:$4 sm:$0xff]  }
 0x17e   :  { %946 = vmatpush1.bf16.msra.mxu1 %v8546_v1  ;;  %1059 = vmatpush1.bf16.msra.mxu0 %v8547_v55  ;;  %v8554_v21 = vld [vmem:[#allocation4 + $0xa4] ss:$16 sps:$4 sm:$0xff]   ;;  %v8556_v10 = vld [vmem:[#allocation4 + $0xac] ss:$16 sps:$4 sm:$0xff]   ;;  %v8558_v27 = vld [vmem:[#allocation4 + $0xa0] ss:$16 sps:$4 sm:$0xff]  }
 0x17f   :  { %947 = vmatprep.subr.bf16.mxu1 %v8548_v37  ;;  %1060 = vmatprep.subr.bf16.mxu0 %v8550_v16  ;;  %v8559_v23 = vld [vmem:[#allocation4 + $0xa8] ss:$16 sps:$4 sm:$0xff]   ;;  %v8560_v29 = vld [vmem:[#allocation4 + $0x84] ss:$16 sps:$4 sm:$0xff]   ;;  %v8562_v28 = vld [vmem:[#allocation4 + $0x8c] ss:$16 sps:$4 sm:$0xff]  }
 0x180   :  { %v8564_v61 = vld [vmem:[#allocation4 + $0x80] ss:$16 sps:$4 sm:$0xff]   ;;  %v8565_v15 = vld [vmem:[#allocation4 + $0x88] ss:$16 sps:$4 sm:$0xff]   ;;  %v8566_v55 = vld [vmem:[#allocation4 + $0x64] ss:$16 sps:$4 sm:$0xff]  }
 0x181   :  { %v8568_v37 = vld [vmem:[#allocation4 + $0x6c] ss:$16 sps:$4 sm:$0xff]   ;;  %v8570_v1 = vld [vmem:[#allocation4 + $0x60] ss:$16 sps:$4 sm:$0xff]   ;;  %v8571_v16 = vld [vmem:[#allocation4 + $0x68] ss:$16 sps:$4 sm:$0xff]  }
 0x182   :  { %948 = vmatpush1.bf16.msra.mxu1 %v8552_v25  ;;  %1061 = vmatpush1.bf16.msra.mxu0 %v8553_v52  ;;  %v8572_v2 = vld [vmem:[#allocation4 + $0x44] ss:$16 sps:$4 sm:$0xff]   ;;  %v8574_v52 = vld [vmem:[#allocation4 + $0x4c] ss:$16 sps:$4 sm:$0xff]   ;;  %v8576_v25 = vld [vmem:[#allocation4 + $0x40] ss:$16 sps:$4 sm:$0xff]  }
 0x183   :  { %949 = vmatprep.subr.bf16.mxu1 %v8554_v21  ;;  %1062 = vmatprep.subr.bf16.mxu0 %v8556_v10  ;;  %v8577_v10 = vld [vmem:[#allocation4 + $0x48] ss:$16 sps:$4 sm:$0xff]   ;;  %v8578_v21 = vld [vmem:[#allocation4 + $0x24] ss:$16 sps:$4 sm:$0xff]   ;;  %v12549_v33 = vmax.f32 %v9728_v8, 0.0  ;;  %v12550_v36 = vmax.f32 %v9740_v31, 0.0 }
 0x184   :  { %v12553_v42 = vmax.f32 %v9744_v40, 0.0  ;;  %v12554_v45 = vmax.f32 %v9756_v5, 0.0  ;;  %v12555_v47 = vmax.f32 %v9764_v43, 0.0  ;;  %v12557_v51 = vmax.f32 %v9760_v17, 0.0 }
 0x185   :  { %v12558_v54 = vmax.f32 %v9772_v9, 0.0  ;;  %v12560_v59 = vmax.f32 %v9768_v6, 0.0  ;;  %v12561_v60 = vmax.f32 %v9776_v34, 0.0  ;;  %v9848_v63 = vsub.s32 2, %v9641_v11 }
 0x186   :  { %950 = vmatpush1.bf16.msra.mxu1 %v8558_v27  ;;  %1063 = vmatpush1.bf16.msra.mxu0 %v8559_v23  ;;  %v8580_v27 = vld [vmem:[#allocation4 + $0x2c] ss:$16 sps:$4 sm:$0xff]   ;;  %v8582_v23 = vld [vmem:[#allocation4 + $0x20] ss:$16 sps:$4 sm:$0xff]   ;;  %v601_v48 = vpack.c.bf16 %v12555_v47, %v12554_v45 }
 0x187   :  { %951 = vmatprep.subr.bf16.mxu1 %v8560_v29  ;;  %1064 = vmatprep.subr.bf16.mxu0 %v8562_v28  ;;  %v8583_v29 = vld [vmem:[#allocation4 + $0x28] ss:$16 sps:$4 sm:$0xff]   ;;  %v8584_v28 = vld [vmem:[#allocation4 + $0x4] ss:$16 sps:$4 sm:$0xff]   ;;  %12562 = vst [vmem:[#allocation42_spill] sm:$0xff] %v9848_v63 }
 0x188   :  { %v587_v7 = vld [vmem:[#allocation11 + $0x1] ss:$8 sm:$0xf] }
 0x189   :  { %v9854_v0 = vrot.slane %v587_v7, %v9644_v12  ;;  %v9857_v3 = vrot.slane %v587_v7, %v9848_v63  ;;  %v9860_v8 = vrot.slane %v587_v7, %v9647_v14 }
 0x18a   :  { %952 = vmatpush1.bf16.msra.mxu1 %v8564_v61  ;;  %1065 = vmatpush1.bf16.msra.mxu0 %v8565_v15  ;;  %v8586_v61 = vld [vmem:[#allocation4 + $0xc] ss:$16 sps:$4 sm:$0xff]   ;;  %v8588_v15 = vld [vmem:[#allocation4] ss:$16 sps:$4 sm:$0xff]  }
 0x18b   :  { %953 = vmatprep.subr.bf16.mxu1 %v8566_v55  ;;  %1066 = vmatprep.subr.bf16.mxu0 %v8568_v37  ;;  %v8589_v55 = vld [vmem:[#allocation4 + $0x8] ss:$16 sps:$4 sm:$0xff]   ;;  %v8590_v37 = vld [vmem:[#allocation4 + $0x1e4] ss:$16 sps:$4 sm:$0xff]  }
 0x18e   :  { %954 = vmatpush1.bf16.msra.mxu1 %v8570_v1  ;;  %1067 = vmatpush1.bf16.msra.mxu0 %v8571_v16  ;;  %v8592_v1 = vld [vmem:[#allocation4 + $0x1ec] ss:$16 sps:$4 sm:$0xff]   ;;  %v8594_v16 = vld [vmem:[#allocation4 + $0x1e0] ss:$16 sps:$4 sm:$0xff]  }
 0x18f   :  { %955 = vmatprep.subr.bf16.mxu1 %v8572_v2  ;;  %1068 = vmatprep.subr.bf16.mxu0 %v8574_v52  ;;  %v8595_v2 = vld [vmem:[#allocation4 + $0x1e8] ss:$16 sps:$4 sm:$0xff]   ;;  %v8596_v52 = vld [vmem:[#allocation4 + $0x1c4] ss:$16 sps:$4 sm:$0xff]  }
 0x192   :  { %956 = vmatpush1.bf16.msra.mxu1 %v8576_v25  ;;  %1069 = vmatpush1.bf16.msra.mxu0 %v8577_v10  ;;  %v8598_v25 = vld [vmem:[#allocation4 + $0x1cc] ss:$16 sps:$4 sm:$0xff]   ;;  %v8600_v10 = vld [vmem:[#allocation4 + $0x1c0] ss:$16 sps:$4 sm:$0xff]  }
 0x193   :  { %957 = vmatprep.subr.bf16.mxu1 %v8578_v21  ;;  %1070 = vmatprep.subr.bf16.mxu0 %v8580_v27  ;;  %v8601_v21 = vld [vmem:[#allocation4 + $0x1c8] ss:$16 sps:$4 sm:$0xff]   ;;  %v8602_v27 = vld [vmem:[#allocation4 + $0x1a4] ss:$16 sps:$4 sm:$0xff]  }
 0x196   :  { %958 = vmatpush1.bf16.msra.mxu1 %v8582_v23  ;;  %1071 = vmatpush1.bf16.msra.mxu0 %v8583_v29  ;;  %v8604_v23 = vld [vmem:[#allocation4 + $0x1ac] ss:$16 sps:$4 sm:$0xff]   ;;  %v8606_v29 = vld [vmem:[#allocation4 + $0x1a0] ss:$16 sps:$4 sm:$0xff]  }
 0x197   :  { %959 = vmatprep.subr.bf16.mxu1 %v8584_v28  ;;  %1072 = vmatprep.subr.bf16.mxu0 %v8586_v61  ;;  %v8607_v28 = vld [vmem:[#allocation4 + $0x1a8] ss:$16 sps:$4 sm:$0xff]   ;;  %v8608_v61 = vld [vmem:[#allocation4 + $0x184] ss:$16 sps:$4 sm:$0xff]  }
 0x19a   :  { %960 = vmatpush1.bf16.msra.mxu1 %v8588_v15  ;;  %1073 = vmatpush1.bf16.msra.mxu0 %v8589_v55  ;;  %v8610_v15 = vld [vmem:[#allocation4 + $0x18c] ss:$16 sps:$4 sm:$0xff]   ;;  %v8612_v55 = vld [vmem:[#allocation4 + $0x180] ss:$16 sps:$4 sm:$0xff]  }
 0x19b   :  { %961 = vmatprep.subr.bf16.mxu1 %v8590_v37  ;;  %1074 = vmatprep.subr.bf16.mxu0 %v8592_v1  ;;  %v8613_v37 = vld [vmem:[#allocation4 + $0x188] ss:$16 sps:$4 sm:$0xff]   ;;  %v8614_v1 = vld [vmem:[#allocation4 + $0x164] ss:$16 sps:$4 sm:$0xff]  }
 0x19e   :  { %962 = vmatpush2.bf16.msra.mxu1 %v8594_v16  ;;  %1075 = vmatpush2.bf16.msra.mxu0 %v8595_v2  ;;  %v8616_v16 = vld [vmem:[#allocation4 + $0x16c] ss:$16 sps:$4 sm:$0xff]   ;;  %v8618_v2 = vld [vmem:[#allocation4 + $0x160] ss:$16 sps:$4 sm:$0xff]  }
 0x19f   :  { %963 = vmatprep.subr.bf16.mxu1 %v8596_v52  ;;  %1076 = vmatprep.subr.bf16.mxu0 %v8598_v25  ;;  %v8619_v52 = vld [vmem:[#allocation4 + $0x168] ss:$16 sps:$4 sm:$0xff]   ;;  %v8620_v25 = vld [vmem:[#allocation4 + $0x144] ss:$16 sps:$4 sm:$0xff]  }
 0x1a2   :  { %964 = vmatpush2.bf16.msra.mxu1 %v8600_v10  ;;  %1077 = vmatpush2.bf16.msra.mxu0 %v8601_v21  ;;  %v8622_v10 = vld [vmem:[#allocation4 + $0x14c] ss:$16 sps:$4 sm:$0xff]   ;;  %v8624_v21 = vld [vmem:[#allocation4 + $0x140] ss:$16 sps:$4 sm:$0xff]  }
 0x1a3   :  { %965 = vmatprep.subr.bf16.mxu1 %v8602_v27  ;;  %1078 = vmatprep.subr.bf16.mxu0 %v8604_v23  ;;  %v8625_v27 = vld [vmem:[#allocation4 + $0x148] ss:$16 sps:$4 sm:$0xff]   ;;  %v8626_v23 = vld [vmem:[#allocation4 + $0x124] ss:$16 sps:$4 sm:$0xff]  }
 0x1a6   :  { %966 = vmatpush2.bf16.msra.mxu1 %v8606_v29  ;;  %1079 = vmatpush2.bf16.msra.mxu0 %v8607_v28  ;;  %v8628_v29 = vld [vmem:[#allocation4 + $0x12c] ss:$16 sps:$4 sm:$0xff]   ;;  %v8630_v28 = vld [vmem:[#allocation4 + $0x120] ss:$16 sps:$4 sm:$0xff]  }
 0x1a7   :  { %967 = vmatprep.subr.bf16.mxu1 %v8608_v61  ;;  %1080 = vmatprep.subr.bf16.mxu0 %v8610_v15  ;;  %v8631_v61 = vld [vmem:[#allocation4 + $0x128] ss:$16 sps:$4 sm:$0xff]   ;;  %v8632_v15 = vld [vmem:[#allocation4 + $0x104] ss:$16 sps:$4 sm:$0xff]  }
 0x1aa   :  { %968 = vmatpush2.bf16.msra.mxu1 %v8612_v55  ;;  %1081 = vmatpush2.bf16.msra.mxu0 %v8613_v37  ;;  %v8634_v55 = vld [vmem:[#allocation4 + $0x10c] ss:$16 sps:$4 sm:$0xff]   ;;  %v8636_v37 = vld [vmem:[#allocation4 + $0x100] ss:$16 sps:$4 sm:$0xff]  }
 0x1ab   :  { %969 = vmatprep.subr.bf16.mxu1 %v8614_v1  ;;  %1082 = vmatprep.subr.bf16.mxu0 %v8616_v16  ;;  %v8637_v1 = vld [vmem:[#allocation4 + $0x108] ss:$16 sps:$4 sm:$0xff]   ;;  %v588_v16 = vpack.c.bf16 %v484_v26, %v482_v20  ;;  %v592_v20 = vpack.c.bf16 %v492_v50, %v490_v44  ;;  %v594_v26 = vpack.c.bf16 %v496_v62, %v494_v56  ;;  %v12556_v50 = vmax.f32 %v9752_v58, 0.0 }
 0x1ac   :  { %v12559_v56 = vmax.f32 %v9780_v46, 0.0  ;;  %v602_v62 = vpack.c.bf16 %v12561_v60, %v12560_v59 }
 0x1ad   :  { %v600_v53 = vpack.c.bf16 %v12557_v51, %v12556_v50 }
 0x1ae   :  { %970 = vmatpush2.bf16.msra.mxu1 %v8618_v2  ;;  %1083 = vmatpush2.bf16.msra.mxu0 %v8619_v52  ;;  %v591_v2 = vpack.c.bf16 %v489_v41, %v487_v35  ;;  %v590_v52 = vpack.c.bf16 %v488_v38, %v486_v32  ;;  %v12548_v32 = vmax.f32 %v9720_v4, 0.0  ;;  %v12551_v38 = vmax.f32 %v9748_v49, 0.0 }
 0x1af   :  { %971 = vmatprep.subr.bf16.mxu1 %v8620_v25  ;;  %1084 = vmatprep.subr.bf16.mxu0 %v8622_v10  ;;  %v12552_v41 = vmax.f32 %v9736_v22, 0.0  ;;  %v603_v57 = vpack.c.bf16 %v12559_v56, %v12558_v54  ;;  %v9851_v4 = vsub.s32 3, %v9641_v11 }
 0x1b0   :  { %v596_v35 = vpack.c.bf16 %v12549_v33, %v12548_v32  ;;  %v599_v39 = vpack.c.bf16 %v12551_v38, %v12550_v36 }
 0x1b1   :  { %v598_v44 = vpack.c.bf16 %v12553_v42, %v12552_v41  ;;  %12563 = vst [vmem:[#allocation43_spill] sm:$0xff] %v9851_v4  ;;  %v9863_v13 = vrot.slane %v587_v7, %v9851_v4 }
 0x1b2   :  { %972 = vmatpush2.bf16.msra.mxu1 %v8624_v21  ;;  %1085 = vmatpush2.bf16.msra.mxu0 %v8625_v27 }
 0x1b3   :  { %973 = vmatprep.subr.bf16.mxu1 %v8626_v23  ;;  %1086 = vmatprep.subr.bf16.mxu0 %v8628_v29 }
 0x1b6   :  { %974 = vmatpush2.bf16.msra.mxu1 %v8630_v28  ;;  %1087 = vmatpush2.bf16.msra.mxu0 %v8631_v61 }
 0x1b7   :  { %975 = vmatprep.subr.bf16.mxu1 %v8632_v15  ;;  %1088 = vmatprep.subr.bf16.mxu0 %v8634_v55 }
 0x1ba   :  { %976 = vmatpush2.bf16.msra.mxu1 %v8636_v37  ;;  %1089 = vmatpush2.bf16.msra.mxu0 %v8637_v1 }
 0x1bd   :  { %978 = vmatmul.mubr.bf16.vlgmr.msra.gmra.mxu1 %v588_v16  ;;  %1091 = vmatmul.mubr.bf16.vlgmr.msra.gmra.mxu0 %v588_v16 }
 0x1be   :  { %987 = vmatprep.mubr.bf16.mxu1 %v591_v2  ;;  %1100 = vmatprep.mubr.bf16.mxu0 %v591_v2 }
 0x1c5   :  { %988 = vmatmul.mubr.bf16.gmra.mxu1 %v590_v52  ;;  %1101 = vmatmul.mubr.bf16.gmra.mxu0 %v590_v52 }
 0x1c6   :  { %997 = vmatprep.mubr.bf16.mxu1 %v593_v18  ;;  %1110 = vmatprep.mubr.bf16.mxu0 %v593_v18 }
 0x1cd   :  { %998 = vmatmul.mubr.bf16.gmra.mxu1 %v592_v20  ;;  %1111 = vmatmul.mubr.bf16.gmra.mxu0 %v592_v20 }
 0x1ce   :  { %1007 = vmatprep.mubr.bf16.mxu1 %v595_v24  ;;  %1120 = vmatprep.mubr.bf16.mxu0 %v595_v24 }
 0x1d5   :  { %1008 = vmatmul.mubr.bf16.gmra.mxu1 %v594_v26  ;;  %1121 = vmatmul.mubr.bf16.gmra.mxu0 %v594_v26 }
 0x1d6   :  { %1017 = vmatprep.mubr.bf16.mxu1 %v597_v30  ;;  %1130 = vmatprep.mubr.bf16.mxu0 %v597_v30 }
 0x1dd   :  { %1018 = vmatmul.mubr.bf16.gmra.mxu1 %v596_v35  ;;  %1131 = vmatmul.mubr.bf16.gmra.mxu0 %v596_v35 }
 0x1de   :  { %1027 = vmatprep.mubr.bf16.mxu1 %v599_v39  ;;  %1140 = vmatprep.mubr.bf16.mxu0 %v599_v39 }
 0x1e5   :  { %1028 = vmatmul.mubr.bf16.gmra.mxu1 %v598_v44  ;;  %1141 = vmatmul.mubr.bf16.gmra.mxu0 %v598_v44 }
 0x1e6   :  { %1037 = vmatprep.mubr.bf16.mxu1 %v601_v48  ;;  %1150 = vmatprep.mubr.bf16.mxu0 %v601_v48 }
 0x1ed   :  { %1038 = vmatmul.mubr.bf16.gmra.mxu1 %v600_v53  ;;  %1151 = vmatmul.mubr.bf16.gmra.mxu0 %v600_v53 }
 0x1ee   :  { %1047 = vmatprep.mubr.bf16.mxu1 %v603_v57  ;;  %1160 = vmatprep.mubr.bf16.mxu0 %v603_v57 }
 0x1f5   :  { %1048 = vmatmul.mubr.bf16.gmra.mxu1 %v602_v62  ;;  %1161 = vmatmul.mubr.bf16.gmra.mxu0 %v602_v62 }
 0x27d   :  { %v979_v19 = vpop.f32.mrf.mxu1  ;;  %v1092_v22 = vpop.f32.mrf.mxu0 }
 0x27e   :  { %v9866_v31 = vadd.f32 %v979_v19, %v9854_v0  ;;  %v9869_v40 = vadd.f32 %v1092_v22, %v9857_v3 }
 0x27f   :  { %v981_v46 = vpop.f32.mrf.mxu1  ;;  %v1094_v49 = vpop.f32.mrf.mxu0 }
 0x280   :  { %v9874_v5 = vadd.f32 %v981_v46, %v9860_v8  ;;  %v9877_v9 = vadd.f32 %v1094_v49, %v9863_v13 }
 0x281   :  { %v983_v17 = vpop.f32.mrf.mxu1  ;;  %v1096_v34 = vpop.f32.mrf.mxu0 }
 0x282   :  { %v9882_v10 = vadd.f32 %v983_v17, %v9854_v0  ;;  %v9885_v21 = vadd.f32 %v1096_v34, %v9857_v3 }
 0x283   :  { %v985_v27 = vpop.f32.mrf.mxu1  ;;  %v1098_v23 = vpop.f32.mrf.mxu0 }
 0x284   :  { %v9890_v61 = vadd.f32 %v985_v27, %v9860_v8  ;;  %v9893_v15 = vadd.f32 %v1098_v23, %v9863_v13 }
 0x285   :  { %v989_v55 = vpop.f32.mrf.mxu1  ;;  %v1102_v37 = vpop.f32.mrf.mxu0 }
 0x286   :  { %v9898_v2 = vadd.f32 %v989_v55, %v9854_v0  ;;  %v9901_v52 = vadd.f32 %v1102_v37, %v9857_v3 }
 0x287   :  { %v991_v18 = vpop.f32.mrf.mxu1  ;;  %v1104_v20 = vpop.f32.mrf.mxu0 }
 0x288   :  { %v9906_v30 = vadd.f32 %v991_v18, %v9860_v8  ;;  %v9909_v32 = vadd.f32 %v1104_v20, %v9863_v13 }
 0x289   :  { %v993_v33 = vpop.f32.mrf.mxu1  ;;  %v1106_v35 = vpop.f32.mrf.mxu0 }
 0x28a   :  { %v9914_v39 = vadd.f32 %v993_v33, %v9854_v0  ;;  %v9917_v41 = vadd.f32 %v1106_v35, %v9857_v3 }
 0x28b   :  { %v995_v42 = vpop.f32.mrf.mxu1  ;;  %v1108_v44 = vpop.f32.mrf.mxu0 }
 0x28c   :  { %v9922_v48 = vadd.f32 %v995_v42, %v9860_v8  ;;  %v9925_v50 = vadd.f32 %v1108_v44, %v9863_v13 }
 0x28d   :  { %v999_v51 = vpop.f32.mrf.mxu1  ;;  %v1112_v53 = vpop.f32.mrf.mxu0 }
 0x28e   :  { %v9930_v57 = vadd.f32 %v999_v51, %v9854_v0  ;;  %v9933_v59 = vadd.f32 %v1112_v53, %v9857_v3 }
 0x28f   :  { %v1001_v60 = vpop.f32.mrf.mxu1  ;;  %v1114_v62 = vpop.f32.mrf.mxu0 }
 0x290   :  { %v9938_v22 = vadd.f32 %v1001_v60, %v9860_v8  ;;  %v9941_v46 = vadd.f32 %v1114_v62, %v9863_v13 }
 0x291   :  { %v1003_v49 = vpop.f32.mrf.mxu1  ;;  %v1116_v17 = vpop.f32.mrf.mxu0 }
 0x292   :  { %v9946_v23 = vadd.f32 %v1003_v49, %v9854_v0  ;;  %v9949_v55 = vadd.f32 %v1116_v17, %v9857_v3 }
 0x293   :  { %v1005_v37 = vpop.f32.mrf.mxu1  ;;  %v1118_v18 = vpop.f32.mrf.mxu0 }
 0x294   :  { %v9954_v35 = vadd.f32 %v1005_v37, %v9860_v8  ;;  %v9957_v42 = vadd.f32 %v1118_v18, %v9863_v13 }
 0x295   :  { %v1009_v44 = vpop.f32.mrf.mxu1  ;;  %v1122_v51 = vpop.f32.mrf.mxu0 }
 0x296   :  { %v9962_v62 = vadd.f32 %v1009_v44, %v9854_v0  ;;  %v9965_v49 = vadd.f32 %v1122_v51, %v9857_v3 }
 0x297   :  { %v1011_v17 = vpop.f32.mrf.mxu1  ;;  %v1124_v33 = vpop.f32.mrf.mxu0 }
 0x298   :  { %v9970_v18 = vadd.f32 %v1011_v17, %v9860_v8  ;;  %v9973_v20 = vadd.f32 %v1124_v33, %v9863_v13 }
 0x299   :  { %v1013_v7 = vpop.f32.mrf.mxu1  ;;  %v1126_v60 = vpop.f32.mrf.mxu0 }
 0x29a   :  { %v9978_v51 = vadd.f32 %v1013_v7, %v9854_v0  ;;  %v9981_v53 = vadd.f32 %v1126_v60, %v9857_v3 }
 0x29b   :  { %v1015_v37 = vpop.f32.mrf.mxu1  ;;  %v1128_v19 = vpop.f32.mrf.mxu0 }
 0x29c   :  { %v9986_v33 = vadd.f32 %v1015_v37, %v9860_v8  ;;  %v9989_v47 = vadd.f32 %v1128_v19, %v9863_v13 }
 0x29d   :  { %v1019_v44 = vpop.f32.mrf.mxu1  ;;  %v1132_v27 = vpop.f32.mrf.mxu0 }
 0x29e   :  { %v9994_v60 = vadd.f32 %v1019_v44, %v9854_v0  ;;  %v9997_v45 = vadd.f32 %v1132_v27, %v9857_v3 }
 0x29f   :  { %v1021_v17 = vpop.f32.mrf.mxu1  ;;  %v1134_v34 = vpop.f32.mrf.mxu0 }
 0x2a0   :  { %v10002_v19 = vadd.f32 %v1021_v17, %v9860_v8  ;;  %v10005_v56 = vadd.f32 %v1134_v34, %v9863_v13 }
 0x2a1   :  { %v1023_v7 = vpop.f32.mrf.mxu1  ;;  %v1136_v26 = vpop.f32.mrf.mxu0 }
 0x2a2   :  { %v10010_v27 = vadd.f32 %v1023_v7, %v9854_v0  ;;  %v10013_v54 = vadd.f32 %v1136_v26, %v9857_v3 }
 0x2a3   :  { %v1025_v37 = vpop.f32.mrf.mxu1  ;;  %v1138_v24 = vpop.f32.mrf.mxu0 }
 0x2a4   :  { %v10018_v34 = vadd.f32 %v1025_v37, %v9860_v8  ;;  %v10021_v28 = vadd.f32 %v1138_v24, %v9863_v13 }
 0x2a5   :  { %v1029_v44 = vpop.f32.mrf.mxu1  ;;  %v1142_v38 = vpop.f32.mrf.mxu0 }
 0x2a6   :  { %v10026_v26 = vadd.f32 %v1029_v44, %v9854_v0  ;;  %v10029_v29 = vadd.f32 %v1142_v38, %v9857_v3 }
 0x2a7   :  { %v1031_v17 = vpop.f32.mrf.mxu1  ;;  %v1144_v36 = vpop.f32.mrf.mxu0 }
 0x2a8   :  { %12564 = vst [vmem:[#allocation44_spill] sm:$0xff] %v10026_v26  ;;  %12565 = vst [vmem:[#allocation45_spill] sm:$0xff] %v10029_v29  ;;  %v10034_v24 = vadd.f32 %v1031_v17, %v9860_v8  ;;  %v10037_v16 = vadd.f32 %v1144_v36, %v9863_v13 }
 0x2a9   :  { %v1033_v7 = vpop.f32.mrf.mxu1  ;;  %v1146_v6 = vpop.f32.mrf.mxu0 }
 0x2aa   :  { %v10042_v38 = vadd.f32 %v1033_v7, %v9854_v0  ;;  %v10045_v1 = vadd.f32 %v1146_v6, %v9857_v3 }
 0x2ab   :  { %v1035_v37 = vpop.f32.mrf.mxu1  ;;  %v1148_v58 = vpop.f32.mrf.mxu0 }
 0x2ac   :  { %12566 = vst [vmem:[#allocation46_spill] sm:$0xff] %v10042_v38  ;;  %12567 = vst [vmem:[#allocation47_spill] sm:$0xff] %v10045_v1  ;;  %v10050_v36 = vadd.f32 %v1035_v37, %v9860_v8  ;;  %v10053_v11 = vadd.f32 %v1148_v58, %v9863_v13 }
 0x2ad   :  { %v1039_v44 = vpop.f32.mrf.mxu1  ;;  %v1152_v25 = vpop.f32.mrf.mxu0 }
 0x2ae   :  { %v10058_v6 = vadd.f32 %v1039_v44, %v9854_v0  ;;  %v10061_v63 = vadd.f32 %v1152_v25, %v9857_v3 }
 0x2af   :  { %v1041_v17 = vpop.f32.mrf.mxu1  ;;  %v1154_v43 = vpop.f32.mrf.mxu0 }
 0x2b0   :  { %12568 = vst [vmem:[#allocation48_spill] sm:$0xff] %v10058_v6  ;;  %12569 = vst [vmem:[#allocation49_spill] sm:$0xff] %v10061_v63  ;;  %v10066_v58 = vadd.f32 %v1041_v17, %v9860_v8  ;;  %v10069_v12 = vadd.f32 %v1154_v43, %v9863_v13 }
 0x2b1   :  { %v1043_v7 = vpop.f32.mrf.mxu1  ;;  %v1156_v4 = vpop.f32.mrf.mxu0 }
 0x2b2   :  { %12570 = vst [vmem:[#allocation50_spill] sm:$0xff] %v10066_v58  ;;  %12571 = vst [vmem:[#allocation51_spill] sm:$0xff] %v10069_v12  ;;  %v10074_v25 = vadd.f32 %v1043_v7, %v9854_v0  ;;  %v10077_v29 = vadd.f32 %v1156_v4, %v9857_v3 }
 0x2b3   :  { %v1045_v37 = vpop.f32.mrf.mxu1  ;;  %v1158_v14 = vpop.f32.mrf.mxu0 }
 0x2b4   :  { %12572 = vst [vmem:[#allocation52_spill] sm:$0xff] %v10074_v25  ;;  %12573 = vst [vmem:[#allocation53_spill] sm:$0xff] %v10077_v29  ;;  %v10082_v43 = vadd.f32 %v1045_v37, %v9860_v8  ;;  %v10085_v6 = vadd.f32 %v1158_v14, %v9863_v13 }
 0x2b5   :  { %v1049_v44 = vpop.f32.mrf.mxu1  ;;  %v1162_v1 = vpop.f32.mrf.mxu0 }
 0x2b6   :  { %12574 = vst [vmem:[#allocation54_spill] sm:$0xff] %v10082_v43  ;;  %12575 = vst [vmem:[#allocation55_spill] sm:$0xff] %v10085_v6  ;;  %v10090_v4 = vadd.f32 %v1049_v44, %v9854_v0  ;;  %v10093_v58 = vadd.f32 %v1162_v1, %v9857_v3 }
 0x2b7   :  { %v1051_v17 = vpop.f32.mrf.mxu1  ;;  %v1164_v63 = vpop.f32.mrf.mxu0 }
 0x2b8   :  { %12576 = vst [vmem:[#allocation56_spill] sm:$0xff] %v10090_v4  ;;  %12577 = vst [vmem:[#allocation57_spill] sm:$0xff] %v10093_v58  ;;  %v10098_v14 = vadd.f32 %v1051_v17, %v9860_v8  ;;  %v10101_v25 = vadd.f32 %v1164_v63, %v9863_v13 }
 0x2b9   :  { %v1053_v7 = vpop.f32.mrf.mxu1  ;;  %v1166_v12 = vpop.f32.mrf.mxu0 }
 0x2ba   :  { %12578 = vst [vmem:[#allocation58_spill] sm:$0xff] %v10098_v14  ;;  %12579 = vst [vmem:[#allocation59_spill] sm:$0xff] %v10101_v25  ;;  %v10106_v1 = vadd.f32 %v1053_v7, %v9854_v0  ;;  %v10109_v43 = vadd.f32 %v1166_v12, %v9857_v3 }
 0x2bb   :  { %v1055_v37 = vpop.f32.mrf.mxu1  ;;  %v1168_v29 = vpop.f32.mrf.mxu0 }
 0x2bc   :  { %12580 = vst [vmem:[#allocation60_spill] sm:$0xff] %v10106_v1  ;;  %12581 = vst [vmem:[#allocation61_spill] sm:$0xff] %v10109_v43  ;;  %v10114_v63 = vadd.f32 %v1055_v37, %v9860_v8  ;;  %v10117_v4 = vadd.f32 %v1168_v29, %v9863_v13 }
 0x2be   :  { %12582 = vst [vmem:[#allocation62_spill] sm:$0xff] %v10114_v63  ;;  %12583 = vst [vmem:[#allocation63_spill] sm:$0xff] %v10117_v4 }
 0x2bf   :  { %9308 = dma.done.wait [#allocation10 + $0x2], 32768 }
 0x2c0   :  { %9309 = vsyncadd [#allocation10 + $0x2], 4294934528  ;;  %v12584_v12 = vmax.f32 %v9874_v5, 0.0  ;;  %v12585_v3 = vmax.f32 %v9890_v61, 0.0  ;;  %v12587_v58 = vmax.f32 %v9877_v9, 0.0  ;;  %v12588_v8 = vmax.f32 %v9893_v15, 0.0 }
 0x2c1   :  { %v1299_v13 = vld [vmem:[#allocation5 + $0x1c0] sm:$0xff] }
 0x2c2   :  { %v10125_v7 = vpack.c.bf16 %v12585_v3, %v12584_v12  ;;  %v10131_v37 = vpack.c.bf16 %v12588_v8, %v12587_v58  ;;  %v1303_v29 = vld [vmem:[#allocation5 + $0x1e0] sm:$0xff] }
 0x2c3   :  { %v1427_v17 = vld [vmem:[#allocation5 + $0x5c0] sm:$0xff]  ;;  %v7868_v0 = vcombine.high %v1299_v13, %v1303_v29  ;;  %v7867_v5 = vcombine.low %v1299_v13, %v1303_v29 }
 0x2c4   :  { %12586 = vst [vmem:[#allocation64_spill] sm:$0xff] %v10125_v7  ;;  %12589 = vst [vmem:[#allocation65_spill] sm:$0xff] %v10131_v37  ;;  %2888 = vmatprep.mubr.bf16.mxu1 %v10125_v7  ;;  %3001 = vmatprep.mubr.bf16.mxu0 %v10131_v37  ;;  %v1431_v6 = vld [vmem:[#allocation5 + $0x5e0] sm:$0xff] }
 0x2c5   :  { %v1291_v44 = vld [vmem:[#allocation5 + $0x180] sm:$0xff]  ;;  %v7996_v12 = vcombine.high %v1427_v17, %v1431_v6  ;;  %v7995_v3 = vcombine.low %v1427_v17, %v1431_v6  ;;  %2856 = vmatprep.subr.bf16.mxu1 %v7868_v0 }
 0x2c6   :  { %v1295_v61 = vld [vmem:[#allocation5 + $0x1a0] sm:$0xff]  ;;  %2857 = vmatpush1.bf16.msra.mxu1 %v7867_v5 }
 0x2c7   :  { %v7860_v43 = vcombine.high %v1291_v44, %v1295_v61  ;;  %v1419_v9 = vld [vmem:[#allocation5 + $0x580] sm:$0xff]  ;;  %2969 = vmatprep.subr.bf16.mxu0 %v7996_v12  ;;  %v7859_v37 = vcombine.low %v1291_v44, %v1295_v61 }
 0x2c8   :  { %v1423_v1 = vld [vmem:[#allocation5 + $0x5a0] sm:$0xff]  ;;  %2970 = vmatpush1.bf16.msra.mxu0 %v7995_v3 }
 0x2c9   :  { %v1283_v15 = vld [vmem:[#allocation5 + $0x140] sm:$0xff]  ;;  %v7988_v58 = vcombine.high %v1419_v9, %v1423_v1  ;;  %2858 = vmatprep.subr.bf16.mxu1 %v7860_v43  ;;  %v7987_v25 = vcombine.low %v1419_v9, %v1423_v1 }
 0x2ca   :  { %v1287_v8 = vld [vmem:[#allocation5 + $0x160] sm:$0xff]  ;;  %2859 = vmatpush1.bf16.msra.mxu1 %v7859_v37 }
 0x2cb   :  { %v1411_v7 = vld [vmem:[#allocation5 + $0x540] sm:$0xff]  ;;  %v7852_v13 = vcombine.high %v1283_v15, %v1287_v8  ;;  %2971 = vmatprep.subr.bf16.mxu0 %v7988_v58  ;;  %v7851_v38 = vcombine.low %v1283_v15, %v1287_v8 }
 0x2cc   :  { %v1415_v4 = vld [vmem:[#allocation5 + $0x560] sm:$0xff]  ;;  %2972 = vmatpush1.bf16.msra.mxu0 %v7987_v25 }
 0x2cd   :  { %v7980_v29 = vcombine.high %v1411_v7, %v1415_v4  ;;  %v1275_v63 = vld [vmem:[#allocation5 + $0x100] sm:$0xff]  ;;  %2860 = vmatprep.subr.bf16.mxu1 %v7852_v13  ;;  %v7979_v0 = vcombine.low %v1411_v7, %v1415_v4 }
 0x2ce   :  { %v1279_v6 = vld [vmem:[#allocation5 + $0x120] sm:$0xff]  ;;  %2861 = vmatpush1.bf16.msra.mxu1 %v7851_v38 }
 0x2cf   :  { %v1403_v17 = vld [vmem:[#allocation5 + $0x500] sm:$0xff]  ;;  %v7844_v26 = vcombine.high %v1275_v63, %v1279_v6  ;;  %2973 = vmatprep.subr.bf16.mxu0 %v7980_v29  ;;  %v7843_v1 = vcombine.low %v1275_v63, %v1279_v6 }
 0x2d0   :  { %v1407_v14 = vld [vmem:[#allocation5 + $0x520] sm:$0xff]  ;;  %2974 = vmatpush1.bf16.msra.mxu0 %v7979_v0 }
 0x2d1   :  { %v7972_v12 = vcombine.high %v1403_v17, %v1407_v14  ;;  %v1267_v5 = vld [vmem:[#allocation5 + $0xc0] sm:$0xff]  ;;  %2862 = vmatprep.subr.bf16.mxu1 %v7844_v26  ;;  %v7971_v3 = vcombine.low %v1403_v17, %v1407_v14 }
 0x2d2   :  { %v1271_v44 = vld [vmem:[#allocation5 + $0xe0] sm:$0xff]  ;;  %2863 = vmatpush1.bf16.msra.mxu1 %v7843_v1 }
 0x2d3   :  { %v1395_v61 = vld [vmem:[#allocation5 + $0x4c0] sm:$0xff]  ;;  %v7836_v9 = vcombine.high %v1267_v5, %v1271_v44  ;;  %2975 = vmatprep.subr.bf16.mxu0 %v7972_v12  ;;  %v7835_v4 = vcombine.low %v1267_v5, %v1271_v44 }
 0x2d4   :  { %v1399_v43 = vld [vmem:[#allocation5 + $0x4e0] sm:$0xff]  ;;  %2976 = vmatpush1.bf16.msra.mxu0 %v7971_v3 }
 0x2d5   :  { %v7964_v58 = vcombine.high %v1395_v61, %v1399_v43  ;;  %v1259_v37 = vld [vmem:[#allocation5 + $0x80] sm:$0xff]  ;;  %2864 = vmatprep.subr.bf16.mxu1 %v7836_v9  ;;  %v7963_v7 = vcombine.low %v1395_v61, %v1399_v43 }
 0x2d6   :  { %v1263_v15 = vld [vmem:[#allocation5 + $0xa0] sm:$0xff]  ;;  %2865 = vmatpush1.bf16.msra.mxu1 %v7835_v4 }
 0x2d7   :  { %v1387_v25 = vld [vmem:[#allocation5 + $0x480] sm:$0xff]  ;;  %v7828_v13 = vcombine.high %v1259_v37, %v1263_v15  ;;  %2977 = vmatprep.subr.bf16.mxu0 %v7964_v58  ;;  %v7827_v14 = vcombine.low %v1259_v37, %v1263_v15 }
 0x2d8   :  { %v1391_v8 = vld [vmem:[#allocation5 + $0x4a0] sm:$0xff]  ;;  %2978 = vmatpush1.bf16.msra.mxu0 %v7963_v7 }
 0x2d9   :  { %v7956_v29 = vcombine.high %v1387_v25, %v1391_v8  ;;  %v1251_v38 = vld [vmem:[#allocation5 + $0x40] sm:$0xff]  ;;  %2866 = vmatprep.subr.bf16.mxu1 %v7828_v13  ;;  %v7955_v17 = vcombine.low %v1387_v25, %v1391_v8 }
 0x2da   :  { %v1255_v63 = vld [vmem:[#allocation5 + $0x60] sm:$0xff]  ;;  %2867 = vmatpush1.bf16.msra.mxu1 %v7827_v14 }
 0x2db   :  { %v1379_v6 = vld [vmem:[#allocation5 + $0x440] sm:$0xff]  ;;  %v7820_v0 = vcombine.high %v1251_v38, %v1255_v63  ;;  %2979 = vmatprep.subr.bf16.mxu0 %v7956_v29  ;;  %v7819_v61 = vcombine.low %v1251_v38, %v1255_v63 }
 0x2dc   :  { %v1383_v26 = vld [vmem:[#allocation5 + $0x460] sm:$0xff]  ;;  %2980 = vmatpush1.bf16.msra.mxu0 %v7955_v17 }
 0x2dd   :  { %v7948_v12 = vcombine.high %v1379_v6, %v1383_v26  ;;  %v1243_v1 = vld [vmem:[#allocation5] sm:$0xff]  ;;  %2868 = vmatprep.subr.bf16.mxu1 %v7820_v0  ;;  %v7947_v43 = vcombine.low %v1379_v6, %v1383_v26 }
 0x2de   :  { %v1247_v5 = vld [vmem:[#allocation5 + $0x20] sm:$0xff]  ;;  %2869 = vmatpush1.bf16.msra.mxu1 %v7819_v61 }
 0x2df   :  { %v1371_v44 = vld [vmem:[#allocation5 + $0x400] sm:$0xff]  ;;  %v7812_v9 = vcombine.high %v1243_v1, %v1247_v5  ;;  %2981 = vmatprep.subr.bf16.mxu0 %v7948_v12  ;;  %v7811_v25 = vcombine.low %v1243_v1, %v1247_v5 }
 0x2e0   :  { %v1375_v3 = vld [vmem:[#allocation5 + $0x420] sm:$0xff]  ;;  %2982 = vmatpush1.bf16.msra.mxu0 %v7947_v43 }
 0x2e1   :  { %v7940_v58 = vcombine.high %v1371_v44, %v1375_v3  ;;  %v1363_v4 = vld [vmem:[#allocation5 + $0x3c0] sm:$0xff]  ;;  %2870 = vmatprep.subr.bf16.mxu1 %v7812_v9  ;;  %v7939_v8 = vcombine.low %v1371_v44, %v1375_v3 }
 0x2e2   :  { %v1367_v37 = vld [vmem:[#allocation5 + $0x3e0] sm:$0xff]  ;;  %2871 = vmatpush1.bf16.msra.mxu1 %v7811_v25 }
 0x2e3   :  { %v1491_v15 = vld [vmem:[#allocation5 + $0x7c0] sm:$0xff]  ;;  %v7932_v13 = vcombine.high %v1363_v4, %v1367_v37  ;;  %2983 = vmatprep.subr.bf16.mxu0 %v7940_v58  ;;  %v7931_v6 = vcombine.low %v1363_v4, %v1367_v37 }
 0x2e4   :  { %v1495_v7 = vld [vmem:[#allocation5 + $0x7e0] sm:$0xff]  ;;  %2984 = vmatpush1.bf16.msra.mxu0 %v7939_v8 }
 0x2e5   :  { %v8060_v29 = vcombine.high %v1491_v15, %v1495_v7  ;;  %v1355_v14 = vld [vmem:[#allocation5 + $0x380] sm:$0xff]  ;;  %2872 = vmatprep.subr.bf16.mxu1 %v7932_v13  ;;  %v8059_v26 = vcombine.low %v1491_v15, %v1495_v7 }
 0x2e6   :  { %v1359_v38 = vld [vmem:[#allocation5 + $0x3a0] sm:$0xff]  ;;  %2873 = vmatpush2.bf16.msra.mxu1 %v7931_v6 }
 0x2e7   :  { %v1483_v63 = vld [vmem:[#allocation5 + $0x780] sm:$0xff]  ;;  %v7924_v0 = vcombine.high %v1355_v14, %v1359_v38  ;;  %2985 = vmatprep.subr.bf16.mxu0 %v8060_v29  ;;  %v7923_v44 = vcombine.low %v1355_v14, %v1359_v38 }
 0x2e8   :  { %v1487_v17 = vld [vmem:[#allocation5 + $0x7a0] sm:$0xff]  ;;  %2986 = vmatpush2.bf16.msra.mxu0 %v8059_v26 }
 0x2e9   :  { %v8052_v12 = vcombine.high %v1483_v63, %v1487_v17  ;;  %v1347_v61 = vld [vmem:[#allocation5 + $0x340] sm:$0xff]  ;;  %2874 = vmatprep.subr.bf16.mxu1 %v7924_v0  ;;  %v8051_v3 = vcombine.low %v1483_v63, %v1487_v17 }
 0x2ea   :  { %v1351_v1 = vld [vmem:[#allocation5 + $0x360] sm:$0xff]  ;;  %2875 = vmatpush2.bf16.msra.mxu1 %v7923_v44 }
 0x2eb   :  { %v1475_v5 = vld [vmem:[#allocation5 + $0x740] sm:$0xff]  ;;  %v7916_v9 = vcombine.high %v1347_v61, %v1351_v1  ;;  %2987 = vmatprep.subr.bf16.mxu0 %v8052_v12  ;;  %v7915_v15 = vcombine.low %v1347_v61, %v1351_v1 }
 0x2ec   :  { %v1479_v43 = vld [vmem:[#allocation5 + $0x760] sm:$0xff]  ;;  %2988 = vmatpush2.bf16.msra.mxu0 %v8051_v3 }
 0x2ed   :  { %v8044_v58 = vcombine.high %v1475_v5, %v1479_v43  ;;  %v1339_v25 = vld [vmem:[#allocation5 + $0x300] sm:$0xff]  ;;  %2876 = vmatprep.subr.bf16.mxu1 %v7916_v9  ;;  %v8043_v7 = vcombine.low %v1475_v5, %v1479_v43 }
 0x2ee   :  { %v1343_v4 = vld [vmem:[#allocation5 + $0x320] sm:$0xff]  ;;  %2877 = vmatpush2.bf16.msra.mxu1 %v7915_v15 }
 0x2ef   :  { %v1467_v37 = vld [vmem:[#allocation5 + $0x700] sm:$0xff]  ;;  %v7908_v13 = vcombine.high %v1339_v25, %v1343_v4  ;;  %2989 = vmatprep.subr.bf16.mxu0 %v8044_v58  ;;  %v7907_v63 = vcombine.low %v1339_v25, %v1343_v4 }
 0x2f0   :  { %v1471_v8 = vld [vmem:[#allocation5 + $0x720] sm:$0xff]  ;;  %2990 = vmatpush2.bf16.msra.mxu0 %v8043_v7 }
 0x2f1   :  { %v8036_v29 = vcombine.high %v1467_v37, %v1471_v8  ;;  %v1331_v6 = vld [vmem:[#allocation5 + $0x2c0] sm:$0xff]  ;;  %2878 = vmatprep.subr.bf16.mxu1 %v7908_v13  ;;  %v8035_v17 = vcombine.low %v1467_v37, %v1471_v8 }
 0x2f2   :  { %v1335_v14 = vld [vmem:[#allocation5 + $0x2e0] sm:$0xff]  ;;  %2879 = vmatpush2.bf16.msra.mxu1 %v7907_v63 }
 0x2f3   :  { %v1459_v38 = vld [vmem:[#allocation5 + $0x6c0] sm:$0xff]  ;;  %v7900_v0 = vcombine.high %v1331_v6, %v1335_v14  ;;  %2991 = vmatprep.subr.bf16.mxu0 %v8036_v29  ;;  %v7899_v5 = vcombine.low %v1331_v6, %v1335_v14 }
 0x2f4   :  { %v1463_v26 = vld [vmem:[#allocation5 + $0x6e0] sm:$0xff]  ;;  %2992 = vmatpush2.bf16.msra.mxu0 %v8035_v17 }
 0x2f5   :  { %v8028_v12 = vcombine.high %v1459_v38, %v1463_v26  ;;  %v1323_v44 = vld [vmem:[#allocation5 + $0x280] sm:$0xff]  ;;  %2880 = vmatprep.subr.bf16.mxu1 %v7900_v0  ;;  %v8027_v43 = vcombine.low %v1459_v38, %v1463_v26 }
 0x2f6   :  { %v1327_v61 = vld [vmem:[#allocation5 + $0x2a0] sm:$0xff]  ;;  %2881 = vmatpush2.bf16.msra.mxu1 %v7899_v5  ;;  %v1300_v5 = vld [vmem:[#allocation5 + $0x1c8] sm:$0xff] }
 0x2f7   :  { %v1451_v1 = vld [vmem:[#allocation5 + $0x680] sm:$0xff]  ;;  %v7892_v9 = vcombine.high %v1323_v44, %v1327_v61  ;;  %2993 = vmatprep.subr.bf16.mxu0 %v8028_v12  ;;  %v7891_v37 = vcombine.low %v1323_v44, %v1327_v61  ;;  %v1304_v44 = vld [vmem:[#allocation5 + $0x1e8] sm:$0xff] }
 0x2f8   :  { %v1455_v3 = vld [vmem:[#allocation5 + $0x6a0] sm:$0xff]  ;;  %2994 = vmatpush2.bf16.msra.mxu0 %v8027_v43  ;;  %v1428_v61 = vld [vmem:[#allocation5 + $0x5c8] sm:$0xff] }
 0x2f9   :  { %v8020_v58 = vcombine.high %v1451_v1, %v1455_v3  ;;  %v1315_v15 = vld [vmem:[#allocation5 + $0x240] sm:$0xff]  ;;  %2882 = vmatprep.subr.bf16.mxu1 %v7892_v9  ;;  %v8019_v8 = vcombine.low %v1451_v1, %v1455_v3  ;;  %v1432_v43 = vld [vmem:[#allocation5 + $0x5e8] sm:$0xff]  ;;  %v7870_v9 = vcombine.high %v1300_v5, %v1304_v44 }
 0x2fa   :  { %v1319_v25 = vld [vmem:[#allocation5 + $0x260] sm:$0xff]  ;;  %2883 = vmatpush2.bf16.msra.mxu1 %v7891_v37  ;;  %v1292_v37 = vld [vmem:[#allocation5 + $0x188] sm:$0xff] }
 0x2fb   :  { %v1443_v4 = vld [vmem:[#allocation5 + $0x640] sm:$0xff]  ;;  %v7884_v13 = vcombine.high %v1315_v15, %v1319_v25  ;;  %2995 = vmatprep.subr.bf16.mxu0 %v8020_v58  ;;  %v7883_v38 = vcombine.low %v1315_v15, %v1319_v25  ;;  %v7998_v58 = vcombine.high %v1428_v61, %v1432_v43  ;;  %v1296_v15 = vld [vmem:[#allocation5 + $0x1a8] sm:$0xff]  ;;  %v12590_v25 = vmax.f32 %v9866_v31, 0.0 }
 0x2fc   :  { %v1447_v7 = vld [vmem:[#allocation5 + $0x660] sm:$0xff]  ;;  %2996 = vmatpush2.bf16.msra.mxu0 %v8019_v8  ;;  %v1420_v8 = vld [vmem:[#allocation5 + $0x588] sm:$0xff] }
 0x2fd   :  { %v8012_v29 = vcombine.high %v1443_v4, %v1447_v7  ;;  %v1307_v63 = vld [vmem:[#allocation5 + $0x200] sm:$0xff]  ;;  %2884 = vmatprep.subr.bf16.mxu1 %v7884_v13  ;;  %v8011_v26 = vcombine.low %v1443_v4, %v1447_v7  ;;  %v12591_v4 = vmax.f32 %v9882_v10, 0.0  ;;  %v1424_v13 = vld [vmem:[#allocation5 + $0x5a8] sm:$0xff]  ;;  %v12594_v10 = vmax.f32 %v9906_v30, 0.0 }
 0x2fe   :  { %v1311_v6 = vld [vmem:[#allocation5 + $0x220] sm:$0xff]  ;;  %2885 = vmatpush2.bf16.msra.mxu1 %v7883_v38  ;;  %v7862_v38 = vcombine.high %v1292_v37, %v1296_v15  ;;  %v7990_v31 = vcombine.high %v1420_v8, %v1424_v13  ;;  %v7861_v30 = vcombine.low %v1292_v37, %v1296_v15  ;;  %v1408_v37 = vld [vmem:[#allocation5 + $0x528] sm:$0xff]  ;;  %v12600_v15 = vmax.f32 %v9901_v52, 0.0 }
 0x2ff   :  { %v1435_v14 = vld [vmem:[#allocation5 + $0x600] sm:$0xff]  ;;  %v7876_v0 = vcombine.high %v1307_v63, %v1311_v6  ;;  %2997 = vmatprep.subr.bf16.mxu0 %v8012_v29  ;;  %v7875_v1 = vcombine.low %v1307_v63, %v1311_v6  ;;  %v10139_v7 = vpack.c.bf16 %v12591_v4, %v12590_v25  ;;  %v12592_v29 = vmax.f32 %v9869_v40, 0.0  ;;  %v1404_v4 = vld [vmem:[#allocation5 + $0x508] sm:$0xff] }
 0x300   :  { %v1439_v17 = vld [vmem:[#allocation5 + $0x620] sm:$0xff]  ;;  %2998 = vmatpush2.bf16.msra.mxu0 %v8011_v26  ;;  %v12593_v63 = vmax.f32 %v9885_v21, 0.0  ;;  %v12595_v26 = vmax.f32 %v9922_v48, 0.0  ;;  %v12596_v40 = vmax.f32 %v9909_v32, 0.0  ;;  %v12597_v21 = vmax.f32 %v9925_v50, 0.0  ;;  %v1280_v32 = vld [vmem:[#allocation5 + $0x128] sm:$0xff] }
 0x301   :  { %v8004_v12 = vcombine.high %v1435_v14, %v1439_v17  ;;  %2886 = vmatprep.subr.bf16.mxu1 %v7876_v0  ;;  %v8003_v3 = vcombine.low %v1435_v14, %v1439_v17  ;;  %v7869_v14 = vcombine.low %v1300_v5, %v1304_v44  ;;  %v7997_v17 = vcombine.low %v1428_v61, %v1432_v43  ;;  %v1412_v44 = vld [vmem:[#allocation5 + $0x548] sm:$0xff] }
 0x302   :  { %2887 = vmatpush2.bf16.msra.mxu1 %v7875_v1  ;;  %v10145_v6 = vpack.c.bf16 %v12593_v63, %v12592_v29  ;;  %v10151_v0 = vpack.c.bf16 %v12595_v26, %v12594_v10  ;;  %v1288_v1 = vld [vmem:[#allocation5 + $0x168] sm:$0xff]  ;;  %v10158_v5 = vpack.c.bf16 %v12597_v21, %v12596_v40  ;;  %v7989_v48 = vcombine.low %v1420_v8, %v1424_v13 }
 0x303   :  { %2999 = vmatprep.subr.bf16.mxu0 %v8004_v12  ;;  %3082 = vmatprep.subr.bf16.mxu1 %v7870_v9  ;;  %v1284_v12 = vld [vmem:[#allocation5 + $0x148] sm:$0xff]  ;;  %v12598_v50 = vmax.f32 %v9898_v2, 0.0  ;;  %v12601_v8 = vmax.f32 %v9917_v41, 0.0  ;;  %v7974_v2 = vcombine.high %v1404_v4, %v1408_v37  ;;  %v12604_v52 = vmax.f32 %v9941_v46, 0.0 }
 0x304   :  { %3000 = vmatpush2.bf16.msra.mxu0 %v8003_v3  ;;  %v1416_v61 = vld [vmem:[#allocation5 + $0x568] sm:$0xff]  ;;  %v7854_v43 = vcombine.high %v1284_v12, %v1288_v1  ;;  %v7853_v29 = vcombine.low %v1284_v12, %v1288_v1  ;;  %v12605_v41 = vmax.f32 %v9957_v42, 0.0  ;;  %v12606_v42 = vmax.f32 %v9930_v57, 0.0 }
 0x305   :  { %3195 = vmatprep.subr.bf16.mxu0 %v7998_v58  ;;  %2889 = vmatmul.mubr.bf16.vlgmr.msra.gmra.mxu1 %v10139_v7  ;;  %v7982_v3 = vcombine.high %v1412_v44, %v1416_v61  ;;  %v1276_v9 = vld [vmem:[#allocation5 + $0x108] sm:$0xff]  ;;  %v12599_v58 = vmax.f32 %v9914_v39, 0.0  ;;  %v10173_v13 = vpack.c.bf16 %v12601_v8, %v12600_v15  ;;  %v7981_v63 = vcombine.low %v1412_v44, %v1416_v61 }
 0x306   :  { %3083 = vmatpush1.bf16.msra.mxu1 %v7869_v14  ;;  %2898 = vmatprep.mubr.bf16.mxu1 %v10151_v0  ;;  %v7846_v14 = vcombine.high %v1276_v9, %v1280_v32  ;;  %v12602_v39 = vmax.f32 %v9938_v22, 0.0  ;;  %v1272_v10 = vld [vmem:[#allocation5 + $0xe8] sm:$0xff]  ;;  %v10186_v26 = vpack.c.bf16 %v12605_v41, %v12604_v52  ;;  %v7845_v22 = vcombine.low %v1276_v9, %v1280_v32 }
 0x307   :  { %3002 = vmatmul.mubr.bf16.vlgmr.msra.gmra.mxu0 %v10145_v6  ;;  %3084 = vmatprep.subr.bf16.mxu1 %v7862_v38  ;;  %v10167_v25 = vpack.c.bf16 %v12599_v58, %v12598_v50  ;;  %v1396_v12 = vld [vmem:[#allocation5 + $0x4c8] sm:$0xff]  ;;  %v12607_v61 = vmax.f32 %v9946_v23, 0.0  ;;  %v12609_v9 = vmax.f32 %v9949_v55, 0.0  ;;  %v12610_v23 = vmax.f32 %v9970_v18, 0.0 }
 0x308   :  { %3196 = vmatpush1.bf16.msra.mxu0 %v7997_v17  ;;  %3011 = vmatprep.mubr.bf16.mxu0 %v10158_v5  ;;  %v12603_v17 = vmax.f32 %v9954_v35, 0.0  ;;  %v1400_v1 = vld [vmem:[#allocation5 + $0x4e8] sm:$0xff]  ;;  %v7973_v35 = vcombine.low %v1404_v4, %v1408_v37  ;;  %v12611_v37 = vmax.f32 %v9986_v33, 0.0  ;;  %v12613_v55 = vmax.f32 %v9989_v47, 0.0 }
 0x309   :  { %3197 = vmatprep.subr.bf16.mxu0 %v7990_v31  ;;  %v1268_v31 = vld [vmem:[#allocation5 + $0xc8] sm:$0xff]  ;;  %v7966_v21 = vcombine.high %v1396_v12, %v1400_v1  ;;  %v7965_v58 = vcombine.low %v1396_v12, %v1400_v1  ;;  %v12614_v47 = vmax.f32 %v9962_v62, 0.0  ;;  %v12616_v1 = vmax.f32 %v9965_v49, 0.0 }
 0x30a   :  { %3085 = vmatpush1.bf16.msra.mxu1 %v7861_v30  ;;  %v10179_v38 = vpack.c.bf16 %v12603_v17, %v12602_v39  ;;  %v7838_v40 = vcombine.high %v1268_v31, %v1272_v10  ;;  %v1260_v44 = vld [vmem:[#allocation5 + $0x88] sm:$0xff]  ;;  %v10195_v30 = vpack.c.bf16 %v12607_v61, %v12606_v42  ;;  %v7837_v50 = vcombine.low %v1268_v31, %v1272_v10 }
 0x30b   :  { %3086 = vmatprep.subr.bf16.mxu1 %v7854_v43  ;;  %v1264_v46 = vld [vmem:[#allocation5 + $0xa8] sm:$0xff]  ;;  %v10207_v15 = vpack.c.bf16 %v12611_v37, %v12610_v23  ;;  %v12615_v10 = vmax.f32 %v9978_v51, 0.0  ;;  %v12618_v51 = vmax.f32 %v10002_v19, 0.0  ;;  %v12621_v49 = vmax.f32 %v10021_v28, 0.0 }
 0x30c   :  { %3198 = vmatpush1.bf16.msra.mxu0 %v7989_v48  ;;  %v1388_v48 = vld [vmem:[#allocation5 + $0x488] sm:$0xff]  ;;  %v7830_v4 = vcombine.high %v1260_v44, %v1264_v46  ;;  %v7829_v18 = vcombine.low %v1260_v44, %v1264_v46  ;;  %v12619_v46 = vmax.f32 %v10018_v34, 0.0  ;;  %v12622_v28 = vmax.f32 %v9994_v60, 0.0 }
 0x30d   :  { %3199 = vmatprep.subr.bf16.mxu0 %v7982_v3  ;;  %2899 = vmatmul.mubr.bf16.gmra.mxu1 %v10167_v25  ;;  %v1392_v43 = vld [vmem:[#allocation5 + $0x4a8] sm:$0xff]  ;;  %v12608_v3 = vmax.f32 %v9933_v59, 0.0  ;;  %v12612_v59 = vmax.f32 %v9973_v20, 0.0  ;;  %v10223_v52 = vpack.c.bf16 %v12615_v10, %v12614_v47 }
 0x30e   :  { %3087 = vmatpush1.bf16.msra.mxu1 %v7853_v29  ;;  %2908 = vmatprep.mubr.bf16.mxu1 %v10179_v38  ;;  %v7958_v57 = vcombine.high %v1388_v48, %v1392_v43  ;;  %v1252_v8 = vld [vmem:[#allocation5 + $0x48] sm:$0xff]  ;;  %v7957_v33 = vcombine.low %v1388_v48, %v1392_v43  ;;  %v10235_v42 = vpack.c.bf16 %v12619_v46, %v12618_v51  ;;  %v12634_v46 = vld [vmem:[#allocation45_spill] sm:$0xff] }
 0x30f   :  { %3012 = vmatmul.mubr.bf16.gmra.mxu0 %v10173_v13  ;;  %3088 = vmatprep.subr.bf16.mxu1 %v7846_v14  ;;  %v10201_v32 = vpack.c.bf16 %v12609_v9, %v12608_v3  ;;  %v1256_v29 = vld [vmem:[#allocation5 + $0x68] sm:$0xff] }
 0x310   :  { %3200 = vmatpush1.bf16.msra.mxu0 %v7981_v63  ;;  %3021 = vmatprep.mubr.bf16.mxu0 %v10186_v26  ;;  %v10214_v63 = vpack.c.bf16 %v12613_v55, %v12612_v59  ;;  %v1380_v14 = vld [vmem:[#allocation5 + $0x448] sm:$0xff]  ;;  %v7822_v39 = vcombine.high %v1252_v8, %v1256_v29  ;;  %v12625_v59 = vmax.f32 %v10013_v54, 0.0  ;;  %v12629_v54 = vmax.f32 %v10053_v11, 0.0 }
 0x311   :  { %3201 = vmatprep.subr.bf16.mxu0 %v7974_v2  ;;  %v1384_v2 = vld [vmem:[#allocation5 + $0x468] sm:$0xff] }
 0x312   :  { %3089 = vmatpush1.bf16.msra.mxu1 %v7845_v22  ;;  %v7950_v17 = vcombine.high %v1380_v14, %v1384_v2  ;;  %v1244_v31 = vld [vmem:[#allocation5 + $0x8] sm:$0xff]  ;;  %v12617_v22 = vmax.f32 %v9981_v53, 0.0  ;;  %v12620_v53 = vmax.f32 %v10005_v56, 0.0 }
 0x313   :  { %3090 = vmatprep.subr.bf16.mxu1 %v7838_v40  ;;  %v1248_v20 = vld [vmem:[#allocation5 + $0x28] sm:$0xff]  ;;  %v7821_v40 = vcombine.low %v1252_v8, %v1256_v29  ;;  %v12624_v29 = vmax.f32 %v9997_v45, 0.0  ;;  %v12628_v45 = vmax.f32 %v10037_v16, 0.0 }
 0x314   :  { %3202 = vmatpush1.bf16.msra.mxu0 %v7973_v35  ;;  %v1372_v41 = vld [vmem:[#allocation5 + $0x408] sm:$0xff]  ;;  %v10229_v35 = vpack.c.bf16 %v12617_v22, %v12616_v1  ;;  %v7814_v44 = vcombine.high %v1244_v31, %v1248_v20  ;;  %v10242_v43 = vpack.c.bf16 %v12621_v49, %v12620_v53  ;;  %v7813_v19 = vcombine.low %v1244_v31, %v1248_v20 }
 0x315   :  { %3203 = vmatprep.subr.bf16.mxu0 %v7966_v21  ;;  %2909 = vmatmul.mubr.bf16.gmra.mxu1 %v10195_v30  ;;  %v1376_v12 = vld [vmem:[#allocation5 + $0x428] sm:$0xff]  ;;  %v7949_v21 = vcombine.low %v1380_v14, %v1384_v2  ;;  %v10257_v55 = vpack.c.bf16 %v12625_v59, %v12624_v29  ;;  %v10270_v20 = vpack.c.bf16 %v12629_v54, %v12628_v45  ;;  %v12644_v59 = vld [vmem:[#allocation55_spill] sm:$0xff] }
 0x316   :  { %3091 = vmatpush1.bf16.msra.mxu1 %v7837_v50  ;;  %2918 = vmatprep.mubr.bf16.mxu1 %v10207_v15  ;;  %v7942_v62 = vcombine.high %v1372_v41, %v1376_v12  ;;  %v1364_v61 = vld [vmem:[#allocation5 + $0x3c8] sm:$0xff]  ;;  %v7941_v34 = vcombine.low %v1372_v41, %v1376_v12 }
 0x317   :  { %3022 = vmatmul.mubr.bf16.gmra.mxu0 %v10201_v32  ;;  %3092 = vmatprep.subr.bf16.mxu1 %v7830_v4  ;;  %v1368_v48 = vld [vmem:[#allocation5 + $0x3e8] sm:$0xff] }
 0x318   :  { %3204 = vmatpush1.bf16.msra.mxu0 %v7965_v58  ;;  %3031 = vmatprep.mubr.bf16.mxu0 %v10214_v63  ;;  %v1492_v3 = vld [vmem:[#allocation5 + $0x7c8] sm:$0xff]  ;;  %v7934_v50 = vcombine.high %v1364_v61, %v1368_v48  ;;  %v7933_v14 = vcombine.low %v1364_v61, %v1368_v48  ;;  %v12635_v61 = vmax.f32 %v12634_v46, 0.0  ;;  %v12636_v48 = vld [vmem:[#allocation47_spill] sm:$0xff] }
 0x319   :  { %3205 = vmatprep.subr.bf16.mxu0 %v7958_v57  ;;  %v1496_v9 = vld [vmem:[#allocation5 + $0x7e8] sm:$0xff]  ;;  %v12623_v57 = vmax.f32 %v10010_v27, 0.0  ;;  %v12626_v27 = vmax.f32 %v10034_v24, 0.0  ;;  %v12637_v53 = vmax.f32 %v12636_v48, 0.0  ;;  %v12654_v48 = vld [vmem:[#allocation58_spill] sm:$0xff] }
 0x31a   :  { %3093 = vmatpush1.bf16.msra.mxu1 %v7829_v18  ;;  %v8062_v58 = vcombine.high %v1492_v3, %v1496_v9  ;;  %v1356_v4 = vld [vmem:[#allocation5 + $0x388] sm:$0xff]  ;;  %v8061_v2 = vcombine.low %v1492_v3, %v1496_v9 }
 0x31b   :  { %3094 = vmatprep.subr.bf16.mxu1 %v7822_v39  ;;  %v1360_v56 = vld [vmem:[#allocation5 + $0x3a8] sm:$0xff]  ;;  %v10251_v23 = vpack.c.bf16 %v12623_v57, %v12622_v28  ;;  %v10285_v49 = vpack.c.bf16 %v12637_v53, %v12635_v61  ;;  %v12655_v53 = vmax.f32 %v12654_v48, 0.0  ;;  %v1429_v48 = vld [vmem:[#allocation5 + $0x5d0] sm:$0xff] }
 0x31c   :  { %3206 = vmatpush1.bf16.msra.mxu0 %v7957_v33  ;;  %v1484_v37 = vld [vmem:[#allocation5 + $0x788] sm:$0xff]  ;;  %v7926_v18 = vcombine.high %v1356_v4, %v1360_v56  ;;  %v12627_v33 = vmax.f32 %v10050_v36, 0.0  ;;  %v7925_v24 = vcombine.low %v1356_v4, %v1360_v56  ;;  %v12640_v4 = vld [vmem:[#allocation54_spill] sm:$0xff] }
 0x31d   :  { %3207 = vmatprep.subr.bf16.mxu0 %v7950_v17  ;;  %2919 = vmatmul.mubr.bf16.gmra.mxu1 %v10223_v52  ;;  %v1488_v8 = vld [vmem:[#allocation5 + $0x7a8] sm:$0xff]  ;;  %v12641_v56 = vmax.f32 %v12640_v4, 0.0 }
 0x31e   :  { %3095 = vmatpush1.bf16.msra.mxu1 %v7821_v40  ;;  %2928 = vmatprep.mubr.bf16.mxu1 %v10235_v42  ;;  %v8054_v60 = vcombine.high %v1484_v37, %v1488_v8  ;;  %v10263_v39 = vpack.c.bf16 %v12627_v33, %v12626_v27  ;;  %v1348_v17 = vld [vmem:[#allocation5 + $0x348] sm:$0xff]  ;;  %v8053_v36 = vcombine.low %v1484_v37, %v1488_v8  ;;  %v12632_v40 = vld [vmem:[#allocation46_spill] sm:$0xff]  ;;  %v12642_v8 = vld [vmem:[#allocation51_spill] sm:$0xff] }
 0x31f   :  { %3032 = vmatmul.mubr.bf16.gmra.mxu0 %v10229_v35  ;;  %3096 = vmatprep.subr.bf16.mxu1 %v7814_v44  ;;  %v1352_v31 = vld [vmem:[#allocation5 + $0x368] sm:$0xff]  ;;  %v12643_v29 = vmax.f32 %v12642_v8, 0.0 }
 0x320   :  { %3208 = vmatpush1.bf16.msra.mxu0 %v7949_v21  ;;  %3041 = vmatprep.mubr.bf16.mxu0 %v10242_v43  ;;  %v1476_v47 = vld [vmem:[#allocation5 + $0x748] sm:$0xff]  ;;  %v7918_v41 = vcombine.high %v1348_v17, %v1352_v31  ;;  %v12633_v21 = vmax.f32 %v12632_v40, 0.0  ;;  %v7917_v3 = vcombine.low %v1348_v17, %v1352_v31 }
 0x321   :  { %3209 = vmatprep.subr.bf16.mxu0 %v7942_v62  ;;  %v1480_v10 = vld [vmem:[#allocation5 + $0x768] sm:$0xff] }
 0x322   :  { %3097 = vmatpush1.bf16.msra.mxu1 %v7813_v19  ;;  %v8046_v12 = vcombine.high %v1476_v47, %v1480_v10  ;;  %v1340_v1 = vld [vmem:[#allocation5 + $0x308] sm:$0xff]  ;;  %v8045_v9 = vcombine.low %v1476_v47, %v1480_v10 }
 0x323   :  { %3098 = vmatprep.subr.bf16.mxu1 %v7934_v50  ;;  %v1344_v16 = vld [vmem:[#allocation5 + $0x328] sm:$0xff]  ;;  %v12638_v50 = vld [vmem:[#allocation50_spill] sm:$0xff] }
 0x324   :  { %3210 = vmatpush1.bf16.msra.mxu0 %v7941_v34  ;;  %v12630_v11 = vld [vmem:[#allocation44_spill] sm:$0xff]  ;;  %v7910_v19 = vcombine.high %v1340_v1, %v1344_v16  ;;  %v7909_v27 = vcombine.low %v1340_v1, %v1344_v16  ;;  %v12650_v16 = vld [vmem:[#allocation49_spill] sm:$0xff] }
 0x325   :  { %3211 = vmatprep.subr.bf16.mxu0 %v8062_v58  ;;  %2929 = vmatmul.mubr.bf16.gmra.mxu1 %v10251_v23  ;;  %v12631_v22 = vmax.f32 %v12630_v11, 0.0  ;;  %v1468_v62 = vld [vmem:[#allocation5 + $0x708] sm:$0xff]  ;;  %v12639_v58 = vmax.f32 %v12638_v50, 0.0  ;;  %v12651_v11 = vmax.f32 %v12650_v16, 0.0 }
 0x326   :  { %3099 = vmatpush2.bf16.msra.mxu1 %v7933_v14  ;;  %2938 = vmatprep.mubr.bf16.mxu1 %v10263_v39  ;;  %v1472_v51 = vld [vmem:[#allocation5 + $0x728] sm:$0xff]  ;;  %v12645_v14 = vmax.f32 %v12644_v59, 0.0 }
 0x327   :  { %3042 = vmatmul.mubr.bf16.gmra.mxu0 %v10257_v55  ;;  %3100 = vmatprep.subr.bf16.mxu1 %v7926_v18  ;;  %v10279_v44 = vpack.c.bf16 %v12633_v21, %v12631_v22  ;;  %v8038_v34 = vcombine.high %v1468_v62, %v1472_v51  ;;  %v10291_v28 = vpack.c.bf16 %v12641_v56, %v12639_v58  ;;  %v1332_v57 = vld [vmem:[#allocation5 + $0x2c8] sm:$0xff]  ;;  %v12652_v22 = vld [vmem:[#allocation53_spill] sm:$0xff]  ;;  %v12658_v58 = vld [vmem:[#allocation59_spill] sm:$0xff] }
 0x328   :  { %3212 = vmatpush2.bf16.msra.mxu0 %v8061_v2  ;;  %3051 = vmatprep.mubr.bf16.mxu0 %v10270_v20  ;;  %v1336_v37 = vld [vmem:[#allocation5 + $0x2e8] sm:$0xff]  ;;  %v10298_v2 = vpack.c.bf16 %v12645_v14, %v12643_v29  ;;  %v8037_v33 = vcombine.low %v1468_v62, %v1472_v51  ;;  %v12653_v40 = vmax.f32 %v12652_v22, 0.0  ;;  %v12659_v4 = vmax.f32 %v12658_v58, 0.0  ;;  %v12660_v56 = vld [vmem:[#allocation63_spill] sm:$0xff] }
 0x329   :  { %3213 = vmatprep.subr.bf16.mxu0 %v8054_v60  ;;  %v1460_v18 = vld [vmem:[#allocation5 + $0x6c8] sm:$0xff]  ;;  %v7902_v17 = vcombine.high %v1332_v57, %v1336_v37  ;;  %v7901_v62 = vcombine.low %v1332_v57, %v1336_v37  ;;  %v12661_v57 = vmax.f32 %v12660_v56, 0.0  ;;  %v1297_v56 = vld [vmem:[#allocation5 + $0x1b0] sm:$0xff] }
 0x32a   :  { %3101 = vmatpush2.bf16.msra.mxu1 %v7925_v24  ;;  %v1464_v60 = vld [vmem:[#allocation5 + $0x6e8] sm:$0xff]  ;;  %v10313_v21 = vpack.c.bf16 %v12653_v40, %v12651_v11 }
 0x32b   :  { %3102 = vmatprep.subr.bf16.mxu1 %v7918_v41  ;;  %v8030_v31 = vcombine.high %v1460_v18, %v1464_v60  ;;  %v1324_v45 = vld [vmem:[#allocation5 + $0x288] sm:$0xff]  ;;  %v8029_v51 = vcombine.low %v1460_v18, %v1464_v60  ;;  %v10326_v37 = vpack.c.bf16 %v12661_v57, %v12659_v4  ;;  %v1293_v4 = vld [vmem:[#allocation5 + $0x190] sm:$0xff] }
 0x32c   :  { %3214 = vmatpush2.bf16.msra.mxu0 %v8053_v36  ;;  %v1328_v54 = vld [vmem:[#allocation5 + $0x2a8] sm:$0xff]  ;;  %v12671_v57 = vld [vmem:[#allocation65_spill] sm:$0xff] }
 0x32d   :  { %3215 = vmatprep.subr.bf16.mxu0 %v8046_v12  ;;  %2939 = vmatmul.mubr.bf16.gmra.mxu1 %v10279_v44  ;;  %v12646_v47 = vld [vmem:[#allocation48_spill] sm:$0xff]  ;;  %v7894_v46 = vcombine.high %v1324_v45, %v1328_v54  ;;  %v7893_v59 = vcombine.low %v1324_v45, %v1328_v54  ;;  %v12666_v54 = vld [vmem:[#allocation57_spill] sm:$0xff] }
 0x32e   :  { %3103 = vmatpush2.bf16.msra.mxu1 %v7917_v3  ;;  %2948 = vmatprep.mubr.bf16.mxu1 %v10291_v28  ;;  %v12647_v10 = vmax.f32 %v12646_v47, 0.0  ;;  %v12648_v24 = vld [vmem:[#allocation52_spill] sm:$0xff]  ;;  %v12656_v3 = vld [vmem:[#allocation62_spill] sm:$0xff] }
 0x32f   :  { %3052 = vmatmul.mubr.bf16.gmra.mxu0 %v10285_v49  ;;  %3104 = vmatprep.subr.bf16.mxu1 %v7910_v19  ;;  %v12649_v36 = vmax.f32 %v12648_v24, 0.0  ;;  %v1452_v12 = vld [vmem:[#allocation5 + $0x688] sm:$0xff] }
 0x330   :  { %3216 = vmatpush2.bf16.msra.mxu0 %v8045_v9  ;;  %3061 = vmatprep.mubr.bf16.mxu0 %v10298_v2  ;;  %v1456_v1 = vld [vmem:[#allocation5 + $0x6a8] sm:$0xff]  ;;  %v12657_v9 = vmax.f32 %v12656_v3, 0.0 }
 0x331   :  { %3217 = vmatprep.subr.bf16.mxu0 %v8038_v34  ;;  %v10307_v41 = vpack.c.bf16 %v12649_v36, %v12647_v10  ;;  %v8022_v61 = vcombine.high %v1452_v12, %v1456_v1  ;;  %v1316_v34 = vld [vmem:[#allocation5 + $0x248] sm:$0xff]  ;;  %v8021_v14 = vcombine.low %v1452_v12, %v1456_v1  ;;  %v12667_v12 = vmax.f32 %v12666_v54, 0.0  ;;  %v12668_v1 = vld [vmem:[#allocation61_spill] sm:$0xff] }
 0x332   :  { %3105 = vmatpush2.bf16.msra.mxu1 %v7909_v27  ;;  %v10319_v19 = vpack.c.bf16 %v12657_v9, %v12655_v53  ;;  %v1320_v50 = vld [vmem:[#allocation5 + $0x268] sm:$0xff]  ;;  %v12669_v16 = vmax.f32 %v12668_v1, 0.0  ;;  %v1433_v53 = vld [vmem:[#allocation5 + $0x5f0] sm:$0xff] }
 0x333   :  { %3106 = vmatprep.subr.bf16.mxu1 %v7902_v17  ;;  %v1444_v8 = vld [vmem:[#allocation5 + $0x648] sm:$0xff]  ;;  %v7886_v18 = vcombine.high %v1316_v34, %v1320_v50  ;;  %v7885_v22 = vcombine.low %v1316_v34, %v1320_v50  ;;  %v8000_v58 = vcombine.high %v1429_v48, %v1433_v53  ;;  %v1277_v54 = vld [vmem:[#allocation5 + $0x110] sm:$0xff] }
 0x334   :  { %3218 = vmatpush2.bf16.msra.mxu0 %v8037_v33  ;;  %v1448_v29 = vld [vmem:[#allocation5 + $0x668] sm:$0xff]  ;;  %v10341_v11 = vpack.c.bf16 %v12669_v16, %v12667_v12  ;;  %v1281_v12 = vld [vmem:[#allocation5 + $0x130] sm:$0xff] }
 0x335   :  { %3219 = vmatprep.subr.bf16.mxu0 %v8030_v31  ;;  %2949 = vmatmul.mubr.bf16.gmra.mxu1 %v10307_v41  ;;  %v8014_v60 = vcombine.high %v1444_v8, %v1448_v29  ;;  %v1308_v27 = vld [vmem:[#allocation5 + $0x208] sm:$0xff]  ;;  %v8013_v40 = vcombine.low %v1444_v8, %v1448_v29  ;;  %v1421_v8 = vld [vmem:[#allocation5 + $0x590] sm:$0xff] }
 0x336   :  { %3107 = vmatpush2.bf16.msra.mxu1 %v7901_v62  ;;  %2958 = vmatprep.mubr.bf16.mxu1 %v10319_v19  ;;  %v1312_v33 = vld [vmem:[#allocation5 + $0x228] sm:$0xff]  ;;  %v1425_v29 = vld [vmem:[#allocation5 + $0x5b0] sm:$0xff] }
 0x337   :  { %3062 = vmatmul.mubr.bf16.gmra.mxu0 %v10313_v21  ;;  %3108 = vmatprep.subr.bf16.mxu1 %v7894_v46  ;;  %v12662_v17 = vld [vmem:[#allocation56_spill] sm:$0xff]  ;;  %v7878_v62 = vcombine.high %v1308_v27, %v1312_v33  ;;  %v1301_v46 = vld [vmem:[#allocation5 + $0x1d0] sm:$0xff]  ;;  %v7877_v3 = vcombine.low %v1308_v27, %v1312_v33 }
 0x338   :  { %3220 = vmatpush2.bf16.msra.mxu0 %v8029_v51  ;;  %3071 = vmatprep.mubr.bf16.mxu0 %v10326_v37  ;;  %v12663_v31 = vmax.f32 %v12662_v17, 0.0  ;;  %v12664_v47 = vld [vmem:[#allocation60_spill] sm:$0xff]  ;;  %v1285_v27 = vld [vmem:[#allocation5 + $0x150] sm:$0xff] }
 0x339   :  { %3221 = vmatprep.subr.bf16.mxu0 %v8022_v61  ;;  %v12665_v10 = vmax.f32 %v12664_v47, 0.0  ;;  %v1436_v36 = vld [vmem:[#allocation5 + $0x608] sm:$0xff]  ;;  %v1305_v61 = vld [vmem:[#allocation5 + $0x1f0] sm:$0xff]  ;;  %v7863_v47 = vcombine.low %v1293_v4, %v1297_v56 }
 0x33a   :  { %v1440_v45 = vld [vmem:[#allocation5 + $0x628] sm:$0xff]  ;;  %3109 = vmatpush2.bf16.msra.mxu1 %v7893_v59  ;;  %v7872_v34 = vcombine.high %v1301_v46, %v1305_v61  ;;  %v7871_v59 = vcombine.low %v1301_v46, %v1305_v61  ;;  %v1289_v33 = vld [vmem:[#allocation5 + $0x170] sm:$0xff] }
 0x33b   :  { %v10335_v24 = vpack.c.bf16 %v12665_v10, %v12663_v31  ;;  %3110 = vmatprep.subr.bf16.mxu1 %v7886_v18  ;;  %v8006_v51 = vcombine.high %v1436_v36, %v1440_v45  ;;  %v8005_v9 = vcombine.low %v1436_v36, %v1440_v45  ;;  %v12670_v50 = vld [vmem:[#allocation64_spill] sm:$0xff]  ;;  %v7864_v18 = vcombine.high %v1293_v4, %v1297_v56  ;;  %v1413_v17 = vld [vmem:[#allocation5 + $0x550] sm:$0xff] }
 0x33c   :  { %3222 = vmatpush2.bf16.msra.mxu0 %v8021_v14  ;;  %v7999_v14 = vcombine.low %v1429_v48, %v1433_v53  ;;  %v1417_v31 = vld [vmem:[#allocation5 + $0x570] sm:$0xff]  ;;  %v7991_v10 = vcombine.low %v1421_v8, %v1425_v29  ;;  %v7856_v36 = vcombine.high %v1285_v27, %v1289_v33 }
 0x33d   :  { %3223 = vmatprep.subr.bf16.mxu0 %v8014_v60  ;;  %2959 = vmatmul.mubr.bf16.gmra.mxu1 %v10335_v24  ;;  %v7992_v60 = vcombine.high %v1421_v8, %v1425_v29  ;;  %v7984_v45 = vcombine.high %v1413_v17, %v1417_v31  ;;  %v1405_v1 = vld [vmem:[#allocation5 + $0x510] sm:$0xff] }
 0x33e   :  { %3111 = vmatpush2.bf16.msra.mxu1 %v7885_v22  ;;  %3114 = vmatprep.mubr.bf16.mxu1 %v12670_v50  ;;  %v1409_v16 = vld [vmem:[#allocation5 + $0x530] sm:$0xff]  ;;  %v7855_v22 = vcombine.low %v1285_v27, %v1289_v33 }
 0x33f   :  { %3072 = vmatmul.mubr.bf16.gmra.mxu0 %v10341_v11  ;;  %3112 = vmatprep.subr.bf16.mxu1 %v7878_v62  ;;  %v7848_v62 = vcombine.high %v1277_v54, %v1281_v12  ;;  %v1269_v46 = vld [vmem:[#allocation5 + $0xd0] sm:$0xff] }
 0x340   :  { %3224 = vmatpush2.bf16.msra.mxu0 %v8013_v40  ;;  %3227 = vmatprep.mubr.bf16.mxu0 %v12671_v57  ;;  %v7983_v40 = vcombine.low %v1413_v17, %v1417_v31  ;;  %v1273_v61 = vld [vmem:[#allocation5 + $0xf0] sm:$0xff] }
 0x341   :  { %3225 = vmatprep.subr.bf16.mxu0 %v8006_v51  ;;  %v7976_v51 = vcombine.high %v1405_v1, %v1409_v16  ;;  %v1397_v48 = vld [vmem:[#allocation5 + $0x4d0] sm:$0xff] }
 0x342   :  { %3113 = vmatpush2.bf16.msra.mxu1 %v7877_v3  ;;  %v1401_v53 = vld [vmem:[#allocation5 + $0x4f0] sm:$0xff]  ;;  %v7847_v3 = vcombine.low %v1277_v54, %v1281_v12 }
 0x343   :  { %3308 = vmatprep.subr.bf16.mxu1 %v7872_v34  ;;  %v7840_v34 = vcombine.high %v1269_v46, %v1273_v61  ;;  %v1261_v4 = vld [vmem:[#allocation5 + $0x90] sm:$0xff] }
 0x344   :  { %3226 = vmatpush2.bf16.msra.mxu0 %v8005_v9  ;;  %v7975_v9 = vcombine.low %v1405_v1, %v1409_v16  ;;  %v1265_v56 = vld [vmem:[#allocation5 + $0xb0] sm:$0xff] }
 0x345   :  { %3421 = vmatprep.subr.bf16.mxu0 %v8000_v58  ;;  %3115 = vmatmul.mubr.bf16.vlgmr.msra.gmra.mxu1 %v10139_v7  ;;  %v7968_v58 = vcombine.high %v1397_v48, %v1401_v53  ;;  %v1389_v8 = vld [vmem:[#allocation5 + $0x490] sm:$0xff] }
 0x346   :  { %3309 = vmatpush1.bf16.msra.mxu1 %v7871_v59  ;;  %3124 = vmatprep.mubr.bf16.mxu1 %v10151_v0  ;;  %v1393_v29 = vld [vmem:[#allocation5 + $0x4b0] sm:$0xff]  ;;  %v7839_v59 = vcombine.low %v1269_v46, %v1273_v61 }
 0x347   :  { %3228 = vmatmul.mubr.bf16.vlgmr.msra.gmra.mxu0 %v10145_v6  ;;  %3310 = vmatprep.subr.bf16.mxu1 %v7864_v18  ;;  %v7832_v18 = vcombine.high %v1261_v4, %v1265_v56  ;;  %v1253_v27 = vld [vmem:[#allocation5 + $0x50] sm:$0xff] }
 0x348   :  { %3422 = vmatpush1.bf16.msra.mxu0 %v7999_v14  ;;  %3237 = vmatprep.mubr.bf16.mxu0 %v10158_v5  ;;  %v7967_v14 = vcombine.low %v1397_v48, %v1401_v53  ;;  %v1257_v33 = vld [vmem:[#allocation5 + $0x70] sm:$0xff] }
 0x349   :  { %3423 = vmatprep.subr.bf16.mxu0 %v7992_v60  ;;  %v7960_v60 = vcombine.high %v1389_v8, %v1393_v29  ;;  %v1381_v17 = vld [vmem:[#allocation5 + $0x450] sm:$0xff] }
 0x34a   :  { %3311 = vmatpush1.bf16.msra.mxu1 %v7863_v47  ;;  %v1385_v31 = vld [vmem:[#allocation5 + $0x470] sm:$0xff]  ;;  %v7831_v47 = vcombine.low %v1261_v4, %v1265_v56 }
 0x34b   :  { %3312 = vmatprep.subr.bf16.mxu1 %v7856_v36  ;;  %v7824_v36 = vcombine.high %v1253_v27, %v1257_v33  ;;  %v1245_v54 = vld [vmem:[#allocation5 + $0x10] sm:$0xff] }
 0x34c   :  { %3424 = vmatpush1.bf16.msra.mxu0 %v7991_v10  ;;  %v7959_v10 = vcombine.low %v1389_v8, %v1393_v29  ;;  %v1249_v12 = vld [vmem:[#allocation5 + $0x30] sm:$0xff] }
 0x34d   :  { %3425 = vmatprep.subr.bf16.mxu0 %v7984_v45  ;;  %3125 = vmatmul.mubr.bf16.gmra.mxu1 %v10167_v25  ;;  %v7952_v45 = vcombine.high %v1381_v17, %v1385_v31  ;;  %v1373_v1 = vld [vmem:[#allocation5 + $0x410] sm:$0xff] }
 0x34e   :  { %3313 = vmatpush1.bf16.msra.mxu1 %v7855_v22  ;;  %3134 = vmatprep.mubr.bf16.mxu1 %v10179_v38  ;;  %v1377_v16 = vld [vmem:[#allocation5 + $0x430] sm:$0xff]  ;;  %v7823_v22 = vcombine.low %v1253_v27, %v1257_v33 }
 0x34f   :  { %3238 = vmatmul.mubr.bf16.gmra.mxu0 %v10173_v13  ;;  %3314 = vmatprep.subr.bf16.mxu1 %v7848_v62  ;;  %v7816_v62 = vcombine.high %v1245_v54, %v1249_v12  ;;  %v1365_v46 = vld [vmem:[#allocation5 + $0x3d0] sm:$0xff] }
 0x350   :  { %3426 = vmatpush1.bf16.msra.mxu0 %v7983_v40  ;;  %3247 = vmatprep.mubr.bf16.mxu0 %v10186_v26  ;;  %v7951_v40 = vcombine.low %v1381_v17, %v1385_v31  ;;  %v1369_v61 = vld [vmem:[#allocation5 + $0x3f0] sm:$0xff] }
 0x351   :  { %3427 = vmatprep.subr.bf16.mxu0 %v7976_v51  ;;  %v7944_v51 = vcombine.high %v1373_v1, %v1377_v16  ;;  %v1493_v48 = vld [vmem:[#allocation5 + $0x7d0] sm:$0xff] }
 0x352   :  { %3315 = vmatpush1.bf16.msra.mxu1 %v7847_v3  ;;  %v1497_v53 = vld [vmem:[#allocation5 + $0x7f0] sm:$0xff]  ;;  %v7815_v3 = vcombine.low %v1245_v54, %v1249_v12 }
 0x353   :  { %3316 = vmatprep.subr.bf16.mxu1 %v7840_v34  ;;  %v7936_v34 = vcombine.high %v1365_v46, %v1369_v61  ;;  %v1357_v4 = vld [vmem:[#allocation5 + $0x390] sm:$0xff] }
 0x354   :  { %3428 = vmatpush1.bf16.msra.mxu0 %v7975_v9  ;;  %v7943_v9 = vcombine.low %v1373_v1, %v1377_v16  ;;  %v1361_v56 = vld [vmem:[#allocation5 + $0x3b0] sm:$0xff] }
 0x355   :  { %3429 = vmatprep.subr.bf16.mxu0 %v7968_v58  ;;  %3135 = vmatmul.mubr.bf16.gmra.mxu1 %v10195_v30  ;;  %v8064_v58 = vcombine.high %v1493_v48, %v1497_v53  ;;  %v1485_v8 = vld [vmem:[#allocation5 + $0x790] sm:$0xff] }
 0x356   :  { %3317 = vmatpush1.bf16.msra.mxu1 %v7839_v59  ;;  %3144 = vmatprep.mubr.bf16.mxu1 %v10207_v15  ;;  %v1489_v29 = vld [vmem:[#allocation5 + $0x7b0] sm:$0xff]  ;;  %v7935_v59 = vcombine.low %v1365_v46, %v1369_v61 }
 0x357   :  { %3248 = vmatmul.mubr.bf16.gmra.mxu0 %v10201_v32  ;;  %3318 = vmatprep.subr.bf16.mxu1 %v7832_v18  ;;  %v7928_v18 = vcombine.high %v1357_v4, %v1361_v56  ;;  %v1349_v27 = vld [vmem:[#allocation5 + $0x350] sm:$0xff] }
 0x358   :  { %3430 = vmatpush1.bf16.msra.mxu0 %v7967_v14  ;;  %3257 = vmatprep.mubr.bf16.mxu0 %v10214_v63  ;;  %v8063_v14 = vcombine.low %v1493_v48, %v1497_v53  ;;  %v1353_v33 = vld [vmem:[#allocation5 + $0x370] sm:$0xff] }
 0x359   :  { %3431 = vmatprep.subr.bf16.mxu0 %v7960_v60  ;;  %v8056_v60 = vcombine.high %v1485_v8, %v1489_v29  ;;  %v1477_v17 = vld [vmem:[#allocation5 + $0x750] sm:$0xff] }
 0x35a   :  { %3319 = vmatpush1.bf16.msra.mxu1 %v7831_v47  ;;  %v1481_v31 = vld [vmem:[#allocation5 + $0x770] sm:$0xff]  ;;  %v7927_v47 = vcombine.low %v1357_v4, %v1361_v56 }
 0x35b   :  { %3320 = vmatprep.subr.bf16.mxu1 %v7824_v36  ;;  %v7920_v36 = vcombine.high %v1349_v27, %v1353_v33  ;;  %v1341_v54 = vld [vmem:[#allocation5 + $0x310] sm:$0xff] }
 0x35c   :  { %3432 = vmatpush1.bf16.msra.mxu0 %v7959_v10  ;;  %v8055_v10 = vcombine.low %v1485_v8, %v1489_v29  ;;  %v1345_v12 = vld [vmem:[#allocation5 + $0x330] sm:$0xff] }
 0x35d   :  { %3433 = vmatprep.subr.bf16.mxu0 %v7952_v45  ;;  %3145 = vmatmul.mubr.bf16.gmra.mxu1 %v10223_v52  ;;  %v8048_v45 = vcombine.high %v1477_v17, %v1481_v31  ;;  %v1469_v1 = vld [vmem:[#allocation5 + $0x710] sm:$0xff] }
 0x35e   :  { %3321 = vmatpush1.bf16.msra.mxu1 %v7823_v22  ;;  %3154 = vmatprep.mubr.bf16.mxu1 %v10235_v42  ;;  %v1473_v16 = vld [vmem:[#allocation5 + $0x730] sm:$0xff]  ;;  %v7919_v22 = vcombine.low %v1349_v27, %v1353_v33 }
 0x35f   :  { %3258 = vmatmul.mubr.bf16.gmra.mxu0 %v10229_v35  ;;  %3322 = vmatprep.subr.bf16.mxu1 %v7816_v62  ;;  %v7912_v62 = vcombine.high %v1341_v54, %v1345_v12  ;;  %v1333_v46 = vld [vmem:[#allocation5 + $0x2d0] sm:$0xff] }
 0x360   :  { %3434 = vmatpush1.bf16.msra.mxu0 %v7951_v40  ;;  %3267 = vmatprep.mubr.bf16.mxu0 %v10242_v43  ;;  %v8047_v40 = vcombine.low %v1477_v17, %v1481_v31  ;;  %v1337_v61 = vld [vmem:[#allocation5 + $0x2f0] sm:$0xff] }
 0x361   :  { %3435 = vmatprep.subr.bf16.mxu0 %v7944_v51  ;;  %v8040_v51 = vcombine.high %v1469_v1, %v1473_v16  ;;  %v1461_v48 = vld [vmem:[#allocation5 + $0x6d0] sm:$0xff] }
 0x362   :  { %3323 = vmatpush1.bf16.msra.mxu1 %v7815_v3  ;;  %v1465_v53 = vld [vmem:[#allocation5 + $0x6f0] sm:$0xff]  ;;  %v7911_v3 = vcombine.low %v1341_v54, %v1345_v12 }
 0x363   :  { %3324 = vmatprep.subr.bf16.mxu1 %v7936_v34  ;;  %v7904_v34 = vcombine.high %v1333_v46, %v1337_v61  ;;  %v1325_v4 = vld [vmem:[#allocation5 + $0x290] sm:$0xff] }
 0x364   :  { %3436 = vmatpush1.bf16.msra.mxu0 %v7943_v9  ;;  %v8039_v9 = vcombine.low %v1469_v1, %v1473_v16  ;;  %v1329_v56 = vld [vmem:[#allocation5 + $0x2b0] sm:$0xff] }
 0x365   :  { %3437 = vmatprep.subr.bf16.mxu0 %v8064_v58  ;;  %3155 = vmatmul.mubr.bf16.gmra.mxu1 %v10251_v23  ;;  %v8032_v58 = vcombine.high %v1461_v48, %v1465_v53  ;;  %v1453_v8 = vld [vmem:[#allocation5 + $0x690] sm:$0xff] }
 0x366   :  { %3325 = vmatpush2.bf16.msra.mxu1 %v7935_v59  ;;  %3164 = vmatprep.mubr.bf16.mxu1 %v10263_v39  ;;  %v1457_v29 = vld [vmem:[#allocation5 + $0x6b0] sm:$0xff]  ;;  %v7903_v59 = vcombine.low %v1333_v46, %v1337_v61  ;;  %v1302_v46 = vld [vmem:[#allocation5 + $0x1d8] sm:$0xff] }
 0x367   :  { %3268 = vmatmul.mubr.bf16.gmra.mxu0 %v10257_v55  ;;  %3326 = vmatprep.subr.bf16.mxu1 %v7928_v18  ;;  %v7896_v18 = vcombine.high %v1325_v4, %v1329_v56  ;;  %v1317_v27 = vld [vmem:[#allocation5 + $0x250] sm:$0xff]  ;;  %v1306_v61 = vld [vmem:[#allocation5 + $0x1f8] sm:$0xff] }
 0x368   :  { %3438 = vmatpush2.bf16.msra.mxu0 %v8063_v14  ;;  %3277 = vmatprep.mubr.bf16.mxu0 %v10270_v20  ;;  %v8031_v14 = vcombine.low %v1461_v48, %v1465_v53  ;;  %v1321_v33 = vld [vmem:[#allocation5 + $0x270] sm:$0xff]  ;;  %v1430_v48 = vld [vmem:[#allocation5 + $0x5d8] sm:$0xff] }
 0x369   :  { %3439 = vmatprep.subr.bf16.mxu0 %v8056_v60  ;;  %v8024_v60 = vcombine.high %v1453_v8, %v1457_v29  ;;  %v1445_v17 = vld [vmem:[#allocation5 + $0x650] sm:$0xff]  ;;  %v1434_v53 = vld [vmem:[#allocation5 + $0x5f8] sm:$0xff] }
 0x36a   :  { %3327 = vmatpush2.bf16.msra.mxu1 %v7927_v47  ;;  %v1449_v31 = vld [vmem:[#allocation5 + $0x670] sm:$0xff]  ;;  %v7895_v47 = vcombine.low %v1325_v4, %v1329_v56  ;;  %v1294_v4 = vld [vmem:[#allocation5 + $0x198] sm:$0xff] }
 0x36b   :  { %3328 = vmatprep.subr.bf16.mxu1 %v7920_v36  ;;  %v7888_v36 = vcombine.high %v1317_v27, %v1321_v33  ;;  %v1309_v54 = vld [vmem:[#allocation5 + $0x210] sm:$0xff]  ;;  %v1298_v56 = vld [vmem:[#allocation5 + $0x1b8] sm:$0xff] }
 0x36c   :  { %3440 = vmatpush2.bf16.msra.mxu0 %v8055_v10  ;;  %v8023_v10 = vcombine.low %v1453_v8, %v1457_v29  ;;  %v1313_v12 = vld [vmem:[#allocation5 + $0x230] sm:$0xff]  ;;  %v1422_v8 = vld [vmem:[#allocation5 + $0x598] sm:$0xff] }
 0x36d   :  { %3441 = vmatprep.subr.bf16.mxu0 %v8048_v45  ;;  %3165 = vmatmul.mubr.bf16.gmra.mxu1 %v10279_v44  ;;  %v8016_v45 = vcombine.high %v1445_v17, %v1449_v31  ;;  %v1437_v1 = vld [vmem:[#allocation5 + $0x610] sm:$0xff]  ;;  %v1426_v29 = vld [vmem:[#allocation5 + $0x5b8] sm:$0xff] }
 0x36e   :  { %3329 = vmatpush2.bf16.msra.mxu1 %v7919_v22  ;;  %3174 = vmatprep.mubr.bf16.mxu1 %v10291_v28  ;;  %v1441_v16 = vld [vmem:[#allocation5 + $0x630] sm:$0xff]  ;;  %v7887_v22 = vcombine.low %v1317_v27, %v1321_v33  ;;  %v1286_v27 = vld [vmem:[#allocation5 + $0x158] sm:$0xff] }
 0x36f   :  { %3278 = vmatmul.mubr.bf16.gmra.mxu0 %v10285_v49  ;;  %3330 = vmatprep.subr.bf16.mxu1 %v7912_v62  ;;  %v7880_v62 = vcombine.high %v1309_v54, %v1313_v12  ;;  %v1290_v33 = vld [vmem:[#allocation5 + $0x178] sm:$0xff] }
 0x370   :  { %3442 = vmatpush2.bf16.msra.mxu0 %v8047_v40  ;;  %3287 = vmatprep.mubr.bf16.mxu0 %v10298_v2  ;;  %v8015_v40 = vcombine.low %v1445_v17, %v1449_v31  ;;  %v1414_v17 = vld [vmem:[#allocation5 + $0x558] sm:$0xff] }
 0x371   :  { %3443 = vmatprep.subr.bf16.mxu0 %v8040_v51  ;;  %v8008_v51 = vcombine.high %v1437_v1, %v1441_v16  ;;  %v1418_v31 = vld [vmem:[#allocation5 + $0x578] sm:$0xff] }
 0x372   :  { %3331 = vmatpush2.bf16.msra.mxu1 %v7911_v3  ;;  %v7879_v3 = vcombine.low %v1309_v54, %v1313_v12  ;;  %v1278_v54 = vld [vmem:[#allocation5 + $0x118] sm:$0xff] }
 0x373   :  { %3332 = vmatprep.subr.bf16.mxu1 %v7904_v34  ;;  %v7874_v34 = vcombine.high %v1302_v46, %v1306_v61  ;;  %v1282_v12 = vld [vmem:[#allocation5 + $0x138] sm:$0xff] }
 0x374   :  { %3444 = vmatpush2.bf16.msra.mxu0 %v8039_v9  ;;  %v8007_v9 = vcombine.low %v1437_v1, %v1441_v16  ;;  %v1406_v1 = vld [vmem:[#allocation5 + $0x518] sm:$0xff] }
 0x375   :  { %3445 = vmatprep.subr.bf16.mxu0 %v8032_v58  ;;  %3175 = vmatmul.mubr.bf16.gmra.mxu1 %v10307_v41  ;;  %v8002_v58 = vcombine.high %v1430_v48, %v1434_v53  ;;  %v1410_v16 = vld [vmem:[#allocation5 + $0x538] sm:$0xff] }
 0x376   :  { %3333 = vmatpush2.bf16.msra.mxu1 %v7903_v59  ;;  %3184 = vmatprep.mubr.bf16.mxu1 %v10319_v19  ;;  %v7873_v59 = vcombine.low %v1302_v46, %v1306_v61  ;;  %v1270_v46 = vld [vmem:[#allocation5 + $0xd8] sm:$0xff] }
 0x377   :  { %3288 = vmatmul.mubr.bf16.gmra.mxu0 %v10313_v21  ;;  %3334 = vmatprep.subr.bf16.mxu1 %v7896_v18  ;;  %v7866_v18 = vcombine.high %v1294_v4, %v1298_v56  ;;  %v1274_v61 = vld [vmem:[#allocation5 + $0xf8] sm:$0xff] }
 0x378   :  { %3446 = vmatpush2.bf16.msra.mxu0 %v8031_v14  ;;  %3297 = vmatprep.mubr.bf16.mxu0 %v10326_v37  ;;  %v8001_v14 = vcombine.low %v1430_v48, %v1434_v53  ;;  %v1398_v48 = vld [vmem:[#allocation5 + $0x4d8] sm:$0xff] }
 0x379   :  { %3447 = vmatprep.subr.bf16.mxu0 %v8024_v60  ;;  %v7994_v60 = vcombine.high %v1422_v8, %v1426_v29  ;;  %v1402_v53 = vld [vmem:[#allocation5 + $0x4f8] sm:$0xff] }
 0x37a   :  { %3335 = vmatpush2.bf16.msra.mxu1 %v7895_v47  ;;  %v7865_v47 = vcombine.low %v1294_v4, %v1298_v56  ;;  %v1262_v4 = vld [vmem:[#allocation5 + $0x98] sm:$0xff] }
 0x37b   :  { %3336 = vmatprep.subr.bf16.mxu1 %v7888_v36  ;;  %v7858_v36 = vcombine.high %v1286_v27, %v1290_v33  ;;  %v1266_v56 = vld [vmem:[#allocation5 + $0xb8] sm:$0xff] }
 0x37c   :  { %3448 = vmatpush2.bf16.msra.mxu0 %v8023_v10  ;;  %v7993_v10 = vcombine.low %v1422_v8, %v1426_v29  ;;  %v1390_v8 = vld [vmem:[#allocation5 + $0x498] sm:$0xff] }
 0x37d   :  { %3449 = vmatprep.subr.bf16.mxu0 %v8016_v45  ;;  %3185 = vmatmul.mubr.bf16.gmra.mxu1 %v10335_v24  ;;  %v7986_v45 = vcombine.high %v1414_v17, %v1418_v31  ;;  %v1394_v29 = vld [vmem:[#allocation5 + $0x4b8] sm:$0xff] }
 0x37e   :  { %3337 = vmatpush2.bf16.msra.mxu1 %v7887_v22  ;;  %3340 = vmatprep.mubr.bf16.mxu1 %v12670_v50  ;;  %v7857_v22 = vcombine.low %v1286_v27, %v1290_v33  ;;  %v1254_v27 = vld [vmem:[#allocation5 + $0x58] sm:$0xff] }
 0x37f   :  { %3298 = vmatmul.mubr.bf16.gmra.mxu0 %v10341_v11  ;;  %3338 = vmatprep.subr.bf16.mxu1 %v7880_v62  ;;  %v7850_v62 = vcombine.high %v1278_v54, %v1282_v12  ;;  %v1258_v33 = vld [vmem:[#allocation5 + $0x78] sm:$0xff] }
 0x380   :  { %3450 = vmatpush2.bf16.msra.mxu0 %v8015_v40  ;;  %3453 = vmatprep.mubr.bf16.mxu0 %v12671_v57  ;;  %v7985_v40 = vcombine.low %v1414_v17, %v1418_v31  ;;  %v1382_v17 = vld [vmem:[#allocation5 + $0x458] sm:$0xff] }
 0x381   :  { %3451 = vmatprep.subr.bf16.mxu0 %v8008_v51  ;;  %v7978_v51 = vcombine.high %v1406_v1, %v1410_v16  ;;  %v1386_v31 = vld [vmem:[#allocation5 + $0x478] sm:$0xff] }
 0x382   :  { %3339 = vmatpush2.bf16.msra.mxu1 %v7879_v3  ;;  %v7849_v3 = vcombine.low %v1278_v54, %v1282_v12  ;;  %v1246_v54 = vld [vmem:[#allocation5 + $0x18] sm:$0xff] }
 0x383   :  { %3534 = vmatprep.subr.bf16.mxu1 %v7874_v34  ;;  %v7842_v34 = vcombine.high %v1270_v46, %v1274_v61  ;;  %v1250_v12 = vld [vmem:[#allocation5 + $0x38] sm:$0xff] }
 0x384   :  { %3452 = vmatpush2.bf16.msra.mxu0 %v8007_v9  ;;  %v7977_v9 = vcombine.low %v1406_v1, %v1410_v16  ;;  %v1374_v1 = vld [vmem:[#allocation5 + $0x418] sm:$0xff] }
 0x385   :  { %3647 = vmatprep.subr.bf16.mxu0 %v8002_v58  ;;  %3341 = vmatmul.mubr.bf16.vlgmr.msra.gmra.mxu1 %v10139_v7  ;;  %v7970_v58 = vcombine.high %v1398_v48, %v1402_v53  ;;  %v1378_v16 = vld [vmem:[#allocation5 + $0x438] sm:$0xff] }
 0x386   :  { %3535 = vmatpush1.bf16.msra.mxu1 %v7873_v59  ;;  %3350 = vmatprep.mubr.bf16.mxu1 %v10151_v0  ;;  %v7841_v59 = vcombine.low %v1270_v46, %v1274_v61  ;;  %v1366_v46 = vld [vmem:[#allocation5 + $0x3d8] sm:$0xff] }
 0x387   :  { %3454 = vmatmul.mubr.bf16.vlgmr.msra.gmra.mxu0 %v10145_v6  ;;  %3536 = vmatprep.subr.bf16.mxu1 %v7866_v18  ;;  %v7834_v18 = vcombine.high %v1262_v4, %v1266_v56  ;;  %v1370_v61 = vld [vmem:[#allocation5 + $0x3f8] sm:$0xff] }
 0x388   :  { %3648 = vmatpush1.bf16.msra.mxu0 %v8001_v14  ;;  %3463 = vmatprep.mubr.bf16.mxu0 %v10158_v5  ;;  %v7969_v14 = vcombine.low %v1398_v48, %v1402_v53  ;;  %v1494_v48 = vld [vmem:[#allocation5 + $0x7d8] sm:$0xff] }
 0x389   :  { %3649 = vmatprep.subr.bf16.mxu0 %v7994_v60  ;;  %v7962_v60 = vcombine.high %v1390_v8, %v1394_v29  ;;  %v1498_v53 = vld [vmem:[#allocation5 + $0x7f8] sm:$0xff] }
 0x38a   :  { %3537 = vmatpush1.bf16.msra.mxu1 %v7865_v47  ;;  %v7833_v47 = vcombine.low %v1262_v4, %v1266_v56  ;;  %v1358_v4 = vld [vmem:[#allocation5 + $0x398] sm:$0xff] }
 0x38b   :  { %3538 = vmatprep.subr.bf16.mxu1 %v7858_v36  ;;  %v7826_v36 = vcombine.high %v1254_v27, %v1258_v33  ;;  %v1362_v56 = vld [vmem:[#allocation5 + $0x3b8] sm:$0xff] }
 0x38c   :  { %3650 = vmatpush1.bf16.msra.mxu0 %v7993_v10  ;;  %v7961_v10 = vcombine.low %v1390_v8, %v1394_v29  ;;  %v1486_v8 = vld [vmem:[#allocation5 + $0x798] sm:$0xff] }
 0x38d   :  { %3651 = vmatprep.subr.bf16.mxu0 %v7986_v45  ;;  %3351 = vmatmul.mubr.bf16.gmra.mxu1 %v10167_v25  ;;  %v7954_v45 = vcombine.high %v1382_v17, %v1386_v31  ;;  %v1490_v29 = vld [vmem:[#allocation5 + $0x7b8] sm:$0xff] }
 0x38e   :  { %3539 = vmatpush1.bf16.msra.mxu1 %v7857_v22  ;;  %3360 = vmatprep.mubr.bf16.mxu1 %v10179_v38  ;;  %v7825_v22 = vcombine.low %v1254_v27, %v1258_v33  ;;  %v1350_v27 = vld [vmem:[#allocation5 + $0x358] sm:$0xff] }
 0x38f   :  { %3464 = vmatmul.mubr.bf16.gmra.mxu0 %v10173_v13  ;;  %3540 = vmatprep.subr.bf16.mxu1 %v7850_v62  ;;  %v7818_v62 = vcombine.high %v1246_v54, %v1250_v12  ;;  %v1354_v33 = vld [vmem:[#allocation5 + $0x378] sm:$0xff] }
 0x390   :  { %3652 = vmatpush1.bf16.msra.mxu0 %v7985_v40  ;;  %3473 = vmatprep.mubr.bf16.mxu0 %v10186_v26  ;;  %v7953_v40 = vcombine.low %v1382_v17, %v1386_v31  ;;  %v1478_v17 = vld [vmem:[#allocation5 + $0x758] sm:$0xff] }
 0x391   :  { %3653 = vmatprep.subr.bf16.mxu0 %v7978_v51  ;;  %v7946_v51 = vcombine.high %v1374_v1, %v1378_v16  ;;  %v1482_v31 = vld [vmem:[#allocation5 + $0x778] sm:$0xff] }
 0x392   :  { %3541 = vmatpush1.bf16.msra.mxu1 %v7849_v3  ;;  %v7817_v3 = vcombine.low %v1246_v54, %v1250_v12  ;;  %v1342_v54 = vld [vmem:[#allocation5 + $0x318] sm:$0xff] }
 0x393   :  { %3542 = vmatprep.subr.bf16.mxu1 %v7842_v34  ;;  %v7938_v34 = vcombine.high %v1366_v46, %v1370_v61  ;;  %v1346_v12 = vld [vmem:[#allocation5 + $0x338] sm:$0xff] }
 0x394   :  { %3654 = vmatpush1.bf16.msra.mxu0 %v7977_v9  ;;  %v7945_v9 = vcombine.low %v1374_v1, %v1378_v16  ;;  %v1470_v1 = vld [vmem:[#allocation5 + $0x718] sm:$0xff] }
 0x395   :  { %3655 = vmatprep.subr.bf16.mxu0 %v7970_v58  ;;  %3361 = vmatmul.mubr.bf16.gmra.mxu1 %v10195_v30  ;;  %v8066_v58 = vcombine.high %v1494_v48, %v1498_v53  ;;  %v1474_v16 = vld [vmem:[#allocation5 + $0x738] sm:$0xff] }
 0x396   :  { %3543 = vmatpush1.bf16.msra.mxu1 %v7841_v59  ;;  %3370 = vmatprep.mubr.bf16.mxu1 %v10207_v15  ;;  %v7937_v59 = vcombine.low %v1366_v46, %v1370_v61  ;;  %v1334_v46 = vld [vmem:[#allocation5 + $0x2d8] sm:$0xff] }
 0x397   :  { %3474 = vmatmul.mubr.bf16.gmra.mxu0 %v10201_v32  ;;  %3544 = vmatprep.subr.bf16.mxu1 %v7834_v18  ;;  %v7930_v18 = vcombine.high %v1358_v4, %v1362_v56  ;;  %v1338_v61 = vld [vmem:[#allocation5 + $0x2f8] sm:$0xff] }
 0x398   :  { %3656 = vmatpush1.bf16.msra.mxu0 %v7969_v14  ;;  %3483 = vmatprep.mubr.bf16.mxu0 %v10214_v63  ;;  %v8065_v14 = vcombine.low %v1494_v48, %v1498_v53  ;;  %v1462_v48 = vld [vmem:[#allocation5 + $0x6d8] sm:$0xff] }
 0x399   :  { %3657 = vmatprep.subr.bf16.mxu0 %v7962_v60  ;;  %v8058_v60 = vcombine.high %v1486_v8, %v1490_v29  ;;  %v1466_v53 = vld [vmem:[#allocation5 + $0x6f8] sm:$0xff] }
 0x39a   :  { %3545 = vmatpush1.bf16.msra.mxu1 %v7833_v47  ;;  %v7929_v47 = vcombine.low %v1358_v4, %v1362_v56  ;;  %v1326_v4 = vld [vmem:[#allocation5 + $0x298] sm:$0xff] }
 0x39b   :  { %3546 = vmatprep.subr.bf16.mxu1 %v7826_v36  ;;  %v7922_v36 = vcombine.high %v1350_v27, %v1354_v33  ;;  %v1330_v56 = vld [vmem:[#allocation5 + $0x2b8] sm:$0xff] }
 0x39c   :  { %3658 = vmatpush1.bf16.msra.mxu0 %v7961_v10  ;;  %v8057_v10 = vcombine.low %v1486_v8, %v1490_v29  ;;  %v1454_v8 = vld [vmem:[#allocation5 + $0x698] sm:$0xff] }
 0x39d   :  { %3659 = vmatprep.subr.bf16.mxu0 %v7954_v45  ;;  %3371 = vmatmul.mubr.bf16.gmra.mxu1 %v10223_v52  ;;  %v8050_v45 = vcombine.high %v1478_v17, %v1482_v31  ;;  %v1458_v29 = vld [vmem:[#allocation5 + $0x6b8] sm:$0xff] }
 0x39e   :  { %3547 = vmatpush1.bf16.msra.mxu1 %v7825_v22  ;;  %3380 = vmatprep.mubr.bf16.mxu1 %v10235_v42  ;;  %v7921_v22 = vcombine.low %v1350_v27, %v1354_v33  ;;  %v1318_v27 = vld [vmem:[#allocation5 + $0x258] sm:$0xff] }
 0x39f   :  { %3484 = vmatmul.mubr.bf16.gmra.mxu0 %v10229_v35  ;;  %3548 = vmatprep.subr.bf16.mxu1 %v7818_v62  ;;  %v7914_v62 = vcombine.high %v1342_v54, %v1346_v12  ;;  %v1322_v33 = vld [vmem:[#allocation5 + $0x278] sm:$0xff] }
 0x3a0   :  { %3660 = vmatpush1.bf16.msra.mxu0 %v7953_v40  ;;  %3493 = vmatprep.mubr.bf16.mxu0 %v10242_v43  ;;  %v8049_v40 = vcombine.low %v1478_v17, %v1482_v31  ;;  %v1446_v17 = vld [vmem:[#allocation5 + $0x658] sm:$0xff] }
 0x3a1   :  { %3661 = vmatprep.subr.bf16.mxu0 %v7946_v51  ;;  %v8042_v51 = vcombine.high %v1470_v1, %v1474_v16  ;;  %v1450_v31 = vld [vmem:[#allocation5 + $0x678] sm:$0xff] }
 0x3a2   :  { %3549 = vmatpush1.bf16.msra.mxu1 %v7817_v3  ;;  %v7913_v3 = vcombine.low %v1342_v54, %v1346_v12  ;;  %v1310_v54 = vld [vmem:[#allocation5 + $0x218] sm:$0xff] }
 0x3a3   :  { %3550 = vmatprep.subr.bf16.mxu1 %v7938_v34  ;;  %v7906_v34 = vcombine.high %v1334_v46, %v1338_v61  ;;  %v1314_v12 = vld [vmem:[#allocation5 + $0x238] sm:$0xff] }
 0x3a4   :  { %3662 = vmatpush1.bf16.msra.mxu0 %v7945_v9  ;;  %v8041_v9 = vcombine.low %v1470_v1, %v1474_v16  ;;  %v1438_v1 = vld [vmem:[#allocation5 + $0x618] sm:$0xff] }
 0x3a5   :  { %3663 = vmatprep.subr.bf16.mxu0 %v8066_v58  ;;  %3381 = vmatmul.mubr.bf16.gmra.mxu1 %v10251_v23  ;;  %v8034_v58 = vcombine.high %v1462_v48, %v1466_v53  ;;  %v1442_v16 = vld [vmem:[#allocation5 + $0x638] sm:$0xff] }
 0x3a6   :  { %3551 = vmatpush2.bf16.msra.mxu1 %v7937_v59  ;;  %3390 = vmatprep.mubr.bf16.mxu1 %v10263_v39  ;;  %v7905_v59 = vcombine.low %v1334_v46, %v1338_v61  ;;  %v1501_v46 = vld [vmem:[#allocation11 + $0x2] ss:$8 sm:$0xf0]  ;;  %v8010_v61 = vcombine.high %v1438_v1, %v1442_v16 }
 0x3a7   :  { %3494 = vmatmul.mubr.bf16.gmra.mxu0 %v10257_v55  ;;  %3552 = vmatprep.subr.bf16.mxu1 %v7930_v18  ;;  %v7898_v18 = vcombine.high %v1326_v4, %v1330_v56 }
 0x3a8   :  { %3664 = vmatpush2.bf16.msra.mxu0 %v8065_v14  ;;  %3503 = vmatprep.mubr.bf16.mxu0 %v10270_v20  ;;  %v8033_v14 = vcombine.low %v1462_v48, %v1466_v53  ;;  %v7881_v48 = vcombine.low %v1310_v54, %v1314_v12 }
 0x3a9   :  { %3665 = vmatprep.subr.bf16.mxu0 %v8058_v60  ;;  %v8026_v60 = vcombine.high %v1454_v8, %v1458_v29 }
 0x3aa   :  { %3553 = vmatpush2.bf16.msra.mxu1 %v7929_v47  ;;  %v7897_v47 = vcombine.low %v1326_v4, %v1330_v56 }
 0x3ab   :  { %3554 = vmatprep.subr.bf16.mxu1 %v7922_v36  ;;  %v7890_v36 = vcombine.high %v1318_v27, %v1322_v33 }
 0x3ac   :  { %3666 = vmatpush2.bf16.msra.mxu0 %v8057_v10  ;;  %v8025_v10 = vcombine.low %v1454_v8, %v1458_v29 }
 0x3ad   :  { %3667 = vmatprep.subr.bf16.mxu0 %v8050_v45  ;;  %3391 = vmatmul.mubr.bf16.gmra.mxu1 %v10279_v44  ;;  %v8018_v45 = vcombine.high %v1446_v17, %v1450_v31 }
 0x3ae   :  { %3555 = vmatpush2.bf16.msra.mxu1 %v7921_v22  ;;  %3400 = vmatprep.mubr.bf16.mxu1 %v10291_v28  ;;  %v7889_v22 = vcombine.low %v1318_v27, %v1322_v33 }
 0x3af   :  { %3504 = vmatmul.mubr.bf16.gmra.mxu0 %v10285_v49  ;;  %3556 = vmatprep.subr.bf16.mxu1 %v7914_v62  ;;  %v7882_v62 = vcombine.high %v1310_v54, %v1314_v12 }
 0x3b0   :  { %3668 = vmatpush2.bf16.msra.mxu0 %v8049_v40  ;;  %3513 = vmatprep.mubr.bf16.mxu0 %v10298_v2  ;;  %v8017_v40 = vcombine.low %v1446_v17, %v1450_v31 }
 0x3b1   :  { %3669 = vmatprep.subr.bf16.mxu0 %v8042_v51  ;;  %v1500_v51 = vld [vmem:[#allocation11 + $0x2] ss:$8 sm:$0xf] }
 0x3b2   :  { %3557 = vmatpush2.bf16.msra.mxu1 %v7913_v3  ;;  %v10409_v53 = vor.u32 %v1501_v46, %v1500_v51  ;;  %v8009_v3 = vcombine.low %v1438_v1, %v1442_v16 }
 0x3b3   :  { %3558 = vmatprep.subr.bf16.mxu1 %v7906_v34 }
 0x3b4   :  { %3670 = vmatpush2.bf16.msra.mxu0 %v8041_v9  ;;  %v12672_v9 = vld [vmem:[#allocation40_spill] sm:$0xff] }
 0x3b5   :  { %3671 = vmatprep.subr.bf16.mxu0 %v8034_v58  ;;  %3401 = vmatmul.mubr.bf16.gmra.mxu1 %v10307_v41  ;;  %v10415_v34 = vrot.slane %v10409_v53, %v12672_v9  ;;  %v12673_v58 = vld [vmem:[#allocation41_spill] sm:$0xff] }
 0x3b6   :  { %3559 = vmatpush2.bf16.msra.mxu1 %v7905_v59  ;;  %3410 = vmatprep.mubr.bf16.mxu1 %v10319_v19  ;;  %v10419_v4 = vrot.slane %v10409_v53, %v12673_v58 }
 0x3b7   :  { %3514 = vmatmul.mubr.bf16.gmra.mxu0 %v10313_v21  ;;  %3560 = vmatprep.subr.bf16.mxu1 %v7898_v18 }
 0x3b8   :  { %3672 = vmatpush2.bf16.msra.mxu0 %v8033_v14  ;;  %3523 = vmatprep.mubr.bf16.mxu0 %v10326_v37 }
 0x3b9   :  { %3673 = vmatprep.subr.bf16.mxu0 %v8026_v60 }
 0x3ba   :  { %3561 = vmatpush2.bf16.msra.mxu1 %v7897_v47 }
 0x3bb   :  { %3562 = vmatprep.subr.bf16.mxu1 %v7890_v36 }
 0x3bc   :  { %3674 = vmatpush2.bf16.msra.mxu0 %v8025_v10 }
 0x3bd   :  { %3675 = vmatprep.subr.bf16.mxu0 %v8018_v45  ;;  %3411 = vmatmul.mubr.bf16.gmra.mxu1 %v10335_v24 }
 0x3be   :  { %3563 = vmatpush2.bf16.msra.mxu1 %v7889_v22  ;;  %3566 = vmatprep.mubr.bf16.mxu1 %v12670_v50 }
 0x3bf   :  { %3524 = vmatmul.mubr.bf16.gmra.mxu0 %v10341_v11  ;;  %3564 = vmatprep.subr.bf16.mxu1 %v7882_v62 }
 0x3c0   :  { %3676 = vmatpush2.bf16.msra.mxu0 %v8017_v40  ;;  %3679 = vmatprep.mubr.bf16.mxu0 %v12671_v57 }
 0x3c1   :  { %3677 = vmatprep.subr.bf16.mxu0 %v8010_v61 }
 0x3c2   :  { %3565 = vmatpush2.bf16.msra.mxu1 %v7881_v48 }
 0x3c4   :  { %3678 = vmatpush2.bf16.msra.mxu0 %v8009_v3 }
 0x3c5   :  { %v2890_v56 = vpop.f32.mrf.mxu1  ;;  %3567 = vmatmul.mubr.bf16.vlgmr.msra.gmra.mxu1 %v10139_v7 }
 0x3c6   :  { %v2891_v8 = vadd.f32 %v2890_v56, %v10415_v34  ;;  %3576 = vmatprep.mubr.bf16.mxu1 %v10151_v0 }
 0x3c7   :  { %v3003_v29 = vpop.f32.mrf.mxu0  ;;  %3680 = vmatmul.mubr.bf16.vlgmr.msra.gmra.mxu0 %v10145_v6  ;;  %v2892_v50 = vpop.f32.mrf.mxu1 }
 0x3c8   :  { %3689 = vmatprep.mubr.bf16.mxu0 %v10158_v5  ;;  %v10426_v57 = vadd.f32 %v3003_v29, %v2891_v8  ;;  %v2893_v59 = vadd.f32 %v2892_v50, %v10419_v4 }
 0x3c9   :  { %v3005_v14 = vpop.f32.mrf.mxu0  ;;  %v2894_v18 = vpop.f32.mrf.mxu1 }
 0x3ca   :  { %v10430_v27 = vadd.f32 %v3005_v14, %v2893_v59  ;;  %v2895_v7 = vadd.f32 %v2894_v18, %v10415_v34 }
 0x3cb   :  { %v3007_v33 = vpop.f32.mrf.mxu0  ;;  %v2896_v17 = vpop.f32.mrf.mxu1 }
 0x3cc   :  { %v10434_v0 = vadd.f32 %v3007_v33, %v2895_v7  ;;  %v2897_v5 = vadd.f32 %v2896_v17, %v10419_v4 }
 0x3cd   :  { %v3009_v31 = vpop.f32.mrf.mxu0  ;;  %v2900_v47 = vpop.f32.mrf.mxu1  ;;  %3577 = vmatmul.mubr.bf16.gmra.mxu1 %v10167_v25 }
 0x3ce   :  { %v10439_v36 = vadd.f32 %v3009_v31, %v2897_v5  ;;  %v2901_v45 = vadd.f32 %v2900_v47, %v10415_v34  ;;  %3586 = vmatprep.mubr.bf16.mxu1 %v10179_v38 }
 0x3cf   :  { %v3013_v54 = vpop.f32.mrf.mxu0  ;;  %3690 = vmatmul.mubr.bf16.gmra.mxu0 %v10173_v13  ;;  %v2902_v12 = vpop.f32.mrf.mxu1 }
 0x3d0   :  { %3699 = vmatprep.mubr.bf16.mxu0 %v10186_v26  ;;  %v10446_v16 = vadd.f32 %v3013_v54, %v2901_v45  ;;  %v2903_v25 = vadd.f32 %v2902_v12, %v10419_v4 }
 0x3d1   :  { %v3015_v22 = vpop.f32.mrf.mxu0  ;;  %v2904_v40 = vpop.f32.mrf.mxu1 }
 0x3d2   :  { %v10450_v51 = vadd.f32 %v3015_v22, %v2903_v25  ;;  %v2905_v46 = vadd.f32 %v2904_v40, %v10415_v34 }
 0x3d3   :  { %v3017_v13 = vpop.f32.mrf.mxu0  ;;  %v2906_v61 = vpop.f32.mrf.mxu1 }
 0x3d4   :  { %v10454_v48 = vadd.f32 %v3017_v13, %v2905_v46  ;;  %v2907_v26 = vadd.f32 %v2906_v61, %v10419_v4 }
 0x3d5   :  { %v3019_v3 = vpop.f32.mrf.mxu0  ;;  %v2910_v56 = vpop.f32.mrf.mxu1  ;;  %3587 = vmatmul.mubr.bf16.gmra.mxu1 %v10195_v30 }
 0x3d6   :  { %v10459_v29 = vadd.f32 %v3019_v3, %v2907_v26  ;;  %v2911_v50 = vadd.f32 %v2910_v56, %v10415_v34  ;;  %3596 = vmatprep.mubr.bf16.mxu1 %v10207_v15 }
 0x3d7   :  { %v3023_v59 = vpop.f32.mrf.mxu0  ;;  %3700 = vmatmul.mubr.bf16.gmra.mxu0 %v10201_v32  ;;  %v2912_v14 = vpop.f32.mrf.mxu1 }
 0x3d8   :  { %3709 = vmatprep.mubr.bf16.mxu0 %v10214_v63  ;;  %v10466_v7 = vadd.f32 %v3023_v59, %v2911_v50  ;;  %v2913_v30 = vadd.f32 %v2912_v14, %v10419_v4 }
 0x3d9   :  { %v3025_v33 = vpop.f32.mrf.mxu0  ;;  %v2914_v17 = vpop.f32.mrf.mxu1 }
 0x3da   :  { %v10470_v31 = vadd.f32 %v3025_v33, %v2913_v30  ;;  %v2915_v47 = vadd.f32 %v2914_v17, %v10415_v34 }
 0x3db   :  { %v3027_v32 = vpop.f32.mrf.mxu0  ;;  %v2916_v45 = vpop.f32.mrf.mxu1 }
 0x3dc   :  { %v10474_v54 = vadd.f32 %v3027_v32, %v2915_v47  ;;  %v2917_v63 = vadd.f32 %v2916_v45, %v10419_v4  ;;  %v12684_v45 = vld [vmem:[#allocation43_spill] sm:$0xff] }
 0x3dd   :  { %v3029_v12 = vpop.f32.mrf.mxu0  ;;  %v2920_v25 = vpop.f32.mrf.mxu1  ;;  %3597 = vmatmul.mubr.bf16.gmra.mxu1 %v10223_v52 }
 0x3de   :  { %v10479_v40 = vadd.f32 %v3029_v12, %v2917_v63  ;;  %v2921_v46 = vadd.f32 %v2920_v25, %v10415_v34  ;;  %3606 = vmatprep.mubr.bf16.mxu1 %v10235_v42 }
 0x3df   :  { %v3033_v13 = vpop.f32.mrf.mxu0  ;;  %3710 = vmatmul.mubr.bf16.gmra.mxu0 %v10229_v35  ;;  %v2922_v61 = vpop.f32.mrf.mxu1 }
 0x3e0   :  { %3719 = vmatprep.mubr.bf16.mxu0 %v10242_v43  ;;  %v10486_v3 = vadd.f32 %v3033_v13, %v2921_v46  ;;  %v2923_v52 = vadd.f32 %v2922_v61, %v10419_v4 }
 0x3e1   :  { %v3035_v56 = vpop.f32.mrf.mxu0  ;;  %v2924_v50 = vpop.f32.mrf.mxu1 }
 0x3e2   :  { %v10490_v14 = vadd.f32 %v3035_v56, %v2923_v52  ;;  %v2925_v30 = vadd.f32 %v2924_v50, %v10415_v34 }
 0x3e3   :  { %v3037_v35 = vpop.f32.mrf.mxu0  ;;  %v2926_v33 = vpop.f32.mrf.mxu1 }
 0x3e4   :  { %v10494_v17 = vadd.f32 %v3037_v35, %v2925_v30  ;;  %v2927_v43 = vadd.f32 %v2926_v33, %v10419_v4 }
 0x3e5   :  { %v3039_v47 = vpop.f32.mrf.mxu0  ;;  %v2930_v32 = vpop.f32.mrf.mxu1  ;;  %3607 = vmatmul.mubr.bf16.gmra.mxu1 %v10251_v23 }
 0x3e6   :  { %v10499_v63 = vadd.f32 %v3039_v47, %v2927_v43  ;;  %v2931_v12 = vadd.f32 %v2930_v32, %v10415_v34  ;;  %3616 = vmatprep.mubr.bf16.mxu1 %v10263_v39 }
 0x3e7   :  { %v3043_v25 = vpop.f32.mrf.mxu0  ;;  %3720 = vmatmul.mubr.bf16.gmra.mxu0 %v10257_v55  ;;  %v2932_v46 = vpop.f32.mrf.mxu1 }
 0x3e8   :  { %3729 = vmatprep.mubr.bf16.mxu0 %v10270_v20  ;;  %v10506_v61 = vadd.f32 %v3043_v25, %v2931_v12  ;;  %v2933_v23 = vadd.f32 %v2932_v46, %v10419_v4 }
 0x3e9   :  { %v3045_v52 = vpop.f32.mrf.mxu0  ;;  %v2934_v56 = vpop.f32.mrf.mxu1 }
 0x3ea   :  { %v10510_v30 = vadd.f32 %v3045_v52, %v2933_v23  ;;  %v2935_v35 = vadd.f32 %v2934_v56, %v10415_v34 }
 0x3eb   :  { %v3047_v55 = vpop.f32.mrf.mxu0  ;;  %v2936_v33 = vpop.f32.mrf.mxu1 }
 0x3ec   :  { %v10514_v43 = vadd.f32 %v3047_v55, %v2935_v35  ;;  %v2937_v20 = vadd.f32 %v2936_v33, %v10419_v4 }
 0x3ed   :  { %v3049_v47 = vpop.f32.mrf.mxu0  ;;  %v2940_v32 = vpop.f32.mrf.mxu1  ;;  %3617 = vmatmul.mubr.bf16.gmra.mxu1 %v10279_v44 }
 0x3ee   :  { %v10519_v25 = vadd.f32 %v3049_v47, %v2937_v20  ;;  %v2941_v46 = vadd.f32 %v2940_v32, %v10415_v34  ;;  %3626 = vmatprep.mubr.bf16.mxu1 %v10291_v28 }
 0x3ef   :  { %v3053_v23 = vpop.f32.mrf.mxu0  ;;  %3730 = vmatmul.mubr.bf16.gmra.mxu0 %v10285_v49  ;;  %v2942_v52 = vpop.f32.mrf.mxu1 }
 0x3f0   :  { %3739 = vmatprep.mubr.bf16.mxu0 %v10298_v2  ;;  %v10526_v35 = vadd.f32 %v3053_v23, %v2941_v46  ;;  %v2943_v44 = vadd.f32 %v2942_v52, %v10419_v4 }
 0x3f1   :  { %v3055_v55 = vpop.f32.mrf.mxu0  ;;  %v2944_v33 = vpop.f32.mrf.mxu1 }
 0x3f2   :  { %12674 = vst [vmem:[#allocation44_spill] sm:$0xff] %v10526_v35  ;;  %v10530_v47 = vadd.f32 %v3055_v55, %v2943_v44  ;;  %v2945_v32 = vadd.f32 %v2944_v33, %v10415_v34 }
 0x3f3   :  { %v3057_v49 = vpop.f32.mrf.mxu0  ;;  %v2946_v12 = vpop.f32.mrf.mxu1 }
 0x3f4   :  { %v10534_v50 = vadd.f32 %v3057_v49, %v2945_v32  ;;  %v2947_v2 = vadd.f32 %v2946_v12, %v10419_v4 }
 0x3f5   :  { %v3059_v46 = vpop.f32.mrf.mxu0  ;;  %v2950_v23 = vpop.f32.mrf.mxu1  ;;  %3627 = vmatmul.mubr.bf16.gmra.mxu1 %v10307_v41 }
 0x3f6   :  { %12675 = vst [vmem:[#allocation46_spill] sm:$0xff] %v10534_v50  ;;  %v10539_v56 = vadd.f32 %v3059_v46, %v2947_v2  ;;  %v2951_v44 = vadd.f32 %v2950_v23, %v10415_v34  ;;  %3636 = vmatprep.mubr.bf16.mxu1 %v10319_v19 }
 0x3f7   :  { %v3063_v55 = vpop.f32.mrf.mxu0  ;;  %3740 = vmatmul.mubr.bf16.gmra.mxu0 %v10313_v21  ;;  %v2952_v33 = vpop.f32.mrf.mxu1 }
 0x3f8   :  { %3749 = vmatprep.mubr.bf16.mxu0 %v10326_v37  ;;  %v10546_v32 = vadd.f32 %v3063_v55, %v2951_v44  ;;  %v2953_v41 = vadd.f32 %v2952_v33, %v10419_v4 }
 0x3f9   :  { %v3065_v49 = vpop.f32.mrf.mxu0  ;;  %v2954_v52 = vpop.f32.mrf.mxu1 }
 0x3fa   :  { %12676 = vst [vmem:[#allocation45_spill] sm:$0xff] %v10546_v32  ;;  %v10550_v46 = vadd.f32 %v3065_v49, %v2953_v41  ;;  %v2955_v23 = vadd.f32 %v2954_v52, %v10415_v34 }
 0x3fb   :  { %v3067_v21 = vpop.f32.mrf.mxu0  ;;  %v2956_v20 = vpop.f32.mrf.mxu1 }
 0x3fc   :  { %12677 = vst [vmem:[#allocation47_spill] sm:$0xff] %v10550_v46  ;;  %v10554_v28 = vadd.f32 %v3067_v21, %v2955_v23  ;;  %v2957_v37 = vadd.f32 %v2956_v20, %v10419_v4 }
 0x3fd   :  { %v3069_v44 = vpop.f32.mrf.mxu0  ;;  %v2960_v55 = vpop.f32.mrf.mxu1  ;;  %3637 = vmatmul.mubr.bf16.gmra.mxu1 %v10335_v24  ;;  %v10581_v24 = vrot.slane %v10409_v53, %v12684_v45 }
 0x3fe   :  { %12678 = vst [vmem:[#allocation50_spill] sm:$0xff] %v10554_v28  ;;  %v10559_v12 = vadd.f32 %v3069_v44, %v2957_v37  ;;  %v2961_v41 = vadd.f32 %v2960_v55, %v10415_v34  ;;  %v12682_v55 = vld [vmem:[#allocation42_spill] sm:$0xff] }
 0x3ff   :  { %v3073_v49 = vpop.f32.mrf.mxu0  ;;  %3750 = vmatmul.mubr.bf16.gmra.mxu0 %v10341_v11  ;;  %v2962_v52 = vpop.f32.mrf.mxu1  ;;  %v10573_v33 = vrot.slane %v10409_v53, %v12682_v55 }
 0x400   :  { %12679 = vst [vmem:[#allocation54_spill] sm:$0xff] %v10559_v12  ;;  %v10564_v23 = vadd.f32 %v3073_v49, %v2961_v41  ;;  %v2963_v20 = vadd.f32 %v2962_v52, %v10419_v4 }
 0x401   :  { %v3075_v21 = vpop.f32.mrf.mxu0  ;;  %v2964_v19 = vpop.f32.mrf.mxu1 }
 0x402   :  { %12680 = vst [vmem:[#allocation51_spill] sm:$0xff] %v10564_v23  ;;  %v10568_v39 = vadd.f32 %v3075_v21, %v2963_v20  ;;  %v2965_v37 = vadd.f32 %v2964_v19, %v10415_v34 }
 0x403   :  { %v3077_v44 = vpop.f32.mrf.mxu0  ;;  %v2966_v11 = vpop.f32.mrf.mxu1 }
 0x404   :  { %12681 = vst [vmem:[#allocation55_spill] sm:$0xff] %v10568_v39  ;;  %v10576_v41 = vadd.f32 %v3077_v44, %v2965_v37  ;;  %v2967_v49 = vadd.f32 %v2966_v11, %v10419_v4 }
 0x405   :  { %v3079_v52 = vpop.f32.mrf.mxu0  ;;  %v3116_v20 = vpop.f32.mrf.mxu1 }
 0x406   :  { %12683 = vst [vmem:[#allocation48_spill] sm:$0xff] %v10576_v41  ;;  %v10584_v19 = vadd.f32 %v3079_v52, %v2967_v49  ;;  %v3117_v21 = vadd.f32 %v3116_v20, %v10573_v33 }
 0x407   :  { %v3229_v59 = vpop.f32.mrf.mxu0  ;;  %v3118_v13 = vpop.f32.mrf.mxu1 }
 0x408   :  { %12685 = vst [vmem:[#allocation52_spill] sm:$0xff] %v10584_v19  ;;  %v10588_v37 = vadd.f32 %v3229_v59, %v3117_v21  ;;  %v3119_v4 = vadd.f32 %v3118_v13, %v10581_v24 }
 0x409   :  { %v3231_v44 = vpop.f32.mrf.mxu0  ;;  %v3120_v11 = vpop.f32.mrf.mxu1 }
 0x40a   :  { %v10592_v22 = vadd.f32 %v3231_v44, %v3119_v4  ;;  %v3121_v34 = vadd.f32 %v3120_v11, %v10573_v33 }
 0x40b   :  { %v3233_v49 = vpop.f32.mrf.mxu0  ;;  %v3122_v52 = vpop.f32.mrf.mxu1 }
 0x40c   :  { %v10596_v5 = vadd.f32 %v3233_v49, %v3121_v34  ;;  %v3123_v2 = vadd.f32 %v3122_v52, %v10581_v24 }
 0x40d   :  { %v3235_v59 = vpop.f32.mrf.mxu0  ;;  %v3126_v21 = vpop.f32.mrf.mxu1 }
 0x40e   :  { %v10600_v26 = vadd.f32 %v3235_v59, %v3123_v2  ;;  %v3127_v15 = vadd.f32 %v3126_v21, %v10573_v33 }
 0x40f   :  { %v3239_v4 = vpop.f32.mrf.mxu0  ;;  %v3128_v44 = vpop.f32.mrf.mxu1 }
 0x410   :  { %v10604_v8 = vadd.f32 %v3239_v4, %v3127_v15  ;;  %v3129_v62 = vadd.f32 %v3128_v44, %v10581_v24 }
 0x411   :  { %v3241_v34 = vpop.f32.mrf.mxu0  ;;  %v3130_v49 = vpop.f32.mrf.mxu1 }
 0x412   :  { %v10608_v18 = vadd.f32 %v3241_v34, %v3129_v62  ;;  %v3131_v38 = vadd.f32 %v3130_v49, %v10573_v33 }
 0x413   :  { %v3243_v2 = vpop.f32.mrf.mxu0  ;;  %v3132_v59 = vpop.f32.mrf.mxu1 }
 0x414   :  { %v10612_v13 = vadd.f32 %v3243_v2, %v3131_v38  ;;  %v3133_v42 = vadd.f32 %v3132_v59, %v10581_v24 }
 0x415   :  { %v3245_v15 = vpop.f32.mrf.mxu0  ;;  %v3136_v4 = vpop.f32.mrf.mxu1 }
 0x416   :  { %v10616_v10 = vadd.f32 %v3245_v15, %v3133_v42  ;;  %v3137_v52 = vadd.f32 %v3136_v4, %v10573_v33 }
 0x417   :  { %v3249_v62 = vpop.f32.mrf.mxu0  ;;  %v3138_v34 = vpop.f32.mrf.mxu1 }
 0x418   :  { %v10620_v60 = vadd.f32 %v3249_v62, %v3137_v52  ;;  %v3139_v21 = vadd.f32 %v3138_v34, %v10581_v24 }
 0x419   :  { %v3251_v38 = vpop.f32.mrf.mxu0  ;;  %v3140_v2 = vpop.f32.mrf.mxu1 }
 0x41a   :  { %v10624_v11 = vadd.f32 %v3251_v38, %v3139_v21  ;;  %v3141_v44 = vadd.f32 %v3140_v2, %v10573_v33 }
 0x41b   :  { %v3253_v42 = vpop.f32.mrf.mxu0  ;;  %v3142_v15 = vpop.f32.mrf.mxu1 }
 0x41c   :  { %v10628_v20 = vadd.f32 %v3253_v42, %v3141_v44  ;;  %v3143_v49 = vadd.f32 %v3142_v15, %v10581_v24 }
 0x41d   :  { %v3255_v52 = vpop.f32.mrf.mxu0  ;;  %v3146_v62 = vpop.f32.mrf.mxu1 }
 0x41e   :  { %v10632_v1 = vadd.f32 %v3255_v52, %v3143_v49  ;;  %v3147_v59 = vadd.f32 %v3146_v62, %v10573_v33 }
 0x41f   :  { %v3259_v21 = vpop.f32.mrf.mxu0  ;;  %v3148_v38 = vpop.f32.mrf.mxu1 }
 0x420   :  { %v10636_v6 = vadd.f32 %v3259_v21, %v3147_v59  ;;  %v3149_v4 = vadd.f32 %v3148_v38, %v10581_v24 }
 0x421   :  { %v3261_v44 = vpop.f32.mrf.mxu0  ;;  %v3150_v42 = vpop.f32.mrf.mxu1 }
 0x422   :  { %v10640_v45 = vadd.f32 %v3261_v44, %v3149_v4  ;;  %v3151_v34 = vadd.f32 %v3150_v42, %v10573_v33 }
 0x423   :  { %v3263_v49 = vpop.f32.mrf.mxu0  ;;  %v3152_v52 = vpop.f32.mrf.mxu1 }
 0x424   :  { %v10644_v55 = vadd.f32 %v3263_v49, %v3151_v34  ;;  %v3153_v2 = vadd.f32 %v3152_v52, %v10581_v24 }
 0x425   :  { %v3265_v59 = vpop.f32.mrf.mxu0  ;;  %v3156_v21 = vpop.f32.mrf.mxu1 }
 0x426   :  { %v10648_v58 = vadd.f32 %v3265_v59, %v3153_v2  ;;  %v3157_v15 = vadd.f32 %v3156_v21, %v10573_v33 }
 0x427   :  { %v3269_v4 = vpop.f32.mrf.mxu0  ;;  %v3158_v44 = vpop.f32.mrf.mxu1 }
 0x428   :  { %v10652_v9 = vadd.f32 %v3269_v4, %v3157_v15  ;;  %v3159_v62 = vadd.f32 %v3158_v44, %v10581_v24 }
 0x429   :  { %v3271_v34 = vpop.f32.mrf.mxu0  ;;  %v3160_v49 = vpop.f32.mrf.mxu1 }
 0x42a   :  { %v10656_v41 = vadd.f32 %v3271_v34, %v3159_v62  ;;  %v3161_v38 = vadd.f32 %v3160_v49, %v10573_v33 }
 0x42b   :  { %v3273_v2 = vpop.f32.mrf.mxu0  ;;  %v3162_v59 = vpop.f32.mrf.mxu1 }
 0x42c   :  { %v10660_v23 = vadd.f32 %v3273_v2, %v3161_v38  ;;  %v3163_v42 = vadd.f32 %v3162_v59, %v10581_v24 }
 0x42d   :  { %v3275_v15 = vpop.f32.mrf.mxu0  ;;  %v3166_v4 = vpop.f32.mrf.mxu1 }
 0x42e   :  { %v10664_v19 = vadd.f32 %v3275_v15, %v3163_v42  ;;  %v3167_v52 = vadd.f32 %v3166_v4, %v10573_v33 }
 0x42f   :  { %v3279_v62 = vpop.f32.mrf.mxu0  ;;  %v3168_v34 = vpop.f32.mrf.mxu1 }
 0x430   :  { %v10668_v39 = vadd.f32 %v3279_v62, %v3167_v52  ;;  %v3169_v21 = vadd.f32 %v3168_v34, %v10581_v24 }
 0x431   :  { %v3281_v38 = vpop.f32.mrf.mxu0  ;;  %v3170_v2 = vpop.f32.mrf.mxu1 }
 0x432   :  { %12686 = vst [vmem:[#allocation49_spill] sm:$0xff] %v10668_v39  ;;  %v10672_v28 = vadd.f32 %v3281_v38, %v3169_v21  ;;  %v3171_v44 = vadd.f32 %v3170_v2, %v10573_v33 }
 0x433   :  { %v3283_v42 = vpop.f32.mrf.mxu0  ;;  %v3172_v15 = vpop.f32.mrf.mxu1 }
 0x434   :  { %v10676_v32 = vadd.f32 %v3283_v42, %v3171_v44  ;;  %v3173_v49 = vadd.f32 %v3172_v15, %v10581_v24 }
 0x435   :  { %v3285_v52 = vpop.f32.mrf.mxu0  ;;  %v3176_v62 = vpop.f32.mrf.mxu1 }
 0x436   :  { %12687 = vst [vmem:[#allocation53_spill] sm:$0xff] %v10676_v32  ;;  %v10680_v12 = vadd.f32 %v3285_v52, %v3173_v49  ;;  %v3177_v59 = vadd.f32 %v3176_v62, %v10573_v33 }
 0x437   :  { %v3289_v21 = vpop.f32.mrf.mxu0  ;;  %v3178_v38 = vpop.f32.mrf.mxu1 }
 0x438   :  { %12688 = vst [vmem:[#allocation58_spill] sm:$0xff] %v10680_v12  ;;  %v10684_v46 = vadd.f32 %v3289_v21, %v3177_v59  ;;  %v3179_v4 = vadd.f32 %v3178_v38, %v10581_v24 }
 0x439   :  { %v3291_v44 = vpop.f32.mrf.mxu0  ;;  %v3180_v42 = vpop.f32.mrf.mxu1 }
 0x43a   :  { %12689 = vst [vmem:[#allocation62_spill] sm:$0xff] %v10684_v46  ;;  %v10688_v39 = vadd.f32 %v3291_v44, %v3179_v4  ;;  %v3181_v34 = vadd.f32 %v3180_v42, %v10573_v33  ;;  %v12693_v44 = vld [vmem:[#allocation39_spill] sm:$0xff] }
 0x43b   :  { %v3293_v49 = vpop.f32.mrf.mxu0  ;;  %v3182_v52 = vpop.f32.mrf.mxu1  ;;  %v1554_v46 = vsub.s32 4, %v12693_v44 }
 0x43c   :  { %12690 = vst [vmem:[#allocation59_spill] sm:$0xff] %v10688_v39  ;;  %v10692_v32 = vadd.f32 %v3293_v49, %v3181_v34  ;;  %v3183_v2 = vadd.f32 %v3182_v52, %v10581_v24  ;;  %v1558_v52 = vsub.s32 5, %v12693_v44 }
 0x43d   :  { %v3295_v59 = vpop.f32.mrf.mxu0  ;;  %v3186_v21 = vpop.f32.mrf.mxu1 }
 0x43e   :  { %12691 = vst [vmem:[#allocation63_spill] sm:$0xff] %v10692_v32  ;;  %v10696_v50 = vadd.f32 %v3295_v59, %v3183_v2  ;;  %v3187_v15 = vadd.f32 %v3186_v21, %v10573_v33  ;;  %v10710_v32 = vrot.slane %v10409_v53, %v1554_v46 }
 0x43f   :  { %v3299_v4 = vpop.f32.mrf.mxu0  ;;  %v3188_v42 = vpop.f32.mrf.mxu1 }
 0x440   :  { %12692 = vst [vmem:[#allocation56_spill] sm:$0xff] %v10696_v50  ;;  %v10701_v12 = vadd.f32 %v3299_v4, %v3187_v15  ;;  %v3189_v34 = vadd.f32 %v3188_v42, %v10581_v24  ;;  %v10717_v50 = vrot.slane %v10409_v53, %v1558_v52 }
 0x441   :  { %v3301_v49 = vpop.f32.mrf.mxu0  ;;  %v3190_v62 = vpop.f32.mrf.mxu1 }
 0x442   :  { %12694 = vst [vmem:[#allocation60_spill] sm:$0xff] %v10701_v12  ;;  %v10706_v2 = vadd.f32 %v3301_v49, %v3189_v34  ;;  %v3191_v59 = vadd.f32 %v3190_v62, %v10573_v33 }
 0x443   :  { %v3303_v21 = vpop.f32.mrf.mxu0  ;;  %v3192_v39 = vpop.f32.mrf.mxu1 }
 0x444   :  { %12695 = vst [vmem:[#allocation57_spill] sm:$0xff] %v10706_v2  ;;  %v10713_v4 = vadd.f32 %v3303_v21, %v3191_v59  ;;  %v3193_v42 = vadd.f32 %v3192_v39, %v10581_v24 }
 0x445   :  { %v3305_v35 = vpop.f32.mrf.mxu0  ;;  %v3342_v38 = vpop.f32.mrf.mxu1 }
 0x446   :  { %12696 = vst [vmem:[#allocation61_spill] sm:$0xff] %v10713_v4  ;;  %v10720_v49 = vadd.f32 %v3305_v35, %v3193_v42  ;;  %v3343_v33 = vadd.f32 %v3342_v38, %v10710_v32 }
 0x447   :  { %v3455_v46 = vpop.f32.mrf.mxu0  ;;  %v3344_v62 = vpop.f32.mrf.mxu1 }
 0x448   :  { %12697 = vst [vmem:[#allocation64_spill] sm:$0xff] %v10720_v49  ;;  %v10724_v15 = vadd.f32 %v3455_v46, %v3343_v33  ;;  %v3345_v59 = vadd.f32 %v3344_v62, %v10717_v50 }
 0x449   :  { %v3457_v39 = vpop.f32.mrf.mxu0  ;;  %v3346_v24 = vpop.f32.mrf.mxu1 }
 0x44a   :  { %12698 = vst [vmem:[#allocation65_spill] sm:$0xff] %v10724_v15  ;;  %v10728_v21 = vadd.f32 %v3457_v39, %v3345_v59  ;;  %v3347_v34 = vadd.f32 %v3346_v24, %v10710_v32 }
 0x44b   :  { %v3459_v35 = vpop.f32.mrf.mxu0  ;;  %v3348_v42 = vpop.f32.mrf.mxu1 }
 0x44c   :  { %12699 = vst [vmem:[#allocation39_spill] sm:$0xff] %v10728_v21  ;;  %v10732_v4 = vadd.f32 %v3459_v35, %v3347_v34  ;;  %v3349_v12 = vadd.f32 %v3348_v42, %v10717_v50 }
 0x44d   :  { %v3461_v33 = vpop.f32.mrf.mxu0  ;;  %v3352_v46 = vpop.f32.mrf.mxu1 }
 0x44e   :  { %12700 = vst [vmem:[#allocation66_spill] sm:$0xff] %v10732_v4  ;;  %v10736_v49 = vadd.f32 %v3461_v33, %v3349_v12  ;;  %v3353_v52 = vadd.f32 %v3352_v46, %v10710_v32 }
 0x44f   :  { %v3465_v59 = vpop.f32.mrf.mxu0  ;;  %v3354_v39 = vpop.f32.mrf.mxu1 }
 0x450   :  { %12701 = vst [vmem:[#allocation67_spill] sm:$0xff] %v10736_v49  ;;  %v10740_v15 = vadd.f32 %v3465_v59, %v3353_v52  ;;  %v3355_v38 = vadd.f32 %v3354_v39, %v10717_v50 }
 0x451   :  { %v3467_v34 = vpop.f32.mrf.mxu0  ;;  %v3356_v35 = vpop.f32.mrf.mxu1 }
 0x452   :  { %12702 = vst [vmem:[#allocation68_spill] sm:$0xff] %v10740_v15  ;;  %v10744_v21 = vadd.f32 %v3467_v34, %v3355_v38  ;;  %v3357_v62 = vadd.f32 %v3356_v35, %v10710_v32 }
 0x453   :  { %v3469_v12 = vpop.f32.mrf.mxu0  ;;  %v3358_v33 = vpop.f32.mrf.mxu1 }
 0x454   :  { %12703 = vst [vmem:[#allocation69_spill] sm:$0xff] %v10744_v21  ;;  %v10748_v4 = vadd.f32 %v3469_v12, %v3357_v62  ;;  %v3359_v24 = vadd.f32 %v3358_v33, %v10717_v50 }
 0x455   :  { %v3471_v52 = vpop.f32.mrf.mxu0  ;;  %v3362_v59 = vpop.f32.mrf.mxu1 }
 0x456   :  { %12704 = vst [vmem:[#allocation70_spill] sm:$0xff] %v10748_v4  ;;  %v10752_v49 = vadd.f32 %v3471_v52, %v3359_v24  ;;  %v3363_v42 = vadd.f32 %v3362_v59, %v10710_v32 }
 0x457   :  { %v3475_v38 = vpop.f32.mrf.mxu0  ;;  %v3364_v34 = vpop.f32.mrf.mxu1 }
 0x458   :  { %12705 = vst [vmem:[#allocation71_spill] sm:$0xff] %v10752_v49  ;;  %v10756_v15 = vadd.f32 %v3475_v38, %v3363_v42  ;;  %v3365_v46 = vadd.f32 %v3364_v34, %v10717_v50 }
 0x459   :  { %v3477_v62 = vpop.f32.mrf.mxu0  ;;  %v3366_v12 = vpop.f32.mrf.mxu1 }
 0x45a   :  { %12706 = vst [vmem:[#allocation72_spill] sm:$0xff] %v10756_v15  ;;  %v10760_v21 = vadd.f32 %v3477_v62, %v3365_v46  ;;  %v3367_v39 = vadd.f32 %v3366_v12, %v10710_v32 }
 0x45b   :  { %v3479_v24 = vpop.f32.mrf.mxu0  ;;  %v3368_v52 = vpop.f32.mrf.mxu1 }
 0x45c   :  { %12707 = vst [vmem:[#allocation73_spill] sm:$0xff] %v10760_v21  ;;  %v10764_v4 = vadd.f32 %v3479_v24, %v3367_v39  ;;  %v3369_v35 = vadd.f32 %v3368_v52, %v10717_v50 }
 0x45d   :  { %v3481_v42 = vpop.f32.mrf.mxu0  ;;  %v3372_v38 = vpop.f32.mrf.mxu1 }
 0x45e   :  { %12708 = vst [vmem:[#allocation74_spill] sm:$0xff] %v10764_v4  ;;  %v10768_v49 = vadd.f32 %v3481_v42, %v3369_v35  ;;  %v3373_v33 = vadd.f32 %v3372_v38, %v10710_v32 }
 0x45f   :  { %v3485_v46 = vpop.f32.mrf.mxu0  ;;  %v3374_v62 = vpop.f32.mrf.mxu1 }
 0x460   :  { %12709 = vst [vmem:[#allocation75_spill] sm:$0xff] %v10768_v49  ;;  %v10772_v15 = vadd.f32 %v3485_v46, %v3373_v33  ;;  %v3375_v59 = vadd.f32 %v3374_v62, %v10717_v50 }
 0x461   :  { %v3487_v39 = vpop.f32.mrf.mxu0  ;;  %v3376_v24 = vpop.f32.mrf.mxu1 }
 0x462   :  { %12710 = vst [vmem:[#allocation76_spill] sm:$0xff] %v10772_v15  ;;  %v10776_v21 = vadd.f32 %v3487_v39, %v3375_v59  ;;  %v3377_v34 = vadd.f32 %v3376_v24, %v10710_v32 }
 0x463   :  { %v3489_v35 = vpop.f32.mrf.mxu0  ;;  %v3378_v42 = vpop.f32.mrf.mxu1 }
 0x464   :  { %12711 = vst [vmem:[#allocation77_spill] sm:$0xff] %v10776_v21  ;;  %v10780_v4 = vadd.f32 %v3489_v35, %v3377_v34  ;;  %v3379_v12 = vadd.f32 %v3378_v42, %v10717_v50 }
 0x465   :  { %v3491_v33 = vpop.f32.mrf.mxu0  ;;  %v3382_v46 = vpop.f32.mrf.mxu1 }
 0x466   :  { %12712 = vst [vmem:[#allocation78_spill] sm:$0xff] %v10780_v4  ;;  %v10784_v49 = vadd.f32 %v3491_v33, %v3379_v12  ;;  %v3383_v52 = vadd.f32 %v3382_v46, %v10710_v32 }
 0x467   :  { %v3495_v59 = vpop.f32.mrf.mxu0  ;;  %v3384_v39 = vpop.f32.mrf.mxu1 }
 0x468   :  { %12713 = vst [vmem:[#allocation79_spill] sm:$0xff] %v10784_v49  ;;  %v10788_v15 = vadd.f32 %v3495_v59, %v3383_v52  ;;  %v3385_v38 = vadd.f32 %v3384_v39, %v10717_v50 }
 0x469   :  { %v3497_v34 = vpop.f32.mrf.mxu0  ;;  %v3386_v35 = vpop.f32.mrf.mxu1 }
 0x46a   :  { %12714 = vst [vmem:[#allocation80_spill] sm:$0xff] %v10788_v15  ;;  %v10792_v21 = vadd.f32 %v3497_v34, %v3385_v38  ;;  %v3387_v62 = vadd.f32 %v3386_v35, %v10710_v32 }
 0x46b   :  { %v3499_v12 = vpop.f32.mrf.mxu0  ;;  %v3388_v33 = vpop.f32.mrf.mxu1 }
 0x46c   :  { %12715 = vst [vmem:[#allocation81_spill] sm:$0xff] %v10792_v21  ;;  %v10796_v4 = vadd.f32 %v3499_v12, %v3387_v62  ;;  %v3389_v24 = vadd.f32 %v3388_v33, %v10717_v50 }
 0x46d   :  { %v3501_v52 = vpop.f32.mrf.mxu0  ;;  %v3392_v59 = vpop.f32.mrf.mxu1 }
 0x46e   :  { %12716 = vst [vmem:[#allocation82_spill] sm:$0xff] %v10796_v4  ;;  %v10800_v49 = vadd.f32 %v3501_v52, %v3389_v24  ;;  %v3393_v42 = vadd.f32 %v3392_v59, %v10710_v32 }
 0x46f   :  { %v3505_v38 = vpop.f32.mrf.mxu0  ;;  %v3394_v34 = vpop.f32.mrf.mxu1 }
 0x470   :  { %12717 = vst [vmem:[#allocation83_spill] sm:$0xff] %v10800_v49  ;;  %v10804_v15 = vadd.f32 %v3505_v38, %v3393_v42  ;;  %v3395_v46 = vadd.f32 %v3394_v34, %v10717_v50 }
 0x471   :  { %v3507_v62 = vpop.f32.mrf.mxu0  ;;  %v3396_v12 = vpop.f32.mrf.mxu1 }
 0x472   :  { %12718 = vst [vmem:[#allocation84_spill] sm:$0xff] %v10804_v15  ;;  %v10808_v21 = vadd.f32 %v3507_v62, %v3395_v46  ;;  %v3397_v39 = vadd.f32 %v3396_v12, %v10710_v32 }
 0x473   :  { %v3509_v24 = vpop.f32.mrf.mxu0  ;;  %v3398_v52 = vpop.f32.mrf.mxu1 }
 0x474   :  { %12719 = vst [vmem:[#allocation85_spill] sm:$0xff] %v10808_v21  ;;  %v10812_v4 = vadd.f32 %v3509_v24, %v3397_v39  ;;  %v3399_v35 = vadd.f32 %v3398_v52, %v10717_v50 }
 0x475   :  { %v3511_v42 = vpop.f32.mrf.mxu0  ;;  %v3402_v38 = vpop.f32.mrf.mxu1 }
 0x476   :  { %12720 = vst [vmem:[#allocation86_spill] sm:$0xff] %v10812_v4  ;;  %v10816_v49 = vadd.f32 %v3511_v42, %v3399_v35  ;;  %v3403_v33 = vadd.f32 %v3402_v38, %v10710_v32 }
 0x477   :  { %v3515_v46 = vpop.f32.mrf.mxu0  ;;  %v3404_v62 = vpop.f32.mrf.mxu1 }
 0x478   :  { %12721 = vst [vmem:[#allocation87_spill] sm:$0xff] %v10816_v49  ;;  %v10820_v15 = vadd.f32 %v3515_v46, %v3403_v33  ;;  %v3405_v59 = vadd.f32 %v3404_v62, %v10717_v50 }
 0x479   :  { %v3517_v39 = vpop.f32.mrf.mxu0  ;;  %v3406_v24 = vpop.f32.mrf.mxu1 }
 0x47a   :  { %12722 = vst [vmem:[#allocation88_spill] sm:$0xff] %v10820_v15  ;;  %v10824_v21 = vadd.f32 %v3517_v39, %v3405_v59  ;;  %v3407_v34 = vadd.f32 %v3406_v24, %v10710_v32  ;;  %v1562_v39 = vsub.s32 6, %v12693_v44 }
 0x47b   :  { %v3519_v35 = vpop.f32.mrf.mxu0  ;;  %v3408_v42 = vpop.f32.mrf.mxu1 }
 0x47c   :  { %12723 = vst [vmem:[#allocation89_spill] sm:$0xff] %v10824_v21  ;;  %v10828_v4 = vadd.f32 %v3519_v35, %v3407_v34  ;;  %v3409_v12 = vadd.f32 %v3408_v42, %v10717_v50  ;;  %v1566_v42 = vsub.s32 7, %v12693_v44 }
 0x47d   :  { %v3521_v33 = vpop.f32.mrf.mxu0  ;;  %v3412_v46 = vpop.f32.mrf.mxu1 }
 0x47e   :  { %12724 = vst [vmem:[#allocation90_spill] sm:$0xff] %v10828_v4  ;;  %v10832_v49 = vadd.f32 %v3521_v33, %v3409_v12  ;;  %v3413_v52 = vadd.f32 %v3412_v46, %v10710_v32  ;;  %v10846_v4 = vrot.slane %v10409_v53, %v1562_v39  ;;  %v10853_v44 = vrot.slane %v10409_v53, %v1566_v42 }
 0x47f   :  { %v3525_v59 = vpop.f32.mrf.mxu0  ;;  %v3414_v24 = vpop.f32.mrf.mxu1 }
 0x480   :  { %12725 = vst [vmem:[#allocation91_spill] sm:$0xff] %v10832_v49  ;;  %v10837_v2 = vadd.f32 %v3525_v59, %v3413_v52  ;;  %v3415_v34 = vadd.f32 %v3414_v24, %v10717_v50 }
 0x481   :  { %v3527_v35 = vpop.f32.mrf.mxu0  ;;  %v3416_v38 = vpop.f32.mrf.mxu1 }
 0x482   :  { %12726 = vst [vmem:[#allocation92_spill] sm:$0xff] %v10837_v2  ;;  %v10842_v12 = vadd.f32 %v3527_v35, %v3415_v34  ;;  %v3417_v33 = vadd.f32 %v3416_v38, %v10710_v32 }
 0x483   :  { %v3529_v46 = vpop.f32.mrf.mxu0  ;;  %v3418_v21 = vpop.f32.mrf.mxu1 }
 0x484   :  { %12727 = vst [vmem:[#allocation93_spill] sm:$0xff] %v10842_v12  ;;  %v10849_v59 = vadd.f32 %v3529_v46, %v3417_v33  ;;  %v3419_v24 = vadd.f32 %v3418_v21, %v10717_v50 }
 0x485   :  { %v3531_v15 = vpop.f32.mrf.mxu0  ;;  %v3568_v62 = vpop.f32.mrf.mxu1 }
 0x486   :  { %12728 = vst [vmem:[#allocation94_spill] sm:$0xff] %v10849_v59  ;;  %v10856_v35 = vadd.f32 %v3531_v15, %v3419_v24  ;;  %v3569_v32 = vadd.f32 %v3568_v62, %v10846_v4 }
 0x487   :  { %v3681_v38 = vpop.f32.mrf.mxu0  ;;  %v3570_v39 = vpop.f32.mrf.mxu1 }
 0x488   :  { %12729 = vst [vmem:[#allocation95_spill] sm:$0xff] %v10856_v35  ;;  %v10860_v52 = vadd.f32 %v3681_v38, %v3569_v32  ;;  %v3571_v33 = vadd.f32 %v3570_v39, %v10853_v44 }
 0x489   :  { %v3683_v50 = vpop.f32.mrf.mxu0  ;;  %v3572_v21 = vpop.f32.mrf.mxu1 }
 0x48a   :  { %v10864_v42 = vadd.f32 %v3683_v50, %v3571_v33  ;;  %v3573_v46 = vadd.f32 %v3572_v21, %v10846_v4 }
 0x48b   :  { %v3685_v15 = vpop.f32.mrf.mxu0  ;;  %v3574_v24 = vpop.f32.mrf.mxu1 }
 0x48c   :  { %v10868_v34 = vadd.f32 %v3685_v15, %v3573_v46  ;;  %v3575_v2 = vadd.f32 %v3574_v24, %v10853_v44 }
 0x48d   :  { %v3687_v32 = vpop.f32.mrf.mxu0  ;;  %v3578_v38 = vpop.f32.mrf.mxu1 }
 0x48e   :  { %12730 = vst [vmem:[#allocation96_spill] sm:$0xff] %v10868_v34  ;;  %v10872_v59 = vadd.f32 %v3687_v32, %v3575_v2  ;;  %v3579_v53 = vadd.f32 %v3578_v38, %v10846_v4 }
 0x48f   :  { %v3691_v33 = vpop.f32.mrf.mxu0  ;;  %v3580_v50 = vpop.f32.mrf.mxu1 }
 0x490   :  { %v10876_v35 = vadd.f32 %v3691_v33, %v3579_v53  ;;  %v3581_v62 = vadd.f32 %v3580_v50, %v10853_v44 }
 0x491   :  { %v3693_v46 = vpop.f32.mrf.mxu0  ;;  %v3582_v15 = vpop.f32.mrf.mxu1 }
 0x492   :  { %12731 = vst [vmem:[#allocation97_spill] sm:$0xff] %v10876_v35  ;;  %v10880_v12 = vadd.f32 %v3693_v46, %v3581_v62  ;;  %v3583_v39 = vadd.f32 %v3582_v15, %v10846_v4 }
 0x493   :  { %v3695_v2 = vpop.f32.mrf.mxu0  ;;  %v3584_v32 = vpop.f32.mrf.mxu1 }
 0x494   :  { %12732 = vst [vmem:[#allocation98_spill] sm:$0xff] %v10880_v12  ;;  %v10884_v49 = vadd.f32 %v3695_v2, %v3583_v39  ;;  %v3585_v21 = vadd.f32 %v3584_v32, %v10853_v44 }
 0x495   :  { %v3697_v53 = vpop.f32.mrf.mxu0  ;;  %v3588_v33 = vpop.f32.mrf.mxu1 }
 0x496   :  { %12733 = vst [vmem:[#allocation99_spill] sm:$0xff] %v10884_v49  ;;  %v10888_v34 = vadd.f32 %v3697_v53, %v3585_v21  ;;  %v3589_v24 = vadd.f32 %v3588_v33, %v10846_v4 }
 0x497   :  { %v3701_v62 = vpop.f32.mrf.mxu0  ;;  %v3590_v46 = vpop.f32.mrf.mxu1 }
 0x498   :  { %12734 = vst [vmem:[#allocation100_spill] sm:$0xff] %v10888_v34  ;;  %v10892_v35 = vadd.f32 %v3701_v62, %v3589_v24  ;;  %v3591_v38 = vadd.f32 %v3590_v46, %v10853_v44 }
 0x499   :  { %v3703_v39 = vpop.f32.mrf.mxu0  ;;  %v3592_v2 = vpop.f32.mrf.mxu1 }
 0x49a   :  { %12735 = vst [vmem:[#allocation101_spill] sm:$0xff] %v10892_v35  ;;  %v10896_v12 = vadd.f32 %v3703_v39, %v3591_v38  ;;  %v3593_v50 = vadd.f32 %v3592_v2, %v10846_v4 }
 0x49b   :  { %v3705_v21 = vpop.f32.mrf.mxu0  ;;  %v3594_v53 = vpop.f32.mrf.mxu1 }
 0x49c   :  { %12736 = vst [vmem:[#allocation102_spill] sm:$0xff] %v10896_v12  ;;  %v10900_v49 = vadd.f32 %v3705_v21, %v3593_v50  ;;  %v3595_v15 = vadd.f32 %v3594_v53, %v10853_v44 }
 0x49d   :  { %v3707_v24 = vpop.f32.mrf.mxu0  ;;  %v3598_v62 = vpop.f32.mrf.mxu1 }
 0x49e   :  { %12737 = vst [vmem:[#allocation103_spill] sm:$0xff] %v10900_v49  ;;  %v10904_v34 = vadd.f32 %v3707_v24, %v3595_v15  ;;  %v3599_v32 = vadd.f32 %v3598_v62, %v10846_v4 }
 0x49f   :  { %v3711_v38 = vpop.f32.mrf.mxu0  ;;  %v3600_v39 = vpop.f32.mrf.mxu1 }
 0x4a0   :  { %12738 = vst [vmem:[#allocation104_spill] sm:$0xff] %v10904_v34  ;;  %v10908_v35 = vadd.f32 %v3711_v38, %v3599_v32  ;;  %v3601_v33 = vadd.f32 %v3600_v39, %v10853_v44 }
 0x4a1   :  { %v3713_v50 = vpop.f32.mrf.mxu0  ;;  %v3602_v21 = vpop.f32.mrf.mxu1 }
 0x4a2   :  { %12739 = vst [vmem:[#allocation105_spill] sm:$0xff] %v10908_v35  ;;  %v10912_v12 = vadd.f32 %v3713_v50, %v3601_v33  ;;  %v3603_v46 = vadd.f32 %v3602_v21, %v10846_v4 }
 0x4a3   :  { %v3715_v15 = vpop.f32.mrf.mxu0  ;;  %v3604_v24 = vpop.f32.mrf.mxu1 }
 0x4a4   :  { %12740 = vst [vmem:[#allocation106_spill] sm:$0xff] %v10912_v12  ;;  %v10916_v49 = vadd.f32 %v3715_v15, %v3603_v46  ;;  %v3605_v2 = vadd.f32 %v3604_v24, %v10853_v44 }
 0x4a5   :  { %v3717_v32 = vpop.f32.mrf.mxu0  ;;  %v3608_v38 = vpop.f32.mrf.mxu1 }
 0x4a6   :  { %12741 = vst [vmem:[#allocation107_spill] sm:$0xff] %v10916_v49  ;;  %v10920_v34 = vadd.f32 %v3717_v32, %v3605_v2  ;;  %v3609_v53 = vadd.f32 %v3608_v38, %v10846_v4 }
 0x4a7   :  { %v3721_v33 = vpop.f32.mrf.mxu0  ;;  %v3610_v50 = vpop.f32.mrf.mxu1 }
 0x4a8   :  { %12742 = vst [vmem:[#allocation108_spill] sm:$0xff] %v10920_v34  ;;  %v10924_v35 = vadd.f32 %v3721_v33, %v3609_v53  ;;  %v3611_v62 = vadd.f32 %v3610_v50, %v10853_v44 }
 0x4a9   :  { %v3723_v46 = vpop.f32.mrf.mxu0  ;;  %v3612_v15 = vpop.f32.mrf.mxu1 }
 0x4aa   :  { %12743 = vst [vmem:[#allocation109_spill] sm:$0xff] %v10924_v35  ;;  %v10928_v12 = vadd.f32 %v3723_v46, %v3611_v62  ;;  %v3613_v39 = vadd.f32 %v3612_v15, %v10846_v4 }
 0x4ab   :  { %v3725_v2 = vpop.f32.mrf.mxu0  ;;  %v3614_v32 = vpop.f32.mrf.mxu1 }
 0x4ac   :  { %12744 = vst [vmem:[#allocation110_spill] sm:$0xff] %v10928_v12  ;;  %v10932_v49 = vadd.f32 %v3725_v2, %v3613_v39  ;;  %v3615_v21 = vadd.f32 %v3614_v32, %v10853_v44 }
 0x4ad   :  { %v3727_v53 = vpop.f32.mrf.mxu0  ;;  %v3618_v33 = vpop.f32.mrf.mxu1 }
 0x4ae   :  { %12745 = vst [vmem:[#allocation111_spill] sm:$0xff] %v10932_v49  ;;  %v10936_v34 = vadd.f32 %v3727_v53, %v3615_v21  ;;  %v3619_v24 = vadd.f32 %v3618_v33, %v10846_v4 }
 0x4af   :  { %v3731_v62 = vpop.f32.mrf.mxu0  ;;  %v3620_v46 = vpop.f32.mrf.mxu1 }
 0x4b0   :  { %12746 = vst [vmem:[#allocation112_spill] sm:$0xff] %v10936_v34  ;;  %v10940_v35 = vadd.f32 %v3731_v62, %v3619_v24  ;;  %v3621_v38 = vadd.f32 %v3620_v46, %v10853_v44 }
 0x4b1   :  { %v3733_v39 = vpop.f32.mrf.mxu0  ;;  %v3622_v2 = vpop.f32.mrf.mxu1 }
 0x4b2   :  { %12747 = vst [vmem:[#allocation113_spill] sm:$0xff] %v10940_v35  ;;  %v10944_v12 = vadd.f32 %v3733_v39, %v3621_v38  ;;  %v3623_v50 = vadd.f32 %v3622_v2, %v10846_v4 }
 0x4b3   :  { %v3735_v21 = vpop.f32.mrf.mxu0  ;;  %v3624_v53 = vpop.f32.mrf.mxu1 }
 0x4b4   :  { %12748 = vst [vmem:[#allocation114_spill] sm:$0xff] %v10944_v12  ;;  %v10948_v49 = vadd.f32 %v3735_v21, %v3623_v50  ;;  %v3625_v15 = vadd.f32 %v3624_v53, %v10853_v44 }
 0x4b5   :  { %v3737_v24 = vpop.f32.mrf.mxu0  ;;  %v3628_v62 = vpop.f32.mrf.mxu1 }
 0x4b6   :  { %12749 = vst [vmem:[#allocation115_spill] sm:$0xff] %v10948_v49  ;;  %v10952_v34 = vadd.f32 %v3737_v24, %v3625_v15  ;;  %v3629_v32 = vadd.f32 %v3628_v62, %v10846_v4 }
 0x4b7   :  { %v3741_v38 = vpop.f32.mrf.mxu0  ;;  %v3630_v39 = vpop.f32.mrf.mxu1 }
 0x4b8   :  { %12750 = vst [vmem:[#allocation116_spill] sm:$0xff] %v10952_v34  ;;  %v10956_v35 = vadd.f32 %v3741_v38, %v3629_v32  ;;  %v3631_v33 = vadd.f32 %v3630_v39, %v10853_v44 }
 0x4b9   :  { %v3743_v50 = vpop.f32.mrf.mxu0  ;;  %v3632_v21 = vpop.f32.mrf.mxu1 }
 0x4ba   :  { %12751 = vst [vmem:[#allocation117_spill] sm:$0xff] %v10956_v35  ;;  %v10960_v12 = vadd.f32 %v3743_v50, %v3631_v33  ;;  %v3633_v46 = vadd.f32 %v3632_v21, %v10846_v4 }
 0x4bb   :  { %v3745_v15 = vpop.f32.mrf.mxu0  ;;  %v3634_v24 = vpop.f32.mrf.mxu1 }
 0x4bc   :  { %12752 = vst [vmem:[#allocation118_spill] sm:$0xff] %v10960_v12  ;;  %v10964_v49 = vadd.f32 %v3745_v15, %v3633_v46  ;;  %v3635_v2 = vadd.f32 %v3634_v24, %v10853_v44 }
 0x4bd   :  { %v3747_v32 = vpop.f32.mrf.mxu0  ;;  %v3638_v38 = vpop.f32.mrf.mxu1 }
 0x4be   :  { %12753 = vst [vmem:[#allocation119_spill] sm:$0xff] %v10964_v49  ;;  %v10968_v34 = vadd.f32 %v3747_v32, %v3635_v2  ;;  %v3639_v53 = vadd.f32 %v3638_v38, %v10846_v4 }
 0x4bf   :  { %v3751_v33 = vpop.f32.mrf.mxu0  ;;  %v3640_v50 = vpop.f32.mrf.mxu1 }
 0x4c0   :  { %12754 = vst [vmem:[#allocation120_spill] sm:$0xff] %v10968_v34  ;;  %v10972_v35 = vadd.f32 %v3751_v33, %v3639_v53  ;;  %v3641_v62 = vadd.f32 %v3640_v50, %v10853_v44 }
 0x4c1   :  { %v3753_v46 = vpop.f32.mrf.mxu0  ;;  %v3642_v15 = vpop.f32.mrf.mxu1 }
 0x4c2   :  { %v10976_v12 = vadd.f32 %v3753_v46, %v3641_v62  ;;  %v3643_v39 = vadd.f32 %v3642_v15, %v10846_v4 }
 0x4c3   :  { %v3755_v2 = vpop.f32.mrf.mxu0  ;;  %v3644_v32 = vpop.f32.mrf.mxu1 }
 0x4c4   :  { %v10980_v49 = vadd.f32 %v3755_v2, %v3643_v39  ;;  %v3645_v21 = vadd.f32 %v3644_v32, %v10853_v44 }
 0x4c5   :  { %v3757_v53 = vpop.f32.mrf.mxu0 }
 0x4c6   :  { %v10984_v50 = vadd.f32 %v3757_v53, %v3645_v21 }
 0x4c7   :  { %9310 = dma.done.wait [#allocation10 + $0x3], 32768 }
 0x4c8   :  { %9311 = vsyncadd [#allocation10 + $0x3], 4294934528  ;;  %v12755_v62 = vmax.f32 %v10430_v27, 0.0  ;;  %v12756_v4 = vmax.f32 %v10439_v36, 0.0  ;;  %v12757_v39 = vmax.f32 %v10592_v22, 0.0  ;;  %v12758_v15 = vmax.f32 %v10600_v26, 0.0 }
 0x4c9   :  { %v8638_v21 = vld [vmem:[#allocation6 + $0xe4] ss:$16 sps:$4 sm:$0xff]   ;;  %v8642_v32 = vld [vmem:[#allocation6 + $0xe0] ss:$16 sps:$4 sm:$0xff]  }
 0x4ca   :  { %v10991_v46 = vpack.c.bf16 %v12756_v4, %v12755_v62  ;;  %v10997_v44 = vpack.c.bf16 %v12758_v15, %v12757_v39  ;;  %v8640_v2 = vld [vmem:[#allocation6 + $0x2e4] ss:$16 sps:$4 sm:$0xff]   ;;  %5519 = vmatprep.subr.bf16.mxu1 %v8638_v21  ;;  %v8643_v53 = vld [vmem:[#allocation6 + $0x2e0] ss:$16 sps:$4 sm:$0xff]  }
 0x4cb   :  { %5632 = vmatprep.subr.bf16.mxu0 %v8640_v2  ;;  %v8644_v27 = vld [vmem:[#allocation6 + $0xc4] ss:$16 sps:$4 sm:$0xff]   ;;  %5520 = vmatpush1.bf16.msra.mxu1 %v8642_v32  ;;  %v8648_v62 = vld [vmem:[#allocation6 + $0xc0] ss:$16 sps:$4 sm:$0xff]  }
 0x4cc   :  { %5551 = vmatprep.mubr.bf16.mxu1 %v10991_v46  ;;  %5664 = vmatprep.mubr.bf16.mxu0 %v10997_v44  ;;  %v8646_v36 = vld [vmem:[#allocation6 + $0x2c4] ss:$16 sps:$4 sm:$0xff]   ;;  %v8649_v22 = vld [vmem:[#allocation6 + $0x2c0] ss:$16 sps:$4 sm:$0xff]  }
 0x4cd   :  { %5633 = vmatpush1.bf16.msra.mxu0 %v8643_v53  ;;  %5521 = vmatprep.subr.bf16.mxu1 %v8644_v27  ;;  %v8650_v26 = vld [vmem:[#allocation6 + $0xa4] ss:$16 sps:$4 sm:$0xff]   ;;  %v8654_v39 = vld [vmem:[#allocation6 + $0xa0] ss:$16 sps:$4 sm:$0xff]  }
 0x4ce   :  { %5634 = vmatprep.subr.bf16.mxu0 %v8646_v36  ;;  %v8652_v4 = vld [vmem:[#allocation6 + $0x2a4] ss:$16 sps:$4 sm:$0xff]   ;;  %v8655_v15 = vld [vmem:[#allocation6 + $0x2a0] ss:$16 sps:$4 sm:$0xff]  }
 0x4cf   :  { %5522 = vmatpush1.bf16.msra.mxu1 %v8648_v62  ;;  %v8656_v33 = vld [vmem:[#allocation6 + $0x84] ss:$16 sps:$4 sm:$0xff]   ;;  %v8660_v24 = vld [vmem:[#allocation6 + $0x80] ss:$16 sps:$4 sm:$0xff]  }
 0x4d0   :  { %5523 = vmatprep.subr.bf16.mxu1 %v8650_v26  ;;  %v8658_v21 = vld [vmem:[#allocation6 + $0x284] ss:$16 sps:$4 sm:$0xff]   ;;  %v8661_v2 = vld [vmem:[#allocation6 + $0x280] ss:$16 sps:$4 sm:$0xff]  }
 0x4d1   :  { %5635 = vmatpush1.bf16.msra.mxu0 %v8649_v22  ;;  %v8662_v32 = vld [vmem:[#allocation6 + $0x64] ss:$16 sps:$4 sm:$0xff]   ;;  %v8666_v27 = vld [vmem:[#allocation6 + $0x60] ss:$16 sps:$4 sm:$0xff]  }
 0x4d2   :  { %5636 = vmatprep.subr.bf16.mxu0 %v8652_v4  ;;  %v8664_v53 = vld [vmem:[#allocation6 + $0x264] ss:$16 sps:$4 sm:$0xff]   ;;  %v8667_v36 = vld [vmem:[#allocation6 + $0x260] ss:$16 sps:$4 sm:$0xff]  }
 0x4d3   :  { %5524 = vmatpush1.bf16.msra.mxu1 %v8654_v39  ;;  %v8668_v34 = vld [vmem:[#allocation6 + $0x44] ss:$16 sps:$4 sm:$0xff]   ;;  %v8672_v22 = vld [vmem:[#allocation6 + $0x40] ss:$16 sps:$4 sm:$0xff]  }
 0x4d4   :  { %5525 = vmatprep.subr.bf16.mxu1 %v8656_v33  ;;  %v8670_v62 = vld [vmem:[#allocation6 + $0x244] ss:$16 sps:$4 sm:$0xff]   ;;  %v8673_v26 = vld [vmem:[#allocation6 + $0x240] ss:$16 sps:$4 sm:$0xff]  }
 0x4d5   :  { %5637 = vmatpush1.bf16.msra.mxu0 %v8655_v15  ;;  %v8674_v4 = vld [vmem:[#allocation6 + $0x24] ss:$16 sps:$4 sm:$0xff]   ;;  %v8678_v15 = vld [vmem:[#allocation6 + $0x20] ss:$16 sps:$4 sm:$0xff]  }
 0x4d6   :  { %5638 = vmatprep.subr.bf16.mxu0 %v8658_v21  ;;  %v8676_v39 = vld [vmem:[#allocation6 + $0x224] ss:$16 sps:$4 sm:$0xff]   ;;  %v8679_v33 = vld [vmem:[#allocation6 + $0x220] ss:$16 sps:$4 sm:$0xff]  }
 0x4d7   :  { %5526 = vmatpush1.bf16.msra.mxu1 %v8660_v24  ;;  %v8680_v21 = vld [vmem:[#allocation6 + $0x4] ss:$16 sps:$4 sm:$0xff]   ;;  %v8737_v38 = vld [vmem:[#allocation6 + $0x6e0] ss:$16 sps:$4 sm:$0xff]  }
 0x4d8   :  { %5527 = vmatprep.subr.bf16.mxu1 %v8662_v32  ;;  %v8682_v24 = vld [vmem:[#allocation6 + $0x204] ss:$16 sps:$4 sm:$0xff]   ;;  %v8685_v32 = vld [vmem:[#allocation6 + $0x200] ss:$16 sps:$4 sm:$0xff]  }
 0x4d9   :  { %5639 = vmatpush1.bf16.msra.mxu0 %v8661_v2  ;;  %v8684_v2 = vld [vmem:[#allocation6] ss:$16 sps:$4 sm:$0xff]  }
 0x4da   :  { %5640 = vmatprep.subr.bf16.mxu0 %v8664_v53  ;;  %v8686_v53 = vld [vmem:[#allocation6 + $0x1e4] ss:$16 sps:$4 sm:$0xff]  }
 0x4db   :  { %5528 = vmatpush1.bf16.msra.mxu1 %v8666_v27  ;;  %v8688_v27 = vld [vmem:[#allocation6 + $0x3e4] ss:$16 sps:$4 sm:$0xff]  }
 0x4dc   :  { %5529 = vmatprep.subr.bf16.mxu1 %v8668_v34  ;;  %v8691_v34 = vld [vmem:[#allocation6 + $0x3e0] ss:$16 sps:$4 sm:$0xff]  }
 0x4dd   :  { %5641 = vmatpush1.bf16.msra.mxu0 %v8667_v36  ;;  %v8690_v36 = vld [vmem:[#allocation6 + $0x1e0] ss:$16 sps:$4 sm:$0xff]  }
 0x4de   :  { %5642 = vmatprep.subr.bf16.mxu0 %v8670_v62  ;;  %v8692_v62 = vld [vmem:[#allocation6 + $0x1c4] ss:$16 sps:$4 sm:$0xff]  }
 0x4df   :  { %5530 = vmatpush1.bf16.msra.mxu1 %v8672_v22  ;;  %v8694_v22 = vld [vmem:[#allocation6 + $0x3c4] ss:$16 sps:$4 sm:$0xff]  }
 0x4e0   :  { %5531 = vmatprep.subr.bf16.mxu1 %v8674_v4  ;;  %v8697_v4 = vld [vmem:[#allocation6 + $0x3c0] ss:$16 sps:$4 sm:$0xff]  }
 0x4e1   :  { %5643 = vmatpush1.bf16.msra.mxu0 %v8673_v26  ;;  %v8696_v26 = vld [vmem:[#allocation6 + $0x1c0] ss:$16 sps:$4 sm:$0xff]  }
 0x4e2   :  { %5644 = vmatprep.subr.bf16.mxu0 %v8676_v39  ;;  %v8698_v39 = vld [vmem:[#allocation6 + $0x1a4] ss:$16 sps:$4 sm:$0xff]  }
 0x4e3   :  { %5532 = vmatpush1.bf16.msra.mxu1 %v8678_v15  ;;  %v8700_v15 = vld [vmem:[#allocation6 + $0x3a4] ss:$16 sps:$4 sm:$0xff]  }
 0x4e4   :  { %5533 = vmatprep.subr.bf16.mxu1 %v8680_v21  ;;  %v8703_v21 = vld [vmem:[#allocation6 + $0x3a0] ss:$16 sps:$4 sm:$0xff]  }
 0x4e5   :  { %5645 = vmatpush1.bf16.msra.mxu0 %v8679_v33  ;;  %v8702_v33 = vld [vmem:[#allocation6 + $0x1a0] ss:$16 sps:$4 sm:$0xff]  }
 0x4e6   :  { %5646 = vmatprep.subr.bf16.mxu0 %v8682_v24  ;;  %v8704_v24 = vld [vmem:[#allocation6 + $0x184] ss:$16 sps:$4 sm:$0xff]  }
 0x4e7   :  { %5534 = vmatpush1.bf16.msra.mxu1 %v8684_v2  ;;  %v8706_v2 = vld [vmem:[#allocation6 + $0x384] ss:$16 sps:$4 sm:$0xff]  }
 0x4e8   :  { %5535 = vmatprep.subr.bf16.mxu1 %v8686_v53  ;;  %v8709_v53 = vld [vmem:[#allocation6 + $0x380] ss:$16 sps:$4 sm:$0xff]  }
 0x4e9   :  { %5647 = vmatpush1.bf16.msra.mxu0 %v8685_v32  ;;  %v8708_v32 = vld [vmem:[#allocation6 + $0x180] ss:$16 sps:$4 sm:$0xff]  }
 0x4ea   :  { %5648 = vmatprep.subr.bf16.mxu0 %v8688_v27  ;;  %v8710_v27 = vld [vmem:[#allocation6 + $0x164] ss:$16 sps:$4 sm:$0xff]  }
 0x4eb   :  { %5536 = vmatpush2.bf16.msra.mxu1 %v8690_v36  ;;  %v8712_v36 = vld [vmem:[#allocation6 + $0x364] ss:$16 sps:$4 sm:$0xff]  }
 0x4ec   :  { %5537 = vmatprep.subr.bf16.mxu1 %v8692_v62  ;;  %v8715_v62 = vld [vmem:[#allocation6 + $0x360] ss:$16 sps:$4 sm:$0xff]  }
 0x4ed   :  { %5649 = vmatpush2.bf16.msra.mxu0 %v8691_v34  ;;  %v8714_v34 = vld [vmem:[#allocation6 + $0x160] ss:$16 sps:$4 sm:$0xff]  }
 0x4ee   :  { %5650 = vmatprep.subr.bf16.mxu0 %v8694_v22  ;;  %v8716_v22 = vld [vmem:[#allocation6 + $0x144] ss:$16 sps:$4 sm:$0xff]  }
 0x4ef   :  { %5538 = vmatpush2.bf16.msra.mxu1 %v8696_v26  ;;  %v8718_v26 = vld [vmem:[#allocation6 + $0x344] ss:$16 sps:$4 sm:$0xff]  }
 0x4f0   :  { %5539 = vmatprep.subr.bf16.mxu1 %v8698_v39  ;;  %v8721_v39 = vld [vmem:[#allocation6 + $0x340] ss:$16 sps:$4 sm:$0xff]  }
 0x4f1   :  { %5651 = vmatpush2.bf16.msra.mxu0 %v8697_v4  ;;  %v8720_v4 = vld [vmem:[#allocation6 + $0x140] ss:$16 sps:$4 sm:$0xff]  }
 0x4f2   :  { %5652 = vmatprep.subr.bf16.mxu0 %v8700_v15  ;;  %v8722_v15 = vld [vmem:[#allocation6 + $0x124] ss:$16 sps:$4 sm:$0xff]  }
 0x4f3   :  { %5540 = vmatpush2.bf16.msra.mxu1 %v8702_v33  ;;  %v8724_v33 = vld [vmem:[#allocation6 + $0x324] ss:$16 sps:$4 sm:$0xff]  }
 0x4f4   :  { %5541 = vmatprep.subr.bf16.mxu1 %v8704_v24  ;;  %v8727_v24 = vld [vmem:[#allocation6 + $0x320] ss:$16 sps:$4 sm:$0xff]  }
 0x4f5   :  { %5653 = vmatpush2.bf16.msra.mxu0 %v8703_v21  ;;  %v8726_v21 = vld [vmem:[#allocation6 + $0x120] ss:$16 sps:$4 sm:$0xff]  }
 0x4f6   :  { %5654 = vmatprep.subr.bf16.mxu0 %v8706_v2  ;;  %v8728_v2 = vld [vmem:[#allocation6 + $0x104] ss:$16 sps:$4 sm:$0xff]  }
 0x4f7   :  { %5542 = vmatpush2.bf16.msra.mxu1 %v8708_v32  ;;  %v8730_v32 = vld [vmem:[#allocation6 + $0x304] ss:$16 sps:$4 sm:$0xff]  }
 0x4f8   :  { %5543 = vmatprep.subr.bf16.mxu1 %v8710_v27  ;;  %v8733_v27 = vld [vmem:[#allocation6 + $0x300] ss:$16 sps:$4 sm:$0xff]  }
 0x4f9   :  { %5655 = vmatpush2.bf16.msra.mxu0 %v8709_v53  ;;  %v8732_v53 = vld [vmem:[#allocation6 + $0x100] ss:$16 sps:$4 sm:$0xff]  }
 0x4fa   :  { %5656 = vmatprep.subr.bf16.mxu0 %v8712_v36  ;;  %v8736_v36 = vld [vmem:[#allocation6 + $0x4e4] ss:$16 sps:$4 sm:$0xff]  }
 0x4fb   :  { %5544 = vmatpush2.bf16.msra.mxu1 %v8714_v34  ;;  %v8739_v34 = vld [vmem:[#allocation6 + $0x6e4] ss:$16 sps:$4 sm:$0xff]  }
 0x4fc   :  { %5545 = vmatprep.subr.bf16.mxu1 %v8716_v22  ;;  %v12760_v22 = vmax.f32 %v10434_v0, 0.0  ;;  %v12764_v0 = vmax.f32 %v10459_v29, 0.0  ;;  %v12768_v29 = vmax.f32 %v10454_v48, 0.0  ;;  %v12772_v48 = vmax.f32 %v10479_v40, 0.0 }
 0x4fd   :  { %5657 = vmatpush2.bf16.msra.mxu0 %v8715_v62  ;;  %v12759_v62 = vmax.f32 %v10426_v57, 0.0  ;;  %v12763_v57 = vmax.f32 %v10450_v51, 0.0  ;;  %v8751_v51 = vld [vmem:[#allocation6 + $0x6a4] ss:$16 sps:$4 sm:$0xff]   ;;  %v12776_v40 = vmax.f32 %v10474_v54, 0.0  ;;  %v12780_v54 = vmax.f32 %v10499_v63, 0.0 }
 0x4fe   :  { %5658 = vmatprep.subr.bf16.mxu0 %v8718_v26 }
 0x4ff   :  { %5546 = vmatpush2.bf16.msra.mxu1 %v8720_v4  ;;  %v11005_v26 = vpack.c.bf16 %v12760_v22, %v12759_v62  ;;  %v12761_v4 = vmax.f32 %v10588_v37, 0.0  ;;  %v12765_v37 = vmax.f32 %v10608_v18, 0.0  ;;  %v12770_v62 = vmax.f32 %v10612_v13, 0.0 }
 0x500   :  { %5547 = vmatprep.subr.bf16.mxu1 %v8722_v15  ;;  %v12774_v13 = vmax.f32 %v10632_v1, 0.0  ;;  %v12775_v1 = vmax.f32 %v10466_v7, 0.0  ;;  %v12779_v7 = vmax.f32 %v10490_v14, 0.0  ;;  %v8775_v14 = vld [vmem:[#allocation6 + $0x624] ss:$16 sps:$4 sm:$0xff]  }
 0x501   :  { %5659 = vmatpush2.bf16.msra.mxu0 %v8721_v39  ;;  %v12762_v39 = vmax.f32 %v10596_v5, 0.0  ;;  %v12766_v5 = vmax.f32 %v10616_v10, 0.0  ;;  %v12767_v10 = vmax.f32 %v10446_v16, 0.0  ;;  %v12771_v16 = vmax.f32 %v10470_v31, 0.0  ;;  %v8763_v31 = vld [vmem:[#allocation6 + $0x664] ss:$16 sps:$4 sm:$0xff]  }
 0x502   :  { %5660 = vmatprep.subr.bf16.mxu0 %v8724_v33  ;;  %v8734_v33 = vld [vmem:[#allocation6 + $0x4e0] ss:$16 sps:$4 sm:$0xff]  }
 0x503   :  { %5548 = vmatpush2.bf16.msra.mxu1 %v8726_v21  ;;  %v11011_v15 = vpack.c.bf16 %v12762_v39, %v12761_v4  ;;  %v8742_v21 = vld [vmem:[#allocation6 + $0x4c4] ss:$16 sps:$4 sm:$0xff]   ;;  %v11033_v18 = vpack.c.bf16 %v12768_v29, %v12767_v10  ;;  %v8749_v4 = vld [vmem:[#allocation6 + $0x6a0] ss:$16 sps:$4 sm:$0xff]  }
 0x504   :  { %5549 = vmatprep.subr.bf16.mxu1 %v8728_v2  ;;  %v11017_v2 = vpack.c.bf16 %v12764_v0, %v12763_v57  ;;  %v8754_v39 = vld [vmem:[#allocation6 + $0x484] ss:$16 sps:$4 sm:$0xff]   ;;  %v8752_v57 = vld [vmem:[#allocation6 + $0x480] ss:$16 sps:$4 sm:$0xff]  }
 0x505   :  { %5661 = vmatpush2.bf16.msra.mxu0 %v8727_v24  ;;  %v8745_v24 = vld [vmem:[#allocation6 + $0x6c4] ss:$16 sps:$4 sm:$0xff]   ;;  %v8755_v0 = vld [vmem:[#allocation6 + $0x680] ss:$16 sps:$4 sm:$0xff]  }
 0x506   :  { %5662 = vmatprep.subr.bf16.mxu0 %v8730_v32  ;;  %v11023_v32 = vpack.c.bf16 %v12766_v5, %v12765_v37  ;;  %v8760_v37 = vld [vmem:[#allocation6 + $0x464] ss:$16 sps:$4 sm:$0xff]   ;;  %v12777_v5 = vmax.f32 %v10620_v60, 0.0  ;;  %v12781_v60 = vmax.f32 %v10640_v45, 0.0  ;;  %v12784_v45 = vmax.f32 %v10494_v17, 0.0 }
 0x507   :  { %5550 = vmatpush2.bf16.msra.mxu1 %v8732_v53  ;;  %v8740_v53 = vld [vmem:[#allocation6 + $0x4c0] ss:$16 sps:$4 sm:$0xff]   ;;  %v8766_v10 = vld [vmem:[#allocation6 + $0x444] ss:$16 sps:$4 sm:$0xff]   ;;  %v12788_v17 = vmax.f32 %v10519_v25, 0.0  ;;  %v12791_v25 = vmax.f32 %v10506_v61, 0.0 }
 0x508   :  { %5745 = vmatprep.subr.bf16.mxu1 %v8736_v36  ;;  %v8748_v36 = vld [vmem:[#allocation6 + $0x4a4] ss:$16 sps:$4 sm:$0xff]   ;;  %v12795_v61 = vmax.f32 %v10530_v47, 0.0  ;;  %v12800_v47 = vld [vmem:[#allocation44_spill] sm:$0xff] }
 0x509   :  { %5663 = vmatpush2.bf16.msra.mxu0 %v8733_v27  ;;  %v8743_v27 = vld [vmem:[#allocation6 + $0x6c0] ss:$16 sps:$4 sm:$0xff]   ;;  %v8769_v29 = vld [vmem:[#allocation6 + $0x644] ss:$16 sps:$4 sm:$0xff]  }
 0x50a   :  { %5858 = vmatprep.subr.bf16.mxu0 %v8739_v34  ;;  %5552 = vmatmul.mubr.bf16.vlgmr.msra.gmra.mxu1 %v11005_v26  ;;  %v12769_v34 = vmax.f32 %v10604_v8, 0.0  ;;  %v12773_v8 = vmax.f32 %v10624_v11, 0.0  ;;  %v11061_v11 = vpack.c.bf16 %v12776_v40, %v12775_v1  ;;  %v8776_v1 = vld [vmem:[#allocation6 + $0x400] ss:$16 sps:$4 sm:$0xff]  }
 0x50b   :  { %5746 = vmatpush1.bf16.msra.mxu1 %v8734_v33  ;;  %5561 = vmatprep.mubr.bf16.mxu1 %v11017_v2  ;;  %v8757_v33 = vld [vmem:[#allocation6 + $0x684] ss:$16 sps:$4 sm:$0xff]   ;;  %v8779_v40 = vld [vmem:[#allocation6 + $0x600] ss:$16 sps:$4 sm:$0xff]  }
 0x50c   :  { %5665 = vmatmul.mubr.bf16.vlgmr.msra.gmra.mxu0 %v11011_v15  ;;  %5747 = vmatprep.subr.bf16.mxu1 %v8742_v21  ;;  %v11039_v22 = vpack.c.bf16 %v12770_v62, %v12769_v34  ;;  %v11045_v21 = vpack.c.bf16 %v12772_v48, %v12771_v16  ;;  %v11073_v34 = vpack.c.bf16 %v12780_v54, %v12779_v7  ;;  %v12786_v16 = vmax.f32 %v10644_v55, 0.0  ;;  %v8790_v7 = vld [vmem:[#allocation6 + $0x5c4] ss:$16 sps:$4 sm:$0xff]  }
 0x50d   :  { %5859 = vmatpush1.bf16.msra.mxu0 %v8737_v38  ;;  %5674 = vmatprep.mubr.bf16.mxu0 %v11023_v32  ;;  %v8746_v38 = vld [vmem:[#allocation6 + $0x4a0] ss:$16 sps:$4 sm:$0xff]   ;;  %v12790_v55 = vmax.f32 %v10664_v19, 0.0  ;;  %v8793_v54 = vld [vmem:[#allocation6 + $0x7c4] ss:$16 sps:$4 sm:$0xff]  }
 0x50e   :  { %5860 = vmatprep.subr.bf16.mxu0 %v8745_v24  ;;  %v11051_v24 = vpack.c.bf16 %v12774_v13, %v12773_v8  ;;  %v8770_v8 = vld [vmem:[#allocation6 + $0x420] ss:$16 sps:$4 sm:$0xff]  }
 0x50f   :  { %5748 = vmatpush1.bf16.msra.mxu1 %v8740_v53  ;;  %v12778_v53 = vmax.f32 %v10628_v20, 0.0  ;;  %v12782_v20 = vmax.f32 %v10648_v58, 0.0  ;;  %v12783_v58 = vmax.f32 %v10486_v3, 0.0  ;;  %v8773_v13 = vld [vmem:[#allocation6 + $0x620] ss:$16 sps:$4 sm:$0xff]   ;;  %v12787_v3 = vmax.f32 %v10510_v30, 0.0 }
 0x510   :  { %5749 = vmatprep.subr.bf16.mxu1 %v8748_v36  ;;  %v8758_v36 = vld [vmem:[#allocation6 + $0x460] ss:$16 sps:$4 sm:$0xff]   ;;  %v8787_v30 = vld [vmem:[#allocation6 + $0x7e4] ss:$16 sps:$4 sm:$0xff]  }
 0x511   :  { %5861 = vmatpush1.bf16.msra.mxu0 %v8743_v27  ;;  %v11067_v27 = vpack.c.bf16 %v12778_v53, %v12777_v5  ;;  %v11079_v62 = vpack.c.bf16 %v12782_v20, %v12781_v60  ;;  %v11089_v63 = vpack.c.bf16 %v12784_v45, %v12783_v58  ;;  %v8784_v5 = vld [vmem:[#allocation6 + $0x5e4] ss:$16 sps:$4 sm:$0xff]   ;;  %v12793_v53 = vmax.f32 %v10652_v9, 0.0  ;;  %v12798_v20 = vld [vmem:[#allocation58_spill] sm:$0xff] }
 0x512   :  { %5862 = vmatprep.subr.bf16.mxu0 %v8751_v51  ;;  %5562 = vmatmul.mubr.bf16.gmra.mxu1 %v11033_v18  ;;  %v8761_v51 = vld [vmem:[#allocation6 + $0x660] ss:$16 sps:$4 sm:$0xff]   ;;  %v12797_v9 = vmax.f32 %v10672_v28, 0.0  ;;  %v12801_v28 = vmax.f32 %v12800_v47, 0.0  ;;  %v12802_v58 = vld [vmem:[#allocation46_spill] sm:$0xff] }
 0x513   :  { %5750 = vmatpush1.bf16.msra.mxu1 %v8746_v38  ;;  %5571 = vmatprep.mubr.bf16.mxu1 %v11045_v21  ;;  %v8764_v38 = vld [vmem:[#allocation6 + $0x440] ss:$16 sps:$4 sm:$0xff]   ;;  %v12803_v45 = vmax.f32 %v12802_v58, 0.0 }
 0x514   :  { %5675 = vmatmul.mubr.bf16.gmra.mxu0 %v11039_v22  ;;  %5751 = vmatprep.subr.bf16.mxu1 %v8754_v39  ;;  %v8772_v39 = vld [vmem:[#allocation6 + $0x424] ss:$16 sps:$4 sm:$0xff]  }
 0x515   :  { %5863 = vmatpush1.bf16.msra.mxu0 %v8749_v4  ;;  %5684 = vmatprep.mubr.bf16.mxu0 %v11051_v24  ;;  %v8767_v4 = vld [vmem:[#allocation6 + $0x640] ss:$16 sps:$4 sm:$0xff]  }
 0x516   :  { %5864 = vmatprep.subr.bf16.mxu0 %v8757_v33  ;;  %v12785_v33 = vmax.f32 %v10636_v6, 0.0  ;;  %v12789_v6 = vmax.f32 %v10656_v41, 0.0  ;;  %v12792_v41 = vmax.f32 %v10514_v43, 0.0  ;;  %v12796_v43 = vmax.f32 %v10539_v56, 0.0  ;;  %v8799_v56 = vld [vmem:[#allocation6 + $0x7a4] ss:$16 sps:$4 sm:$0xff]  }
 0x517   :  { %5752 = vmatpush1.bf16.msra.mxu1 %v8752_v57  ;;  %v8778_v57 = vld [vmem:[#allocation6 + $0x404] ss:$16 sps:$4 sm:$0xff]  }
 0x518   :  { %5753 = vmatprep.subr.bf16.mxu1 %v8760_v37  ;;  %v11095_v48 = vpack.c.bf16 %v12786_v16, %v12785_v33  ;;  %v11101_v37 = vpack.c.bf16 %v12788_v17, %v12787_v3  ;;  %v11117_v19 = vpack.c.bf16 %v12792_v41, %v12791_v25  ;;  %v11129_v60 = vpack.c.bf16 %v12796_v43, %v12795_v61  ;;  %v12804_v16 = vld [vmem:[#allocation49_spill] sm:$0xff]  ;;  %v12812_v41 = vld [vmem:[#allocation59_spill] sm:$0xff] }
 0x519   :  { %5865 = vmatpush1.bf16.msra.mxu0 %v8755_v0  ;;  %v8781_v0 = vld [vmem:[#allocation6 + $0x604] ss:$16 sps:$4 sm:$0xff]   ;;  %v11145_v33 = vpack.c.bf16 %v12803_v45, %v12801_v28  ;;  %v8794_v3 = vld [vmem:[#allocation6 + $0x5a0] ss:$16 sps:$4 sm:$0xff]  }
 0x51a   :  { %5866 = vmatprep.subr.bf16.mxu0 %v8763_v31  ;;  %5572 = vmatmul.mubr.bf16.gmra.mxu1 %v11061_v11  ;;  %v11107_v31 = vpack.c.bf16 %v12790_v55, %v12789_v6  ;;  %v8797_v17 = vld [vmem:[#allocation6 + $0x7a0] ss:$16 sps:$4 sm:$0xff]   ;;  %v8802_v6 = vld [vmem:[#allocation6 + $0x584] ss:$16 sps:$4 sm:$0xff]  }
 0x51b   :  { %5754 = vmatpush1.bf16.msra.mxu1 %v8758_v36  ;;  %5581 = vmatprep.mubr.bf16.mxu1 %v11073_v34  ;;  %v12794_v36 = vmax.f32 %v10660_v23, 0.0  ;;  %v12799_v23 = vmax.f32 %v12798_v20, 0.0  ;;  %v8805_v55 = vld [vmem:[#allocation6 + $0x784] ss:$16 sps:$4 sm:$0xff]   ;;  %v8806_v45 = vld [vmem:[#allocation6 + $0x560] ss:$16 sps:$4 sm:$0xff]  }
 0x51c   :  { %5685 = vmatmul.mubr.bf16.gmra.mxu0 %v11067_v27  ;;  %5755 = vmatprep.subr.bf16.mxu1 %v8766_v10  ;;  %v8782_v10 = vld [vmem:[#allocation6 + $0x5e0] ss:$16 sps:$4 sm:$0xff]   ;;  %v8808_v61 = vld [vmem:[#allocation6 + $0x564] ss:$16 sps:$4 sm:$0xff]  }
 0x51d   :  { %5867 = vmatpush1.bf16.msra.mxu0 %v8761_v51  ;;  %5694 = vmatprep.mubr.bf16.mxu0 %v11079_v62  ;;  %v11123_v51 = vpack.c.bf16 %v12794_v36, %v12793_v53  ;;  %v12813_v53 = vmax.f32 %v12812_v41, 0.0  ;;  %v12814_v36 = vld [vmem:[#allocation56_spill] sm:$0xff]  ;;  %v8811_v43 = vld [vmem:[#allocation6 + $0x764] ss:$16 sps:$4 sm:$0xff]  }
 0x51e   :  { %5868 = vmatprep.subr.bf16.mxu0 %v8769_v29  ;;  %v8785_v29 = vld [vmem:[#allocation6 + $0x7e0] ss:$16 sps:$4 sm:$0xff]  }
 0x51f   :  { %5756 = vmatpush1.bf16.msra.mxu1 %v8764_v38  ;;  %v11135_v38 = vpack.c.bf16 %v12799_v23, %v12797_v9  ;;  %v12816_v9 = vld [vmem:[#allocation45_spill] sm:$0xff]  ;;  %v12818_v23 = vld [vmem:[#allocation50_spill] sm:$0xff]  ;;  %v12822_v47 = vld [vmem:[#allocation63_spill] sm:$0xff] }
 0x520   :  { %5757 = vmatprep.subr.bf16.mxu1 %v8772_v39  ;;  %v8791_v39 = vld [vmem:[#allocation6 + $0x7c0] ss:$16 sps:$4 sm:$0xff]   ;;  %v12817_v20 = vmax.f32 %v12816_v9, 0.0  ;;  %v12823_v28 = vmax.f32 %v12822_v47, 0.0 }
 0x521   :  { %5869 = vmatpush1.bf16.msra.mxu0 %v8767_v4  ;;  %v8788_v4 = vld [vmem:[#allocation6 + $0x5c0] ss:$16 sps:$4 sm:$0xff]  }
 0x522   :  { %5870 = vmatprep.subr.bf16.mxu0 %v8775_v14  ;;  %5582 = vmatmul.mubr.bf16.gmra.mxu1 %v11089_v63  ;;  %v8796_v14 = vld [vmem:[#allocation6 + $0x5a4] ss:$16 sps:$4 sm:$0xff]  }
 0x523   :  { %5758 = vmatpush1.bf16.msra.mxu1 %v8770_v8  ;;  %5591 = vmatprep.mubr.bf16.mxu1 %v11101_v37  ;;  %v12805_v8 = vmax.f32 %v12804_v16, 0.0  ;;  %v8809_v16 = vld [vmem:[#allocation6 + $0x760] ss:$16 sps:$4 sm:$0xff]  }
 0x524   :  { %5695 = vmatmul.mubr.bf16.gmra.mxu0 %v11095_v48  ;;  %5759 = vmatprep.subr.bf16.mxu1 %v8778_v57 }
 0x525   :  { %5871 = vmatpush1.bf16.msra.mxu0 %v8773_v13  ;;  %5704 = vmatprep.mubr.bf16.mxu0 %v11107_v31  ;;  %v12806_v13 = vld [vmem:[#allocation53_spill] sm:$0xff] }
 0x526   :  { %5872 = vmatprep.subr.bf16.mxu0 %v8781_v0  ;;  %v12807_v57 = vmax.f32 %v12806_v13, 0.0  ;;  %v8817_v13 = vld [vmem:[#allocation6 + $0x744] ss:$16 sps:$4 sm:$0xff]  }
 0x527   :  { %5760 = vmatpush1.bf16.msra.mxu1 %v8776_v1  ;;  %v12808_v1 = vld [vmem:[#allocation47_spill] sm:$0xff] }
 0x528   :  { %5761 = vmatprep.subr.bf16.mxu1 %v8784_v5  ;;  %v11151_v0 = vpack.c.bf16 %v12807_v57, %v12805_v8  ;;  %v12810_v5 = vld [vmem:[#allocation54_spill] sm:$0xff]  ;;  %v8814_v8 = vld [vmem:[#allocation6 + $0x544] ss:$16 sps:$4 sm:$0xff]  }
 0x529   :  { %5873 = vmatpush1.bf16.msra.mxu0 %v8779_v40  ;;  %v12809_v40 = vmax.f32 %v12808_v1, 0.0  ;;  %v12824_v57 = vld [vmem:[#allocation55_spill] sm:$0xff]  ;;  %v12828_v1 = vld [vmem:[#allocation57_spill] sm:$0xff] }
 0x52a   :  { %5874 = vmatprep.subr.bf16.mxu0 %v8787_v30  ;;  %5592 = vmatmul.mubr.bf16.gmra.mxu1 %v11117_v19  ;;  %v12811_v30 = vmax.f32 %v12810_v5, 0.0  ;;  %v12830_v5 = vld [vmem:[#allocation64_spill] sm:$0xff] }
 0x52b   :  { %5762 = vmatpush2.bf16.msra.mxu1 %v8782_v10  ;;  %5601 = vmatprep.mubr.bf16.mxu1 %v11129_v60  ;;  %v12815_v10 = vmax.f32 %v12814_v36, 0.0  ;;  %v8815_v36 = vld [vmem:[#allocation6 + $0x740] ss:$16 sps:$4 sm:$0xff]  }
 0x52c   :  { %5705 = vmatmul.mubr.bf16.gmra.mxu0 %v11123_v51  ;;  %5763 = vmatprep.subr.bf16.mxu1 %v8790_v7  ;;  %v11157_v25 = vpack.c.bf16 %v12811_v30, %v12809_v40  ;;  %v8800_v7 = vld [vmem:[#allocation6 + $0x580] ss:$16 sps:$4 sm:$0xff]   ;;  %v12829_v40 = vmax.f32 %v12828_v1, 0.0  ;;  %v12831_v30 = vmax.f32 %v12830_v5, 0.0  ;;  %v12844_v1 = vmax.f32 %v10864_v42, 0.0 }
 0x52d   :  { %5875 = vmatpush2.bf16.msra.mxu0 %v8785_v29  ;;  %5714 = vmatprep.mubr.bf16.mxu0 %v11135_v38  ;;  %v11163_v29 = vpack.c.bf16 %v12815_v10, %v12813_v53  ;;  %v8812_v53 = vld [vmem:[#allocation6 + $0x540] ss:$16 sps:$4 sm:$0xff]   ;;  %v8820_v10 = vld [vmem:[#allocation6 + $0x524] ss:$16 sps:$4 sm:$0xff]  }
 0x52e   :  { %5876 = vmatprep.subr.bf16.mxu0 %v8793_v54  ;;  %v8803_v54 = vld [vmem:[#allocation6 + $0x780] ss:$16 sps:$4 sm:$0xff]   ;;  %v11191_v41 = vpack.c.bf16 %v12831_v30, %v12829_v40  ;;  %v12845_v40 = vmax.f32 %v10872_v59, 0.0 }
 0x52f   :  { %5764 = vmatpush2.bf16.msra.mxu1 %v8788_v4  ;;  %v12819_v4 = vmax.f32 %v12818_v23, 0.0  ;;  %v12836_v23 = vld [vmem:[#allocation60_spill] sm:$0xff]  ;;  %v8824_v30 = vld [vmem:[#allocation6 + $0x500] ss:$16 sps:$4 sm:$0xff]  }
 0x530   :  { %5765 = vmatprep.subr.bf16.mxu1 %v8796_v14  ;;  %v12820_v14 = vld [vmem:[#allocation62_spill] sm:$0xff]  ;;  %v11219_v5 = vpack.c.bf16 %v12845_v40, %v12844_v1  ;;  %v12846_v42 = vld [vmem:[#allocation65_spill] sm:$0xff]  ;;  %v12859_v1 = vld [vmem:[#allocation100_spill] sm:$0xff] }
 0x531   :  { %5877 = vmatpush2.bf16.msra.mxu0 %v8791_v39  ;;  %v11173_v39 = vpack.c.bf16 %v12819_v4, %v12817_v20  ;;  %v12837_v4 = vmax.f32 %v12836_v23, 0.0  ;;  %v12847_v59 = vmax.f32 %v12846_v42, 0.0  ;;  %v12860_v40 = vmax.f32 %v12859_v1, 0.0  ;;  %v12872_v1 = vld [vmem:[#allocation75_spill] sm:$0xff] }
 0x532   :  { %5878 = vmatprep.subr.bf16.mxu0 %v8799_v56  ;;  %5602 = vmatmul.mubr.bf16.gmra.mxu1 %v11145_v33  ;;  %v12821_v56 = vmax.f32 %v12820_v14, 0.0  ;;  %v12838_v14 = vld [vmem:[#allocation61_spill] sm:$0xff] }
 0x533   :  { %5766 = vmatpush2.bf16.msra.mxu1 %v8794_v3  ;;  %5611 = vmatprep.mubr.bf16.mxu1 %v11157_v25  ;;  %v12825_v3 = vmax.f32 %v12824_v57, 0.0 }
 0x534   :  { %5715 = vmatmul.mubr.bf16.gmra.mxu0 %v11151_v0  ;;  %5767 = vmatprep.subr.bf16.mxu1 %v8802_v6  ;;  %v11179_v58 = vpack.c.bf16 %v12823_v28, %v12821_v56  ;;  %v12839_v56 = vmax.f32 %v12838_v14, 0.0  ;;  %v8818_v28 = vld [vmem:[#allocation6 + $0x520] ss:$16 sps:$4 sm:$0xff]   ;;  %v8830_v14 = vld [vmem:[#allocation6 + $0xe8] ss:$16 sps:$4 sm:$0xff]  }
 0x535   :  { %5879 = vmatpush2.bf16.msra.mxu0 %v8797_v17  ;;  %5724 = vmatprep.mubr.bf16.mxu0 %v11163_v29  ;;  %v12826_v17 = vld [vmem:[#allocation52_spill] sm:$0xff] }
 0x536   :  { %5880 = vmatprep.subr.bf16.mxu0 %v8805_v55  ;;  %v12827_v6 = vmax.f32 %v12826_v17, 0.0  ;;  %v11207_v47 = vpack.c.bf16 %v12839_v56, %v12837_v4  ;;  %v8833_v56 = vld [vmem:[#allocation6 + $0x2e8] ss:$16 sps:$4 sm:$0xff]  }
 0x537   :  { %5768 = vmatpush2.bf16.msra.mxu1 %v8800_v7  ;;  %v8823_v7 = vld [vmem:[#allocation6 + $0x724] ss:$16 sps:$4 sm:$0xff]  }
 0x538   :  { %5769 = vmatprep.subr.bf16.mxu1 %v8808_v61  ;;  %v11185_v55 = vpack.c.bf16 %v12827_v6, %v12825_v3  ;;  %v12842_v3 = vld [vmem:[#allocation67_spill] sm:$0xff] }
 0x539   :  { %5881 = vmatpush2.bf16.msra.mxu0 %v8803_v54  ;;  %v12832_v54 = vld [vmem:[#allocation51_spill] sm:$0xff]  ;;  %v12843_v17 = vmax.f32 %v12842_v3, 0.0 }
 0x53a   :  { %5882 = vmatprep.subr.bf16.mxu0 %v8811_v43  ;;  %5612 = vmatmul.mubr.bf16.gmra.mxu1 %v11173_v39  ;;  %v12833_v61 = vmax.f32 %v12832_v54, 0.0  ;;  %v12834_v43 = vld [vmem:[#allocation48_spill] sm:$0xff] }
 0x53b   :  { %5770 = vmatpush2.bf16.msra.mxu1 %v8806_v45  ;;  %5621 = vmatprep.mubr.bf16.mxu1 %v11185_v55  ;;  %v12835_v9 = vmax.f32 %v12834_v43, 0.0  ;;  %v8821_v45 = vld [vmem:[#allocation6 + $0x720] ss:$16 sps:$4 sm:$0xff]   ;;  %v12850_v43 = vmax.f32 %v10860_v52, 0.0 }
 0x53c   :  { %5725 = vmatmul.mubr.bf16.gmra.mxu0 %v11179_v58  ;;  %5771 = vmatprep.subr.bf16.mxu1 %v8814_v8  ;;  %v8829_v8 = vld [vmem:[#allocation6 + $0x704] ss:$16 sps:$4 sm:$0xff]  }
 0x53d   :  { %5883 = vmatpush2.bf16.msra.mxu0 %v8809_v16  ;;  %5734 = vmatprep.mubr.bf16.mxu0 %v11191_v41  ;;  %v11201_v20 = vpack.c.bf16 %v12835_v9, %v12833_v61  ;;  %v8826_v16 = vld [vmem:[#allocation6 + $0x504] ss:$16 sps:$4 sm:$0xff]   ;;  %v12851_v9 = vld [vmem:[#allocation96_spill] sm:$0xff] }
 0x53e   :  { %5884 = vmatprep.subr.bf16.mxu0 %v8817_v13  ;;  %v12840_v13 = vld [vmem:[#allocation39_spill] sm:$0xff]  ;;  %v12852_v23 = vmax.f32 %v12851_v9, 0.0 }
 0x53f   :  { %5772 = vmatpush2.bf16.msra.mxu1 %v8812_v53  ;;  %v12841_v57 = vmax.f32 %v12840_v13, 0.0  ;;  %v8827_v53 = vld [vmem:[#allocation6 + $0x700] ss:$16 sps:$4 sm:$0xff]  }
 0x540   :  { %5773 = vmatprep.subr.bf16.mxu1 %v8820_v10  ;;  %v8835_v10 = vld [vmem:[#allocation6 + $0x2ec] ss:$16 sps:$4 sm:$0xff]   ;;  %v11235_v4 = vpack.c.bf16 %v12852_v23, %v12850_v43  ;;  %v12855_v13 = vld [vmem:[#allocation71_spill] sm:$0xff]  ;;  %v12865_v23 = vld [vmem:[#allocation97_spill] sm:$0xff] }
 0x541   :  { %5885 = vmatpush2.bf16.msra.mxu0 %v8815_v36  ;;  %v11213_v6 = vpack.c.bf16 %v12843_v17, %v12841_v57  ;;  %v8832_v36 = vld [vmem:[#allocation6 + $0xec] ss:$16 sps:$4 sm:$0xff]   ;;  %v12856_v57 = vmax.f32 %v12855_v13, 0.0 }
 0x542   :  { %5886 = vmatprep.subr.bf16.mxu0 %v8823_v7  ;;  %5622 = vmatmul.mubr.bf16.gmra.mxu1 %v11201_v20  ;;  %v12848_v7 = vld [vmem:[#allocation66_spill] sm:$0xff] }
 0x543   :  { %5774 = vmatpush2.bf16.msra.mxu1 %v8818_v28  ;;  %5777 = vmatprep.mubr.bf16.mxu1 %v11213_v6  ;;  %v12849_v54 = vmax.f32 %v12848_v7, 0.0  ;;  %v8838_v28 = vld [vmem:[#allocation6 + $0xcc] ss:$16 sps:$4 sm:$0xff]  }
 0x544   :  { %5735 = vmatmul.mubr.bf16.gmra.mxu0 %v11207_v47  ;;  %5775 = vmatprep.subr.bf16.mxu1 %v8826_v16  ;;  %v12853_v16 = vld [vmem:[#allocation69_spill] sm:$0xff]  ;;  %v12857_v17 = vld [vmem:[#allocation98_spill] sm:$0xff] }
 0x545   :  { %5887 = vmatpush2.bf16.msra.mxu0 %v8821_v45  ;;  %5890 = vmatprep.mubr.bf16.mxu0 %v11219_v5  ;;  %v11229_v61 = vpack.c.bf16 %v12849_v54, %v12847_v59  ;;  %v8841_v45 = vld [vmem:[#allocation6 + $0x2cc] ss:$16 sps:$4 sm:$0xff]   ;;  %v12858_v52 = vmax.f32 %v12857_v17, 0.0  ;;  %v12870_v17 = vld [vmem:[#allocation73_spill] sm:$0xff] }
 0x546   :  { %5888 = vmatprep.subr.bf16.mxu0 %v8829_v8  ;;  %v12854_v8 = vmax.f32 %v12853_v16, 0.0  ;;  %v12861_v59 = vld [vmem:[#allocation68_spill] sm:$0xff]  ;;  %v12863_v54 = vld [vmem:[#allocation70_spill] sm:$0xff]  ;;  %v12866_v16 = vmax.f32 %v12865_v23, 0.0 }
 0x547   :  { %5776 = vmatpush2.bf16.msra.mxu1 %v8824_v30  ;;  %v11247_v42 = vpack.c.bf16 %v12860_v40, %v12858_v52  ;;  %v8836_v30 = vld [vmem:[#allocation6 + $0xc8] ss:$16 sps:$4 sm:$0xff]   ;;  %v12862_v7 = vmax.f32 %v12861_v59, 0.0  ;;  %v12864_v43 = vmax.f32 %v12863_v54, 0.0  ;;  %v12871_v52 = vmax.f32 %v12870_v17, 0.0 }
 0x548   :  { %5971 = vmatprep.subr.bf16.mxu1 %v8832_v36  ;;  %v11241_v3 = vpack.c.bf16 %v12856_v57, %v12854_v8  ;;  %v8844_v36 = vld [vmem:[#allocation6 + $0xac] ss:$16 sps:$4 sm:$0xff]   ;;  %v12867_v8 = vld [vmem:[#allocation99_spill] sm:$0xff]  ;;  %v12873_v40 = vmax.f32 %v12872_v1, 0.0 }
 0x549   :  { %5889 = vmatpush2.bf16.msra.mxu0 %v8827_v53  ;;  %v8839_v53 = vld [vmem:[#allocation6 + $0x2c8] ss:$16 sps:$4 sm:$0xff]   ;;  %v11257_v9 = vpack.c.bf16 %v12864_v43, %v12862_v7  ;;  %v12868_v13 = vmax.f32 %v12867_v8, 0.0  ;;  %v8853_v57 = vld [vmem:[#allocation6 + $0x28c] ss:$16 sps:$4 sm:$0xff]  }
 0x54a   :  { %6084 = vmatprep.subr.bf16.mxu0 %v8835_v10  ;;  %5778 = vmatmul.mubr.bf16.vlgmr.msra.gmra.mxu1 %v11229_v61  ;;  %v8847_v10 = vld [vmem:[#allocation6 + $0x2ac] ss:$16 sps:$4 sm:$0xff]   ;;  %v11269_v59 = vpack.c.bf16 %v12873_v40, %v12871_v52  ;;  %v12885_v40 = vld [vmem:[#allocation101_spill] sm:$0xff] }
 0x54b   :  { %5972 = vmatpush1.bf16.msra.mxu1 %v8830_v14  ;;  %5787 = vmatprep.mubr.bf16.mxu1 %v11241_v3  ;;  %v11263_v14 = vpack.c.bf16 %v12868_v13, %v12866_v16  ;;  %v12875_v7 = vld [vmem:[#allocation102_spill] sm:$0xff]  ;;  %v12877_v43 = vld [vmem:[#allocation104_spill] sm:$0xff] }
 0x54c   :  { %5891 = vmatmul.mubr.bf16.vlgmr.msra.gmra.mxu0 %v11235_v4  ;;  %5973 = vmatprep.subr.bf16.mxu1 %v8838_v28  ;;  %v8845_v28 = vld [vmem:[#allocation6 + $0x2a8] ss:$16 sps:$4 sm:$0xff]   ;;  %12874 = vst [vmem:[#allocation44_spill] sm:$0xff] %v11269_v59  ;;  %v12876_v54 = vmax.f32 %v12875_v7, 0.0  ;;  %v12878_v23 = vmax.f32 %v12877_v43, 0.0  ;;  %v12886_v7 = vmax.f32 %v12885_v40, 0.0 }
 0x54d   :  { %6085 = vmatpush1.bf16.msra.mxu0 %v8833_v56  ;;  %5900 = vmatprep.mubr.bf16.mxu0 %v11247_v42  ;;  %12869 = vst [vmem:[#allocation58_spill] sm:$0xff] %v11263_v14  ;;  %v8842_v56 = vld [vmem:[#allocation6 + $0xa8] ss:$16 sps:$4 sm:$0xff]  }
 0x54e   :  { %6086 = vmatprep.subr.bf16.mxu0 %v8841_v45  ;;  %v8850_v45 = vld [vmem:[#allocation6 + $0x8c] ss:$16 sps:$4 sm:$0xff]   ;;  %v11275_v16 = vpack.c.bf16 %v12878_v23, %v12876_v54  ;;  %v12887_v54 = vld [vmem:[#allocation103_spill] sm:$0xff] }
 0x54f   :  { %5974 = vmatpush1.bf16.msra.mxu1 %v8836_v30  ;;  %v8848_v30 = vld [vmem:[#allocation6 + $0x88] ss:$16 sps:$4 sm:$0xff]   ;;  %v12888_v43 = vmax.f32 %v12887_v54, 0.0  ;;  %v8865_v23 = vld [vmem:[#allocation6 + $0x24c] ss:$16 sps:$4 sm:$0xff]  }
 0x550   :  { %5975 = vmatprep.subr.bf16.mxu1 %v8844_v36  ;;  %12879 = vst [vmem:[#allocation46_spill] sm:$0xff] %v11275_v16  ;;  %v8856_v36 = vld [vmem:[#allocation6 + $0x6c] ss:$16 sps:$4 sm:$0xff]  }
 0x551   :  { %6087 = vmatpush1.bf16.msra.mxu0 %v8839_v53  ;;  %v8851_v53 = vld [vmem:[#allocation6 + $0x288] ss:$16 sps:$4 sm:$0xff]  }
 0x552   :  { %6088 = vmatprep.subr.bf16.mxu0 %v8847_v10  ;;  %5788 = vmatmul.mubr.bf16.gmra.mxu1 %v11257_v9  ;;  %v8859_v10 = vld [vmem:[#allocation6 + $0x26c] ss:$16 sps:$4 sm:$0xff]  }
 0x553   :  { %5976 = vmatpush1.bf16.msra.mxu1 %v8842_v56  ;;  %5797 = vmatprep.mubr.bf16.mxu1 %v11269_v59  ;;  %v12880_v8 = vld [vmem:[#allocation72_spill] sm:$0xff]  ;;  %v12882_v17 = vld [vmem:[#allocation74_spill] sm:$0xff]  ;;  %v11291_v56 = vpack.c.bf16 %v12888_v43, %v12886_v7  ;;  %v12892_v59 = vld [vmem:[#allocation79_spill] sm:$0xff] }
 0x554   :  { %5901 = vmatmul.mubr.bf16.gmra.mxu0 %v11263_v14  ;;  %5977 = vmatprep.subr.bf16.mxu1 %v8850_v45  ;;  %v12881_v13 = vmax.f32 %v12880_v8, 0.0  ;;  %v12883_v52 = vmax.f32 %v12882_v17, 0.0  ;;  %v8857_v45 = vld [vmem:[#allocation6 + $0x268] ss:$16 sps:$4 sm:$0xff]   ;;  %v12893_v17 = vmax.f32 %v12892_v59, 0.0 }
 0x555   :  { %6089 = vmatpush1.bf16.msra.mxu0 %v8845_v28  ;;  %5910 = vmatprep.mubr.bf16.mxu0 %v11275_v16  ;;  %12889 = vst [vmem:[#allocation53_spill] sm:$0xff] %v11291_v56  ;;  %v8854_v28 = vld [vmem:[#allocation6 + $0x68] ss:$16 sps:$4 sm:$0xff]   ;;  %v12890_v16 = vld [vmem:[#allocation77_spill] sm:$0xff]  ;;  %v8871_v59 = vld [vmem:[#allocation6 + $0x22c] ss:$16 sps:$4 sm:$0xff]  }
 0x556   :  { %6090 = vmatprep.subr.bf16.mxu0 %v8853_v57  ;;  %v11285_v1 = vpack.c.bf16 %v12883_v52, %v12881_v13  ;;  %v8862_v57 = vld [vmem:[#allocation6 + $0x4c] ss:$16 sps:$4 sm:$0xff]   ;;  %v12891_v8 = vmax.f32 %v12890_v16, 0.0 }
 0x557   :  { %5978 = vmatpush1.bf16.msra.mxu1 %v8848_v30  ;;  %v12895_v52 = vld [vmem:[#allocation106_spill] sm:$0xff]  ;;  %v12897_v14 = vld [vmem:[#allocation108_spill] sm:$0xff] }
 0x558   :  { %12884 = vst [vmem:[#allocation49_spill] sm:$0xff] %v11285_v1  ;;  %5979 = vmatprep.subr.bf16.mxu1 %v8856_v36  ;;  %v11297_v13 = vpack.c.bf16 %v12893_v17, %v12891_v8  ;;  %v12896_v40 = vmax.f32 %v12895_v52, 0.0  ;;  %v12898_v54 = vmax.f32 %v12897_v14, 0.0  ;;  %v8860_v30 = vld [vmem:[#allocation6 + $0x48] ss:$16 sps:$4 sm:$0xff]   ;;  %v12905_v17 = vld [vmem:[#allocation105_spill] sm:$0xff] }
 0x559   :  { %6091 = vmatpush1.bf16.msra.mxu0 %v8851_v53  ;;  %v8863_v53 = vld [vmem:[#allocation6 + $0x248] ss:$16 sps:$4 sm:$0xff]   ;;  %v8868_v36 = vld [vmem:[#allocation6 + $0x2c] ss:$16 sps:$4 sm:$0xff]   ;;  %v12906_v52 = vmax.f32 %v12905_v17, 0.0 }
 0x55a   :  { %6092 = vmatprep.subr.bf16.mxu0 %v8859_v10  ;;  %12894 = vst [vmem:[#allocation47_spill] sm:$0xff] %v11297_v13  ;;  %v11303_v7 = vpack.c.bf16 %v12898_v54, %v12896_v40  ;;  %5798 = vmatmul.mubr.bf16.gmra.mxu1 %v11285_v1  ;;  %v12900_v16 = vld [vmem:[#allocation76_spill] sm:$0xff]  ;;  %v12902_v10 = vld [vmem:[#allocation78_spill] sm:$0xff]  ;;  %v12907_v40 = vld [vmem:[#allocation107_spill] sm:$0xff] }
 0x55b   :  { %5980 = vmatpush1.bf16.msra.mxu1 %v8854_v28  ;;  %5807 = vmatprep.mubr.bf16.mxu1 %v11297_v13  ;;  %v12901_v14 = vmax.f32 %v12900_v16, 0.0  ;;  %v12903_v43 = vmax.f32 %v12902_v10, 0.0  ;;  %v12908_v54 = vmax.f32 %v12907_v40, 0.0  ;;  %v12910_v13 = vld [vmem:[#allocation81_spill] sm:$0xff]  ;;  %v12917_v1 = vld [vmem:[#allocation112_spill] sm:$0xff] }
 0x55c   :  { %12899 = vst [vmem:[#allocation54_spill] sm:$0xff] %v11303_v7  ;;  %5911 = vmatmul.mubr.bf16.gmra.mxu0 %v11291_v56  ;;  %5981 = vmatprep.subr.bf16.mxu1 %v8862_v57  ;;  %v8869_v57 = vld [vmem:[#allocation6 + $0x228] ss:$16 sps:$4 sm:$0xff]   ;;  %v12911_v16 = vmax.f32 %v12910_v13, 0.0  ;;  %v12912_v56 = vld [vmem:[#allocation83_spill] sm:$0xff]  ;;  %v12918_v40 = vmax.f32 %v12917_v1, 0.0 }
 0x55d   :  { %6093 = vmatpush1.bf16.msra.mxu0 %v8857_v45  ;;  %5920 = vmatprep.mubr.bf16.mxu0 %v11303_v7  ;;  %v11313_v8 = vpack.c.bf16 %v12903_v43, %v12901_v14  ;;  %v11319_v28 = vpack.c.bf16 %v12908_v54, %v12906_v52  ;;  %v8866_v45 = vld [vmem:[#allocation6 + $0x28] ss:$16 sps:$4 sm:$0xff]   ;;  %v8877_v7 = vld [vmem:[#allocation6 + $0x20c] ss:$16 sps:$4 sm:$0xff]   ;;  %v12913_v10 = vmax.f32 %v12912_v56, 0.0 }
 0x55e   :  { %6094 = vmatprep.subr.bf16.mxu0 %v8865_v23  ;;  %v8874_v23 = vld [vmem:[#allocation6 + $0xc] ss:$16 sps:$4 sm:$0xff]  }
 0x55f   :  { %12904 = vst [vmem:[#allocation59_spill] sm:$0xff] %v11313_v8  ;;  %12909 = vst [vmem:[#allocation56_spill] sm:$0xff] %v11319_v28  ;;  %5982 = vmatpush1.bf16.msra.mxu1 %v8860_v30  ;;  %v11325_v14 = vpack.c.bf16 %v12913_v10, %v12911_v16  ;;  %v12915_v43 = vld [vmem:[#allocation110_spill] sm:$0xff]  ;;  %v12920_v13 = vld [vmem:[#allocation80_spill] sm:$0xff] }
 0x560   :  { %5983 = vmatprep.subr.bf16.mxu1 %v8868_v36  ;;  %v12916_v17 = vmax.f32 %v12915_v43, 0.0  ;;  %v8872_v30 = vld [vmem:[#allocation6 + $0x8] ss:$16 sps:$4 sm:$0xff]   ;;  %v8880_v36 = vld [vmem:[#allocation6 + $0x1ec] ss:$16 sps:$4 sm:$0xff]   ;;  %v12921_v1 = vmax.f32 %v12920_v13, 0.0 }
 0x561   :  { %6095 = vmatpush1.bf16.msra.mxu0 %v8863_v53  ;;  %12914 = vst [vmem:[#allocation45_spill] sm:$0xff] %v11325_v14  ;;  %v8875_v53 = vld [vmem:[#allocation6 + $0x208] ss:$16 sps:$4 sm:$0xff]   ;;  %v8883_v56 = vld [vmem:[#allocation6 + $0x3ec] ss:$16 sps:$4 sm:$0xff]   ;;  %v12925_v10 = vld [vmem:[#allocation109_spill] sm:$0xff] }
 0x562   :  { %6096 = vmatprep.subr.bf16.mxu0 %v8871_v59  ;;  %v11331_v52 = vpack.c.bf16 %v12918_v40, %v12916_v17  ;;  %5808 = vmatmul.mubr.bf16.gmra.mxu1 %v11313_v8  ;;  %v12922_v59 = vld [vmem:[#allocation82_spill] sm:$0xff]  ;;  %v12926_v43 = vmax.f32 %v12925_v10, 0.0  ;;  %v12927_v17 = vld [vmem:[#allocation111_spill] sm:$0xff]  ;;  %v12937_v8 = vld [vmem:[#allocation116_spill] sm:$0xff] }
 0x563   :  { %5984 = vmatpush1.bf16.msra.mxu1 %v8866_v45  ;;  %5817 = vmatprep.mubr.bf16.mxu1 %v11325_v14  ;;  %v12923_v54 = vmax.f32 %v12922_v59, 0.0  ;;  %v12928_v40 = vmax.f32 %v12927_v17, 0.0  ;;  %v12930_v14 = vld [vmem:[#allocation85_spill] sm:$0xff]  ;;  %v12938_v17 = vmax.f32 %v12937_v8, 0.0 }
 0x564   :  { %12919 = vst [vmem:[#allocation50_spill] sm:$0xff] %v11331_v52  ;;  %5921 = vmatmul.mubr.bf16.gmra.mxu0 %v11319_v28  ;;  %5985 = vmatprep.subr.bf16.mxu1 %v8874_v23  ;;  %v8881_v23 = vld [vmem:[#allocation6 + $0x3e8] ss:$16 sps:$4 sm:$0xff]   ;;  %v12931_v13 = vmax.f32 %v12930_v14, 0.0  ;;  %v12932_v28 = vld [vmem:[#allocation87_spill] sm:$0xff] }
 0x565   :  { %6097 = vmatpush1.bf16.msra.mxu0 %v8869_v57  ;;  %5930 = vmatprep.mubr.bf16.mxu0 %v11331_v52  ;;  %v11341_v16 = vpack.c.bf16 %v12923_v54, %v12921_v1  ;;  %v11347_v45 = vpack.c.bf16 %v12928_v40, %v12926_v43  ;;  %v8878_v57 = vld [vmem:[#allocation6 + $0x1e8] ss:$16 sps:$4 sm:$0xff]   ;;  %v8889_v52 = vld [vmem:[#allocation6 + $0x3cc] ss:$16 sps:$4 sm:$0xff]   ;;  %v12933_v59 = vmax.f32 %v12932_v28, 0.0 }
 0x566   :  { %6098 = vmatprep.subr.bf16.mxu0 %v8877_v7  ;;  %v8886_v7 = vld [vmem:[#allocation6 + $0x1cc] ss:$16 sps:$4 sm:$0xff]  }
 0x567   :  { %12924 = vst [vmem:[#allocation62_spill] sm:$0xff] %v11341_v16  ;;  %12929 = vst [vmem:[#allocation63_spill] sm:$0xff] %v11347_v45  ;;  %5986 = vmatpush1.bf16.msra.mxu1 %v8872_v30  ;;  %v11353_v1 = vpack.c.bf16 %v12933_v59, %v12931_v13  ;;  %v12935_v54 = vld [vmem:[#allocation114_spill] sm:$0xff]  ;;  %v12940_v14 = vld [vmem:[#allocation84_spill] sm:$0xff] }
 0x568   :  { %5987 = vmatprep.subr.bf16.mxu1 %v8880_v36  ;;  %v12936_v10 = vmax.f32 %v12935_v54, 0.0  ;;  %v8884_v30 = vld [vmem:[#allocation6 + $0x1c8] ss:$16 sps:$4 sm:$0xff]   ;;  %v8892_v36 = vld [vmem:[#allocation6 + $0x1ac] ss:$16 sps:$4 sm:$0xff]   ;;  %v12941_v8 = vmax.f32 %v12940_v14, 0.0 }
 0x569   :  { %6099 = vmatpush1.bf16.msra.mxu0 %v8875_v53  ;;  %12934 = vst [vmem:[#allocation55_spill] sm:$0xff] %v11353_v1  ;;  %v8887_v53 = vld [vmem:[#allocation6 + $0x3c8] ss:$16 sps:$4 sm:$0xff]   ;;  %v8895_v28 = vld [vmem:[#allocation6 + $0x3ac] ss:$16 sps:$4 sm:$0xff]   ;;  %v12944_v59 = vld [vmem:[#allocation113_spill] sm:$0xff] }
 0x56a   :  { %6100 = vmatprep.subr.bf16.mxu0 %v8883_v56  ;;  %v11359_v43 = vpack.c.bf16 %v12938_v17, %v12936_v10  ;;  %5818 = vmatmul.mubr.bf16.gmra.mxu1 %v11341_v16  ;;  %v12942_v56 = vld [vmem:[#allocation86_spill] sm:$0xff]  ;;  %v12945_v54 = vmax.f32 %v12944_v59, 0.0  ;;  %v12946_v10 = vld [vmem:[#allocation115_spill] sm:$0xff]  ;;  %v12956_v16 = vld [vmem:[#allocation120_spill] sm:$0xff] }
 0x56b   :  { %5988 = vmatpush2.bf16.msra.mxu1 %v8878_v57  ;;  %5827 = vmatprep.mubr.bf16.mxu1 %v11353_v1  ;;  %v12943_v40 = vmax.f32 %v12942_v56, 0.0  ;;  %v12947_v17 = vmax.f32 %v12946_v10, 0.0  ;;  %v12949_v1 = vld [vmem:[#allocation89_spill] sm:$0xff]  ;;  %v12957_v10 = vmax.f32 %v12956_v16, 0.0 }
 0x56c   :  { %12939 = vst [vmem:[#allocation52_spill] sm:$0xff] %v11359_v43  ;;  %5931 = vmatmul.mubr.bf16.gmra.mxu0 %v11347_v45  ;;  %5989 = vmatprep.subr.bf16.mxu1 %v8886_v7  ;;  %v8893_v7 = vld [vmem:[#allocation6 + $0x3a8] ss:$16 sps:$4 sm:$0xff]   ;;  %v12950_v14 = vmax.f32 %v12949_v1, 0.0  ;;  %v12951_v45 = vld [vmem:[#allocation91_spill] sm:$0xff] }
 0x56d   :  { %6101 = vmatpush2.bf16.msra.mxu0 %v8881_v23  ;;  %5940 = vmatprep.mubr.bf16.mxu0 %v11359_v43  ;;  %v11369_v13 = vpack.c.bf16 %v12943_v40, %v12941_v8  ;;  %v11375_v57 = vpack.c.bf16 %v12947_v17, %v12945_v54  ;;  %v8890_v23 = vld [vmem:[#allocation6 + $0x1a8] ss:$16 sps:$4 sm:$0xff]   ;;  %v8901_v43 = vld [vmem:[#allocation6 + $0x38c] ss:$16 sps:$4 sm:$0xff]   ;;  %v12952_v56 = vmax.f32 %v12951_v45, 0.0 }
 0x56e   :  { %6102 = vmatprep.subr.bf16.mxu0 %v8889_v52  ;;  %v8898_v52 = vld [vmem:[#allocation6 + $0x18c] ss:$16 sps:$4 sm:$0xff]  }
 0x56f   :  { %12948 = vst [vmem:[#allocation57_spill] sm:$0xff] %v11375_v57  ;;  %5990 = vmatpush2.bf16.msra.mxu1 %v8884_v30  ;;  %v11381_v8 = vpack.c.bf16 %v12952_v56, %v12950_v14  ;;  %v12954_v40 = vld [vmem:[#allocation118_spill] sm:$0xff]  ;;  %v12963_v56 = vld [vmem:[#allocation117_spill] sm:$0xff] }
 0x570   :  { %5991 = vmatprep.subr.bf16.mxu1 %v8892_v36  ;;  %v12955_v59 = vmax.f32 %v12954_v40, 0.0  ;;  %v8896_v30 = vld [vmem:[#allocation6 + $0x188] ss:$16 sps:$4 sm:$0xff]   ;;  %v8904_v1 = vld [vmem:[#allocation6 + $0x16c] ss:$16 sps:$4 sm:$0xff]   ;;  %v12964_v40 = vmax.f32 %v12963_v56, 0.0 }
 0x571   :  { %6103 = vmatpush2.bf16.msra.mxu0 %v8887_v53  ;;  %12953 = vst [vmem:[#allocation64_spill] sm:$0xff] %v11381_v8  ;;  %v8899_v53 = vld [vmem:[#allocation6 + $0x388] ss:$16 sps:$4 sm:$0xff]   ;;  %v8907_v45 = vld [vmem:[#allocation6 + $0x36c] ss:$16 sps:$4 sm:$0xff]   ;;  %v12972_v56 = vmax.f32 %v10984_v50, 0.0 }
 0x572   :  { %6104 = vmatprep.subr.bf16.mxu0 %v8895_v28  ;;  %v11387_v54 = vpack.c.bf16 %v12957_v10, %v12955_v59  ;;  %5828 = vmatmul.mubr.bf16.gmra.mxu1 %v11369_v13  ;;  %v12959_v36 = vld [vmem:[#allocation88_spill] sm:$0xff]  ;;  %v12961_v28 = vld [vmem:[#allocation90_spill] sm:$0xff] }
 0x573   :  { %5992 = vmatpush2.bf16.msra.mxu1 %v8890_v23  ;;  %5837 = vmatprep.mubr.bf16.mxu1 %v11381_v8  ;;  %v12960_v16 = vmax.f32 %v12959_v36, 0.0  ;;  %v12962_v17 = vmax.f32 %v12961_v28, 0.0  ;;  %v12965_v23 = vld [vmem:[#allocation119_spill] sm:$0xff]  ;;  %v8910_v10 = vld [vmem:[#allocation6 + $0x14c] ss:$16 sps:$4 sm:$0xff]   ;;  %v12967_v8 = vld [vmem:[#allocation93_spill] sm:$0xff] }
 0x574   :  { %12958 = vst [vmem:[#allocation51_spill] sm:$0xff] %v11387_v54  ;;  %5941 = vmatmul.mubr.bf16.gmra.mxu0 %v11375_v57  ;;  %5993 = vmatprep.subr.bf16.mxu1 %v8898_v52  ;;  %v8905_v52 = vld [vmem:[#allocation6 + $0x368] ss:$16 sps:$4 sm:$0xff]   ;;  %v12968_v36 = vmax.f32 %v12967_v8, 0.0  ;;  %v12969_v57 = vld [vmem:[#allocation95_spill] sm:$0xff] }
 0x575   :  { %6105 = vmatpush2.bf16.msra.mxu0 %v8893_v7  ;;  %5950 = vmatprep.mubr.bf16.mxu0 %v11387_v54  ;;  %v11397_v14 = vpack.c.bf16 %v12962_v17, %v12960_v16  ;;  %v12966_v7 = vmax.f32 %v12965_v23, 0.0  ;;  %v8913_v54 = vld [vmem:[#allocation6 + $0x34c] ss:$16 sps:$4 sm:$0xff]   ;;  %v12970_v28 = vmax.f32 %v12969_v57, 0.0  ;;  %v12971_v17 = vmax.f32 %v10976_v12, 0.0 }
 0x576   :  { %6106 = vmatprep.subr.bf16.mxu0 %v8901_v43  ;;  %v8902_v43 = vld [vmem:[#allocation6 + $0x168] ss:$16 sps:$4 sm:$0xff]   ;;  %v8916_v8 = vld [vmem:[#allocation6 + $0x12c] ss:$16 sps:$4 sm:$0xff]  }
 0x577   :  { %v11403_v59 = vpack.c.bf16 %v12966_v7, %v12964_v40  ;;  %5994 = vmatpush2.bf16.msra.mxu1 %v8896_v30  ;;  %v11409_v16 = vpack.c.bf16 %v12970_v28, %v12968_v36  ;;  %v11415_v40 = vpack.c.bf16 %v12972_v56, %v12971_v17  ;;  %v8908_v30 = vld [vmem:[#allocation6 + $0x148] ss:$16 sps:$4 sm:$0xff]   ;;  %v8919_v57 = vld [vmem:[#allocation6 + $0x32c] ss:$16 sps:$4 sm:$0xff]   ;;  %v12977_v7 = vmax.f32 %v10972_v35, 0.0 }
 0x578   :  { %5995 = vmatprep.subr.bf16.mxu1 %v8904_v1  ;;  %v12973_v12 = vld [vmem:[#allocation92_spill] sm:$0xff]  ;;  %v12975_v1 = vld [vmem:[#allocation94_spill] sm:$0xff] }
 0x579   :  { %6107 = vmatpush2.bf16.msra.mxu0 %v8899_v53  ;;  %v8911_v53 = vld [vmem:[#allocation6 + $0x348] ss:$16 sps:$4 sm:$0xff]   ;;  %v12974_v50 = vmax.f32 %v12973_v12, 0.0  ;;  %v8922_v36 = vld [vmem:[#allocation6 + $0x10c] ss:$16 sps:$4 sm:$0xff]  }
 0x57a   :  { %6108 = vmatprep.subr.bf16.mxu0 %v8907_v45  ;;  %5838 = vmatmul.mubr.bf16.gmra.mxu1 %v11397_v14  ;;  %v12976_v45 = vmax.f32 %v12975_v1, 0.0  ;;  %v8925_v28 = vld [vmem:[#allocation6 + $0x30c] ss:$16 sps:$4 sm:$0xff]   ;;  %v8920_v17 = vld [vmem:[#allocation6 + $0x108] ss:$16 sps:$4 sm:$0xff]  }
 0x57b   :  { %5996 = vmatpush2.bf16.msra.mxu1 %v8902_v43  ;;  %5847 = vmatprep.mubr.bf16.mxu1 %v11409_v16  ;;  %v12978_v43 = vmax.f32 %v10980_v49, 0.0  ;;  %v8923_v35 = vld [vmem:[#allocation6 + $0x308] ss:$16 sps:$4 sm:$0xff]   ;;  %v8928_v49 = vld [vmem:[#allocation6 + $0x4ec] ss:$16 sps:$4 sm:$0xff]  }
 0x57c   :  { %5951 = vmatmul.mubr.bf16.gmra.mxu0 %v11403_v59  ;;  %5997 = vmatprep.subr.bf16.mxu1 %v8910_v10  ;;  %v11425_v23 = vpack.c.bf16 %v12976_v45, %v12974_v50  ;;  %v8917_v10 = vld [vmem:[#allocation6 + $0x328] ss:$16 sps:$4 sm:$0xff]   ;;  %v8931_v56 = vld [vmem:[#allocation6 + $0x6ec] ss:$16 sps:$4 sm:$0xff]  }
 0x57d   :  { %6109 = vmatpush2.bf16.msra.mxu0 %v8905_v52  ;;  %5960 = vmatprep.mubr.bf16.mxu0 %v11415_v40  ;;  %v11431_v52 = vpack.c.bf16 %v12978_v43, %v12977_v7  ;;  %v8932_v12 = vld [vmem:[#allocation6 + $0x4c8] ss:$16 sps:$4 sm:$0xff]  }
 0x57e   :  { %6110 = vmatprep.subr.bf16.mxu0 %v8913_v54  ;;  %v8914_v54 = vld [vmem:[#allocation6 + $0x128] ss:$16 sps:$4 sm:$0xff]  }
 0x57f   :  { %5998 = vmatpush2.bf16.msra.mxu1 %v8908_v30  ;;  %v8926_v30 = vld [vmem:[#allocation6 + $0x4e8] ss:$16 sps:$4 sm:$0xff]  }
 0x580   :  { %5999 = vmatprep.subr.bf16.mxu1 %v8916_v8  ;;  %v8934_v8 = vld [vmem:[#allocation6 + $0x4cc] ss:$16 sps:$4 sm:$0xff]   ;;  %v8935_v50 = vld [vmem:[#allocation6 + $0x6c8] ss:$16 sps:$4 sm:$0xff]  }
 0x581   :  { %6111 = vmatpush2.bf16.msra.mxu0 %v8911_v53  ;;  %v8929_v53 = vld [vmem:[#allocation6 + $0x6e8] ss:$16 sps:$4 sm:$0xff]  }
 0x582   :  { %6112 = vmatprep.subr.bf16.mxu0 %v8919_v57  ;;  %5848 = vmatmul.mubr.bf16.gmra.mxu1 %v11425_v23  ;;  %v8937_v57 = vld [vmem:[#allocation6 + $0x6cc] ss:$16 sps:$4 sm:$0xff]   ;;  %v8938_v1 = vld [vmem:[#allocation6 + $0x4a8] ss:$16 sps:$4 sm:$0xff]  }
 0x583   :  { %6000 = vmatpush2.bf16.msra.mxu1 %v8914_v54  ;;  %6003 = vmatprep.mubr.bf16.mxu1 %v10991_v46  ;;  %v8940_v46 = vld [vmem:[#allocation6 + $0x4ac] ss:$16 sps:$4 sm:$0xff]   ;;  %v8941_v45 = vld [vmem:[#allocation6 + $0x6a8] ss:$16 sps:$4 sm:$0xff]  }
 0x584   :  { %5961 = vmatmul.mubr.bf16.gmra.mxu0 %v11431_v52  ;;  %6001 = vmatprep.subr.bf16.mxu1 %v8922_v36  ;;  %v8944_v7 = vld [vmem:[#allocation6 + $0x488] ss:$16 sps:$4 sm:$0xff]  }
 0x585   :  { %6113 = vmatpush2.bf16.msra.mxu0 %v8917_v10  ;;  %6116 = vmatprep.mubr.bf16.mxu0 %v10997_v44  ;;  %v8943_v44 = vld [vmem:[#allocation6 + $0x6ac] ss:$16 sps:$4 sm:$0xff]   ;;  %v8947_v43 = vld [vmem:[#allocation6 + $0x688] ss:$16 sps:$4 sm:$0xff]  }
 0x586   :  { %6114 = vmatprep.subr.bf16.mxu0 %v8925_v28  ;;  %v8950_v54 = vld [vmem:[#allocation6 + $0x468] ss:$16 sps:$4 sm:$0xff]  }
 0x587   :  { %6002 = vmatpush2.bf16.msra.mxu1 %v8920_v17  ;;  %v8953_v10 = vld [vmem:[#allocation6 + $0x668] ss:$16 sps:$4 sm:$0xff]  }
 0x588   :  { %6197 = vmatprep.subr.bf16.mxu1 %v8928_v49  ;;  %v8956_v36 = vld [vmem:[#allocation6 + $0x448] ss:$16 sps:$4 sm:$0xff]  }
 0x589   :  { %6115 = vmatpush2.bf16.msra.mxu0 %v8923_v35  ;;  %v8959_v28 = vld [vmem:[#allocation6 + $0x648] ss:$16 sps:$4 sm:$0xff]  }
 0x58a   :  { %6310 = vmatprep.subr.bf16.mxu0 %v8931_v56  ;;  %6004 = vmatmul.mubr.bf16.vlgmr.msra.gmra.mxu1 %v11005_v26  ;;  %v8946_v26 = vld [vmem:[#allocation6 + $0x48c] ss:$16 sps:$4 sm:$0xff]   ;;  %v8962_v17 = vld [vmem:[#allocation6 + $0x428] ss:$16 sps:$4 sm:$0xff]  }
 0x58b   :  { %6198 = vmatpush1.bf16.msra.mxu1 %v8926_v30  ;;  %6013 = vmatprep.mubr.bf16.mxu1 %v11017_v2  ;;  %v8952_v2 = vld [vmem:[#allocation6 + $0x46c] ss:$16 sps:$4 sm:$0xff]   ;;  %v8965_v35 = vld [vmem:[#allocation6 + $0x628] ss:$16 sps:$4 sm:$0xff]  }
 0x58c   :  { %6117 = vmatmul.mubr.bf16.vlgmr.msra.gmra.mxu0 %v11011_v15  ;;  %6199 = vmatprep.subr.bf16.mxu1 %v8934_v8  ;;  %v8949_v15 = vld [vmem:[#allocation6 + $0x68c] ss:$16 sps:$4 sm:$0xff]   ;;  %v8968_v49 = vld [vmem:[#allocation6 + $0x408] ss:$16 sps:$4 sm:$0xff]  }
 0x58d   :  { %6311 = vmatpush1.bf16.msra.mxu0 %v8929_v53  ;;  %6126 = vmatprep.mubr.bf16.mxu0 %v11023_v32  ;;  %v8955_v32 = vld [vmem:[#allocation6 + $0x66c] ss:$16 sps:$4 sm:$0xff]   ;;  %v8971_v56 = vld [vmem:[#allocation6 + $0x608] ss:$16 sps:$4 sm:$0xff]  }
 0x58e   :  { %6312 = vmatprep.subr.bf16.mxu0 %v8937_v57  ;;  %v8974_v30 = vld [vmem:[#allocation6 + $0x5e8] ss:$16 sps:$4 sm:$0xff]  }
 0x58f   :  { %6200 = vmatpush1.bf16.msra.mxu1 %v8932_v12  ;;  %v8977_v53 = vld [vmem:[#allocation6 + $0x7e8] ss:$16 sps:$4 sm:$0xff]  }
 0x590   :  { %6201 = vmatprep.subr.bf16.mxu1 %v8940_v46  ;;  %v8980_v8 = vld [vmem:[#allocation6 + $0x5c8] ss:$16 sps:$4 sm:$0xff]  }
 0x591   :  { %6313 = vmatpush1.bf16.msra.mxu0 %v8935_v50  ;;  %v8983_v57 = vld [vmem:[#allocation6 + $0x7c8] ss:$16 sps:$4 sm:$0xff]  }
 0x592   :  { %6314 = vmatprep.subr.bf16.mxu0 %v8943_v44  ;;  %6014 = vmatmul.mubr.bf16.gmra.mxu1 %v11033_v18  ;;  %v8958_v18 = vld [vmem:[#allocation6 + $0x44c] ss:$16 sps:$4 sm:$0xff]   ;;  %v8986_v12 = vld [vmem:[#allocation6 + $0x5a8] ss:$16 sps:$4 sm:$0xff]  }
 0x593   :  { %6202 = vmatpush1.bf16.msra.mxu1 %v8938_v1  ;;  %6023 = vmatprep.mubr.bf16.mxu1 %v11045_v21  ;;  %v8964_v21 = vld [vmem:[#allocation6 + $0x42c] ss:$16 sps:$4 sm:$0xff]   ;;  %v8989_v50 = vld [vmem:[#allocation6 + $0x7a8] ss:$16 sps:$4 sm:$0xff]  }
 0x594   :  { %6127 = vmatmul.mubr.bf16.gmra.mxu0 %v11039_v22  ;;  %6203 = vmatprep.subr.bf16.mxu1 %v8946_v26  ;;  %v8961_v22 = vld [vmem:[#allocation6 + $0x64c] ss:$16 sps:$4 sm:$0xff]   ;;  %v8992_v46 = vld [vmem:[#allocation6 + $0x588] ss:$16 sps:$4 sm:$0xff]  }
 0x595   :  { %6315 = vmatpush1.bf16.msra.mxu0 %v8941_v45  ;;  %6136 = vmatprep.mubr.bf16.mxu0 %v11051_v24  ;;  %v8967_v24 = vld [vmem:[#allocation6 + $0x62c] ss:$16 sps:$4 sm:$0xff]   ;;  %v8995_v44 = vld [vmem:[#allocation6 + $0x788] ss:$16 sps:$4 sm:$0xff]  }
 0x596   :  { %6316 = vmatprep.subr.bf16.mxu0 %v8949_v15  ;;  %v8998_v1 = vld [vmem:[#allocation6 + $0x568] ss:$16 sps:$4 sm:$0xff]  }
 0x597   :  { %6204 = vmatpush1.bf16.msra.mxu1 %v8944_v7  ;;  %v9001_v45 = vld [vmem:[#allocation6 + $0x768] ss:$16 sps:$4 sm:$0xff]  }
 0x598   :  { %6205 = vmatprep.subr.bf16.mxu1 %v8952_v2  ;;  %v9004_v26 = vld [vmem:[#allocation6 + $0x548] ss:$16 sps:$4 sm:$0xff]  }
 0x599   :  { %6317 = vmatpush1.bf16.msra.mxu0 %v8947_v43  ;;  %v9007_v15 = vld [vmem:[#allocation6 + $0x748] ss:$16 sps:$4 sm:$0xff]  }
 0x59a   :  { %6318 = vmatprep.subr.bf16.mxu0 %v8955_v32  ;;  %6024 = vmatmul.mubr.bf16.gmra.mxu1 %v11061_v11  ;;  %v8970_v11 = vld [vmem:[#allocation6 + $0x40c] ss:$16 sps:$4 sm:$0xff]   ;;  %v9010_v7 = vld [vmem:[#allocation6 + $0x528] ss:$16 sps:$4 sm:$0xff]  }
 0x59b   :  { %6206 = vmatpush1.bf16.msra.mxu1 %v8950_v54  ;;  %6033 = vmatprep.mubr.bf16.mxu1 %v11073_v34  ;;  %v8976_v34 = vld [vmem:[#allocation6 + $0x5ec] ss:$16 sps:$4 sm:$0xff]   ;;  %v9013_v43 = vld [vmem:[#allocation6 + $0x728] ss:$16 sps:$4 sm:$0xff]  }
 0x59c   :  { %6137 = vmatmul.mubr.bf16.gmra.mxu0 %v11067_v27  ;;  %6207 = vmatprep.subr.bf16.mxu1 %v8958_v18  ;;  %v8973_v27 = vld [vmem:[#allocation6 + $0x60c] ss:$16 sps:$4 sm:$0xff]   ;;  %v9016_v2 = vld [vmem:[#allocation6 + $0x508] ss:$16 sps:$4 sm:$0xff]  }
 0x59d   :  { %6319 = vmatpush1.bf16.msra.mxu0 %v8953_v10  ;;  %6146 = vmatprep.mubr.bf16.mxu0 %v11079_v62  ;;  %v8979_v62 = vld [vmem:[#allocation6 + $0x7ec] ss:$16 sps:$4 sm:$0xff]   ;;  %v9019_v32 = vld [vmem:[#allocation6 + $0x708] ss:$16 sps:$4 sm:$0xff]  }
 0x59e   :  { %6320 = vmatprep.subr.bf16.mxu0 %v8961_v22 }
 0x59f   :  { %6208 = vmatpush1.bf16.msra.mxu1 %v8956_v36 }
 0x5a0   :  { %6209 = vmatprep.subr.bf16.mxu1 %v8964_v21 }
 0x5a1   :  { %6321 = vmatpush1.bf16.msra.mxu0 %v8959_v28 }
 0x5a2   :  { %6322 = vmatprep.subr.bf16.mxu0 %v8967_v24  ;;  %6034 = vmatmul.mubr.bf16.gmra.mxu1 %v11089_v63  ;;  %v8982_v63 = vld [vmem:[#allocation6 + $0x5cc] ss:$16 sps:$4 sm:$0xff]  }
 0x5a3   :  { %6210 = vmatpush1.bf16.msra.mxu1 %v8962_v17  ;;  %6043 = vmatprep.mubr.bf16.mxu1 %v11101_v37  ;;  %v8988_v37 = vld [vmem:[#allocation6 + $0x5ac] ss:$16 sps:$4 sm:$0xff]  }
 0x5a4   :  { %6147 = vmatmul.mubr.bf16.gmra.mxu0 %v11095_v48  ;;  %6211 = vmatprep.subr.bf16.mxu1 %v8970_v11  ;;  %v8985_v48 = vld [vmem:[#allocation6 + $0x7cc] ss:$16 sps:$4 sm:$0xff]  }
 0x5a5   :  { %6323 = vmatpush1.bf16.msra.mxu0 %v8965_v35  ;;  %6156 = vmatprep.mubr.bf16.mxu0 %v11107_v31  ;;  %v8991_v31 = vld [vmem:[#allocation6 + $0x7ac] ss:$16 sps:$4 sm:$0xff]  }
 0x5a6   :  { %6324 = vmatprep.subr.bf16.mxu0 %v8973_v27 }
 0x5a7   :  { %6212 = vmatpush1.bf16.msra.mxu1 %v8968_v49  ;;  %v12981_v49 = vld [vmem:[#allocation58_spill] sm:$0xff] }
 0x5a8   :  { %6213 = vmatprep.subr.bf16.mxu1 %v8976_v34 }
 0x5a9   :  { %6325 = vmatpush1.bf16.msra.mxu0 %v8971_v56 }
 0x5aa   :  { %6326 = vmatprep.subr.bf16.mxu0 %v8979_v62  ;;  %6044 = vmatmul.mubr.bf16.gmra.mxu1 %v11117_v19  ;;  %v8994_v19 = vld [vmem:[#allocation6 + $0x58c] ss:$16 sps:$4 sm:$0xff]  }
 0x5ab   :  { %6214 = vmatpush2.bf16.msra.mxu1 %v8974_v30  ;;  %6053 = vmatprep.mubr.bf16.mxu1 %v11129_v60  ;;  %v9000_v60 = vld [vmem:[#allocation6 + $0x56c] ss:$16 sps:$4 sm:$0xff]  }
 0x5ac   :  { %6157 = vmatmul.mubr.bf16.gmra.mxu0 %v11123_v51  ;;  %6215 = vmatprep.subr.bf16.mxu1 %v8982_v63  ;;  %v8997_v51 = vld [vmem:[#allocation6 + $0x78c] ss:$16 sps:$4 sm:$0xff]  }
 0x5ad   :  { %6327 = vmatpush2.bf16.msra.mxu0 %v8977_v53  ;;  %6166 = vmatprep.mubr.bf16.mxu0 %v11135_v38  ;;  %v9003_v38 = vld [vmem:[#allocation6 + $0x76c] ss:$16 sps:$4 sm:$0xff]  }
 0x5ae   :  { %6328 = vmatprep.subr.bf16.mxu0 %v8985_v48  ;;  %v12982_v62 = vld [vmem:[#allocation44_spill] sm:$0xff]  ;;  %v12983_v30 = vld [vmem:[#allocation46_spill] sm:$0xff] }
 0x5af   :  { %6216 = vmatpush2.bf16.msra.mxu1 %v8980_v8 }
 0x5b0   :  { %6217 = vmatprep.subr.bf16.mxu1 %v8988_v37 }
 0x5b1   :  { %6329 = vmatpush2.bf16.msra.mxu0 %v8983_v57 }
 0x5b2   :  { %6330 = vmatprep.subr.bf16.mxu0 %v8991_v31  ;;  %6054 = vmatmul.mubr.bf16.gmra.mxu1 %v11145_v33  ;;  %v9006_v33 = vld [vmem:[#allocation6 + $0x54c] ss:$16 sps:$4 sm:$0xff]  }
 0x5b3   :  { %6218 = vmatpush2.bf16.msra.mxu1 %v8986_v12  ;;  %6063 = vmatprep.mubr.bf16.mxu1 %v11157_v25  ;;  %v9012_v25 = vld [vmem:[#allocation6 + $0x52c] ss:$16 sps:$4 sm:$0xff]  }
 0x5b4   :  { %6167 = vmatmul.mubr.bf16.gmra.mxu0 %v11151_v0  ;;  %6219 = vmatprep.subr.bf16.mxu1 %v8994_v19  ;;  %v9009_v0 = vld [vmem:[#allocation6 + $0x74c] ss:$16 sps:$4 sm:$0xff]  }
 0x5b5   :  { %6331 = vmatpush2.bf16.msra.mxu0 %v8989_v50  ;;  %6176 = vmatprep.mubr.bf16.mxu0 %v11163_v29  ;;  %v9015_v29 = vld [vmem:[#allocation6 + $0x72c] ss:$16 sps:$4 sm:$0xff]  }
 0x5b6   :  { %6332 = vmatprep.subr.bf16.mxu0 %v8997_v51 }
 0x5b7   :  { %6220 = vmatpush2.bf16.msra.mxu1 %v8992_v46 }
 0x5b8   :  { %6221 = vmatprep.subr.bf16.mxu1 %v9000_v60  ;;  %v12984_v60 = vld [vmem:[#allocation49_spill] sm:$0xff] }
 0x5b9   :  { %6333 = vmatpush2.bf16.msra.mxu0 %v8995_v44 }
 0x5ba   :  { %6334 = vmatprep.subr.bf16.mxu0 %v9003_v38  ;;  %6064 = vmatmul.mubr.bf16.gmra.mxu1 %v11173_v39  ;;  %v9018_v39 = vld [vmem:[#allocation6 + $0x50c] ss:$16 sps:$4 sm:$0xff]   ;;  %v12985_v38 = vld [vmem:[#allocation53_spill] sm:$0xff] }
 0x5bb   :  { %6222 = vmatpush2.bf16.msra.mxu1 %v8998_v1  ;;  %6073 = vmatprep.mubr.bf16.mxu1 %v11185_v55  ;;  %v11467_v55 = vld [vmem:[#allocation11 + $0x3] ss:$8 sm:$0xf] }
 0x5bc   :  { %6177 = vmatmul.mubr.bf16.gmra.mxu0 %v11179_v58  ;;  %6223 = vmatprep.subr.bf16.mxu1 %v9006_v33  ;;  %v9021_v58 = vld [vmem:[#allocation6 + $0x70c] ss:$16 sps:$4 sm:$0xff]   ;;  %v12986_v33 = vld [vmem:[#allocation47_spill] sm:$0xff] }
 0x5bd   :  { %6335 = vmatpush2.bf16.msra.mxu0 %v9001_v45  ;;  %6186 = vmatprep.mubr.bf16.mxu0 %v11191_v41  ;;  %v12979_v41 = vld [vmem:[#allocation40_spill] sm:$0xff] }
 0x5be   :  { %6336 = vmatprep.subr.bf16.mxu0 %v9009_v0  ;;  %v11473_v54 = vrot.slane %v11467_v55, %v12979_v41  ;;  %v12987_v0 = vld [vmem:[#allocation54_spill] sm:$0xff] }
 0x5bf   :  { %6224 = vmatpush2.bf16.msra.mxu1 %v9004_v26 }
 0x5c0   :  { %6225 = vmatprep.subr.bf16.mxu1 %v9012_v25 }
 0x5c1   :  { %6337 = vmatpush2.bf16.msra.mxu0 %v9007_v15 }
 0x5c2   :  { %6338 = vmatprep.subr.bf16.mxu0 %v9015_v29  ;;  %6074 = vmatmul.mubr.bf16.gmra.mxu1 %v11201_v20  ;;  %v12980_v20 = vld [vmem:[#allocation41_spill] sm:$0xff] }
 0x5c3   :  { %6226 = vmatpush2.bf16.msra.mxu1 %v9010_v7  ;;  %6229 = vmatprep.mubr.bf16.mxu1 %v11213_v6 }
 0x5c4   :  { %6187 = vmatmul.mubr.bf16.gmra.mxu0 %v11207_v47  ;;  %6227 = vmatprep.subr.bf16.mxu1 %v9018_v39  ;;  %v11477_v47 = vrot.slane %v11467_v55, %v12980_v20 }
 0x5c5   :  { %6339 = vmatpush2.bf16.msra.mxu0 %v9013_v43  ;;  %6342 = vmatprep.mubr.bf16.mxu0 %v11219_v5 }
 0x5c6   :  { %6340 = vmatprep.subr.bf16.mxu0 %v9021_v58 }
 0x5c7   :  { %6228 = vmatpush2.bf16.msra.mxu1 %v9016_v2 }
 0x5c9   :  { %6341 = vmatpush2.bf16.msra.mxu0 %v9019_v32 }
 0x5ca   :  { %v5553_v10 = vpop.f32.mrf.mxu1  ;;  %6230 = vmatmul.mubr.bf16.vlgmr.msra.gmra.mxu1 %v11229_v61 }
 0x5cb   :  { %v5554_v6 = vadd.f32 %v5553_v10, %v11473_v54  ;;  %6239 = vmatprep.mubr.bf16.mxu1 %v11241_v3 }
 0x5cc   :  { %v5666_v18 = vpop.f32.mrf.mxu0  ;;  %6343 = vmatmul.mubr.bf16.vlgmr.msra.gmra.mxu0 %v11235_v4  ;;  %v5555_v5 = vpop.f32.mrf.mxu1 }
 0x5cd   :  { %6352 = vmatprep.mubr.bf16.mxu0 %v11247_v42  ;;  %v11484_v36 = vadd.f32 %v5666_v18, %v5554_v6  ;;  %v5556_v28 = vadd.f32 %v5555_v5, %v11477_v47 }
 0x5ce   :  { %v5668_v22 = vpop.f32.mrf.mxu0  ;;  %v5557_v21 = vpop.f32.mrf.mxu1 }
 0x5cf   :  { %v11487_v17 = vadd.f32 %v5668_v22, %v5556_v28  ;;  %v5558_v61 = vadd.f32 %v5557_v21, %v11473_v54  ;;  %v12988_v22 = vld [vmem:[#allocation59_spill] sm:$0xff]  ;;  %v12989_v28 = vld [vmem:[#allocation56_spill] sm:$0xff] }
 0x5d0   :  { %v5670_v24 = vpop.f32.mrf.mxu0  ;;  %v5559_v35 = vpop.f32.mrf.mxu1 }
 0x5d1   :  { %v11490_v11 = vadd.f32 %v5670_v24, %v5558_v61  ;;  %v5560_v3 = vadd.f32 %v5559_v35, %v11477_v47  ;;  %v12990_v61 = vld [vmem:[#allocation45_spill] sm:$0xff]  ;;  %v12991_v35 = vld [vmem:[#allocation50_spill] sm:$0xff] }
 0x5d2   :  { %v5672_v4 = vpop.f32.mrf.mxu0  ;;  %v5563_v27 = vpop.f32.mrf.mxu1  ;;  %6240 = vmatmul.mubr.bf16.gmra.mxu1 %v11257_v9 }
 0x5d3   :  { %v11495_v56 = vadd.f32 %v5672_v4, %v5560_v3  ;;  %v5564_v34 = vadd.f32 %v5563_v27, %v11473_v54  ;;  %6249 = vmatprep.mubr.bf16.mxu1 %v12982_v62 }
 0x5d4   :  { %v5676_v42 = vpop.f32.mrf.mxu0  ;;  %6353 = vmatmul.mubr.bf16.gmra.mxu0 %v12981_v49  ;;  %v5565_v53 = vpop.f32.mrf.mxu1 }
 0x5d5   :  { %6362 = vmatprep.mubr.bf16.mxu0 %v12983_v30  ;;  %v11500_v48 = vadd.f32 %v5676_v42, %v5564_v34  ;;  %v5566_v8 = vadd.f32 %v5565_v53, %v11477_v47 }
 0x5d6   :  { %v5678_v63 = vpop.f32.mrf.mxu0  ;;  %v5567_v57 = vpop.f32.mrf.mxu1 }
 0x5d7   :  { %v11503_v31 = vadd.f32 %v5678_v63, %v5566_v8  ;;  %v5568_v9 = vadd.f32 %v5567_v57, %v11473_v54 }
 0x5d8   :  { %v5680_v37 = vpop.f32.mrf.mxu0  ;;  %v5569_v12 = vpop.f32.mrf.mxu1 }
 0x5d9   :  { %v11506_v19 = vadd.f32 %v5680_v37, %v5568_v9  ;;  %v5570_v51 = vadd.f32 %v5569_v12, %v11477_v47  ;;  %v12992_v12 = vld [vmem:[#allocation62_spill] sm:$0xff] }
 0x5da   :  { %v5682_v50 = vpop.f32.mrf.mxu0  ;;  %v5573_v46 = vpop.f32.mrf.mxu1  ;;  %6250 = vmatmul.mubr.bf16.gmra.mxu1 %v12984_v60  ;;  %v12995_v60 = vld [vmem:[#allocation52_spill] sm:$0xff] }
 0x5db   :  { %v11511_v1 = vadd.f32 %v5682_v50, %v5570_v51  ;;  %v5574_v45 = vadd.f32 %v5573_v46, %v11473_v54  ;;  %6259 = vmatprep.mubr.bf16.mxu1 %v12986_v33  ;;  %v12993_v50 = vld [vmem:[#allocation63_spill] sm:$0xff] }
 0x5dc   :  { %v5686_v44 = vpop.f32.mrf.mxu0  ;;  %6363 = vmatmul.mubr.bf16.gmra.mxu0 %v12985_v38  ;;  %v5575_v26 = vpop.f32.mrf.mxu1 }
 0x5dd   :  { %6372 = vmatprep.mubr.bf16.mxu0 %v12987_v0  ;;  %v11516_v25 = vadd.f32 %v5686_v44, %v5574_v45  ;;  %v5576_v29 = vadd.f32 %v5575_v26, %v11477_v47  ;;  %v12994_v44 = vld [vmem:[#allocation55_spill] sm:$0xff] }
 0x5de   :  { %v5688_v15 = vpop.f32.mrf.mxu0  ;;  %v5577_v7 = vpop.f32.mrf.mxu1 }
 0x5df   :  { %v11519_v39 = vadd.f32 %v5688_v15, %v5576_v29  ;;  %v5578_v58 = vadd.f32 %v5577_v7, %v11473_v54 }
 0x5e0   :  { %v5690_v43 = vpop.f32.mrf.mxu0  ;;  %v5579_v2 = vpop.f32.mrf.mxu1 }
 0x5e1   :  { %v11522_v10 = vadd.f32 %v5690_v43, %v5578_v58  ;;  %v5580_v18 = vadd.f32 %v5579_v2, %v11477_v47 }
 0x5e2   :  { %v5692_v32 = vpop.f32.mrf.mxu0  ;;  %v5583_v6 = vpop.f32.mrf.mxu1  ;;  %6260 = vmatmul.mubr.bf16.gmra.mxu1 %v12988_v22 }
 0x5e3   :  { %v11527_v21 = vadd.f32 %v5692_v32, %v5580_v18  ;;  %v5584_v24 = vadd.f32 %v5583_v6, %v11473_v54  ;;  %6269 = vmatprep.mubr.bf16.mxu1 %v12990_v61  ;;  %v12998_v61 = vld [vmem:[#allocation51_spill] sm:$0xff] }
 0x5e4   :  { %v5696_v5 = vpop.f32.mrf.mxu0  ;;  %6373 = vmatmul.mubr.bf16.gmra.mxu0 %v12989_v28  ;;  %v5585_v4 = vpop.f32.mrf.mxu1 }
 0x5e5   :  { %6382 = vmatprep.mubr.bf16.mxu0 %v12991_v35  ;;  %v11532_v27 = vadd.f32 %v5696_v5, %v5584_v24  ;;  %v5586_v42 = vadd.f32 %v5585_v4, %v11477_v47  ;;  %v12996_v5 = vld [vmem:[#allocation57_spill] sm:$0xff]  ;;  %v12997_v24 = vld [vmem:[#allocation64_spill] sm:$0xff] }
 0x5e6   :  { %v5698_v3 = vpop.f32.mrf.mxu0  ;;  %v5587_v49 = vpop.f32.mrf.mxu1 }
 0x5e7   :  { %v11535_v62 = vadd.f32 %v5698_v3, %v5586_v42  ;;  %v5588_v30 = vadd.f32 %v5587_v49, %v11473_v54 }
 0x5e8   :  { %v5700_v34 = vpop.f32.mrf.mxu0  ;;  %v5589_v53 = vpop.f32.mrf.mxu1 }
 0x5e9   :  { %v11538_v8 = vadd.f32 %v5700_v34, %v5588_v30  ;;  %v5590_v57 = vadd.f32 %v5589_v53, %v11477_v47 }
 0x5ea   :  { %v5702_v63 = vpop.f32.mrf.mxu0  ;;  %v5593_v37 = vpop.f32.mrf.mxu1  ;;  %6270 = vmatmul.mubr.bf16.gmra.mxu1 %v12992_v12 }
 0x5eb   :  { %v11543_v51 = vadd.f32 %v5702_v63, %v5590_v57  ;;  %v5594_v46 = vadd.f32 %v5593_v37, %v11473_v54  ;;  %6279 = vmatprep.mubr.bf16.mxu1 %v12994_v44 }
 0x5ec   :  { %v5706_v9 = vpop.f32.mrf.mxu0  ;;  %6383 = vmatmul.mubr.bf16.gmra.mxu0 %v12993_v50  ;;  %v5595_v38 = vpop.f32.mrf.mxu1 }
 0x5ed   :  { %6392 = vmatprep.mubr.bf16.mxu0 %v12995_v60  ;;  %v11548_v33 = vadd.f32 %v5706_v9, %v5594_v46  ;;  %v5596_v0 = vadd.f32 %v5595_v38, %v11477_v47 }
 0x5ee   :  { %v5708_v45 = vpop.f32.mrf.mxu0  ;;  %v5597_v26 = vpop.f32.mrf.mxu1 }
 0x5ef   :  { %v11551_v29 = vadd.f32 %v5708_v45, %v5596_v0  ;;  %v5598_v7 = vadd.f32 %v5597_v26, %v11473_v54 }
 0x5f0   :  { %v5710_v15 = vpop.f32.mrf.mxu0  ;;  %v5599_v43 = vpop.f32.mrf.mxu1 }
 0x5f1   :  { %v11554_v2 = vadd.f32 %v5710_v15, %v5598_v7  ;;  %v5600_v32 = vadd.f32 %v5599_v43, %v11477_v47 }
 0x5f2   :  { %v5712_v58 = vpop.f32.mrf.mxu0  ;;  %v5603_v18 = vpop.f32.mrf.mxu1  ;;  %6280 = vmatmul.mubr.bf16.gmra.mxu1 %v11369_v13 }
 0x5f3   :  { %v11559_v22 = vadd.f32 %v5712_v58, %v5600_v32  ;;  %v5604_v28 = vadd.f32 %v5603_v18, %v11473_v54  ;;  %6289 = vmatprep.mubr.bf16.mxu1 %v12997_v24 }
 0x5f4   :  { %v5716_v6 = vpop.f32.mrf.mxu0  ;;  %6393 = vmatmul.mubr.bf16.gmra.mxu0 %v12996_v5  ;;  %v5605_v35 = vpop.f32.mrf.mxu1 }
 0x5f5   :  { %6402 = vmatprep.mubr.bf16.mxu0 %v12998_v61  ;;  %v11564_v3 = vadd.f32 %v5716_v6, %v5604_v28  ;;  %v5606_v42 = vadd.f32 %v5605_v35, %v11477_v47 }
 0x5f6   :  { %v5718_v4 = vpop.f32.mrf.mxu0  ;;  %v5607_v49 = vpop.f32.mrf.mxu1 }
 0x5f7   :  { %v11567_v30 = vadd.f32 %v5718_v4, %v5606_v42  ;;  %v5608_v13 = vadd.f32 %v5607_v49, %v11473_v54 }
 0x5f8   :  { %v5720_v34 = vpop.f32.mrf.mxu0  ;;  %v5609_v53 = vpop.f32.mrf.mxu1 }
 0x5f9   :  { %v11570_v57 = vadd.f32 %v5720_v34, %v5608_v13  ;;  %v5610_v37 = vadd.f32 %v5609_v53, %v11477_v47 }
 0x5fa   :  { %v5722_v63 = vpop.f32.mrf.mxu0  ;;  %v5613_v9 = vpop.f32.mrf.mxu1  ;;  %6290 = vmatmul.mubr.bf16.gmra.mxu1 %v11397_v14 }
 0x5fb   :  { %v11575_v50 = vadd.f32 %v5722_v63, %v5610_v37  ;;  %v5614_v46 = vadd.f32 %v5613_v9, %v11473_v54  ;;  %6299 = vmatprep.mubr.bf16.mxu1 %v11409_v16 }
 0x5fc   :  { %v5726_v12 = vpop.f32.mrf.mxu0  ;;  %6403 = vmatmul.mubr.bf16.gmra.mxu0 %v11403_v59  ;;  %v5615_v44 = vpop.f32.mrf.mxu1 }
 0x5fd   :  { %6412 = vmatprep.mubr.bf16.mxu0 %v11415_v40  ;;  %v11580_v38 = vadd.f32 %v5726_v12, %v5614_v46  ;;  %v5616_v45 = vadd.f32 %v5615_v44, %v11477_v47 }
 0x5fe   :  { %v5728_v60 = vpop.f32.mrf.mxu0  ;;  %v5617_v0 = vpop.f32.mrf.mxu1 }
 0x5ff   :  { %v11583_v15 = vadd.f32 %v5728_v60, %v5616_v45  ;;  %v5618_v14 = vadd.f32 %v5617_v0, %v11473_v54 }
 0x600   :  { %v5730_v26 = vpop.f32.mrf.mxu0  ;;  %v5619_v59 = vpop.f32.mrf.mxu1 }
 0x601   :  { %v11586_v43 = vadd.f32 %v5730_v26, %v5618_v14  ;;  %v5620_v16 = vadd.f32 %v5619_v59, %v11477_v47 }
 0x602   :  { %v5732_v7 = vpop.f32.mrf.mxu0  ;;  %v5623_v58 = vpop.f32.mrf.mxu1  ;;  %6300 = vmatmul.mubr.bf16.gmra.mxu1 %v11425_v23 }
 0x603   :  { %v11591_v32 = vadd.f32 %v5732_v7, %v5620_v16  ;;  %v5624_v18 = vadd.f32 %v5623_v58, %v11473_v54 }
 0x604   :  { %v5736_v40 = vpop.f32.mrf.mxu0  ;;  %6413 = vmatmul.mubr.bf16.gmra.mxu0 %v11431_v52  ;;  %v5625_v6 = vpop.f32.mrf.mxu1 }
 0x605   :  { %v11594_v28 = vadd.f32 %v5736_v40, %v5624_v18  ;;  %v5626_v24 = vadd.f32 %v5625_v6, %v11477_v47 }
 0x606   :  { %v5738_v5 = vpop.f32.mrf.mxu0  ;;  %v5627_v61 = vpop.f32.mrf.mxu1 }
 0x607   :  { %v11597_v4 = vadd.f32 %v5738_v5, %v5626_v24  ;;  %v5628_v42 = vadd.f32 %v5627_v61, %v11473_v54 }
 0x608   :  { %v5740_v35 = vpop.f32.mrf.mxu0  ;;  %v5629_v49 = vpop.f32.mrf.mxu1 }
 0x609   :  { %v11600_v34 = vadd.f32 %v5740_v35, %v5628_v42  ;;  %v5630_v52 = vadd.f32 %v5629_v49, %v11477_v47 }
 0x60a   :  { %v5742_v23 = vpop.f32.mrf.mxu0  ;;  %v5779_v13 = vpop.f32.mrf.mxu1 }
 0x60b   :  { %v11603_v63 = vadd.f32 %v5742_v23, %v5630_v52  ;;  %v5780_v37 = vadd.f32 %v5779_v13, %v11484_v36 }
 0x60c   :  { %v5892_v53 = vpop.f32.mrf.mxu0  ;;  %v5781_v9 = vpop.f32.mrf.mxu1 }
 0x60d   :  { %v11606_v46 = vadd.f32 %v5892_v53, %v5780_v37  ;;  %v5782_v44 = vadd.f32 %v5781_v9, %v11487_v17 }
 0x60e   :  { %v5894_v12 = vpop.f32.mrf.mxu0  ;;  %v5783_v60 = vpop.f32.mrf.mxu1 }
 0x60f   :  { %v11610_v0 = vadd.f32 %v5894_v12, %v5782_v44  ;;  %v5784_v47 = vadd.f32 %v5783_v60, %v11490_v11 }
 0x610   :  { %v5896_v54 = vpop.f32.mrf.mxu0  ;;  %v5785_v26 = vpop.f32.mrf.mxu1 }
 0x611   :  { %v11614_v7 = vadd.f32 %v5896_v54, %v5784_v47  ;;  %v5786_v36 = vadd.f32 %v5785_v26, %v11495_v56 }
 0x612   :  { %v5898_v14 = vpop.f32.mrf.mxu0  ;;  %v5789_v16 = vpop.f32.mrf.mxu1 }
 0x613   :  { %v11618_v40 = vadd.f32 %v5898_v14, %v5786_v36  ;;  %v5790_v18 = vadd.f32 %v5789_v16, %v11500_v48 }
 0x614   :  { %v5902_v58 = vpop.f32.mrf.mxu0  ;;  %v5791_v6 = vpop.f32.mrf.mxu1 }
 0x615   :  { %v11622_v24 = vadd.f32 %v5902_v58, %v5790_v18  ;;  %v5792_v61 = vadd.f32 %v5791_v6, %v11503_v31 }
 0x616   :  { %v5904_v5 = vpop.f32.mrf.mxu0  ;;  %v5793_v35 = vpop.f32.mrf.mxu1 }
 0x617   :  { %v11626_v49 = vadd.f32 %v5904_v5, %v5792_v61  ;;  %v5794_v23 = vadd.f32 %v5793_v35, %v11506_v19 }
 0x618   :  { %v5906_v42 = vpop.f32.mrf.mxu0  ;;  %v5795_v52 = vpop.f32.mrf.mxu1 }
 0x619   :  { %v11630_v53 = vadd.f32 %v5906_v42, %v5794_v23  ;;  %v5796_v37 = vadd.f32 %v5795_v52, %v11511_v1 }
 0x61a   :  { %v5908_v13 = vpop.f32.mrf.mxu0  ;;  %v5799_v9 = vpop.f32.mrf.mxu1 }
 0x61b   :  { %v11634_v44 = vadd.f32 %v5908_v13, %v5796_v37  ;;  %v5800_v60 = vadd.f32 %v5799_v9, %v11516_v25 }
 0x61c   :  { %v5912_v12 = vpop.f32.mrf.mxu0  ;;  %v5801_v54 = vpop.f32.mrf.mxu1 }
 0x61d   :  { %v11638_v26 = vadd.f32 %v5912_v12, %v5800_v60  ;;  %v5802_v14 = vadd.f32 %v5801_v54, %v11519_v39 }
 0x61e   :  { %v5914_v47 = vpop.f32.mrf.mxu0  ;;  %v5803_v36 = vpop.f32.mrf.mxu1 }
 0x61f   :  { %v11642_v58 = vadd.f32 %v5914_v47, %v5802_v14  ;;  %v5804_v18 = vadd.f32 %v5803_v36, %v11522_v10 }
 0x620   :  { %v5916_v16 = vpop.f32.mrf.mxu0  ;;  %v5805_v6 = vpop.f32.mrf.mxu1 }
 0x621   :  { %v11646_v61 = vadd.f32 %v5916_v16, %v5804_v18  ;;  %v5806_v35 = vadd.f32 %v5805_v6, %v11527_v21 }
 0x622   :  { %v5918_v5 = vpop.f32.mrf.mxu0  ;;  %v5809_v42 = vpop.f32.mrf.mxu1 }
 0x623   :  { %v11650_v52 = vadd.f32 %v5918_v5, %v5806_v35  ;;  %v5810_v13 = vadd.f32 %v5809_v42, %v11532_v27 }
 0x624   :  { %v5922_v23 = vpop.f32.mrf.mxu0  ;;  %v5811_v37 = vpop.f32.mrf.mxu1 }
 0x625   :  { %v11654_v12 = vadd.f32 %v5922_v23, %v5810_v13  ;;  %v5812_v60 = vadd.f32 %v5811_v37, %v11535_v62 }
 0x626   :  { %v5924_v9 = vpop.f32.mrf.mxu0  ;;  %v5813_v54 = vpop.f32.mrf.mxu1 }
 0x627   :  { %12999 = vst [vmem:[#allocation48_spill] sm:$0xff] %v11654_v12  ;;  %v11658_v14 = vadd.f32 %v5924_v9, %v5812_v60  ;;  %v5814_v36 = vadd.f32 %v5813_v54, %v11538_v8 }
 0x628   :  { %v5926_v47 = vpop.f32.mrf.mxu0  ;;  %v5815_v16 = vpop.f32.mrf.mxu1 }
 0x629   :  { %13000 = vst [vmem:[#allocation60_spill] sm:$0xff] %v11658_v14  ;;  %v11662_v6 = vadd.f32 %v5926_v47, %v5814_v36  ;;  %v5816_v5 = vadd.f32 %v5815_v16, %v11543_v51 }
 0x62a   :  { %v5928_v18 = vpop.f32.mrf.mxu0  ;;  %v5819_v35 = vpop.f32.mrf.mxu1 }
 0x62b   :  { %13001 = vst [vmem:[#allocation61_spill] sm:$0xff] %v11662_v6  ;;  %v11666_v23 = vadd.f32 %v5928_v18, %v5816_v5  ;;  %v5820_v13 = vadd.f32 %v5819_v35, %v11548_v33 }
 0x62c   :  { %v5932_v42 = vpop.f32.mrf.mxu0  ;;  %v5821_v37 = vpop.f32.mrf.mxu1 }
 0x62d   :  { %13002 = vst [vmem:[#allocation39_spill] sm:$0xff] %v11666_v23  ;;  %v11670_v60 = vadd.f32 %v5932_v42, %v5820_v13  ;;  %v5822_v54 = vadd.f32 %v5821_v37, %v11551_v29 }
 0x62e   :  { %v5934_v9 = vpop.f32.mrf.mxu0  ;;  %v5823_v47 = vpop.f32.mrf.mxu1 }
 0x62f   :  { %13003 = vst [vmem:[#allocation67_spill] sm:$0xff] %v11670_v60  ;;  %v11674_v16 = vadd.f32 %v5934_v9, %v5822_v54  ;;  %v5824_v62 = vadd.f32 %v5823_v47, %v11554_v2 }
 0x630   :  { %v5936_v36 = vpop.f32.mrf.mxu0  ;;  %v5825_v18 = vpop.f32.mrf.mxu1 }
 0x631   :  { %13004 = vst [vmem:[#allocation65_spill] sm:$0xff] %v11674_v16  ;;  %v11678_v35 = vadd.f32 %v5936_v36, %v5824_v62  ;;  %v5826_v21 = vadd.f32 %v5825_v18, %v11559_v22 }
 0x632   :  { %v5938_v5 = vpop.f32.mrf.mxu0  ;;  %v5829_v42 = vpop.f32.mrf.mxu1 }
 0x633   :  { %13005 = vst [vmem:[#allocation66_spill] sm:$0xff] %v11678_v35  ;;  %v11682_v37 = vadd.f32 %v5938_v5, %v5826_v21  ;;  %v5830_v51 = vadd.f32 %v5829_v42, %v11564_v3 }
 0x634   :  { %v5942_v13 = vpop.f32.mrf.mxu0  ;;  %v5831_v9 = vpop.f32.mrf.mxu1 }
 0x635   :  { %13006 = vst [vmem:[#allocation96_spill] sm:$0xff] %v11682_v37  ;;  %v11686_v47 = vadd.f32 %v5942_v13, %v5830_v51  ;;  %v5832_v33 = vadd.f32 %v5831_v9, %v11567_v30 }
 0x636   :  { %v5944_v54 = vpop.f32.mrf.mxu0  ;;  %v5833_v62 = vpop.f32.mrf.mxu1 }
 0x637   :  { %13007 = vst [vmem:[#allocation69_spill] sm:$0xff] %v11686_v47  ;;  %v11690_v18 = vadd.f32 %v5944_v54, %v5832_v33  ;;  %v5834_v29 = vadd.f32 %v5833_v62, %v11570_v57 }
 0x638   :  { %v5946_v36 = vpop.f32.mrf.mxu0  ;;  %v5835_v21 = vpop.f32.mrf.mxu1 }
 0x639   :  { %13008 = vst [vmem:[#allocation71_spill] sm:$0xff] %v11690_v18  ;;  %v11694_v42 = vadd.f32 %v5946_v36, %v5834_v29  ;;  %v5836_v2 = vadd.f32 %v5835_v21, %v11575_v50 }
 0x63a   :  { %v5948_v5 = vpop.f32.mrf.mxu0  ;;  %v5839_v51 = vpop.f32.mrf.mxu1 }
 0x63b   :  { %13009 = vst [vmem:[#allocation98_spill] sm:$0xff] %v11694_v42  ;;  %v11698_v9 = vadd.f32 %v5948_v5, %v5836_v2  ;;  %v5840_v22 = vadd.f32 %v5839_v51, %v11580_v38 }
 0x63c   :  { %v5952_v13 = vpop.f32.mrf.mxu0  ;;  %v5841_v33 = vpop.f32.mrf.mxu1 }
 0x63d   :  { %13010 = vst [vmem:[#allocation100_spill] sm:$0xff] %v11698_v9  ;;  %v11702_v62 = vadd.f32 %v5952_v13, %v5840_v22  ;;  %v5842_v3 = vadd.f32 %v5841_v33, %v11583_v15 }
 0x63e   :  { %v5954_v54 = vpop.f32.mrf.mxu0  ;;  %v5843_v29 = vpop.f32.mrf.mxu1 }
 0x63f   :  { %13011 = vst [vmem:[#allocation68_spill] sm:$0xff] %v11702_v62  ;;  %v11706_v21 = vadd.f32 %v5954_v54, %v5842_v3  ;;  %v5844_v30 = vadd.f32 %v5843_v29, %v11586_v43 }
 0x640   :  { %v5956_v36 = vpop.f32.mrf.mxu0  ;;  %v5845_v2 = vpop.f32.mrf.mxu1 }
 0x641   :  { %13012 = vst [vmem:[#allocation70_spill] sm:$0xff] %v11706_v21  ;;  %v11710_v51 = vadd.f32 %v5956_v36, %v5844_v30  ;;  %v5846_v57 = vadd.f32 %v5845_v2, %v11591_v32 }
 0x642   :  { %v5958_v5 = vpop.f32.mrf.mxu0  ;;  %v5849_v22 = vpop.f32.mrf.mxu1 }
 0x643   :  { %13013 = vst [vmem:[#allocation97_spill] sm:$0xff] %v11710_v51  ;;  %v11714_v33 = vadd.f32 %v5958_v5, %v5846_v57  ;;  %v5850_v50 = vadd.f32 %v5849_v22, %v11594_v28  ;;  %v13017_v57 = vld [vmem:[#allocation42_spill] sm:$0xff] }
 0x644   :  { %v5962_v13 = vpop.f32.mrf.mxu0  ;;  %v5851_v3 = vpop.f32.mrf.mxu1  ;;  %v11727_v5 = vrot.slane %v11467_v55, %v13017_v57 }
 0x645   :  { %13014 = vst [vmem:[#allocation99_spill] sm:$0xff] %v11714_v33  ;;  %v11718_v29 = vadd.f32 %v5962_v13, %v5850_v50  ;;  %v5852_v38 = vadd.f32 %v5851_v3, %v11597_v4  ;;  %v13019_v13 = vld [vmem:[#allocation43_spill] sm:$0xff] }
 0x646   :  { %v5964_v54 = vpop.f32.mrf.mxu0  ;;  %v5853_v30 = vpop.f32.mrf.mxu1  ;;  %v11735_v3 = vrot.slane %v11467_v55, %v13019_v13 }
 0x647   :  { %13015 = vst [vmem:[#allocation73_spill] sm:$0xff] %v11718_v29  ;;  %v11722_v2 = vadd.f32 %v5964_v54, %v5852_v38  ;;  %v5854_v15 = vadd.f32 %v5853_v30, %v11600_v34 }
 0x648   :  { %v5966_v36 = vpop.f32.mrf.mxu0  ;;  %v5855_v28 = vpop.f32.mrf.mxu1 }
 0x649   :  { %13016 = vst [vmem:[#allocation75_spill] sm:$0xff] %v11722_v2  ;;  %v11730_v50 = vadd.f32 %v5966_v36, %v5854_v15  ;;  %v5856_v4 = vadd.f32 %v5855_v28, %v11603_v63 }
 0x64a   :  { %v5968_v22 = vpop.f32.mrf.mxu0  ;;  %v6005_v38 = vpop.f32.mrf.mxu1 }
 0x64b   :  { %13018 = vst [vmem:[#allocation102_spill] sm:$0xff] %v11730_v50  ;;  %v11738_v30 = vadd.f32 %v5968_v22, %v5856_v4  ;;  %v6006_v57 = vadd.f32 %v6005_v38, %v11727_v5 }
 0x64c   :  { %v6118_v54 = vpop.f32.mrf.mxu0  ;;  %v6007_v32 = vpop.f32.mrf.mxu1 }
 0x64d   :  { %13020 = vst [vmem:[#allocation104_spill] sm:$0xff] %v11738_v30  ;;  %v11742_v15 = vadd.f32 %v6118_v54, %v6006_v57  ;;  %v6008_v63 = vadd.f32 %v6007_v32, %v11735_v3 }
 0x64e   :  { %v6120_v8 = vpop.f32.mrf.mxu0  ;;  %v6009_v36 = vpop.f32.mrf.mxu1 }
 0x64f   :  { %v11745_v55 = vadd.f32 %v6120_v8, %v6008_v63  ;;  %v6010_v13 = vadd.f32 %v6009_v36, %v11727_v5 }
 0x650   :  { %v6122_v28 = vpop.f32.mrf.mxu0  ;;  %v6011_v27 = vpop.f32.mrf.mxu1 }
 0x651   :  { %v11748_v22 = vadd.f32 %v6122_v28, %v6010_v13  ;;  %v6012_v4 = vadd.f32 %v6011_v27, %v11735_v3 }
 0x652   :  { %v6124_v34 = vpop.f32.mrf.mxu0  ;;  %v6015_v38 = vpop.f32.mrf.mxu1 }
 0x653   :  { %v11751_v1 = vadd.f32 %v6124_v34, %v6012_v4  ;;  %v6016_v54 = vadd.f32 %v6015_v38, %v11727_v5 }
 0x654   :  { %v6128_v39 = vpop.f32.mrf.mxu0  ;;  %v6017_v57 = vpop.f32.mrf.mxu1 }
 0x655   :  { %v11754_v43 = vadd.f32 %v6128_v39, %v6016_v54  ;;  %v6018_v8 = vadd.f32 %v6017_v57, %v11735_v3 }
 0x656   :  { %v6130_v32 = vpop.f32.mrf.mxu0  ;;  %v6019_v63 = vpop.f32.mrf.mxu1 }
 0x657   :  { %v11757_v10 = vadd.f32 %v6130_v32, %v6018_v8  ;;  %v6020_v28 = vadd.f32 %v6019_v63, %v11727_v5 }
 0x658   :  { %v6132_v36 = vpop.f32.mrf.mxu0  ;;  %v6021_v13 = vpop.f32.mrf.mxu1 }
 0x659   :  { %v11760_v25 = vadd.f32 %v6132_v36, %v6020_v28  ;;  %v6022_v34 = vadd.f32 %v6021_v13, %v11735_v3 }
 0x65a   :  { %v6134_v27 = vpop.f32.mrf.mxu0  ;;  %v6025_v4 = vpop.f32.mrf.mxu1 }
 0x65b   :  { %v11763_v31 = vadd.f32 %v6134_v27, %v6022_v34  ;;  %v6026_v39 = vadd.f32 %v6025_v4, %v11727_v5 }
 0x65c   :  { %v6138_v38 = vpop.f32.mrf.mxu0  ;;  %v6027_v54 = vpop.f32.mrf.mxu1 }
 0x65d   :  { %v11766_v56 = vadd.f32 %v6138_v38, %v6026_v39  ;;  %v6028_v32 = vadd.f32 %v6027_v54, %v11735_v3 }
 0x65e   :  { %v6140_v57 = vpop.f32.mrf.mxu0  ;;  %v6029_v8 = vpop.f32.mrf.mxu1 }
 0x65f   :  { %v11769_v19 = vadd.f32 %v6140_v57, %v6028_v32  ;;  %v6030_v36 = vadd.f32 %v6029_v8, %v11727_v5 }
 0x660   :  { %v6142_v63 = vpop.f32.mrf.mxu0  ;;  %v6031_v28 = vpop.f32.mrf.mxu1 }
 0x661   :  { %v11772_v48 = vadd.f32 %v6142_v63, %v6030_v36  ;;  %v6032_v27 = vadd.f32 %v6031_v28, %v11735_v3 }
 0x662   :  { %v6144_v13 = vpop.f32.mrf.mxu0  ;;  %v6035_v34 = vpop.f32.mrf.mxu1 }
 0x663   :  { %v11775_v17 = vadd.f32 %v6144_v13, %v6032_v27  ;;  %v6036_v38 = vadd.f32 %v6035_v34, %v11727_v5 }
 0x664   :  { %v6148_v4 = vpop.f32.mrf.mxu0  ;;  %v6037_v39 = vpop.f32.mrf.mxu1 }
 0x665   :  { %v11778_v45 = vadd.f32 %v6148_v4, %v6036_v38  ;;  %v6038_v57 = vadd.f32 %v6037_v39, %v11735_v3 }
 0x666   :  { %v6150_v54 = vpop.f32.mrf.mxu0  ;;  %v6039_v32 = vpop.f32.mrf.mxu1 }
 0x667   :  { %v11781_v11 = vadd.f32 %v6150_v54, %v6038_v57  ;;  %v6040_v63 = vadd.f32 %v6039_v32, %v11727_v5 }
 0x668   :  { %v6152_v8 = vpop.f32.mrf.mxu0  ;;  %v6041_v36 = vpop.f32.mrf.mxu1 }
 0x669   :  { %v11784_v59 = vadd.f32 %v6152_v8, %v6040_v63  ;;  %v6042_v13 = vadd.f32 %v6041_v36, %v11735_v3 }
 0x66a   :  { %v6154_v28 = vpop.f32.mrf.mxu0  ;;  %v6045_v27 = vpop.f32.mrf.mxu1 }
 0x66b   :  { %v11787_v20 = vadd.f32 %v6154_v28, %v6042_v13  ;;  %v6046_v4 = vadd.f32 %v6045_v27, %v11727_v5 }
 0x66c   :  { %v6158_v34 = vpop.f32.mrf.mxu0  ;;  %v6047_v38 = vpop.f32.mrf.mxu1 }
 0x66d   :  { %v11790_v41 = vadd.f32 %v6158_v34, %v6046_v4  ;;  %v6048_v54 = vadd.f32 %v6047_v38, %v11735_v3 }
 0x66e   :  { %v6160_v39 = vpop.f32.mrf.mxu0  ;;  %v6049_v57 = vpop.f32.mrf.mxu1 }
 0x66f   :  { %v11793_v50 = vadd.f32 %v6160_v39, %v6048_v54  ;;  %v6050_v8 = vadd.f32 %v6049_v57, %v11727_v5 }
 0x670   :  { %v6162_v32 = vpop.f32.mrf.mxu0  ;;  %v6051_v63 = vpop.f32.mrf.mxu1 }
 0x671   :  { %v11796_v29 = vadd.f32 %v6162_v32, %v6050_v8  ;;  %v6052_v28 = vadd.f32 %v6051_v63, %v11735_v3 }
 0x672   :  { %v6164_v36 = vpop.f32.mrf.mxu0  ;;  %v6055_v13 = vpop.f32.mrf.mxu1 }
 0x673   :  { %v11799_v30 = vadd.f32 %v6164_v36, %v6052_v28  ;;  %v6056_v34 = vadd.f32 %v6055_v13, %v11727_v5 }
 0x674   :  { %v6168_v27 = vpop.f32.mrf.mxu0  ;;  %v6057_v4 = vpop.f32.mrf.mxu1 }
 0x675   :  { %v11802_v2 = vadd.f32 %v6168_v27, %v6056_v34  ;;  %v6058_v39 = vadd.f32 %v6057_v4, %v11735_v3 }
 0x676   :  { %v6170_v38 = vpop.f32.mrf.mxu0  ;;  %v6059_v54 = vpop.f32.mrf.mxu1 }
 0x677   :  { %v11805_v51 = vadd.f32 %v6170_v38, %v6058_v39  ;;  %v6060_v32 = vadd.f32 %v6059_v54, %v11727_v5 }
 0x678   :  { %v6172_v57 = vpop.f32.mrf.mxu0  ;;  %v6061_v8 = vpop.f32.mrf.mxu1 }
 0x679   :  { %v11808_v62 = vadd.f32 %v6172_v57, %v6060_v32  ;;  %v6062_v36 = vadd.f32 %v6061_v8, %v11735_v3 }
 0x67a   :  { %v6174_v63 = vpop.f32.mrf.mxu0  ;;  %v6065_v28 = vpop.f32.mrf.mxu1 }
 0x67b   :  { %v11811_v33 = vadd.f32 %v6174_v63, %v6062_v36  ;;  %v6066_v27 = vadd.f32 %v6065_v28, %v11727_v5 }
 0x67c   :  { %v6178_v13 = vpop.f32.mrf.mxu0  ;;  %v6067_v34 = vpop.f32.mrf.mxu1 }
 0x67d   :  { %v11814_v21 = vadd.f32 %v6178_v13, %v6066_v27  ;;  %v6068_v38 = vadd.f32 %v6067_v34, %v11735_v3 }
 0x67e   :  { %v6180_v4 = vpop.f32.mrf.mxu0  ;;  %v6069_v39 = vpop.f32.mrf.mxu1 }
 0x67f   :  { %v11817_v42 = vadd.f32 %v6180_v4, %v6068_v38  ;;  %v6070_v57 = vadd.f32 %v6069_v39, %v11727_v5 }
 0x680   :  { %v6182_v54 = vpop.f32.mrf.mxu0  ;;  %v6071_v32 = vpop.f32.mrf.mxu1 }
 0x681   :  { %v11820_v47 = vadd.f32 %v6182_v54, %v6070_v57  ;;  %v6072_v63 = vadd.f32 %v6071_v32, %v11735_v3 }
 0x682   :  { %v6184_v8 = vpop.f32.mrf.mxu0  ;;  %v6075_v36 = vpop.f32.mrf.mxu1 }
 0x683   :  { %v11823_v9 = vadd.f32 %v6184_v8, %v6072_v63  ;;  %v6076_v13 = vadd.f32 %v6075_v36, %v11727_v5 }
 0x684   :  { %v6188_v28 = vpop.f32.mrf.mxu0  ;;  %v6077_v27 = vpop.f32.mrf.mxu1 }
 0x685   :  { %v11826_v18 = vadd.f32 %v6188_v28, %v6076_v13  ;;  %v6078_v4 = vadd.f32 %v6077_v27, %v11735_v3 }
 0x686   :  { %v6190_v34 = vpop.f32.mrf.mxu0  ;;  %v11829_v38 = vpop.f32.mrf.mxu1 }
 0x687   :  { %v11833_v54 = vadd.f32 %v6190_v34, %v6078_v4 }
 0x688   :  { %v11831_v39 = vpop.f32.mrf.mxu0  ;;  %v11835_v57 = vpop.f32.mrf.mxu1 }
 0x68a   :  { %v11837_v32 = vpop.f32.mrf.mxu0  ;;  %v6231_v8 = vpop.f32.mrf.mxu1 }
 0x68b   :  { %v6232_v36 = vadd.f32 %v6231_v8, %v11742_v15 }
 0x68c   :  { %v6344_v63 = vpop.f32.mrf.mxu0  ;;  %v6233_v35 = vpop.f32.mrf.mxu1 }
 0x68d   :  { %v11840_v28 = vadd.f32 %v6344_v63, %v6232_v36  ;;  %v6234_v13 = vadd.f32 %v6233_v35, %v11745_v55 }
 0x68e   :  { %v6346_v60 = vpop.f32.mrf.mxu0  ;;  %v6235_v27 = vpop.f32.mrf.mxu1 }
 0x68f   :  { %v11844_v34 = vadd.f32 %v6346_v60, %v6234_v13  ;;  %v6236_v4 = vadd.f32 %v6235_v27, %v11748_v22 }
 0x690   :  { %v6348_v37 = vpop.f32.mrf.mxu0  ;;  %v6237_v6 = vpop.f32.mrf.mxu1 }
 0x691   :  { %v6426_v23 = vmax.f32 %v11844_v34, 0.0  ;;  %v11848_v14 = vadd.f32 %v6348_v37, %v6236_v4  ;;  %v6238_v15 = vadd.f32 %v6237_v6, %v11751_v1 }
 0x692   :  { %v6350_v12 = vpop.f32.mrf.mxu0  ;;  %v6241_v8 = vpop.f32.mrf.mxu1 }
 0x693   :  { %v11852_v55 = vadd.f32 %v6350_v12, %v6238_v15  ;;  %v6242_v36 = vadd.f32 %v6241_v8, %v11754_v43 }
 0x694   :  { %v6354_v63 = vpop.f32.mrf.mxu0  ;;  %v6243_v60 = vpop.f32.mrf.mxu1 }
 0x695   :  { %v11856_v27 = vadd.f32 %v6354_v63, %v6242_v36  ;;  %v6244_v16 = vadd.f32 %v6243_v60, %v11757_v10 }
 0x696   :  { %v6356_v13 = vpop.f32.mrf.mxu0  ;;  %v6245_v37 = vpop.f32.mrf.mxu1 }
 0x697   :  { %v11860_v6 = vadd.f32 %v6356_v13, %v6244_v16  ;;  %v6246_v35 = vadd.f32 %v6245_v37, %v11760_v25 }
 0x698   :  { %v6358_v4 = vpop.f32.mrf.mxu0  ;;  %v6247_v12 = vpop.f32.mrf.mxu1 }
 0x699   :  { %v11864_v8 = vadd.f32 %v6358_v4, %v6246_v35  ;;  %v6248_v22 = vadd.f32 %v6247_v12, %v11763_v31 }
 0x69a   :  { %v6360_v15 = vpop.f32.mrf.mxu0  ;;  %v6251_v63 = vpop.f32.mrf.mxu1 }
 0x69b   :  { %v11868_v60 = vadd.f32 %v6360_v15, %v6248_v22  ;;  %v6252_v1 = vadd.f32 %v6251_v63, %v11766_v56 }
 0x69c   :  { %v6364_v36 = vpop.f32.mrf.mxu0  ;;  %v6253_v16 = vpop.f32.mrf.mxu1 }
 0x69d   :  { %v11872_v37 = vadd.f32 %v6364_v36, %v6252_v1  ;;  %v6254_v43 = vadd.f32 %v6253_v16, %v11769_v19 }
 0x69e   :  { %v6366_v13 = vpop.f32.mrf.mxu0  ;;  %v6255_v35 = vpop.f32.mrf.mxu1 }
 0x69f   :  { %v11876_v12 = vadd.f32 %v6366_v13, %v6254_v43  ;;  %v6256_v10 = vadd.f32 %v6255_v35, %v11772_v48 }
 0x6a0   :  { %v6368_v4 = vpop.f32.mrf.mxu0  ;;  %v6257_v22 = vpop.f32.mrf.mxu1 }
 0x6a1   :  { %v11880_v63 = vadd.f32 %v6368_v4, %v6256_v10  ;;  %v6258_v25 = vadd.f32 %v6257_v22, %v11775_v17 }
 0x6a2   :  { %v6370_v15 = vpop.f32.mrf.mxu0  ;;  %v6261_v1 = vpop.f32.mrf.mxu1 }
 0x6a3   :  { %v11884_v16 = vadd.f32 %v6370_v15, %v6258_v25  ;;  %v6262_v31 = vadd.f32 %v6261_v1, %v11778_v45 }
 0x6a4   :  { %v6374_v36 = vpop.f32.mrf.mxu0  ;;  %v6263_v43 = vpop.f32.mrf.mxu1 }
 0x6a5   :  { %v11888_v35 = vadd.f32 %v6374_v36, %v6262_v31  ;;  %v6264_v56 = vadd.f32 %v6263_v43, %v11781_v11 }
 0x6a6   :  { %v6376_v13 = vpop.f32.mrf.mxu0  ;;  %v6265_v10 = vpop.f32.mrf.mxu1 }
 0x6a7   :  { %v11892_v22 = vadd.f32 %v6376_v13, %v6264_v56  ;;  %v6266_v19 = vadd.f32 %v6265_v10, %v11784_v59 }
 0x6a8   :  { %v6378_v4 = vpop.f32.mrf.mxu0  ;;  %v6267_v25 = vpop.f32.mrf.mxu1 }
 0x6a9   :  { %v11896_v1 = vadd.f32 %v6378_v4, %v6266_v19  ;;  %v6268_v48 = vadd.f32 %v6267_v25, %v11787_v20 }
 0x6aa   :  { %v6380_v15 = vpop.f32.mrf.mxu0  ;;  %v6271_v31 = vpop.f32.mrf.mxu1 }
 0x6ab   :  { %v11900_v43 = vadd.f32 %v6380_v15, %v6268_v48  ;;  %v6272_v17 = vadd.f32 %v6271_v31, %v11790_v41 }
 0x6ac   :  { %v6384_v36 = vpop.f32.mrf.mxu0  ;;  %v6273_v56 = vpop.f32.mrf.mxu1 }
 0x6ad   :  { %v11904_v10 = vadd.f32 %v6384_v36, %v6272_v17  ;;  %v6274_v45 = vadd.f32 %v6273_v56, %v11793_v50 }
 0x6ae   :  { %v6386_v13 = vpop.f32.mrf.mxu0  ;;  %v6275_v19 = vpop.f32.mrf.mxu1 }
 0x6af   :  { %v11908_v25 = vadd.f32 %v6386_v13, %v6274_v45  ;;  %v6276_v11 = vadd.f32 %v6275_v19, %v11796_v29 }
 0x6b0   :  { %v6388_v4 = vpop.f32.mrf.mxu0  ;;  %v6277_v48 = vpop.f32.mrf.mxu1 }
 0x6b1   :  { %v11912_v31 = vadd.f32 %v6388_v4, %v6276_v11  ;;  %v6278_v59 = vadd.f32 %v6277_v48, %v11799_v30 }
 0x6b2   :  { %v6390_v15 = vpop.f32.mrf.mxu0  ;;  %v6281_v17 = vpop.f32.mrf.mxu1 }
 0x6b3   :  { %v11916_v56 = vadd.f32 %v6390_v15, %v6278_v59  ;;  %v6282_v20 = vadd.f32 %v6281_v17, %v11802_v2 }
 0x6b4   :  { %v6394_v36 = vpop.f32.mrf.mxu0  ;;  %v6283_v45 = vpop.f32.mrf.mxu1 }
 0x6b5   :  { %v11920_v19 = vadd.f32 %v6394_v36, %v6282_v20  ;;  %v6284_v41 = vadd.f32 %v6283_v45, %v11805_v51 }
 0x6b6   :  { %v6396_v13 = vpop.f32.mrf.mxu0  ;;  %v6285_v11 = vpop.f32.mrf.mxu1 }
 0x6b7   :  { %v11924_v48 = vadd.f32 %v6396_v13, %v6284_v41  ;;  %v6286_v50 = vadd.f32 %v6285_v11, %v11808_v62 }
 0x6b8   :  { %v6398_v4 = vpop.f32.mrf.mxu0  ;;  %v6287_v59 = vpop.f32.mrf.mxu1 }
 0x6b9   :  { %v11928_v17 = vadd.f32 %v6398_v4, %v6286_v50  ;;  %v6288_v29 = vadd.f32 %v6287_v59, %v11811_v33 }
 0x6ba   :  { %v6400_v15 = vpop.f32.mrf.mxu0  ;;  %v6291_v20 = vpop.f32.mrf.mxu1 }
 0x6bb   :  { %v11932_v45 = vadd.f32 %v6400_v15, %v6288_v29  ;;  %v6292_v30 = vadd.f32 %v6291_v20, %v11814_v21  ;;  %v6080_v21 = vadd.f32 %v11829_v38, %v11727_v5 }
 0x6bc   :  { %v6404_v36 = vpop.f32.mrf.mxu0  ;;  %v6293_v41 = vpop.f32.mrf.mxu1 }
 0x6bd   :  { %v11936_v11 = vadd.f32 %v6404_v36, %v6292_v30  ;;  %v6294_v2 = vadd.f32 %v6293_v41, %v11817_v42  ;;  %v6082_v41 = vadd.f32 %v11835_v57, %v11735_v3  ;;  %v6193_v5 = vadd.f32 %v11831_v39, %v6080_v21 }
 0x6be   :  { %v6406_v13 = vpop.f32.mrf.mxu0  ;;  %v6295_v50 = vpop.f32.mrf.mxu1 }
 0x6bf   :  { %v11940_v59 = vadd.f32 %v6406_v13, %v6294_v2  ;;  %v6296_v51 = vadd.f32 %v6295_v50, %v11820_v47  ;;  %v6195_v3 = vadd.f32 %v11837_v32, %v6082_v41 }
 0x6c0   :  { %v6408_v4 = vpop.f32.mrf.mxu0  ;;  %v6297_v29 = vpop.f32.mrf.mxu1 }
 0x6c1   :  { %v6474_v20 = vmax.f32 %v11940_v59, 0.0  ;;  %v11946_v62 = vadd.f32 %v6408_v4, %v6296_v51  ;;  %v6298_v30 = vadd.f32 %v6297_v29, %v11823_v9 }
 0x6c2   :  { %v6410_v15 = vpop.f32.mrf.mxu0  ;;  %v6301_v42 = vpop.f32.mrf.mxu1 }
 0x6c3   :  { %v11952_v13 = vadd.f32 %v6410_v15, %v6298_v30  ;;  %v6302_v47 = vadd.f32 %v6301_v42, %v11826_v18 }
 0x6c4   :  { %v6414_v36 = vpop.f32.mrf.mxu0  ;;  %v6303_v50 = vpop.f32.mrf.mxu1 }
 0x6c5   :  { %v6478_v38 = vmax.f32 %v11952_v13, 0.0  ;;  %v11957_v51 = vadd.f32 %v6414_v36, %v6302_v47  ;;  %v6304_v9 = vadd.f32 %v6303_v50, %v11833_v54 }
 0x6c6   :  { %v6416_v33 = vpop.f32.mrf.mxu0  ;;  %v6305_v4 = vpop.f32.mrf.mxu1 }
 0x6c7   :  { %v6481_v57 = vmax.f32 %v11957_v51, 0.0  ;;  %v11962_v15 = vadd.f32 %v6416_v33, %v6304_v9  ;;  %v6306_v30 = vadd.f32 %v6305_v4, %v6193_v5 }
 0x6c8   :  { %v6418_v29 = vpop.f32.mrf.mxu0  ;;  %v6307_v18 = vpop.f32.mrf.mxu1 }
 0x6c9   :  { %v6482_v42 = vmax.f32 %v11962_v15, 0.0  ;;  %v11965_v2 = vadd.f32 %v6418_v29, %v6306_v30  ;;  %v6308_v39 = vadd.f32 %v6307_v18, %v6195_v3 }
 0x6ca   :  { %v6420_v21 = vpop.f32.mrf.mxu0 }
 0x6cb   :  { %v6485_v36 = vmax.f32 %v11965_v2, 0.0  ;;  %v11968_v47 = vadd.f32 %v6420_v21, %v6308_v39 }
 0x6cd   :  { %v6486_v54 = vmax.f32 %v11968_v47, 0.0 }
 0x6ce   :  { %9312 = dma.done.wait [#allocation10 + $0x4], 8192 }
 0x6cf   :  { %9313 = vsyncadd [#allocation10 + $0x4], 4294959104  ;;  %v13021_v32 = vmax.f32 %v11610_v0, 0.0  ;;  %v13022_v33 = vmax.f32 %v11618_v40, 0.0  ;;  %v13023_v50 = vmax.f32 %v11852_v55, 0.0  ;;  %v13092_v59 = vld [vmem:[#allocation104_spill] sm:$0xff] }
 0x6d0   :  { %v9022_v9 = vld [vmem:[#allocation7 + $0x74] ss:$8 sps:$4 sm:$0xff]   ;;  %v9026_v29 = vld [vmem:[#allocation7 + $0x70] ss:$8 sps:$4 sm:$0xff]   ;;  %v9028_v30 = vld [vmem:[#allocation7 + $0x64] ss:$8 sps:$4 sm:$0xff]  }
 0x6d1   :  { %v6562_v41 = vpack.c.bf16 %v13022_v33, %v13021_v32  ;;  %v6564_v5 = vpack.c.bf16 %v13023_v50, %v6426_v23  ;;  %v9024_v4 = vld [vmem:[#allocation7 + $0x174] ss:$8 sps:$4 sm:$0xff]   ;;  %6924 = vmatprep.subr.bf16.mxu1 %v9022_v9  ;;  %v9027_v3 = vld [vmem:[#allocation7 + $0x170] ss:$8 sps:$4 sm:$0xff]   ;;  %v9030_v0 = vld [vmem:[#allocation7 + $0x164] ss:$8 sps:$4 sm:$0xff]  }
 0x6d2   :  { %7037 = vmatprep.subr.bf16.mxu0 %v9024_v4  ;;  %6925 = vmatpush1.bf16.msra.mxu1 %v9026_v29  ;;  %v9032_v18 = vld [vmem:[#allocation7 + $0x60] ss:$8 sps:$4 sm:$0xff]   ;;  %v9034_v34 = vld [vmem:[#allocation7 + $0x54] ss:$8 sps:$4 sm:$0xff]   ;;  %v9038_v55 = vld [vmem:[#allocation7 + $0x50] ss:$8 sps:$4 sm:$0xff]  }
 0x6d3   :  { %6956 = vmatprep.mubr.bf16.mxu1 %v6562_v41  ;;  %7069 = vmatprep.mubr.bf16.mxu0 %v6564_v5  ;;  %v9033_v40 = vld [vmem:[#allocation7 + $0x160] ss:$8 sps:$4 sm:$0xff]   ;;  %v9036_v39 = vld [vmem:[#allocation7 + $0x154] ss:$8 sps:$4 sm:$0xff]   ;;  %v9039_v23 = vld [vmem:[#allocation7 + $0x150] ss:$8 sps:$4 sm:$0xff]  }
 0x6d4   :  { %7038 = vmatpush1.bf16.msra.mxu0 %v9027_v3  ;;  %6926 = vmatprep.subr.bf16.mxu1 %v9028_v30  ;;  %v9040_v21 = vld [vmem:[#allocation7 + $0x44] ss:$8 sps:$4 sm:$0xff]   ;;  %v9044_v33 = vld [vmem:[#allocation7 + $0x40] ss:$8 sps:$4 sm:$0xff]   ;;  %v9046_v50 = vld [vmem:[#allocation7 + $0x34] ss:$8 sps:$4 sm:$0xff]  }
 0x6d5   :  { %7039 = vmatprep.subr.bf16.mxu0 %v9030_v0  ;;  %v9042_v32 = vld [vmem:[#allocation7 + $0x144] ss:$8 sps:$4 sm:$0xff]   ;;  %v9045_v41 = vld [vmem:[#allocation7 + $0x140] ss:$8 sps:$4 sm:$0xff]   ;;  %v9048_v5 = vld [vmem:[#allocation7 + $0x134] ss:$8 sps:$4 sm:$0xff]  }
 0x6d6   :  { %6927 = vmatpush1.bf16.msra.mxu1 %v9032_v18  ;;  %v9050_v9 = vld [vmem:[#allocation7 + $0x30] ss:$8 sps:$4 sm:$0xff]   ;;  %v9052_v29 = vld [vmem:[#allocation7 + $0x24] ss:$8 sps:$4 sm:$0xff]   ;;  %v9056_v30 = vld [vmem:[#allocation7 + $0x20] ss:$8 sps:$4 sm:$0xff]  }
 0x6d7   :  { %6928 = vmatprep.subr.bf16.mxu1 %v9034_v34  ;;  %v9051_v4 = vld [vmem:[#allocation7 + $0x130] ss:$8 sps:$4 sm:$0xff]   ;;  %v9054_v3 = vld [vmem:[#allocation7 + $0x124] ss:$8 sps:$4 sm:$0xff]   ;;  %v9057_v0 = vld [vmem:[#allocation7 + $0x120] ss:$8 sps:$4 sm:$0xff]  }
 0x6d8   :  { %7040 = vmatpush1.bf16.msra.mxu0 %v9033_v40  ;;  %v9058_v18 = vld [vmem:[#allocation7 + $0x14] ss:$8 sps:$4 sm:$0xff]   ;;  %v9062_v34 = vld [vmem:[#allocation7 + $0x10] ss:$8 sps:$4 sm:$0xff]  }
 0x6d9   :  { %7041 = vmatprep.subr.bf16.mxu0 %v9036_v39  ;;  %v9060_v40 = vld [vmem:[#allocation7 + $0x114] ss:$8 sps:$4 sm:$0xff]   ;;  %v9063_v39 = vld [vmem:[#allocation7 + $0x110] ss:$8 sps:$4 sm:$0xff]  }
 0x6da   :  { %6929 = vmatpush1.bf16.msra.mxu1 %v9038_v55  ;;  %v9064_v55 = vld [vmem:[#allocation7 + $0x4] ss:$8 sps:$4 sm:$0xff]  }
 0x6db   :  { %6930 = vmatprep.subr.bf16.mxu1 %v9040_v21  ;;  %v9068_v21 = vld [vmem:[#allocation7] ss:$8 sps:$4 sm:$0xff]   ;;  %v6560_v15 = vld [vmem:[#allocation11 + $0x4] ss:$8 sm:$0x3] }
 0x6dc   :  { %7042 = vmatpush1.bf16.msra.mxu0 %v9039_v23  ;;  %v9066_v23 = vld [vmem:[#allocation7 + $0x104] ss:$8 sps:$4 sm:$0xff]  }
 0x6dd   :  { %7043 = vmatprep.subr.bf16.mxu0 %v9042_v32  ;;  %v9069_v32 = vld [vmem:[#allocation7 + $0x100] ss:$8 sps:$4 sm:$0xff]  }
 0x6de   :  { %6931 = vmatpush1.bf16.msra.mxu1 %v9044_v33  ;;  %v9070_v33 = vld [vmem:[#allocation7 + $0xf4] ss:$8 sps:$4 sm:$0xff]  }
 0x6df   :  { %6932 = vmatprep.subr.bf16.mxu1 %v9046_v50  ;;  %v9074_v50 = vld [vmem:[#allocation7 + $0xf0] ss:$8 sps:$4 sm:$0xff]  }
 0x6e0   :  { %7044 = vmatpush1.bf16.msra.mxu0 %v9045_v41  ;;  %v9072_v41 = vld [vmem:[#allocation7 + $0x1f4] ss:$8 sps:$4 sm:$0xff]  }
 0x6e1   :  { %7045 = vmatprep.subr.bf16.mxu0 %v9048_v5  ;;  %v9075_v5 = vld [vmem:[#allocation7 + $0x1f0] ss:$8 sps:$4 sm:$0xff]  }
 0x6e2   :  { %6933 = vmatpush1.bf16.msra.mxu1 %v9050_v9  ;;  %v9076_v9 = vld [vmem:[#allocation7 + $0xe4] ss:$8 sps:$4 sm:$0xff]  }
 0x6e3   :  { %6934 = vmatprep.subr.bf16.mxu1 %v9052_v29  ;;  %v9080_v29 = vld [vmem:[#allocation7 + $0xe0] ss:$8 sps:$4 sm:$0xff]  }
 0x6e4   :  { %7046 = vmatpush1.bf16.msra.mxu0 %v9051_v4  ;;  %v9078_v4 = vld [vmem:[#allocation7 + $0x1e4] ss:$8 sps:$4 sm:$0xff]  }
 0x6e5   :  { %7047 = vmatprep.subr.bf16.mxu0 %v9054_v3  ;;  %v9081_v3 = vld [vmem:[#allocation7 + $0x1e0] ss:$8 sps:$4 sm:$0xff]  }
 0x6e6   :  { %6935 = vmatpush1.bf16.msra.mxu1 %v9056_v30  ;;  %v9082_v30 = vld [vmem:[#allocation7 + $0xd4] ss:$8 sps:$4 sm:$0xff]  }
 0x6e7   :  { %6936 = vmatprep.subr.bf16.mxu1 %v9058_v18  ;;  %v9086_v18 = vld [vmem:[#allocation7 + $0xd0] ss:$8 sps:$4 sm:$0xff]  }
 0x6e8   :  { %7048 = vmatpush1.bf16.msra.mxu0 %v9057_v0  ;;  %v9084_v0 = vld [vmem:[#allocation7 + $0x1d4] ss:$8 sps:$4 sm:$0xff]  }
 0x6e9   :  { %7049 = vmatprep.subr.bf16.mxu0 %v9060_v40  ;;  %v9087_v40 = vld [vmem:[#allocation7 + $0x1d0] ss:$8 sps:$4 sm:$0xff]  }
 0x6ea   :  { %6937 = vmatpush1.bf16.msra.mxu1 %v9062_v34  ;;  %v9088_v34 = vld [vmem:[#allocation7 + $0xc4] ss:$8 sps:$4 sm:$0xff]  }
 0x6eb   :  { %6938 = vmatprep.subr.bf16.mxu1 %v9064_v55  ;;  %v9092_v55 = vld [vmem:[#allocation7 + $0xc0] ss:$8 sps:$4 sm:$0xff]  }
 0x6ec   :  { %7050 = vmatpush1.bf16.msra.mxu0 %v9063_v39  ;;  %v9090_v39 = vld [vmem:[#allocation7 + $0x1c4] ss:$8 sps:$4 sm:$0xff]  }
 0x6ed   :  { %7051 = vmatprep.subr.bf16.mxu0 %v9066_v23  ;;  %v9093_v23 = vld [vmem:[#allocation7 + $0x1c0] ss:$8 sps:$4 sm:$0xff]  }
 0x6ee   :  { %6939 = vmatpush1.bf16.msra.mxu1 %v9068_v21  ;;  %v9094_v21 = vld [vmem:[#allocation7 + $0xb4] ss:$8 sps:$4 sm:$0xff]  }
 0x6ef   :  { %6940 = vmatprep.subr.bf16.mxu1 %v9070_v33  ;;  %v9098_v33 = vld [vmem:[#allocation7 + $0xb0] ss:$8 sps:$4 sm:$0xff]  }
 0x6f0   :  { %7052 = vmatpush1.bf16.msra.mxu0 %v9069_v32  ;;  %v9096_v32 = vld [vmem:[#allocation7 + $0x1b4] ss:$8 sps:$4 sm:$0xff]  }
 0x6f1   :  { %7053 = vmatprep.subr.bf16.mxu0 %v9072_v41  ;;  %v9099_v41 = vld [vmem:[#allocation7 + $0x1b0] ss:$8 sps:$4 sm:$0xff]  }
 0x6f2   :  { %6941 = vmatpush2.bf16.msra.mxu1 %v9074_v50  ;;  %v9100_v50 = vld [vmem:[#allocation7 + $0xa4] ss:$8 sps:$4 sm:$0xff]  }
 0x6f3   :  { %6942 = vmatprep.subr.bf16.mxu1 %v9076_v9  ;;  %v9104_v9 = vld [vmem:[#allocation7 + $0xa0] ss:$8 sps:$4 sm:$0xff]  }
 0x6f4   :  { %7054 = vmatpush2.bf16.msra.mxu0 %v9075_v5  ;;  %v9102_v5 = vld [vmem:[#allocation7 + $0x1a4] ss:$8 sps:$4 sm:$0xff]  }
 0x6f5   :  { %7055 = vmatprep.subr.bf16.mxu0 %v9078_v4  ;;  %v9105_v4 = vld [vmem:[#allocation7 + $0x1a0] ss:$8 sps:$4 sm:$0xff]  }
 0x6f6   :  { %6943 = vmatpush2.bf16.msra.mxu1 %v9080_v29  ;;  %v9106_v29 = vld [vmem:[#allocation7 + $0x94] ss:$8 sps:$4 sm:$0xff]  }
 0x6f7   :  { %6944 = vmatprep.subr.bf16.mxu1 %v9082_v30  ;;  %v9110_v30 = vld [vmem:[#allocation7 + $0x90] ss:$8 sps:$4 sm:$0xff]  }
 0x6f8   :  { %7056 = vmatpush2.bf16.msra.mxu0 %v9081_v3  ;;  %v9108_v3 = vld [vmem:[#allocation7 + $0x194] ss:$8 sps:$4 sm:$0xff]  }
 0x6f9   :  { %7057 = vmatprep.subr.bf16.mxu0 %v9084_v0  ;;  %v9111_v0 = vld [vmem:[#allocation7 + $0x190] ss:$8 sps:$4 sm:$0xff]  }
 0x6fa   :  { %6945 = vmatpush2.bf16.msra.mxu1 %v9086_v18  ;;  %v9112_v18 = vld [vmem:[#allocation7 + $0x84] ss:$8 sps:$4 sm:$0xff]  }
 0x6fb   :  { %6946 = vmatprep.subr.bf16.mxu1 %v9088_v34  ;;  %v9116_v34 = vld [vmem:[#allocation7 + $0x80] ss:$8 sps:$4 sm:$0xff]  }
 0x6fc   :  { %7058 = vmatpush2.bf16.msra.mxu0 %v9087_v40  ;;  %v9114_v40 = vld [vmem:[#allocation7 + $0x184] ss:$8 sps:$4 sm:$0xff]  }
 0x6fd   :  { %7059 = vmatprep.subr.bf16.mxu0 %v9090_v39  ;;  %v9117_v39 = vld [vmem:[#allocation7 + $0x180] ss:$8 sps:$4 sm:$0xff]  }
 0x6fe   :  { %6947 = vmatpush2.bf16.msra.mxu1 %v9092_v55  ;;  %v13024_v55 = vmax.f32 %v11606_v46, 0.0 }
 0x6ff   :  { %6948 = vmatprep.subr.bf16.mxu1 %v9094_v21 }
 0x700   :  { %7060 = vmatpush2.bf16.msra.mxu0 %v9093_v23  ;;  %v13025_v23 = vmax.f32 %v11614_v7, 0.0  ;;  %v13032_v7 = vmax.f32 %v11622_v24, 0.0  ;;  %v13040_v24 = vmax.f32 %v11638_v26, 0.0  ;;  %v13050_v26 = vld [vmem:[#allocation48_spill] sm:$0xff] }
 0x701   :  { %7061 = vmatprep.subr.bf16.mxu0 %v9096_v32  ;;  %v13026_v32 = vmax.f32 %v11840_v28, 0.0 }
 0x702   :  { %6949 = vmatpush2.bf16.msra.mxu1 %v9098_v33  ;;  %v6561_v21 = vpack.c.bf16 %v13025_v23, %v13024_v55  ;;  %v13027_v33 = vmax.f32 %v11848_v14, 0.0  ;;  %v13033_v14 = vmax.f32 %v11630_v53, 0.0  ;;  %v13041_v53 = vmax.f32 %v11646_v61, 0.0 }
 0x703   :  { %6950 = vmatprep.subr.bf16.mxu1 %v9100_v50  ;;  %v13028_v50 = vmax.f32 %v11626_v49, 0.0  ;;  %v13035_v49 = vmax.f32 %v11864_v8, 0.0  ;;  %v13042_v8 = vmax.f32 %v11872_v37, 0.0  ;;  %v13048_v23 = vmax.f32 %v11892_v22, 0.0  ;;  %v13052_v37 = vld [vmem:[#allocation61_spill] sm:$0xff]  ;;  %v13058_v22 = vld [vmem:[#allocation96_spill] sm:$0xff] }
 0x704   :  { %7062 = vmatpush2.bf16.msra.mxu0 %v9099_v41  ;;  %v6563_v41 = vpack.c.bf16 %v13027_v33, %v13026_v32  ;;  %v6565_v28 = vpack.c.bf16 %v13033_v14, %v13032_v7  ;;  %v13051_v61 = vmax.f32 %v13050_v26, 0.0  ;;  %v13053_v33 = vmax.f32 %v13052_v37, 0.0 }
 0x705   :  { %7063 = vmatprep.subr.bf16.mxu0 %v9102_v5  ;;  %v13029_v5 = vmax.f32 %v11634_v44, 0.0  ;;  %v13061_v7 = vmax.f32 %v11916_v56, 0.0  ;;  %v13089_v37 = vmax.f32 %v11946_v62, 0.0 }
 0x706   :  { %6951 = vmatpush2.bf16.msra.mxu1 %v9104_v9 }
 0x707   :  { %6952 = vmatprep.subr.bf16.mxu1 %v9106_v29  ;;  %v6566_v9 = vpack.c.bf16 %v13029_v5, %v13028_v50  ;;  %v13031_v29 = vmax.f32 %v11868_v60, 0.0  ;;  %v13055_v50 = vmax.f32 %v11896_v1, 0.0 }
 0x708   :  { %7064 = vmatpush2.bf16.msra.mxu0 %v9105_v4  ;;  %v13030_v4 = vmax.f32 %v11860_v6, 0.0  ;;  %v13037_v6 = vmax.f32 %v11650_v52, 0.0 }
 0x709   :  { %7065 = vmatprep.subr.bf16.mxu0 %v9108_v3  ;;  %v13034_v3 = vmax.f32 %v11856_v27, 0.0  ;;  %v6569_v27 = vpack.c.bf16 %v13041_v53, %v13040_v24  ;;  %v13073_v24 = vmax.f32 %v11932_v45, 0.0 }
 0x70a   :  { %6953 = vmatpush2.bf16.msra.mxu1 %v9110_v30  ;;  %v6568_v46 = vpack.c.bf16 %v13031_v29, %v13030_v4  ;;  %v13036_v30 = vmax.f32 %v11642_v58, 0.0  ;;  %v13043_v58 = vmax.f32 %v11880_v63, 0.0  ;;  %v6573_v63 = vpack.c.bf16 %v13053_v33, %v13051_v61 }
 0x70b   :  { %6954 = vmatprep.subr.bf16.mxu1 %v9112_v18  ;;  %v6567_v44 = vpack.c.bf16 %v13035_v49, %v13034_v3  ;;  %v13039_v18 = vmax.f32 %v11884_v16, 0.0  ;;  %v13059_v29 = vmax.f32 %v13058_v22, 0.0  ;;  %v13088_v61 = vmax.f32 %v11936_v11, 0.0  ;;  %v13096_v11 = vld [vmem:[#allocation102_spill] sm:$0xff]  ;;  %v13098_v22 = vld [vmem:[#allocation40_spill] sm:$0xff] }
 0x70c   :  { %7066 = vmatpush2.bf16.msra.mxu0 %v9111_v0  ;;  %v6570_v60 = vpack.c.bf16 %v13037_v6, %v13036_v30  ;;  %v13038_v0 = vmax.f32 %v11876_v12, 0.0  ;;  %v6571_v52 = vpack.c.bf16 %v13043_v58, %v13042_v8  ;;  %v13046_v12 = vld [vmem:[#allocation39_spill] sm:$0xff]  ;;  %v13067_v30 = vmax.f32 %v11912_v31, 0.0 }
 0x70d   :  { %7067 = vmatprep.subr.bf16.mxu0 %v9114_v40  ;;  %v13047_v55 = vmax.f32 %v13046_v12, 0.0  ;;  %v13080_v12 = vld [vmem:[#allocation70_spill] sm:$0xff]  ;;  %v6587_v33 = vpack.c.bf16 %v13089_v37, %v13088_v61  ;;  %v12100_v47 = vrot.slane %v6560_v15, %v13098_v22 }
 0x70e   :  { %6955 = vmatpush2.bf16.msra.mxu1 %v9116_v34  ;;  %v6572_v40 = vpack.c.bf16 %v13039_v18, %v13038_v0  ;;  %v13044_v34 = vld [vmem:[#allocation60_spill] sm:$0xff] }
 0x710   :  { %7068 = vmatpush2.bf16.msra.mxu0 %v9117_v39  ;;  %v13045_v39 = vmax.f32 %v13044_v34, 0.0  ;;  %v13079_v34 = vmax.f32 %v11928_v17, 0.0 }
 0x711   :  { %6957 = vmatmul.mubr.bf16.vlgmr.msra.gmra.mxu1 %v6561_v21  ;;  %v13049_v21 = vmax.f32 %v11900_v43, 0.0 }
 0x712   :  { %6966 = vmatprep.mubr.bf16.mxu1 %v6566_v9  ;;  %v6574_v16 = vpack.c.bf16 %v13047_v55, %v13045_v39  ;;  %v13056_v9 = vld [vmem:[#allocation65_spill] sm:$0xff]  ;;  %v13081_v55 = vmax.f32 %v13080_v12, 0.0 }
 0x713   :  { %7070 = vmatmul.mubr.bf16.vlgmr.msra.gmra.mxu0 %v6563_v41  ;;  %v6576_v32 = vpack.c.bf16 %v13049_v21, %v13048_v23  ;;  %v13054_v41 = vmax.f32 %v11888_v35, 0.0  ;;  %v13057_v4 = vmax.f32 %v13056_v9, 0.0  ;;  %v13064_v35 = vld [vmem:[#allocation66_spill] sm:$0xff]  ;;  %v6588_v23 = vpack.c.bf16 %v6478_v38, %v6474_v20  ;;  %v13084_v21 = vld [vmem:[#allocation68_spill] sm:$0xff]  ;;  %v13094_v38 = vld [vmem:[#allocation73_spill] sm:$0xff] }
 0x714   :  { %7079 = vmatprep.mubr.bf16.mxu0 %v6568_v46  ;;  %v13060_v46 = vmax.f32 %v11908_v25, 0.0  ;;  %v13065_v49 = vmax.f32 %v13064_v35, 0.0  ;;  %v13070_v25 = vld [vmem:[#allocation100_spill] sm:$0xff]  ;;  %v6592_v20 = vpack.c.bf16 %v6486_v54, %v6482_v42  ;;  %v13097_v9 = vmax.f32 %v13096_v11, 0.0  ;;  %v13099_v42 = vld [vmem:[#allocation41_spill] sm:$0xff] }
 0x715   :  { %v6575_v5 = vpack.c.bf16 %v13055_v50, %v13054_v41  ;;  %v6578_v43 = vpack.c.bf16 %v13059_v29, %v13057_v4  ;;  %v13071_v18 = vmax.f32 %v13070_v25, 0.0  ;;  %v13093_v50 = vmax.f32 %v13092_v59, 0.0 }
 0x716   :  { %v6580_v14 = vpack.c.bf16 %v13061_v7, %v13060_v46  ;;  %v6591_v4 = vpack.c.bf16 %v6485_v36, %v6481_v57  ;;  %v12103_v54 = vrot.slane %v6560_v15, %v13099_v42 }
 0x719   :  { %6967 = vmatmul.mubr.bf16.gmra.mxu1 %v6565_v28  ;;  %v13062_v28 = vld [vmem:[#allocation67_spill] sm:$0xff] }
 0x71a   :  { %6976 = vmatprep.mubr.bf16.mxu1 %v6570_v60  ;;  %v13063_v3 = vmax.f32 %v13062_v28, 0.0  ;;  %v13068_v60 = vld [vmem:[#allocation71_spill] sm:$0xff] }
 0x71b   :  { %7080 = vmatmul.mubr.bf16.gmra.mxu0 %v6567_v44  ;;  %v13066_v44 = vmax.f32 %v11904_v10, 0.0  ;;  %v13069_v0 = vmax.f32 %v13068_v60, 0.0  ;;  %v13076_v10 = vld [vmem:[#allocation98_spill] sm:$0xff] }
 0x71c   :  { %7089 = vmatprep.mubr.bf16.mxu0 %v6572_v40  ;;  %v6577_v1 = vpack.c.bf16 %v13065_v49, %v13063_v3  ;;  %v13072_v40 = vmax.f32 %v11924_v48, 0.0  ;;  %v13077_v58 = vmax.f32 %v13076_v10, 0.0  ;;  %v13082_v48 = vld [vmem:[#allocation99_spill] sm:$0xff] }
 0x71d   :  { %v6579_v6 = vpack.c.bf16 %v13067_v30, %v13066_v44  ;;  %v6582_v56 = vpack.c.bf16 %v13071_v18, %v13069_v0 }
 0x71e   :  { %v6584_v53 = vpack.c.bf16 %v13073_v24, %v13072_v40 }
 0x721   :  { %6977 = vmatmul.mubr.bf16.gmra.mxu1 %v6569_v27  ;;  %v13074_v27 = vld [vmem:[#allocation69_spill] sm:$0xff] }
 0x722   :  { %6986 = vmatprep.mubr.bf16.mxu1 %v6574_v16  ;;  %v13075_v8 = vmax.f32 %v13074_v27, 0.0  ;;  %v13083_v16 = vmax.f32 %v13082_v48, 0.0 }
 0x723   :  { %7090 = vmatmul.mubr.bf16.gmra.mxu0 %v6571_v52  ;;  %v13078_v52 = vmax.f32 %v11920_v19, 0.0  ;;  %v13086_v19 = vld [vmem:[#allocation97_spill] sm:$0xff] }
 0x724   :  { %7099 = vmatprep.mubr.bf16.mxu0 %v6576_v32  ;;  %v6581_v31 = vpack.c.bf16 %v13077_v58, %v13075_v8  ;;  %v6586_v45 = vpack.c.bf16 %v13083_v16, %v13081_v55  ;;  %v13085_v32 = vmax.f32 %v13084_v21, 0.0  ;;  %v13087_v26 = vmax.f32 %v13086_v19, 0.0 }
 0x725   :  { %v6583_v39 = vpack.c.bf16 %v13079_v34, %v13078_v52 }
 0x726   :  { %v6585_v17 = vpack.c.bf16 %v13087_v26, %v13085_v32 }
 0x729   :  { %6987 = vmatmul.mubr.bf16.gmra.mxu1 %v6573_v63  ;;  %v13090_v63 = vld [vmem:[#allocation75_spill] sm:$0xff] }
 0x72a   :  { %6996 = vmatprep.mubr.bf16.mxu1 %v6578_v43  ;;  %v13091_v41 = vmax.f32 %v13090_v63, 0.0 }
 0x72b   :  { %7100 = vmatmul.mubr.bf16.gmra.mxu0 %v6575_v5  ;;  %v13095_v5 = vmax.f32 %v13094_v38, 0.0 }
 0x72c   :  { %7109 = vmatprep.mubr.bf16.mxu0 %v6580_v14  ;;  %v6590_v13 = vpack.c.bf16 %v13093_v50, %v13091_v41 }
 0x72d   :  { %v6589_v62 = vpack.c.bf16 %v13097_v9, %v13095_v5 }
 0x731   :  { %6997 = vmatmul.mubr.bf16.gmra.mxu1 %v6577_v1 }
 0x732   :  { %7006 = vmatprep.mubr.bf16.mxu1 %v6582_v56 }
 0x733   :  { %7110 = vmatmul.mubr.bf16.gmra.mxu0 %v6579_v6 }
 0x734   :  { %7119 = vmatprep.mubr.bf16.mxu0 %v6584_v53 }
 0x739   :  { %7007 = vmatmul.mubr.bf16.gmra.mxu1 %v6581_v31 }
 0x73a   :  { %7016 = vmatprep.mubr.bf16.mxu1 %v6586_v45 }
 0x73b   :  { %7120 = vmatmul.mubr.bf16.gmra.mxu0 %v6583_v39 }
 0x73c   :  { %7129 = vmatprep.mubr.bf16.mxu0 %v6588_v23 }
 0x741   :  { %7017 = vmatmul.mubr.bf16.gmra.mxu1 %v6585_v17 }
 0x742   :  { %7026 = vmatprep.mubr.bf16.mxu1 %v6590_v13 }
 0x743   :  { %7130 = vmatmul.mubr.bf16.gmra.mxu0 %v6587_v33 }
 0x744   :  { %7139 = vmatprep.mubr.bf16.mxu0 %v6592_v20 }
 0x749   :  { %7027 = vmatmul.mubr.bf16.gmra.mxu1 %v6589_v62 }
 0x74b   :  { %7140 = vmatmul.mubr.bf16.gmra.mxu0 %v6591_v4 }
 0x7d1   :  { %v6958_v29 = vpop.f32.mrf.mxu1 }
 0x7d2   :  { %v6959_v46 = vadd.f32 %v6958_v29, %v12100_v47 }
 0x7d3   :  { %v7071_v43 = vpop.f32.mrf.mxu0  ;;  %v6960_v7 = vpop.f32.mrf.mxu1 }
 0x7d4   :  { %v12106_v28 = vadd.f32 %v7071_v43, %v6959_v46  ;;  %v6961_v2 = vadd.f32 %v6960_v7, %v12103_v54 }
 0x7d5   :  { %v7073_v14 = vpop.f32.mrf.mxu0  ;;  %v6962_v51 = vpop.f32.mrf.mxu1 }
 0x7d6   :  { %v7150_v36 = vmax.f32 %v12106_v28, 0.0  ;;  %v12110_v3 = vadd.f32 %v7073_v14, %v6961_v2  ;;  %v6963_v35 = vadd.f32 %v6962_v51, %v12100_v47 }
 0x7d7   :  { %v7075_v57 = vpop.f32.mrf.mxu0  ;;  %v6964_v49 = vpop.f32.mrf.mxu1 }
 0x7d8   :  { %v7151_v44 = vmax.f32 %v12110_v3, 0.0  ;;  %v12114_v30 = vadd.f32 %v7075_v57, %v6963_v35  ;;  %v6965_v6 = vadd.f32 %v6964_v49, %v12103_v54 }
 0x7d9   :  { %v7077_v1 = vpop.f32.mrf.mxu0  ;;  %v6968_v60 = vpop.f32.mrf.mxu1 }
 0x7da   :  { %v7152_v25 = vmax.f32 %v12114_v30, 0.0  ;;  %v12118_v18 = vadd.f32 %v7077_v1, %v6965_v6  ;;  %v6969_v56 = vadd.f32 %v6968_v60, %v12100_v47 }
 0x7db   :  { %v7081_v0 = vpop.f32.mrf.mxu0  ;;  %v6970_v40 = vpop.f32.mrf.mxu1 }
 0x7dc   :  { %v7153_v53 = vmax.f32 %v12118_v18, 0.0  ;;  %v12122_v27 = vadd.f32 %v7081_v0, %v6969_v56  ;;  %v6971_v8 = vadd.f32 %v6970_v40, %v12103_v54 }
 0x7dd   :  { %v7083_v24 = vpop.f32.mrf.mxu0  ;;  %v6972_v10 = vpop.f32.mrf.mxu1 }
 0x7de   :  { %v7154_v31 = vmax.f32 %v12122_v27, 0.0  ;;  %v12126_v52 = vadd.f32 %v7083_v24, %v6971_v8  ;;  %v6973_v34 = vadd.f32 %v6972_v10, %v12100_v47 }
 0x7df   :  { %v7085_v58 = vpop.f32.mrf.mxu0  ;;  %v6974_v39 = vpop.f32.mrf.mxu1 }
 0x7e0   :  { %v7155_v55 = vmax.f32 %v12126_v52, 0.0  ;;  %v12130_v48 = vadd.f32 %v7085_v58, %v6973_v34  ;;  %v6975_v16 = vadd.f32 %v6974_v39, %v12103_v54 }
 0x7e1   :  { %v7087_v12 = vpop.f32.mrf.mxu0  ;;  %v6978_v45 = vpop.f32.mrf.mxu1 }
 0x7e2   :  { %v7156_v21 = vmax.f32 %v12130_v48, 0.0  ;;  %v12134_v32 = vadd.f32 %v7087_v12, %v6975_v16  ;;  %v6979_v19 = vadd.f32 %v6978_v45, %v12100_v47 }
 0x7e3   :  { %v7091_v23 = vpop.f32.mrf.mxu0  ;;  %v6980_v26 = vpop.f32.mrf.mxu1 }
 0x7e4   :  { %v7157_v61 = vmax.f32 %v12134_v32, 0.0  ;;  %v12138_v37 = vadd.f32 %v7091_v23, %v6979_v19  ;;  %v6981_v33 = vadd.f32 %v6980_v26, %v12103_v54 }
 0x7e5   :  { %v7093_v17 = vpop.f32.mrf.mxu0  ;;  %v6982_v63 = vpop.f32.mrf.mxu1 }
 0x7e6   :  { %v7158_v59 = vmax.f32 %v12138_v37, 0.0  ;;  %v12142_v50 = vadd.f32 %v7093_v17, %v6981_v33  ;;  %v6983_v13 = vadd.f32 %v6982_v63, %v12100_v47 }
 0x7e7   :  { %v7095_v41 = vpop.f32.mrf.mxu0  ;;  %v6984_v20 = vpop.f32.mrf.mxu1 }
 0x7e8   :  { %v7159_v5 = vmax.f32 %v12142_v50, 0.0  ;;  %v12146_v11 = vadd.f32 %v7095_v41, %v6983_v13  ;;  %v6985_v9 = vadd.f32 %v6984_v20, %v12103_v54 }
 0x7e9   :  { %v7097_v38 = vpop.f32.mrf.mxu0  ;;  %v6988_v62 = vpop.f32.mrf.mxu1 }
 0x7ea   :  { %v7160_v15 = vmax.f32 %v12146_v11, 0.0  ;;  %v12150_v22 = vadd.f32 %v7097_v38, %v6985_v9  ;;  %v6989_v42 = vadd.f32 %v6988_v62, %v12100_v47 }
 0x7eb   :  { %v7101_v4 = vpop.f32.mrf.mxu0  ;;  %v6990_v29 = vpop.f32.mrf.mxu1 }
 0x7ec   :  { %v7161_v46 = vmax.f32 %v12150_v22, 0.0  ;;  %v12154_v7 = vadd.f32 %v7101_v4, %v6989_v42  ;;  %v6991_v14 = vadd.f32 %v6990_v29, %v12103_v54 }
 0x7ed   :  { %v7103_v43 = vpop.f32.mrf.mxu0  ;;  %v6992_v2 = vpop.f32.mrf.mxu1 }
 0x7ee   :  { %v7162_v57 = vmax.f32 %v12154_v7, 0.0  ;;  %v12158_v35 = vadd.f32 %v7103_v43, %v6991_v14  ;;  %v6993_v49 = vadd.f32 %v6992_v2, %v12100_v47 }
 0x7ef   :  { %v7105_v51 = vpop.f32.mrf.mxu0  ;;  %v6994_v1 = vpop.f32.mrf.mxu1 }
 0x7f0   :  { %v7163_v60 = vmax.f32 %v12158_v35, 0.0  ;;  %v12162_v0 = vadd.f32 %v7105_v51, %v6993_v49  ;;  %v6995_v56 = vadd.f32 %v6994_v1, %v12103_v54 }
 0x7f1   :  { %v7107_v6 = vpop.f32.mrf.mxu0  ;;  %v6998_v40 = vpop.f32.mrf.mxu1 }
 0x7f2   :  { %v7164_v8 = vmax.f32 %v12162_v0, 0.0  ;;  %v12166_v10 = vadd.f32 %v7107_v6, %v6995_v56  ;;  %v6999_v58 = vadd.f32 %v6998_v40, %v12100_v47 }
 0x7f3   :  { %v7111_v24 = vpop.f32.mrf.mxu0  ;;  %v7000_v34 = vpop.f32.mrf.mxu1 }
 0x7f4   :  { %v7165_v12 = vmax.f32 %v12166_v10, 0.0  ;;  %v12170_v16 = vadd.f32 %v7111_v24, %v6999_v58  ;;  %v7001_v45 = vadd.f32 %v7000_v34, %v12103_v54 }
 0x7f5   :  { %v7113_v39 = vpop.f32.mrf.mxu0  ;;  %v7002_v23 = vpop.f32.mrf.mxu1 }
 0x7f6   :  { %v12174_v17 = vadd.f32 %v7113_v39, %v7001_v45  ;;  %v7003_v33 = vadd.f32 %v7002_v23, %v12100_v47 }
 0x7f7   :  { %v7115_v19 = vpop.f32.mrf.mxu0  ;;  %v7004_v63 = vpop.f32.mrf.mxu1 }
 0x7f8   :  { %v7167_v13 = vmax.f32 %v12174_v17, 0.0  ;;  %v12178_v20 = vadd.f32 %v7115_v19, %v7003_v33  ;;  %v7005_v38 = vadd.f32 %v7004_v63, %v12103_v54 }
 0x7f9   :  { %v7117_v41 = vpop.f32.mrf.mxu0  ;;  %v7008_v9 = vpop.f32.mrf.mxu1 }
 0x7fa   :  { %v12182_v42 = vadd.f32 %v7117_v41, %v7005_v38  ;;  %v7009_v29 = vadd.f32 %v7008_v9, %v12100_v47 }
 0x7fb   :  { %v7121_v62 = vpop.f32.mrf.mxu0  ;;  %v7010_v43 = vpop.f32.mrf.mxu1 }
 0x7fc   :  { %v7169_v2 = vmax.f32 %v12182_v42, 0.0  ;;  %v12186_v51 = vadd.f32 %v7121_v62, %v7009_v29  ;;  %v7011_v49 = vadd.f32 %v7010_v43, %v12103_v54 }
 0x7fd   :  { %v7123_v14 = vpop.f32.mrf.mxu0  ;;  %v7012_v1 = vpop.f32.mrf.mxu1 }
 0x7fe   :  { %v12190_v40 = vadd.f32 %v7123_v14, %v7011_v49  ;;  %v7013_v24 = vadd.f32 %v7012_v1, %v12100_v47 }
 0x7ff   :  { %v7125_v6 = vpop.f32.mrf.mxu0  ;;  %v7014_v58 = vpop.f32.mrf.mxu1 }
 0x800   :  { %v12194_v45 = vadd.f32 %v7125_v6, %v7013_v24  ;;  %v7015_v23 = vadd.f32 %v7014_v58, %v12103_v54 }
 0x801   :  { %v7127_v34 = vpop.f32.mrf.mxu0  ;;  %v7018_v19 = vpop.f32.mrf.mxu1 }
 0x802   :  { %v12198_v41 = vadd.f32 %v7127_v34, %v7015_v23  ;;  %v7019_v38 = vadd.f32 %v7018_v19, %v12100_v47 }
 0x803   :  { %v7131_v33 = vpop.f32.mrf.mxu0  ;;  %v7020_v9 = vpop.f32.mrf.mxu1 }
 0x804   :  { %v12202_v43 = vadd.f32 %v7131_v33, %v7019_v38  ;;  %v7021_v14 = vadd.f32 %v7020_v9, %v12103_v54 }
 0x805   :  { %v7133_v62 = vpop.f32.mrf.mxu0  ;;  %v7022_v49 = vpop.f32.mrf.mxu1 }
 0x806   :  { %v12206_v24 = vadd.f32 %v7133_v62, %v7021_v14  ;;  %v7023_v58 = vadd.f32 %v7022_v49, %v12100_v47 }
 0x807   :  { %v7135_v1 = vpop.f32.mrf.mxu0  ;;  %v7024_v34 = vpop.f32.mrf.mxu1 }
 0x808   :  { %v12210_v63 = vadd.f32 %v7135_v1, %v7023_v58  ;;  %v7025_v56 = vadd.f32 %v7024_v34, %v12103_v54 }
 0x809   :  { %v7137_v23 = vpop.f32.mrf.mxu0  ;;  %v7028_v33 = vpop.f32.mrf.mxu1 }
 0x80a   :  { %v12214_v29 = vadd.f32 %v7137_v23, %v7025_v56  ;;  %v7029_v6 = vadd.f32 %v7028_v33, %v12100_v47 }
 0x80b   :  { %v7141_v38 = vpop.f32.mrf.mxu0  ;;  %v7030_v62 = vpop.f32.mrf.mxu1 }
 0x80c   :  { %v12218_v39 = vadd.f32 %v7141_v38, %v7029_v6  ;;  %v7031_v19 = vadd.f32 %v7030_v62, %v12103_v54 }
 0x80d   :  { %v7143_v14 = vpop.f32.mrf.mxu0  ;;  %v7032_v1 = vpop.f32.mrf.mxu1 }
 0x80e   :  { %v7178_v34 = vmax.f32 %v12218_v39, 0.0  ;;  %v12222_v4 = vadd.f32 %v7143_v14, %v7031_v19  ;;  %v7033_v9 = vadd.f32 %v7032_v1, %v12100_v47 }
 0x80f   :  { %v7145_v58 = vpop.f32.mrf.mxu0  ;;  %v7034_v56 = vpop.f32.mrf.mxu1 }
 0x810   :  { %v7179_v23 = vmax.f32 %v12222_v4, 0.0  ;;  %v12226_v33 = vadd.f32 %v7145_v58, %v7033_v9  ;;  %v7035_v26 = vadd.f32 %v7034_v56, %v12103_v54 }
 0x811   :  { %v7147_v49 = vpop.f32.mrf.mxu0 }
 0x812   :  { %v7180_v6 = vmax.f32 %v12226_v33, 0.0  ;;  %v12230_v38 = vadd.f32 %v7147_v49, %v7035_v26 }
 0x814   :  { %v7181_v62 = vmax.f32 %v12230_v38, 0.0 }
 0x815   :  { %9314 = dma.done.wait [#allocation10 + $0x5], 2048 }
 0x816   :  { %9315 = vsyncadd [#allocation10 + $0x5], 4294965248  ;;  %v7224_v47 = vpack.c.bf16 %v7153_v53, %v7151_v44  ;;  %v9118_v19 = vld [vmem:[#allocation8 + $0x78] sm:$0xff]   ;;  %v9120_v14 = vld [vmem:[#allocation8 + $0x70] sm:$0xff]   ;;  %v7228_v28 = vpack.c.bf16 %v7161_v46, %v7159_v5  ;;  %v7230_v30 = vpack.c.bf16 %v7165_v12, %v7163_v60  ;;  %v7232_v27 = vpack.c.bf16 %v7169_v2, %v7167_v13 }
 0x817   :  { %v9119_v9 = vld [vmem:[#allocation8 + $0x38] sm:$0xff]   ;;  %8418 = vmatprep.subr.bf16.mxu1 %v9118_v19  ;;  %v9121_v54 = vld [vmem:[#allocation8 + $0x30] sm:$0xff]   ;;  %v9122_v1 = vld [vmem:[#allocation8 + $0x68] sm:$0xff]   ;;  %v13101_v52 = vmax.f32 %v12178_v20, 0.0  ;;  %v13102_v48 = vmax.f32 %v12190_v40, 0.0  ;;  %v13105_v37 = vmax.f32 %v12194_v45, 0.0  ;;  %v7238_v7 = vpack.c.bf16 %v7181_v62, %v7179_v23 }
 0x818   :  { %7367 = vmatprep.mubr.bf16.mxu1 %v7224_v47  ;;  %8419 = vmatpush3.bf16.msra.mxu1 %v9119_v9  ;;  %v9123_v26 = vld [vmem:[#allocation8 + $0x28] sm:$0xff]   ;;  %v9124_v49 = vld [vmem:[#allocation8 + $0x60] sm:$0xff]   ;;  %v9126_v3 = vld [vmem:[#allocation8 + $0x58] sm:$0xff]   ;;  %v7223_v9 = vpack.c.bf16 %v7152_v25, %v7150_v36  ;;  %v7227_v36 = vpack.c.bf16 %v7160_v15, %v7158_v59  ;;  %v7229_v25 = vpack.c.bf16 %v7164_v8, %v7162_v57  ;;  %v13106_v50 = vmax.f32 %v12206_v24, 0.0 }
 0x819   :  { %8420 = vmatprep.subr.bf16.mxu1 %v9120_v14  ;;  %v9125_v58 = vld [vmem:[#allocation8 + $0x20] sm:$0xff]   ;;  %v9127_v18 = vld [vmem:[#allocation8 + $0x18] sm:$0xff]   ;;  %v9128_v44 = vld [vmem:[#allocation8 + $0x50] sm:$0xff]   ;;  %v7226_v14 = vpack.c.bf16 %v7157_v61, %v7155_v55  ;;  %v13104_v61 = vmax.f32 %v12186_v51, 0.0  ;;  %v13107_v5 = vmax.f32 %v12214_v29, 0.0  ;;  %v13108_v15 = vmax.f32 %v12202_v43, 0.0 }
 0x81a   :  { %v9129_v53 = vld [vmem:[#allocation8 + $0x10] sm:$0xff]   ;;  %v9130_v56 = vld [vmem:[#allocation8 + $0x48] sm:$0xff]   ;;  %v9132_v47 = vld [vmem:[#allocation8 + $0x40] sm:$0xff]   ;;  %v13109_v22 = vmax.f32 %v12210_v63, 0.0  ;;  %v7237_v57 = vpack.c.bf16 %v7180_v6, %v7178_v34 }
 0x81b   :  { %v9131_v38 = vld [vmem:[#allocation8 + $0x8] sm:$0xff]   ;;  %v9133_v19 = vld [vmem:[#allocation8] sm:$0xff]   ;;  %v7233_v59 = vpack.c.bf16 %v13105_v37, %v13104_v61  ;;  %v7236_v11 = vpack.c.bf16 %v13107_v5, %v13106_v50 }
 0x81c   :  { %8421 = vmatpush3.bf16.msra.mxu1 %v9121_v54  ;;  %v7225_v54 = vpack.c.bf16 %v7156_v21, %v7154_v31  ;;  %v13100_v31 = vmax.f32 %v12170_v16, 0.0  ;;  %v13103_v21 = vmax.f32 %v12198_v41, 0.0  ;;  %v7235_v46 = vpack.c.bf16 %v13109_v22, %v13108_v15  ;;  %v12295_v60 = vld [vmem:[#allocation11 + $0x5] ss:$0 sm:$0xff] }
 0x81d   :  { %8422 = vmatprep.subr.bf16.mxu1 %v9122_v1 }
 0x81e   :  { %v7231_v55 = vpack.c.bf16 %v13101_v52, %v13100_v31  ;;  %v7234_v32 = vpack.c.bf16 %v13103_v21, %v13102_v48 }
 0x820   :  { %8423 = vmatpush3.bf16.msra.mxu1 %v9123_v26 }
 0x821   :  { %8424 = vmatprep.subr.bf16.mxu1 %v9124_v49 }
 0x824   :  { %8425 = vmatpush3.bf16.msra.mxu1 %v9125_v58 }
 0x825   :  { %8426 = vmatprep.subr.bf16.mxu1 %v9126_v3 }
 0x828   :  { %8427 = vmatpush3.bf16.msra.mxu1 %v9127_v18 }
 0x829   :  { %8428 = vmatprep.subr.bf16.mxu1 %v9128_v44 }
 0x82c   :  { %8429 = vmatpush3.bf16.msra.mxu1 %v9129_v53 }
 0x82d   :  { %8430 = vmatprep.subr.bf16.mxu1 %v9130_v56 }
 0x830   :  { %8431 = vmatpush3.bf16.msra.mxu1 %v9131_v38 }
 0x831   :  { %8432 = vmatprep.subr.bf16.mxu1 %v9132_v47 }
 0x834   :  { %8433 = vmatpush3.bf16.msra.mxu1 %v9133_v19 }
 0x837   :  { %7368 = vmatmul.mubr.bf16.vlgmr.msra.gmra.mxu1 %v7223_v9 }
 0x838   :  { %7375 = vmatprep.mubr.bf16.mxu1 %v7226_v14 }
 0x83f   :  { %7376 = vmatmul.mubr.bf16.gmra.mxu1 %v7225_v54 }
 0x840   :  { %7383 = vmatprep.mubr.bf16.mxu1 %v7228_v28 }
 0x847   :  { %7384 = vmatmul.mubr.bf16.gmra.mxu1 %v7227_v36 }
 0x848   :  { %7391 = vmatprep.mubr.bf16.mxu1 %v7230_v30 }
 0x84f   :  { %7392 = vmatmul.mubr.bf16.gmra.mxu1 %v7229_v25 }
 0x850   :  { %7399 = vmatprep.mubr.bf16.mxu1 %v7232_v27 }
 0x857   :  { %7400 = vmatmul.mubr.bf16.gmra.mxu1 %v7231_v55 }
 0x858   :  { %7407 = vmatprep.mubr.bf16.mxu1 %v7234_v32 }
 0x85f   :  { %7408 = vmatmul.mubr.bf16.gmra.mxu1 %v7233_v59 }
 0x860   :  { %7415 = vmatprep.mubr.bf16.mxu1 %v7236_v11 }
 0x867   :  { %7416 = vmatmul.mubr.bf16.gmra.mxu1 %v7235_v46 }
 0x868   :  { %7423 = vmatprep.mubr.bf16.mxu1 %v7238_v7 }
 0x86f   :  { %7424 = vmatmul.mubr.bf16.gmra.mxu1 %v7237_v57 }
 0x8f7   :  { %v8434_v35 = vpop.f32.mrf.mxu1 }
 0x8f9   :  { %v8435_v0 = vpop.f32.mrf.mxu1 }
 0x8fa   :  { %v8436_v8 = vadd.f32 %v8435_v0, %v8434_v35 }
 0x8fb   :  { %v8437_v10 = vpop.f32.mrf.mxu1 }
 0x8fc   :  { %v12298_v12 = vadd.f32 %v8436_v8, %v12295_v60 }
 0x8fd   :  { %v8438_v16 = vpop.f32.mrf.mxu1 }
 0x8fe   :  { %v7432_v17 = vmax.f32 %v12298_v12, 0.0  ;;  %v8439_v13 = vadd.f32 %v8438_v16, %v8437_v10 }
 0x8ff   :  { %v8440_v20 = vpop.f32.mrf.mxu1 }
 0x900   :  { %v12302_v4 = vadd.f32 %v8439_v13, %v12295_v60 }
 0x901   :  { %v8441_v42 = vpop.f32.mrf.mxu1 }
 0x902   :  { %v7433_v2 = vmax.f32 %v12302_v4, 0.0  ;;  %v8442_v51 = vadd.f32 %v8441_v42, %v8440_v20 }
 0x903   :  { %v8443_v40 = vpop.f32.mrf.mxu1 }
 0x904   :  { %v12306_v39 = vadd.f32 %v8442_v51, %v12295_v60 }
 0x905   :  { %v8444_v45 = vpop.f32.mrf.mxu1 }
 0x906   :  { %v7434_v63 = vmax.f32 %v12306_v39, 0.0  ;;  %v8445_v41 = vadd.f32 %v8444_v45, %v8443_v40 }
 0x907   :  { %v8446_v29 = vpop.f32.mrf.mxu1 }
 0x908   :  { %v12310_v43 = vadd.f32 %v8445_v41, %v12295_v60 }
 0x909   :  { %v8447_v24 = vpop.f32.mrf.mxu1 }
 0x90a   :  { %v7435_v34 = vmax.f32 %v12310_v43, 0.0  ;;  %v8448_v23 = vadd.f32 %v8447_v24, %v8446_v29 }
 0x90b   :  { %v8449_v33 = vpop.f32.mrf.mxu1 }
 0x90c   :  { %v12314_v6 = vadd.f32 %v8448_v23, %v12295_v60 }
 0x90d   :  { %v8450_v62 = vpop.f32.mrf.mxu1 }
 0x90e   :  { %v7436_v1 = vmax.f32 %v12314_v6, 0.0  ;;  %v8451_v26 = vadd.f32 %v8450_v62, %v8449_v33 }
 0x90f   :  { %v8452_v49 = vpop.f32.mrf.mxu1 }
 0x910   :  { %v12318_v58 = vadd.f32 %v8451_v26, %v12295_v60 }
 0x911   :  { %v8453_v3 = vpop.f32.mrf.mxu1 }
 0x912   :  { %v7437_v18 = vmax.f32 %v12318_v58, 0.0  ;;  %v8454_v44 = vadd.f32 %v8453_v3, %v8452_v49 }
 0x913   :  { %v8455_v53 = vpop.f32.mrf.mxu1 }
 0x914   :  { %v12322_v56 = vadd.f32 %v8454_v44, %v12295_v60 }
 0x915   :  { %v8456_v38 = vpop.f32.mrf.mxu1 }
 0x916   :  { %v7438_v47 = vmax.f32 %v12322_v56, 0.0  ;;  %v8457_v19 = vadd.f32 %v8456_v38, %v8455_v53 }
 0x917   :  { %v8458_v9 = vpop.f32.mrf.mxu1 }
 0x918   :  { %v12326_v14 = vadd.f32 %v8457_v19, %v12295_v60 }
 0x919   :  { %v8459_v54 = vpop.f32.mrf.mxu1 }
 0x91a   :  { %v7439_v28 = vmax.f32 %v12326_v14, 0.0  ;;  %v8460_v36 = vadd.f32 %v8459_v54, %v8458_v9 }
 0x91b   :  { %v8461_v30 = vpop.f32.mrf.mxu1 }
 0x91c   :  { %v12330_v25 = vadd.f32 %v8460_v36, %v12295_v60 }
 0x91d   :  { %v8462_v27 = vpop.f32.mrf.mxu1 }
 0x91e   :  { %v7440_v31 = vmax.f32 %v12330_v25, 0.0  ;;  %v8463_v52 = vadd.f32 %v8462_v27, %v8461_v30 }
 0x91f   :  { %v8464_v55 = vpop.f32.mrf.mxu1 }
 0x920   :  { %v12334_v48 = vadd.f32 %v8463_v52, %v12295_v60 }
 0x921   :  { %v8465_v21 = vpop.f32.mrf.mxu1 }
 0x922   :  { %v7441_v32 = vmax.f32 %v12334_v48, 0.0  ;;  %v8466_v61 = vadd.f32 %v8465_v21, %v8464_v55 }
 0x923   :  { %v8467_v37 = vpop.f32.mrf.mxu1 }
 0x924   :  { %v12338_v59 = vadd.f32 %v8466_v61, %v12295_v60 }
 0x925   :  { %v8468_v50 = vpop.f32.mrf.mxu1 }
 0x926   :  { %v7442_v5 = vmax.f32 %v12338_v59, 0.0  ;;  %v8469_v11 = vadd.f32 %v8468_v50, %v8467_v37 }
 0x927   :  { %v8470_v15 = vpop.f32.mrf.mxu1 }
 0x928   :  { %v7413_v22 = vadd.f32 %v8469_v11, %v12295_v60 }
 0x929   :  { %v8471_v46 = vpop.f32.mrf.mxu1 }
 0x92a   :  { %v7443_v7 = vmax.f32 %v7413_v22, 0.0  ;;  %v8472_v57 = vadd.f32 %v8471_v46, %v8470_v15 }
 0x92b   :  { %v8473_v35 = vpop.f32.mrf.mxu1 }
 0x92c   :  { %v7418_v0 = vadd.f32 %v8472_v57, %v12295_v60 }
 0x92d   :  { %v8474_v8 = vpop.f32.mrf.mxu1 }
 0x92e   :  { %v7444_v10 = vmax.f32 %v7418_v0, 0.0  ;;  %v8475_v16 = vadd.f32 %v8474_v8, %v8473_v35 }
 0x92f   :  { %v8476_v13 = vpop.f32.mrf.mxu1 }
 0x930   :  { %v7421_v20 = vadd.f32 %v8475_v16, %v12295_v60 }
 0x931   :  { %v8477_v42 = vpop.f32.mrf.mxu1 }
 0x932   :  { %v7445_v51 = vmax.f32 %v7421_v20, 0.0  ;;  %v8478_v40 = vadd.f32 %v8477_v42, %v8476_v13 }
 0x933   :  { %v8479_v45 = vpop.f32.mrf.mxu1 }
 0x934   :  { %v7426_v41 = vadd.f32 %v8478_v40, %v12295_v60 }
 0x935   :  { %v8480_v29 = vpop.f32.mrf.mxu1 }
 0x936   :  { %v7446_v24 = vmax.f32 %v7426_v41, 0.0  ;;  %v8481_v23 = vadd.f32 %v8480_v29, %v8479_v45 }
 0x938   :  { %v7429_v33 = vadd.f32 %v8481_v23, %v12295_v60 }
 0x93a   :  { %v7447_v62 = vmax.f32 %v7429_v33, 0.0 }
 0x93b   :  { %9316 = dma.done.wait [#allocation10 + $0x6], 1024 }
 0x93c   :  { %9317 = vsyncadd [#allocation10 + $0x6], 4294966272  ;;  %v7473_v26 = vpack.c.bf16 %v7433_v2, %v7432_v17  ;;  %v9134_v49 = vld [vmem:[#allocation9 + $0x38] sm:$0xff]   ;;  %v9135_v3 = vld [vmem:[#allocation9 + $0x30] sm:$0xff]   ;;  %v7474_v4 = vpack.c.bf16 %v7435_v34, %v7434_v63  ;;  %v7475_v2 = vpack.c.bf16 %v7437_v18, %v7436_v1  ;;  %v7476_v19 = vpack.c.bf16 %v7439_v28, %v7438_v47  ;;  %s9329_s7 = smov [#allocation14]  }
 0x93d   :  { %8498 = vmatprep.subr.bf16.mxu0 %v9134_v49  ;;  %v9136_v44 = vld [vmem:[#allocation9 + $0x28] sm:$0xff]   ;;  %v9137_v53 = vld [vmem:[#allocation9 + $0x20] sm:$0xff]   ;;  %v9138_v60 = vld [vmem:[#allocation9 + $0x18] sm:$0xff]   ;;  %v7477_v9 = vpack.c.bf16 %v7441_v32, %v7440_v31  ;;  %v7478_v39 = vpack.c.bf16 %v7443_v7, %v7442_v5  ;;  %v7479_v63 = vpack.c.bf16 %v7445_v51, %v7444_v10  ;;  %v7480_v43 = vpack.c.bf16 %v7447_v62, %v7446_v24  ;;  %s7663_s8 = sshll.u32 %s9329_s7, 4  ;;  %s7664_s8 = int_to_ptr.vmem [resolvable:$true] %s7663_s8 }
 0x93e   :  { %8514 = vmatprep.mubr.bf16.mxu0 %v7473_v26  ;;  %8499 = vmatpush3.bf16.msra.mxu0 %v9134_v49  ;;  %v9139_v38 = vld [vmem:[#allocation9 + $0x10] sm:$0xff]   ;;  %v9140_v12 = vld [vmem:[#allocation9 + $0x8] sm:$0xff]   ;;  %v9141_v17 = vld [vmem:[#allocation9] sm:$0xff]   ;;  %s9282_s12 = scalar_lea.vmem %s7664_s8, 2048  ;;  %p9287_p8 = scmp.lt.s32.totalorder %s7664_s8, %s7664_s8 }
 0x93f   :  { %8500 = vmatprep.subr.bf16.mxu0 %v9135_v3  ;;  %v12364_v34 = vld [vmem:[#allocation11 + $0x6] ss:$0 sm:$0xff]  ;;  %p9283_p7 = scmp.ne.s32.totalorder %s7664_s8, %s9282_s12  ;;  %p9288_p9 = scmp.lt.s32.totalorder %s9282_s12, %s9282_s12 }
 0x941   :  { %p9289_p10 = por %p9288_p9, %p9287_p8 }
 0x942   :  { %8501 = vmatpush3.bf16.msra.mxu0 %v9135_v3 }
 0x943   :  { %8502 = vmatprep.subr.bf16.mxu0 %v9136_v44  ;;  %p9290_p11 = pnand %p9289_p10, %p9283_p7 }
 0x946   :  { %8503 = vmatpush3.bf16.msra.mxu0 %v9136_v44 }
 0x947   :  { %8504 = vmatprep.subr.bf16.mxu0 %v9137_v53 }
 0x94a   :  { %8505 = vmatpush3.bf16.msra.mxu0 %v9137_v53 }
 0x94b   :  { %8506 = vmatprep.subr.bf16.mxu0 %v9138_v60 }
 0x94e   :  { %8507 = vmatpush3.bf16.msra.mxu0 %v9138_v60 }
 0x94f   :  { %8508 = vmatprep.subr.bf16.mxu0 %v9139_v38 }
 0x952   :  { %8509 = vmatpush3.bf16.msra.mxu0 %v9139_v38 }
 0x953   :  { %8510 = vmatprep.subr.bf16.mxu0 %v9140_v12 }
 0x956   :  { %8511 = vmatpush3.bf16.msra.mxu0 %v9140_v12 }
 0x957   :  { %8512 = vmatprep.subr.bf16.mxu0 %v9141_v17 }
 0x95a   :  { %8513 = vmatpush3.bf16.msra.mxu0 %v9141_v17 }
 0x95d   :  { %8515 = vmatmul.mubr.bf16.vlgmr.msra.gmra.mxu0 %v7474_v4 }
 0x95e   :  { %8518 = vmatprep.mubr.bf16.mxu0 %v7475_v2 }
 0x965   :  { %8519 = vmatmul.mubr.bf16.gmra.mxu0 %v7476_v19 }
 0x966   :  { %8522 = vmatprep.mubr.bf16.mxu0 %v7477_v9 }
 0x96d   :  { %8523 = vmatmul.mubr.bf16.gmra.mxu0 %v7478_v39 }
 0x96e   :  { %8526 = vmatprep.mubr.bf16.mxu0 %v7479_v63 }
 0x975   :  { %8527 = vmatmul.mubr.bf16.gmra.mxu0 %v7480_v43 }
 0xa1d   :  { %v8516_v6 = vpop.f32.mrf.mxu0 }
 0xa1e   :  { %v7572_v1 = vadd.f32 %v8516_v6, %v12364_v34 }
 0xa1f   :  { %v7563_v58 = vpop.f32.mrf.mxu0 }
 0xa20   :  { %v7628_v18 = vmax.f32 %v7572_v1, 0.0  ;;  %v7564_v56 = vadd.f32 %v7563_v58, %v12364_v34 }
 0xa21   :  { %v8517_v47 = vpop.f32.mrf.mxu0 }
 0xa22   :  { %7644 = vst [vmem:[#allocation14 + $0x10] sm:$0xff] %v7628_v18  ;;  %v7626_v14 = vmax.f32 %v7564_v56, 0.0  ;;  %v7575_v54 = vadd.f32 %v8517_v47, %v12364_v34 }
 0xa23   :  { %v7566_v28 = vpop.f32.mrf.mxu0 }
 0xa24   :  { %7642 = vst [vmem:[#allocation14] sm:$0xff] %v7626_v14  ;;  %v7629_v36 = vmax.f32 %v7575_v54, 0.0  ;;  %v7567_v30 = vadd.f32 %v7566_v28, %v12364_v34 }
 0xa25   :  { %v8520_v25 = vpop.f32.mrf.mxu0 }
 0xa26   :  { %7645 = vst [vmem:[#allocation14 + $0x18] sm:$0xff] %v7629_v36  ;;  %v7627_v27 = vmax.f32 %v7567_v30, 0.0  ;;  %v7588_v31 = vadd.f32 %v8520_v25, %v12364_v34 }
 0xa27   :  { %v7579_v52 = vpop.f32.mrf.mxu0 }
 0xa28   :  { %7643 = vst [vmem:[#allocation14 + $0x8] sm:$0xff] %v7627_v27  ;;  %v7632_v55 = vmax.f32 %v7588_v31, 0.0  ;;  %v7580_v48 = vadd.f32 %v7579_v52, %v12364_v34 }
 0xa29   :  { %v8521_v21 = vpop.f32.mrf.mxu0 }
 0xa2a   :  { %7648 = vst [vmem:[#allocation14 + $0x30] sm:$0xff] %v7632_v55  ;;  %v7630_v32 = vmax.f32 %v7580_v48, 0.0  ;;  %v7591_v61 = vadd.f32 %v8521_v21, %v12364_v34 }
 0xa2b   :  { %v7582_v37 = vpop.f32.mrf.mxu0 }
 0xa2c   :  { %7646 = vst [vmem:[#allocation14 + $0x20] sm:$0xff] %v7630_v32  ;;  %v7633_v59 = vmax.f32 %v7591_v61, 0.0  ;;  %v7583_v50 = vadd.f32 %v7582_v37, %v12364_v34 }
 0xa2d   :  { %v8524_v5 = vpop.f32.mrf.mxu0 }
 0xa2e   :  { %7649 = vst [vmem:[#allocation14 + $0x38] sm:$0xff] %v7633_v59  ;;  %v7631_v11 = vmax.f32 %v7583_v50, 0.0  ;;  %v7604_v15 = vadd.f32 %v8524_v5, %v12364_v34 }
 0xa2f   :  { %v7595_v22 = vpop.f32.mrf.mxu0 }
 0xa30   :  { %7647 = vst [vmem:[#allocation14 + $0x28] sm:$0xff] %v7631_v11  ;;  %v7636_v46 = vmax.f32 %v7604_v15, 0.0  ;;  %v7596_v7 = vadd.f32 %v7595_v22, %v12364_v34 }
 0xa31   :  { %v8525_v57 = vpop.f32.mrf.mxu0 }
 0xa32   :  { %7652 = vst [vmem:[#allocation14 + $0x50] sm:$0xff] %v7636_v46  ;;  %v7634_v35 = vmax.f32 %v7596_v7, 0.0  ;;  %v7607_v0 = vadd.f32 %v8525_v57, %v12364_v34 }
 0xa33   :  { %v7598_v8 = vpop.f32.mrf.mxu0 }
 0xa34   :  { %7650 = vst [vmem:[#allocation14 + $0x40] sm:$0xff] %v7634_v35  ;;  %v7637_v10 = vmax.f32 %v7607_v0, 0.0  ;;  %v7599_v16 = vadd.f32 %v7598_v8, %v12364_v34 }
 0xa35   :  { %v8528_v13 = vpop.f32.mrf.mxu0 }
 0xa36   :  { %7653 = vst [vmem:[#allocation14 + $0x58] sm:$0xff] %v7637_v10  ;;  %v7635_v20 = vmax.f32 %v7599_v16, 0.0  ;;  %v7620_v42 = vadd.f32 %v8528_v13, %v12364_v34 }
 0xa37   :  { %v7611_v51 = vpop.f32.mrf.mxu0 }
 0xa38   :  { %7651 = vst [vmem:[#allocation14 + $0x48] sm:$0xff] %v7635_v20  ;;  %v7640_v40 = vmax.f32 %v7620_v42, 0.0  ;;  %v7612_v45 = vadd.f32 %v7611_v51, %v12364_v34 }
 0xa39   :  { %v8529_v41 = vpop.f32.mrf.mxu0 }
 0xa3a   :  { %7656 = vst [vmem:[#allocation14 + $0x70] sm:$0xff] %v7640_v40  ;;  %v7638_v29 = vmax.f32 %v7612_v45, 0.0  ;;  %v7623_v24 = vadd.f32 %v8529_v41, %v12364_v34 }
 0xa3b   :  { %v7614_v23 = vpop.f32.mrf.mxu0 }
 0xa3c   :  { %7654 = vst [vmem:[#allocation14 + $0x60] sm:$0xff] %v7638_v29  ;;  %v7641_v33 = vmax.f32 %v7623_v24, 0.0  ;;  %v7615_v62 = vadd.f32 %v7614_v23, %v12364_v34 }
 0xa3e   :  { %7657 = vst [vmem:[#allocation14 + $0x78] sm:$0xff] %v7641_v33  ;;  %v7639_v26 = vmax.f32 %v7615_v62, 0.0 }
 0xa40   :  { %7655 = vst [vmem:[#allocation14 + $0x68] sm:$0xff] %v7639_v26 }
 0xa41   :  { %9293 = shalt.err (!%p9290_p11)
}
 0xa42   :  { %s9330_s13 = smov 128   ;;  %s9331_s15 = smov 8  }
 0xa43   :  { %7669 = dma.vmem_to_hbm [thread:$0]  %s7664_s8, 2048, %s12394_s9, [#allocation13], %s9330_s13, %s9330_s13, %s9331_s15  }
 0xa44   :  { %9318 = dma.done.wait [#allocation13], 2048  }
 0xa45   :  { %9319 = vsyncadd [#allocation13], 4294965248 }
 0xa46   :  { %7673 = vsyncpa [#allocation12], 1 }
 0xa47   :  { %7674 = vsyncpa [#allocation13], 1 }
 0xa48   :  { %7675 = vsyncmov [#allocation10] }
 0xa4b   :  { %s7676_s18 = vpop.sfrf %7675 }
 0xa4c   :  { %p8411_p12 = scmp.ne.s32.totalorder %s7676_s18, 0 }
 0xa4e   :  { %7680 = shalt.err (%p8411_p12)  }
 0xa4f   :  { %7682 = vsyncmov [#allocation10 + $0x1] }
 0xa52   :  { %s7683_s19 = vpop.sfrf %7682 }
 0xa53   :  { %p8412_p13 = scmp.ne.s32.totalorder %s7683_s19, 0 }
 0xa55   :  { %7687 = shalt.err (%p8412_p13)  }
 0xa56   :  { %7689 = vsyncmov [#allocation10 + $0x2] }
 0xa59   :  { %s7690_s20 = vpop.sfrf %7689 }
 0xa5a   :  { %p8413_p0 = scmp.ne.s32.totalorder %s7690_s20, 0 }
 0xa5c   :  { %7694 = shalt.err (%p8413_p0)  }
 0xa5d   :  { %7696 = vsyncmov [#allocation10 + $0x3] }
 0xa60   :  { %s7697_s0 = vpop.sfrf %7696 }
 0xa61   :  { %p8414_p1 = scmp.ne.s32.totalorder %s7697_s0, 0 }
 0xa63   :  { %7701 = shalt.err (%p8414_p1)  }
 0xa64   :  { %7703 = vsyncmov [#allocation10 + $0x4] }
 0xa67   :  { %s7704_s9 = vpop.sfrf %7703 }
 0xa68   :  { %p8415_p2 = scmp.ne.s32.totalorder %s7704_s9, 0 }
 0xa6a   :  { %7708 = shalt.err (%p8415_p2)  }
 0xa6b   :  { %7710 = vsyncmov [#allocation10 + $0x5] }
 0xa6e   :  { %s7711_s21 = vpop.sfrf %7710 }
 0xa6f   :  { %p8416_p3 = scmp.ne.s32.totalorder %s7711_s21, 0 }
 0xa71   :  { %7715 = shalt.err (%p8416_p3)  }
 0xa72   :  { %7717 = vsyncmov [#allocation10 + $0x6] }
 0xa75   :  { %s7718_s22 = vpop.sfrf %7717 }
 0xa76   :  { %p8417_p4 = scmp.ne.s32.totalorder %s7718_s22, 0 }
 0xa78   :  { %7722 = shalt.err (%p8417_p4)  }

</bundles_post_ra>
